<compile_context>
chip_gen: v7x
topology: tpu7x:2x2x1
jax: 0.10.0
libtpu: 0.0.40
codegen_flags: <defaults>
</compile_context>

<pallas_src>
import functools

import jax
import jax.numpy as jnp
from jax.experimental import pallas as pl
from jax.experimental.pallas import tpu as pltpu

NH = 256          # nh in the module
NZ = 128          # opt.nz
DOMAIN_NUM = 4    # opt.domain_num
BN_EPS = 1e-5
VMEM_LIMIT = 32 * 1024 * 1024   # explicit budget; safe on v5e/v6e/v7x


def _round_up(x, m):
    return (x + m - 1) // m * m


# ----------------------------------------------------------------------------
# Pallas kernel: fused 3x3 stride-2 conv + folded BN + ReLU (one image / step)
# ----------------------------------------------------------------------------
def _conv3x3s2_kernel(wph, x_ref, w_ref, st_ref, o_ref, acc_ref):
    """x_ref: (1, 4, Hph*Wph, Cin) bf16   - 4 parity phases, spatially flattened
       w_ref: (9, Cin, N) bf16            - one (Cin,N) matrix per kernel tap
       st_ref: (2, N) f32                 - row0 = BN scale, row1 = BN shift (+bias)
       o_ref: (1, M, N) bf16, M = HO*Wph  (over-computed columns sliced off outside)
       acc_ref: (M, N) f32 VMEM scratch accumulator."""
    m = acc_ref.shape[0]
    tap = 0
    for di in range(3):
        a, p = di // 2, di % 2
        for dj in range(3):
            b, q = dj // 2, dj % 2
            off = a * wph + b                       # static shift into the phase slab
            lhs = x_ref[0, 2 * p + q, off:off + m, :]          # (M, Cin) bf16
            contrib = jnp.dot(lhs, w_ref[tap],
                              preferred_element_type=jnp.float32)
            if tap == 0:
                acc_ref[...] = contrib
            else:
                acc_ref[...] += contrib
            tap += 1
    scale = st_ref[0:1, :]
    shift = st_ref[1:2, :]
    out = jnp.maximum(acc_ref[...] * scale + shift, 0.0)        # f32 epilogue
    o_ref[0] = out.astype(o_ref.dtype)


def conv3x3_s2_bn_relu(x_nhwc, w_taps, scale_shift):
    """x_nhwc: (B,H,W,C) bf16; w_taps: (9,Cw,N) bf16 (Cw>=C, extra cin zero);
       scale_shift: (2,N) f32 -> (B, HO, WO, N) bf16, HO=ceil(H/2), WO=ceil(W/2)."""
    B, H, W, C = x_nhwc.shape
    Cw = w_taps.shape[1]
    N = w_taps.shape[-1]
    HO = (H + 2 - 3) // 2 + 1
    WO = (W + 2 - 3) // 2 + 1
    Hph = HO + 2                          # phase-plane rows (incl. over-compute room)
    Wph = _round_up(WO + 1, 8)            # sublane-aligned phase-plane width
    Hp, Wp = 2 * Hph, 2 * Wph             # padded input dims (PyTorch pad=1 top/left)
    M = HO * Wph                          # output rows per image (over-computed width)

    # single pad: spatial (1 top/left + slack bottom/right) and channel (C -> Cw)
    xp = jnp.pad(x_nhwc, ((0, 0), (1, Hp - H - 1), (1, Wp - W - 1), (0, Cw - C)))
    # space-to-depth into 4 parity phases, spatially flattened (1x data, no im2col)
    xph = xp.reshape(B, Hph, 2, Wph, 2, Cw).transpose(0, 2, 4, 1, 3, 5)
    xph = xph.reshape(B, 4, Hph * Wph, Cw)

    kernel = functools.partial(_conv3x3s2_kernel, Wph)
    out = pl.pallas_call(
        kernel,
        out_shape=jax.ShapeDtypeStruct((B, M, N), jnp.bfloat16),
        grid_spec=pltpu.PrefetchScalarGridSpec(
            num_scalar_prefetch=0,
            grid=(B,),
            in_specs=[
                pl.BlockSpec((1, 4, Hph * Wph, Cw), lambda b: (b, 0, 0, 0)),
                pl.BlockSpec((9, Cw, N), lambda b: (0, 0, 0)),    # resident weights
                pl.BlockSpec((2, N), lambda b: (0, 0)),           # resident scale/shift
            ],
            out_specs=pl.BlockSpec((1, M, N), lambda b: (b, 0, 0)),
            scratch_shapes=[pltpu.VMEM((M, N), jnp.float32)],
        ),
        compiler_params=pltpu.CompilerParams(
            dimension_semantics=("parallel",),       # shard batch across cores (v7x)
            vmem_limit_bytes=VMEM_LIMIT,
        ),
    )(xph, w_taps, scale_shift)
    # (B, HO*Wph, N) -> (B, HO, WO, N): drop the over-computed column(s)
    return out.reshape(B, HO, Wph, N)[:, :, :WO, :]


# ----------------------------------------------------------------------------
# Pallas kernel: fused tail  conv4(4x4) -> 1x1 conv -> 1x1 conv -> Linear
# ----------------------------------------------------------------------------
def _tail_kernel(x_ref, w4_ref, b4_ref, w1_ref, st1_ref, w2_ref, st2_ref,
                 wl_ref, bl_ref, z_ref, y_ref):
    x = x_ref[...]                                                   # (B, 4096) bf16
    z = jnp.dot(x, w4_ref[...], preferred_element_type=jnp.float32)
    z = jnp.maximum(z + b4_ref[...], 0.0)                            # conv4 + ReLU
    z_ref[...] = z                                                   # (B, NZ) f32
    h = jnp.dot(z.astype(jnp.bfloat16), w1_ref[...],
                preferred_element_type=jnp.float32)
    h = jnp.maximum(h * st1_ref[0:1, :] + st1_ref[1:2, :], 0.0)      # 1x1 conv+BN+ReLU
    h = jnp.dot(h.astype(jnp.bfloat16), w2_ref[...],
                preferred_element_type=jnp.float32)
    h = jnp.maximum(h * st2_ref[0:1, :] + st2_ref[1:2, :], 0.0)      # 1x1 conv+BN+ReLU
    y = jnp.dot(h.astype(jnp.bfloat16), wl_ref[...],
                preferred_element_type=jnp.float32)
    y_ref[...] = y + bl_ref[...]                                     # Linear (lane-dense 128)


def fused_tail(x_flat, prep):
    B = x_flat.shape[0]
    vmem = pl.BlockSpec(memory_space=pltpu.MemorySpace.VMEM)
    # TODO(synk): tile the M(=B) axis with a grid if batch grows very large.
    z, y_pad = pl.pallas_call(
        _tail_kernel,
        out_shape=(jax.ShapeDtypeStruct((B, NZ), jnp.float32),
                   jax.ShapeDtypeStruct((B, 128), jnp.float32)),
        in_specs=[vmem] * 9,
        out_specs=(vmem, vmem),
        compiler_params=pltpu.CompilerParams(vmem_limit_bytes=VMEM_LIMIT),
    )(x_flat, prep["w4"], prep["b4"], prep["wf1"], prep["stf1"],
      prep["wf2"], prep["stf2"], prep["wl"], prep["bl"])
    return z, y_pad


# ----------------------------------------------------------------------------
# Host-side parameter folding / layout
# ----------------------------------------------------------------------------
def _fold_bn_bias(bn, bias):
    gamma, beta, mean, var = bn
    scale = gamma * jax.lax.rsqrt(var + BN_EPS)
    shift = beta - mean * scale + bias * scale       # conv bias folded into shift
    return jnp.stack([scale, shift]).astype(jnp.float32)            # (2, C)


def _conv_w_taps(w):
    # (Cout, Cin, kh, kw) -> (kh*kw, Cin, Cout), matching in-kernel tap order
    cout, cin, kh, kw = w.shape
    return jnp.transpose(w, (2, 3, 1, 0)).reshape(kh * kw, cin, cout)


def prepare_params(p):
    prep = {}
    w1 = _conv_w_taps(p["c1_w"])                          # (9, 2, NH)
    prep["w1"] = jnp.pad(w1, ((0, 0), (0, 6), (0, 0))).astype(jnp.bfloat16)  # Cin 2->8
    prep["st1"] = _fold_bn_bias(p["bn1"], p["c1_b"])
    prep["w2"] = _conv_w_taps(p["c2_w"]).astype(jnp.bfloat16)
    prep["st2"] = _fold_bn_bias(p["bn2"], p["c2_b"])
    prep["w3"] = _conv_w_taps(p["c3_w"]).astype(jnp.bfloat16)
    prep["st3"] = _fold_bn_bias(p["bn3"], p["c3_b"])
    prep["w4"] = (jnp.transpose(p["c4_w"], (2, 3, 1, 0))
                  .reshape(4 * 4 * NH, NZ).astype(jnp.bfloat16))
    prep["b4"] = p["c4_b"].reshape(1, NZ).astype(jnp.float32)
    prep["wf1"] = (jnp.transpose(p["f1_w"], (2, 3, 1, 0))
                   .reshape(NZ, NH).astype(jnp.bfloat16))
    prep["stf1"] = _fold_bn_bias(p["fbn1"], p["f1_b"])
    prep["wf2"] = (jnp.transpose(p["f2_w"], (2, 3, 1, 0))
                   .reshape(NH, NH).astype(jnp.bfloat16))
    prep["stf2"] = _fold_bn_bias(p["fbn2"], p["f2_b"])
    wl = jnp.transpose(p["lin_w"])                        # (NH, 10)
    prep["wl"] = jnp.pad(wl, ((0, 0), (0, 128 - 10))).astype(jnp.bfloat16)   # lane-dense
    prep["bl"] = jnp.pad(p["lin_b"], (0, 128 - 10)).reshape(1, 128).astype(jnp.float32)
    return prep


# ----------------------------------------------------------------------------
# Deterministic parameter initialization (shapes from the module's __init__)
# ----------------------------------------------------------------------------
def init_params(key):
    counter = [0]

    def nk():
        counter[0] += 1
        return jax.random.fold_in(key, counter[0])

    def conv(cout, cin, kh, kw):
        w = jax.random.normal(nk(), (cout, cin, kh, kw), jnp.float32) * 0.05
        b = jax.random.normal(nk(), (cout,), jnp.float32) * 0.05
        return w, b

    def bn(c):
        gamma = 1.0 + 0.1 * jax.random.normal(nk(), (c,), jnp.float32)
        beta = 0.1 * jax.random.normal(nk(), (c,), jnp.float32)
        mean = 0.1 * jax.random.normal(nk(), (c,), jnp.float32)
        var = 1.0 + 0.1 * jnp.abs(jax.random.normal(nk(), (c,), jnp.float32))
        return gamma, beta, mean, var

    p = {}
    p["c1_w"], p["c1_b"] = conv(NH, 2, 3, 3)
    p["bn1"] = bn(NH)
    p["c2_w"], p["c2_b"] = conv(NH, NH, 3, 3)
    p["bn2"] = bn(NH)
    p["c3_w"], p["c3_b"] = conv(NH, NH, 3, 3)
    p["bn3"] = bn(NH)
    p["c4_w"], p["c4_b"] = conv(NZ, NH, 4, 4)
    p["f1_w"], p["f1_b"] = conv(NH, NZ, 1, 1)
    p["fbn1"] = bn(NH)
    p["f2_w"], p["f2_b"] = conv(NH, NH, 1, 1)
    p["fbn2"] = bn(NH)
    p["lin_w"] = jax.random.normal(nk(), (10, NH), jnp.float32) * 0.05
    p["lin_b"] = jax.random.normal(nk(), (10,), jnp.float32) * 0.05
    return p


# ----------------------------------------------------------------------------
# Forward pass
# ----------------------------------------------------------------------------
def encoder_stn_no_alpha(prep, x, domain_index):
    """x: (B,1,28,28) f32 NCHW, domain_index: (B,1) -> (y:(B,10), z:(B,NZ,1,1))."""
    B = x.shape[0]
    x_img = jnp.transpose(x, (0, 2, 3, 1))                          # (B,28,28,1) NHWC
    d = (domain_index.reshape(B, 1, 1, 1) / float(DOMAIN_NUM - 1)).astype(jnp.float32)
    d = jnp.broadcast_to(d, (B, 28, 28, 1))
    h = jnp.concatenate([x_img, d], axis=-1).astype(jnp.bfloat16)   # (B,28,28,2)

    h = conv3x3_s2_bn_relu(h, prep["w1"], prep["st1"])              # (B,14,14,NH)
    h = conv3x3_s2_bn_relu(h, prep["w2"], prep["st2"])              # (B, 7, 7,NH)
    h = conv3x3_s2_bn_relu(h, prep["w3"], prep["st3"])              # (B, 4, 4,NH)

    x_flat = h.reshape(B, 4 * 4 * NH)                               # (B,4096) bf16
    z_flat, y_pad = fused_tail(x_flat, prep)                        # (B,NZ) f32, (B,128) f32
    y = y_pad[:, :10]                                               # real logits
    z = z_flat.reshape(B, NZ, 1, 1)                                 # matches torch z (post-ReLU)
    return y, z


# ----------------------------------------------------------------------------
if __name__ == "__main__":
    key = jax.random.PRNGKey(0)
    pkey, xkey, dkey = jax.random.split(key, 3)

    params = init_params(pkey)
    prep = prepare_params(params)

    B = 2
    x = jax.random.normal(xkey, (B, 1, 28, 28), jnp.float32)
    domain_index = jax.random.randint(dkey, (B, 1), 0, DOMAIN_NUM).astype(jnp.float32)

    fwd = jax.jit(functools.partial(encoder_stn_no_alpha, prep))
    y, z = fwd(x, domain_index)
    jax.block_until_ready((y, z))

    assert y.shape == (B, 10), y.shape
    assert z.shape == (B, NZ, 1, 1), z.shape
    assert bool(jnp.all(jnp.isfinite(y))) and bool(jnp.all(jnp.isfinite(z)))
    print("KERNEL_OK")
</pallas_src>

<mosaic_0001>
module attributes {stable_mosaic.version = 11 : i64} {
  func.func @_conv3x3s2_kernel(%arg0: i32, %arg1: memref<1x4x256x8xbf16, #tpu.memory_space<vmem>>, %arg2: memref<9x8x256xbf16, #tpu.memory_space<vmem>>, %arg3: memref<2x256xf32, #tpu.memory_space<vmem>>, %arg4: memref<1x224x256xbf16, #tpu.memory_space<vmem>>, %arg5: memref<224x256xf32, #tpu.memory_space<vmem>>) attributes {dimension_semantics = [#tpu.dimension_semantics<parallel>], iteration_bounds = array<i64: 2>, scalar_prefetch = 0 : i64, scratch_operands = 1 : i64, tpu.core_type = #tpu.core_type<tc>, window_params = [{transform_indices = @transform_0, window_bounds = array<i64: 1, 4, 256, 8>}, {pipeline_mode = #tpu.pipeline_mode<synchronous>, transform_indices = @transform_1, window_bounds = array<i64: 9, 8, 256>}, {pipeline_mode = #tpu.pipeline_mode<synchronous>, transform_indices = @transform_2, window_bounds = array<i64: 2, 256>}, {transform_indices = @transform_3, window_bounds = array<i64: 1, 224, 256>}]} {
    %c0 = arith.constant 0 : index
    %c0_0 = arith.constant 0 : index
    %c0_1 = arith.constant 0 : index
    %c0_2 = arith.constant 0 : index
    %0 = vector.load %arg1[%c0, %c0_0, %c0_1, %c0_2] : memref<1x4x256x8xbf16, #tpu.memory_space<vmem>>, vector<1x1x224x8xbf16>
    %1 = vector.shape_cast %0 : vector<1x1x224x8xbf16> to vector<224x8xbf16>
    %c0_3 = arith.constant 0 : index
    %c0_4 = arith.constant 0 : index
    %c0_5 = arith.constant 0 : index
    %2 = vector.load %arg2[%c0_3, %c0_4, %c0_5] : memref<9x8x256xbf16, #tpu.memory_space<vmem>>, vector<1x8x256xbf16>
    %3 = vector.shape_cast %2 : vector<1x8x256xbf16> to vector<8x256xbf16>
    %cst = arith.constant dense<0.000000e+00> : vector<224x256xf32>
    %4 = tpu.matmul %1, %3, %cst {dimension_numbers = #tpu.dot_dimension_numbers<[1], [0], [0], [1], [0, 0, 1, 1], [], []>} : vector<224x8xbf16>, vector<8x256xbf16>, vector<224x256xf32> -> vector<224x256xf32>
    %c0_6 = arith.constant 0 : index
    %c0_7 = arith.constant 0 : index
    %5 = vector.load %arg5[%c0_6, %c0_7] : memref<224x256xf32, #tpu.memory_space<vmem>>, vector<224x256xf32>
    tpu.vector_store %arg5[%c0_6, %c0_7], %4 {strides = array<i32>} : memref<224x256xf32, #tpu.memory_space<vmem>>, vector<224x256xf32>,
    %c0_8 = arith.constant 0 : index
    %c1 = arith.constant 1 : index
    %c0_9 = arith.constant 0 : index
    %c0_10 = arith.constant 0 : index
    %6 = vector.load %arg1[%c0_8, %c1, %c0_9, %c0_10] : memref<1x4x256x8xbf16, #tpu.memory_space<vmem>>, vector<1x1x224x8xbf16>
    %7 = vector.shape_cast %6 : vector<1x1x224x8xbf16> to vector<224x8xbf16>
    %c1_11 = arith.constant 1 : index
    %c0_12 = arith.constant 0 : index
    %c0_13 = arith.constant 0 : index
    %8 = vector.load %arg2[%c1_11, %c0_12, %c0_13] : memref<9x8x256xbf16, #tpu.memory_space<vmem>>, vector<1x8x256xbf16>
    %9 = vector.shape_cast %8 : vector<1x8x256xbf16> to vector<8x256xbf16>
    %cst_14 = arith.constant dense<0.000000e+00> : vector<224x256xf32>
    %10 = tpu.matmul %7, %9, %cst_14 {dimension_numbers = #tpu.dot_dimension_numbers<[1], [0], [0], [1], [0, 0, 1, 1], [], []>} : vector<224x8xbf16>, vector<8x256xbf16>, vector<224x256xf32> -> vector<224x256xf32>
    %c0_15 = arith.constant 0 : index
    %c0_16 = arith.constant 0 : index
    %11 = vector.load %arg5[%c0_15, %c0_16] : memref<224x256xf32, #tpu.memory_space<vmem>>, vector<224x256xf32>
    %12 = arith.addf %11, %10 : vector<224x256xf32>
    %c0_17 = arith.constant 0 : index
    %c0_18 = arith.constant 0 : index
    %13 = vector.load %arg5[%c0_17, %c0_18] : memref<224x256xf32, #tpu.memory_space<vmem>>, vector<224x256xf32>
    tpu.vector_store %arg5[%c0_17, %c0_18], %12 {strides = array<i32>} : memref<224x256xf32, #tpu.memory_space<vmem>>, vector<224x256xf32>,
    %c0_19 = arith.constant 0 : index
    %c0_20 = arith.constant 0 : index
    %c1_21 = arith.constant 1 : index
    %c0_22 = arith.constant 0 : index
    %14 = vector.load %arg1[%c0_19, %c0_20, %c1_21, %c0_22] : memref<1x4x256x8xbf16, #tpu.memory_space<vmem>>, vector<1x1x224x8xbf16>
    %15 = vector.shape_cast %14 : vector<1x1x224x8xbf16> to vector<224x8xbf16>
    %c2 = arith.constant 2 : index
    %c0_23 = arith.constant 0 : index
    %c0_24 = arith.constant 0 : index
    %16 = vector.load %arg2[%c2, %c0_23, %c0_24] : memref<9x8x256xbf16, #tpu.memory_space<vmem>>, vector<1x8x256xbf16>
    %17 = vector.shape_cast %16 : vector<1x8x256xbf16> to vector<8x256xbf16>
    %cst_25 = arith.constant dense<0.000000e+00> : vector<224x256xf32>
    %18 = tpu.matmul %15, %17, %cst_25 {dimension_numbers = #tpu.dot_dimension_numbers<[1], [0], [0], [1], [0, 0, 1, 1], [], []>} : vector<224x8xbf16>, vector<8x256xbf16>, vector<224x256xf32> -> vector<224x256xf32>
    %c0_26 = arith.constant 0 : index
    %c0_27 = arith.constant 0 : index
    %19 = vector.load %arg5[%c0_26, %c0_27] : memref<224x256xf32, #tpu.memory_space<vmem>>, vector<224x256xf32>
    %20 = arith.addf %19, %18 : vector<224x256xf32>
    %c0_28 = arith.constant 0 : index
    %c0_29 = arith.constant 0 : index
    %21 = vector.load %arg5[%c0_28, %c0_29] : memref<224x256xf32, #tpu.memory_space<vmem>>, vector<224x256xf32>
    tpu.vector_store %arg5[%c0_28, %c0_29], %20 {strides = array<i32>} : memref<224x256xf32, #tpu.memory_space<vmem>>, vector<224x256xf32>,
    %c0_30 = arith.constant 0 : index
    %c2_31 = arith.constant 2 : index
    %c0_32 = arith.constant 0 : index
    %c0_33 = arith.constant 0 : index
    %22 = vector.load %arg1[%c0_30, %c2_31, %c0_32, %c0_33] : memref<1x4x256x8xbf16, #tpu.memory_space<vmem>>, vector<1x1x224x8xbf16>
    %23 = vector.shape_cast %22 : vector<1x1x224x8xbf16> to vector<224x8xbf16>
    %c3 = arith.constant 3 : index
    %c0_34 = arith.constant 0 : index
    %c0_35 = arith.constant 0 : index
    %24 = vector.load %arg2[%c3, %c0_34, %c0_35] : memref<9x8x256xbf16, #tpu.memory_space<vmem>>, vector<1x8x256xbf16>
    %25 = vector.shape_cast %24 : vector<1x8x256xbf16> to vector<8x256xbf16>
    %cst_36 = arith.constant dense<0.000000e+00> : vector<224x256xf32>
    %26 = tpu.matmul %23, %25, %cst_36 {dimension_numbers = #tpu.dot_dimension_numbers<[1], [0], [0], [1], [0, 0, 1, 1], [], []>} : vector<224x8xbf16>, vector<8x256xbf16>, vector<224x256xf32> -> vector<224x256xf32>
    %c0_37 = arith.constant 0 : index
    %c0_38 = arith.constant 0 : index
    %27 = vector.load %arg5[%c0_37, %c0_38] : memref<224x256xf32, #tpu.memory_space<vmem>>, vector<224x256xf32>
    %28 = arith.addf %27, %26 : vector<224x256xf32>
    %c0_39 = arith.constant 0 : index
    %c0_40 = arith.constant 0 : index
    %29 = vector.load %arg5[%c0_39, %c0_40] : memref<224x256xf32, #tpu.memory_space<vmem>>, vector<224x256xf32>
    tpu.vector_store %arg5[%c0_39, %c0_40], %28 {strides = array<i32>} : memref<224x256xf32, #tpu.memory_space<vmem>>, vector<224x256xf32>,
    %c0_41 = arith.constant 0 : index
    %c3_42 = arith.constant 3 : index
    %c0_43 = arith.constant 0 : index
    %c0_44 = arith.constant 0 : index
    %30 = vector.load %arg1[%c0_41, %c3_42, %c0_43, %c0_44] : memref<1x4x256x8xbf16, #tpu.memory_space<vmem>>, vector<1x1x224x8xbf16>
    %31 = vector.shape_cast %30 : vector<1x1x224x8xbf16> to vector<224x8xbf16>
    %c4 = arith.constant 4 : index
    %c0_45 = arith.constant 0 : index
    %c0_46 = arith.constant 0 : index
    %32 = vector.load %arg2[%c4, %c0_45, %c0_46] : memref<9x8x256xbf16, #tpu.memory_space<vmem>>, vector<1x8x256xbf16>
    %33 = vector.shape_cast %32 : vector<1x8x256xbf16> to vector<8x256xbf16>
    %cst_47 = arith.constant dense<0.000000e+00> : vector<224x256xf32>
    %34 = tpu.matmul %31, %33, %cst_47 {dimension_numbers = #tpu.dot_dimension_numbers<[1], [0], [0], [1], [0, 0, 1, 1], [], []>} : vector<224x8xbf16>, vector<8x256xbf16>, vector<224x256xf32> -> vector<224x256xf32>
    %c0_48 = arith.constant 0 : index
    %c0_49 = arith.constant 0 : index
    %35 = vector.load %arg5[%c0_48, %c0_49] : memref<224x256xf32, #tpu.memory_space<vmem>>, vector<224x256xf32>
    %36 = arith.addf %35, %34 : vector<224x256xf32>
    %c0_50 = arith.constant 0 : index
    %c0_51 = arith.constant 0 : index
    %37 = vector.load %arg5[%c0_50, %c0_51] : memref<224x256xf32, #tpu.memory_space<vmem>>, vector<224x256xf32>
    tpu.vector_store %arg5[%c0_50, %c0_51], %36 {strides = array<i32>} : memref<224x256xf32, #tpu.memory_space<vmem>>, vector<224x256xf32>,
    %c0_52 = arith.constant 0 : index
    %c2_53 = arith.constant 2 : index
    %c1_54 = arith.constant 1 : index
    %c0_55 = arith.constant 0 : index
    %38 = vector.load %arg1[%c0_52, %c2_53, %c1_54, %c0_55] : memref<1x4x256x8xbf16, #tpu.memory_space<vmem>>, vector<1x1x224x8xbf16>
    %39 = vector.shape_cast %38 : vector<1x1x224x8xbf16> to vector<224x8xbf16>
    %c5 = arith.constant 5 : index
    %c0_56 = arith.constant 0 : index
    %c0_57 = arith.constant 0 : index
    %40 = vector.load %arg2[%c5, %c0_56, %c0_57] : memref<9x8x256xbf16, #tpu.memory_space<vmem>>, vector<1x8x256xbf16>
    %41 = vector.shape_cast %40 : vector<1x8x256xbf16> to vector<8x256xbf16>
    %cst_58 = arith.constant dense<0.000000e+00> : vector<224x256xf32>
    %42 = tpu.matmul %39, %41, %cst_58 {dimension_numbers = #tpu.dot_dimension_numbers<[1], [0], [0], [1], [0, 0, 1, 1], [], []>} : vector<224x8xbf16>, vector<8x256xbf16>, vector<224x256xf32> -> vector<224x256xf32>
    %c0_59 = arith.constant 0 : index
    %c0_60 = arith.constant 0 : index
    %43 = vector.load %arg5[%c0_59, %c0_60] : memref<224x256xf32, #tpu.memory_space<vmem>>, vector<224x256xf32>
    %44 = arith.addf %43, %42 : vector<224x256xf32>
    %c0_61 = arith.constant 0 : index
    %c0_62 = arith.constant 0 : index
    %45 = vector.load %arg5[%c0_61, %c0_62] : memref<224x256xf32, #tpu.memory_space<vmem>>, vector<224x256xf32>
    tpu.vector_store %arg5[%c0_61, %c0_62], %44 {strides = array<i32>} : memref<224x256xf32, #tpu.memory_space<vmem>>, vector<224x256xf32>,
    %c0_63 = arith.constant 0 : index
    %c0_64 = arith.constant 0 : index
    %c16 = arith.constant 16 : index
    %c0_65 = arith.constant 0 : index
    %46 = vector.load %arg1[%c0_63, %c0_64, %c16, %c0_65] : memref<1x4x256x8xbf16, #tpu.memory_space<vmem>>, vector<1x1x224x8xbf16>
    %47 = vector.shape_cast %46 : vector<1x1x224x8xbf16> to vector<224x8xbf16>
    %c6 = arith.constant 6 : index
    %c0_66 = arith.constant 0 : index
    %c0_67 = arith.constant 0 : index
    %48 = vector.load %arg2[%c6, %c0_66, %c0_67] : memref<9x8x256xbf16, #tpu.memory_space<vmem>>, vector<1x8x256xbf16>
    %49 = vector.shape_cast %48 : vector<1x8x256xbf16> to vector<8x256xbf16>
    %cst_68 = arith.constant dense<0.000000e+00> : vector<224x256xf32>
    %50 = tpu.matmul %47, %49, %cst_68 {dimension_numbers = #tpu.dot_dimension_numbers<[1], [0], [0], [1], [0, 0, 1, 1], [], []>} : vector<224x8xbf16>, vector<8x256xbf16>, vector<224x256xf32> -> vector<224x256xf32>
    %c0_69 = arith.constant 0 : index
    %c0_70 = arith.constant 0 : index
    %51 = vector.load %arg5[%c0_69, %c0_70] : memref<224x256xf32, #tpu.memory_space<vmem>>, vector<224x256xf32>
    %52 = arith.addf %51, %50 : vector<224x256xf32>
    %c0_71 = arith.constant 0 : index
    %c0_72 = arith.constant 0 : index
    %53 = vector.load %arg5[%c0_71, %c0_72] : memref<224x256xf32, #tpu.memory_space<vmem>>, vector<224x256xf32>
    tpu.vector_store %arg5[%c0_71, %c0_72], %52 {strides = array<i32>} : memref<224x256xf32, #tpu.memory_space<vmem>>, vector<224x256xf32>,
    %c0_73 = arith.constant 0 : index
    %c1_74 = arith.constant 1 : index
    %c16_75 = arith.constant 16 : index
    %c0_76 = arith.constant 0 : index
    %54 = vector.load %arg1[%c0_73, %c1_74, %c16_75, %c0_76] : memref<1x4x256x8xbf16, #tpu.memory_space<vmem>>, vector<1x1x224x8xbf16>
    %55 = vector.shape_cast %54 : vector<1x1x224x8xbf16> to vector<224x8xbf16>
    %c7 = arith.constant 7 : index
    %c0_77 = arith.constant 0 : index
    %c0_78 = arith.constant 0 : index
    %56 = vector.load %arg2[%c7, %c0_77, %c0_78] : memref<9x8x256xbf16, #tpu.memory_space<vmem>>, vector<1x8x256xbf16>
    %57 = vector.shape_cast %56 : vector<1x8x256xbf16> to vector<8x256xbf16>
    %cst_79 = arith.constant dense<0.000000e+00> : vector<224x256xf32>
    %58 = tpu.matmul %55, %57, %cst_79 {dimension_numbers = #tpu.dot_dimension_numbers<[1], [0], [0], [1], [0, 0, 1, 1], [], []>} : vector<224x8xbf16>, vector<8x256xbf16>, vector<224x256xf32> -> vector<224x256xf32>
    %c0_80 = arith.constant 0 : index
    %c0_81 = arith.constant 0 : index
    %59 = vector.load %arg5[%c0_80, %c0_81] : memref<224x256xf32, #tpu.memory_space<vmem>>, vector<224x256xf32>
    %60 = arith.addf %59, %58 : vector<224x256xf32>
    %c0_82 = arith.constant 0 : index
    %c0_83 = arith.constant 0 : index
    %61 = vector.load %arg5[%c0_82, %c0_83] : memref<224x256xf32, #tpu.memory_space<vmem>>, vector<224x256xf32>
    tpu.vector_store %arg5[%c0_82, %c0_83], %60 {strides = array<i32>} : memref<224x256xf32, #tpu.memory_space<vmem>>, vector<224x256xf32>,
    %c0_84 = arith.constant 0 : index
    %c0_85 = arith.constant 0 : index
    %c17 = arith.constant 17 : index
    %c0_86 = arith.constant 0 : index
    %62 = vector.load %arg1[%c0_84, %c0_85, %c17, %c0_86] : memref<1x4x256x8xbf16, #tpu.memory_space<vmem>>, vector<1x1x224x8xbf16>
    %63 = vector.shape_cast %62 : vector<1x1x224x8xbf16> to vector<224x8xbf16>
    %c8 = arith.constant 8 : index
    %c0_87 = arith.constant 0 : index
    %c0_88 = arith.constant 0 : index
    %64 = vector.load %arg2[%c8, %c0_87, %c0_88] : memref<9x8x256xbf16, #tpu.memory_space<vmem>>, vector<1x8x256xbf16>
    %65 = vector.shape_cast %64 : vector<1x8x256xbf16> to vector<8x256xbf16>
    %cst_89 = arith.constant dense<0.000000e+00> : vector<224x256xf32>
    %66 = tpu.matmul %63, %65, %cst_89 {dimension_numbers = #tpu.dot_dimension_numbers<[1], [0], [0], [1], [0, 0, 1, 1], [], []>} : vector<224x8xbf16>, vector<8x256xbf16>, vector<224x256xf32> -> vector<224x256xf32>
    %c0_90 = arith.constant 0 : index
    %c0_91 = arith.constant 0 : index
    %67 = vector.load %arg5[%c0_90, %c0_91] : memref<224x256xf32, #tpu.memory_space<vmem>>, vector<224x256xf32>
    %68 = arith.addf %67, %66 : vector<224x256xf32>
    %c0_92 = arith.constant 0 : index
    %c0_93 = arith.constant 0 : index
    %69 = vector.load %arg5[%c0_92, %c0_93] : memref<224x256xf32, #tpu.memory_space<vmem>>, vector<224x256xf32>
    tpu.vector_store %arg5[%c0_92, %c0_93], %68 {strides = array<i32>} : memref<224x256xf32, #tpu.memory_space<vmem>>, vector<224x256xf32>,
    %c0_94 = arith.constant 0 : index
    %c0_95 = arith.constant 0 : index
    %70 = vector.load %arg3[%c0_94, %c0_95] : memref<2x256xf32, #tpu.memory_space<vmem>>, vector<1x256xf32>
    %c1_96 = arith.constant 1 : index
    %c0_97 = arith.constant 0 : index
    %71 = vector.load %arg3[%c1_96, %c0_97] : memref<2x256xf32, #tpu.memory_space<vmem>>, vector<1x256xf32>
    %c0_98 = arith.constant 0 : index
    %c0_99 = arith.constant 0 : index
    %72 = vector.load %arg5[%c0_98, %c0_99] : memref<224x256xf32, #tpu.memory_space<vmem>>, vector<224x256xf32>
    %73 = vector.broadcast %70 : vector<1x256xf32> to vector<224x256xf32>
    %74 = arith.mulf %72, %73 : vector<224x256xf32>
    %75 = vector.broadcast %71 : vector<1x256xf32> to vector<224x256xf32>
    %76 = arith.addf %74, %75 : vector<224x256xf32>
    %cst_100 = arith.constant 0.000000e+00 : f32
    %77 = vector.broadcast %cst_100 : f32 to vector<224x256xf32>
    %78 = arith.maximumf %76, %77 : vector<224x256xf32>
    %79 = arith.truncf %78 : vector<224x256xf32> to vector<224x256xbf16>
    %c0_101 = arith.constant 0 : index
    %c0_102 = arith.constant 0 : index
    %c0_103 = arith.constant 0 : index
    %80 = vector.load %arg4[%c0_101, %c0_102, %c0_103] : memref<1x224x256xbf16, #tpu.memory_space<vmem>>, vector<1x224x256xbf16>
    %81 = vector.shape_cast %80 : vector<1x224x256xbf16> to vector<224x256xbf16>
    %82 = vector.shape_cast %79 : vector<224x256xbf16> to vector<1x224x256xbf16>
    tpu.vector_store %arg4[%c0_101, %c0_102, %c0_103], %82 {strides = array<i32>} : memref<1x224x256xbf16, #tpu.memory_space<vmem>>, vector<1x224x256xbf16>,
    return
  }
  func.func @transform_0(%arg0: i32) -> (i32, i32, i32, i32) {
    %c0_i32 = arith.constant 0 : i32
    %c0_i32_0 = arith.constant 0 : i32
    %c0_i32_1 = arith.constant 0 : i32
    %c0_i32_2 = arith.constant 0 : i32
    return %arg0, %c0_i32, %c0_i32_0, %c0_i32_1 : i32, i32, i32, i32
  }
  func.func @transform_1(%arg0: i32) -> (i32, i32, i32) {
    %c0_i32 = arith.constant 0 : i32
    %c0_i32_0 = arith.constant 0 : i32
    %c0_i32_1 = arith.constant 0 : i32
    %c0_i32_2 = arith.constant 0 : i32
    return %c0_i32, %c0_i32_0, %c0_i32_1 : i32, i32, i32
  }
  func.func @transform_2(%arg0: i32) -> (i32, i32) {
    %c0_i32 = arith.constant 0 : i32
    %c0_i32_0 = arith.constant 0 : i32
    %c0_i32_1 = arith.constant 0 : i32
    return %c0_i32, %c0_i32_0 : i32, i32
  }
  func.func @transform_3(%arg0: i32) -> (i32, i32, i32) {
    %c0_i32 = arith.constant 0 : i32
    %c0_i32_0 = arith.constant 0 : i32
    %c0_i32_1 = arith.constant 0 : i32
    return %arg0, %c0_i32, %c0_i32_0 : i32, i32, i32
  }
}

module attributes {stable_mosaic.version = 11 : i64} {
  func.func @_conv3x3s2_kernel(%arg0: i32, %arg1: memref<1x4x72x256xbf16, #tpu.memory_space<vmem>>, %arg2: memref<9x256x256xbf16, #tpu.memory_space<vmem>>, %arg3: memref<2x256xf32, #tpu.memory_space<vmem>>, %arg4: memref<1x56x256xbf16, #tpu.memory_space<vmem>>, %arg5: memref<56x256xf32, #tpu.memory_space<vmem>>) attributes {dimension_semantics = [#tpu.dimension_semantics<parallel>], iteration_bounds = array<i64: 2>, scalar_prefetch = 0 : i64, scratch_operands = 1 : i64, tpu.core_type = #tpu.core_type<tc>, window_params = [{transform_indices = @transform_0, window_bounds = array<i64: 1, 4, 72, 256>}, {pipeline_mode = #tpu.pipeline_mode<synchronous>, transform_indices = @transform_1, window_bounds = array<i64: 9, 256, 256>}, {pipeline_mode = #tpu.pipeline_mode<synchronous>, transform_indices = @transform_2, window_bounds = array<i64: 2, 256>}, {transform_indices = @transform_3, window_bounds = array<i64: 1, 56, 256>}]} {
    %c0 = arith.constant 0 : index
    %c0_0 = arith.constant 0 : index
    %c0_1 = arith.constant 0 : index
    %c0_2 = arith.constant 0 : index
    %0 = vector.load %arg1[%c0, %c0_0, %c0_1, %c0_2] : memref<1x4x72x256xbf16, #tpu.memory_space<vmem>>, vector<1x1x56x256xbf16>
    %1 = vector.shape_cast %0 : vector<1x1x56x256xbf16> to vector<56x256xbf16>
    %c0_3 = arith.constant 0 : index
    %c0_4 = arith.constant 0 : index
    %c0_5 = arith.constant 0 : index
    %2 = vector.load %arg2[%c0_3, %c0_4, %c0_5] : memref<9x256x256xbf16, #tpu.memory_space<vmem>>, vector<1x256x256xbf16>
    %3 = vector.shape_cast %2 : vector<1x256x256xbf16> to vector<256x256xbf16>
    %cst = arith.constant dense<0.000000e+00> : vector<56x256xf32>
    %4 = tpu.matmul %1, %3, %cst {dimension_numbers = #tpu.dot_dimension_numbers<[1], [0], [0], [1], [0, 0, 1, 1], [], []>} : vector<56x256xbf16>, vector<256x256xbf16>, vector<56x256xf32> -> vector<56x256xf32>
    %c0_6 = arith.constant 0 : index
    %c0_7 = arith.constant 0 : index
    %5 = vector.load %arg5[%c0_6, %c0_7] : memref<56x256xf32, #tpu.memory_space<vmem>>, vector<56x256xf32>
    tpu.vector_store %arg5[%c0_6, %c0_7], %4 {strides = array<i32>} : memref<56x256xf32, #tpu.memory_space<vmem>>, vector<56x256xf32>,
    %c0_8 = arith.constant 0 : index
    %c1 = arith.constant 1 : index
    %c0_9 = arith.constant 0 : index
    %c0_10 = arith.constant 0 : index
    %6 = vector.load %arg1[%c0_8, %c1, %c0_9, %c0_10] : memref<1x4x72x256xbf16, #tpu.memory_space<vmem>>, vector<1x1x56x256xbf16>
    %7 = vector.shape_cast %6 : vector<1x1x56x256xbf16> to vector<56x256xbf16>
    %c1_11 = arith.constant 1 : index
    %c0_12 = arith.constant 0 : index
    %c0_13 = arith.constant 0 : index
    %8 = vector.load %arg2[%c1_11, %c0_12, %c0_13] : memref<9x256x256xbf16, #tpu.memory_space<vmem>>, vector<1x256x256xbf16>
    %9 = vector.shape_cast %8 : vector<1x256x256xbf16> to vector<256x256xbf16>
    %cst_14 = arith.constant dense<0.000000e+00> : vector<56x256xf32>
    %10 = tpu.matmul %7, %9, %cst_14 {dimension_numbers = #tpu.dot_dimension_numbers<[1], [0], [0], [1], [0, 0, 1, 1], [], []>} : vector<56x256xbf16>, vector<256x256xbf16>, vector<56x256xf32> -> vector<56x256xf32>
    %c0_15 = arith.constant 0 : index
    %c0_16 = arith.constant 0 : index
    %11 = vector.load %arg5[%c0_15, %c0_16] : memref<56x256xf32, #tpu.memory_space<vmem>>, vector<56x256xf32>
    %12 = arith.addf %11, %10 : vector<56x256xf32>
    %c0_17 = arith.constant 0 : index
    %c0_18 = arith.constant 0 : index
    %13 = vector.load %arg5[%c0_17, %c0_18] : memref<56x256xf32, #tpu.memory_space<vmem>>, vector<56x256xf32>
    tpu.vector_store %arg5[%c0_17, %c0_18], %12 {strides = array<i32>} : memref<56x256xf32, #tpu.memory_space<vmem>>, vector<56x256xf32>,
    %c0_19 = arith.constant 0 : index
    %c0_20 = arith.constant 0 : index
    %c1_21 = arith.constant 1 : index
    %c0_22 = arith.constant 0 : index
    %14 = vector.load %arg1[%c0_19, %c0_20, %c1_21, %c0_22] : memref<1x4x72x256xbf16, #tpu.memory_space<vmem>>, vector<1x1x56x256xbf16>
    %15 = vector.shape_cast %14 : vector<1x1x56x256xbf16> to vector<56x256xbf16>
    %c2 = arith.constant 2 : index
    %c0_23 = arith.constant 0 : index
    %c0_24 = arith.constant 0 : index
    %16 = vector.load %arg2[%c2, %c0_23, %c0_24] : memref<9x256x256xbf16, #tpu.memory_space<vmem>>, vector<1x256x256xbf16>
    %17 = vector.shape_cast %16 : vector<1x256x256xbf16> to vector<256x256xbf16>
    %cst_25 = arith.constant dense<0.000000e+00> : vector<56x256xf32>
    %18 = tpu.matmul %15, %17, %cst_25 {dimension_numbers = #tpu.dot_dimension_numbers<[1], [0], [0], [1], [0, 0, 1, 1], [], []>} : vector<56x256xbf16>, vector<256x256xbf16>, vector<56x256xf32> -> vector<56x256xf32>
    %c0_26 = arith.constant 0 : index
    %c0_27 = arith.constant 0 : index
    %19 = vector.load %arg5[%c0_26, %c0_27] : memref<56x256xf32, #tpu.memory_space<vmem>>, vector<56x256xf32>
    %20 = arith.addf %19, %18 : vector<56x256xf32>
    %c0_28 = arith.constant 0 : index
    %c0_29 = arith.constant 0 : index
    %21 = vector.load %arg5[%c0_28, %c0_29] : memref<56x256xf32, #tpu.memory_space<vmem>>, vector<56x256xf32>
    tpu.vector_store %arg5[%c0_28, %c0_29], %20 {strides = array<i32>} : memref<56x256xf32, #tpu.memory_space<vmem>>, vector<56x256xf32>,
    %c0_30 = arith.constant 0 : index
    %c2_31 = arith.constant 2 : index
    %c0_32 = arith.constant 0 : index
    %c0_33 = arith.constant 0 : index
    %22 = vector.load %arg1[%c0_30, %c2_31, %c0_32, %c0_33] : memref<1x4x72x256xbf16, #tpu.memory_space<vmem>>, vector<1x1x56x256xbf16>
    %23 = vector.shape_cast %22 : vector<1x1x56x256xbf16> to vector<56x256xbf16>
    %c3 = arith.constant 3 : index
    %c0_34 = arith.constant 0 : index
    %c0_35 = arith.constant 0 : index
    %24 = vector.load %arg2[%c3, %c0_34, %c0_35] : memref<9x256x256xbf16, #tpu.memory_space<vmem>>, vector<1x256x256xbf16>
    %25 = vector.shape_cast %24 : vector<1x256x256xbf16> to vector<256x256xbf16>
    %cst_36 = arith.constant dense<0.000000e+00> : vector<56x256xf32>
    %26 = tpu.matmul %23, %25, %cst_36 {dimension_numbers = #tpu.dot_dimension_numbers<[1], [0], [0], [1], [0, 0, 1, 1], [], []>} : vector<56x256xbf16>, vector<256x256xbf16>, vector<56x256xf32> -> vector<56x256xf32>
    %c0_37 = arith.constant 0 : index
    %c0_38 = arith.constant 0 : index
    %27 = vector.load %arg5[%c0_37, %c0_38] : memref<56x256xf32, #tpu.memory_space<vmem>>, vector<56x256xf32>
    %28 = arith.addf %27, %26 : vector<56x256xf32>
    %c0_39 = arith.constant 0 : index
    %c0_40 = arith.constant 0 : index
    %29 = vector.load %arg5[%c0_39, %c0_40] : memref<56x256xf32, #tpu.memory_space<vmem>>, vector<56x256xf32>
    tpu.vector_store %arg5[%c0_39, %c0_40], %28 {strides = array<i32>} : memref<56x256xf32, #tpu.memory_space<vmem>>, vector<56x256xf32>,
    %c0_41 = arith.constant 0 : index
    %c3_42 = arith.constant 3 : index
    %c0_43 = arith.constant 0 : index
    %c0_44 = arith.constant 0 : index
    %30 = vector.load %arg1[%c0_41, %c3_42, %c0_43, %c0_44] : memref<1x4x72x256xbf16, #tpu.memory_space<vmem>>, vector<1x1x56x256xbf16>
    %31 = vector.shape_cast %30 : vector<1x1x56x256xbf16> to vector<56x256xbf16>
    %c4 = arith.constant 4 : index
    %c0_45 = arith.constant 0 : index
    %c0_46 = arith.constant 0 : index
    %32 = vector.load %arg2[%c4, %c0_45, %c0_46] : memref<9x256x256xbf16, #tpu.memory_space<vmem>>, vector<1x256x256xbf16>
    %33 = vector.shape_cast %32 : vector<1x256x256xbf16> to vector<256x256xbf16>
    %cst_47 = arith.constant dense<0.000000e+00> : vector<56x256xf32>
    %34 = tpu.matmul %31, %33, %cst_47 {dimension_numbers = #tpu.dot_dimension_numbers<[1], [0], [0], [1], [0, 0, 1, 1], [], []>} : vector<56x256xbf16>, vector<256x256xbf16>, vector<56x256xf32> -> vector<56x256xf32>
    %c0_48 = arith.constant 0 : index
    %c0_49 = arith.constant 0 : index
    %35 = vector.load %arg5[%c0_48, %c0_49] : memref<56x256xf32, #tpu.memory_space<vmem>>, vector<56x256xf32>
    %36 = arith.addf %35, %34 : vector<56x256xf32>
    %c0_50 = arith.constant 0 : index
    %c0_51 = arith.constant 0 : index
    %37 = vector.load %arg5[%c0_50, %c0_51] : memref<56x256xf32, #tpu.memory_space<vmem>>, vector<56x256xf32>
    tpu.vector_store %arg5[%c0_50, %c0_51], %36 {strides = array<i32>} : memref<56x256xf32, #tpu.memory_space<vmem>>, vector<56x256xf32>,
    %c0_52 = arith.constant 0 : index
    %c2_53 = arith.constant 2 : index
    %c1_54 = arith.constant 1 : index
    %c0_55 = arith.constant 0 : index
    %38 = vector.load %arg1[%c0_52, %c2_53, %c1_54, %c0_55] : memref<1x4x72x256xbf16, #tpu.memory_space<vmem>>, vector<1x1x56x256xbf16>
    %39 = vector.shape_cast %38 : vector<1x1x56x256xbf16> to vector<56x256xbf16>
    %c5 = arith.constant 5 : index
    %c0_56 = arith.constant 0 : index
    %c0_57 = arith.constant 0 : index
    %40 = vector.load %arg2[%c5, %c0_56, %c0_57] : memref<9x256x256xbf16, #tpu.memory_space<vmem>>, vector<1x256x256xbf16>
    %41 = vector.shape_cast %40 : vector<1x256x256xbf16> to vector<256x256xbf16>
    %cst_58 = arith.constant dense<0.000000e+00> : vector<56x256xf32>
    %42 = tpu.matmul %39, %41, %cst_58 {dimension_numbers = #tpu.dot_dimension_numbers<[1], [0], [0], [1], [0, 0, 1, 1], [], []>} : vector<56x256xbf16>, vector<256x256xbf16>, vector<56x256xf32> -> vector<56x256xf32>
    %c0_59 = arith.constant 0 : index
    %c0_60 = arith.constant 0 : index
    %43 = vector.load %arg5[%c0_59, %c0_60] : memref<56x256xf32, #tpu.memory_space<vmem>>, vector<56x256xf32>
    %44 = arith.addf %43, %42 : vector<56x256xf32>
    %c0_61 = arith.constant 0 : index
    %c0_62 = arith.constant 0 : index
    %45 = vector.load %arg5[%c0_61, %c0_62] : memref<56x256xf32, #tpu.memory_space<vmem>>, vector<56x256xf32>
    tpu.vector_store %arg5[%c0_61, %c0_62], %44 {strides = array<i32>} : memref<56x256xf32, #tpu.memory_space<vmem>>, vector<56x256xf32>,
    %c0_63 = arith.constant 0 : index
    %c0_64 = arith.constant 0 : index
    %c8 = arith.constant 8 : index
    %c0_65 = arith.constant 0 : index
    %46 = vector.load %arg1[%c0_63, %c0_64, %c8, %c0_65] : memref<1x4x72x256xbf16, #tpu.memory_space<vmem>>, vector<1x1x56x256xbf16>
    %47 = vector.shape_cast %46 : vector<1x1x56x256xbf16> to vector<56x256xbf16>
    %c6 = arith.constant 6 : index
    %c0_66 = arith.constant 0 : index
    %c0_67 = arith.constant 0 : index
    %48 = vector.load %arg2[%c6, %c0_66, %c0_67] : memref<9x256x256xbf16, #tpu.memory_space<vmem>>, vector<1x256x256xbf16>
    %49 = vector.shape_cast %48 : vector<1x256x256xbf16> to vector<256x256xbf16>
    %cst_68 = arith.constant dense<0.000000e+00> : vector<56x256xf32>
    %50 = tpu.matmul %47, %49, %cst_68 {dimension_numbers = #tpu.dot_dimension_numbers<[1], [0], [0], [1], [0, 0, 1, 1], [], []>} : vector<56x256xbf16>, vector<256x256xbf16>, vector<56x256xf32> -> vector<56x256xf32>
    %c0_69 = arith.constant 0 : index
    %c0_70 = arith.constant 0 : index
    %51 = vector.load %arg5[%c0_69, %c0_70] : memref<56x256xf32, #tpu.memory_space<vmem>>, vector<56x256xf32>
    %52 = arith.addf %51, %50 : vector<56x256xf32>
    %c0_71 = arith.constant 0 : index
    %c0_72 = arith.constant 0 : index
    %53 = vector.load %arg5[%c0_71, %c0_72] : memref<56x256xf32, #tpu.memory_space<vmem>>, vector<56x256xf32>
    tpu.vector_store %arg5[%c0_71, %c0_72], %52 {strides = array<i32>} : memref<56x256xf32, #tpu.memory_space<vmem>>, vector<56x256xf32>,
    %c0_73 = arith.constant 0 : index
    %c1_74 = arith.constant 1 : index
    %c8_75 = arith.constant 8 : index
    %c0_76 = arith.constant 0 : index
    %54 = vector.load %arg1[%c0_73, %c1_74, %c8_75, %c0_76] : memref<1x4x72x256xbf16, #tpu.memory_space<vmem>>, vector<1x1x56x256xbf16>
    %55 = vector.shape_cast %54 : vector<1x1x56x256xbf16> to vector<56x256xbf16>
    %c7 = arith.constant 7 : index
    %c0_77 = arith.constant 0 : index
    %c0_78 = arith.constant 0 : index
    %56 = vector.load %arg2[%c7, %c0_77, %c0_78] : memref<9x256x256xbf16, #tpu.memory_space<vmem>>, vector<1x256x256xbf16>
    %57 = vector.shape_cast %56 : vector<1x256x256xbf16> to vector<256x256xbf16>
    %cst_79 = arith.constant dense<0.000000e+00> : vector<56x256xf32>
    %58 = tpu.matmul %55, %57, %cst_79 {dimension_numbers = #tpu.dot_dimension_numbers<[1], [0], [0], [1], [0, 0, 1, 1], [], []>} : vector<56x256xbf16>, vector<256x256xbf16>, vector<56x256xf32> -> vector<56x256xf32>
    %c0_80 = arith.constant 0 : index
    %c0_81 = arith.constant 0 : index
    %59 = vector.load %arg5[%c0_80, %c0_81] : memref<56x256xf32, #tpu.memory_space<vmem>>, vector<56x256xf32>
    %60 = arith.addf %59, %58 : vector<56x256xf32>
    %c0_82 = arith.constant 0 : index
    %c0_83 = arith.constant 0 : index
    %61 = vector.load %arg5[%c0_82, %c0_83] : memref<56x256xf32, #tpu.memory_space<vmem>>, vector<56x256xf32>
    tpu.vector_store %arg5[%c0_82, %c0_83], %60 {strides = array<i32>} : memref<56x256xf32, #tpu.memory_space<vmem>>, vector<56x256xf32>,
    %c0_84 = arith.constant 0 : index
    %c0_85 = arith.constant 0 : index
    %c9 = arith.constant 9 : index
    %c0_86 = arith.constant 0 : index
    %62 = vector.load %arg1[%c0_84, %c0_85, %c9, %c0_86] : memref<1x4x72x256xbf16, #tpu.memory_space<vmem>>, vector<1x1x56x256xbf16>
    %63 = vector.shape_cast %62 : vector<1x1x56x256xbf16> to vector<56x256xbf16>
    %c8_87 = arith.constant 8 : index
    %c0_88 = arith.constant 0 : index
    %c0_89 = arith.constant 0 : index
    %64 = vector.load %arg2[%c8_87, %c0_88, %c0_89] : memref<9x256x256xbf16, #tpu.memory_space<vmem>>, vector<1x256x256xbf16>
    %65 = vector.shape_cast %64 : vector<1x256x256xbf16> to vector<256x256xbf16>
    %cst_90 = arith.constant dense<0.000000e+00> : vector<56x256xf32>
    %66 = tpu.matmul %63, %65, %cst_90 {dimension_numbers = #tpu.dot_dimension_numbers<[1], [0], [0], [1], [0, 0, 1, 1], [], []>} : vector<56x256xbf16>, vector<256x256xbf16>, vector<56x256xf32> -> vector<56x256xf32>
    %c0_91 = arith.constant 0 : index
    %c0_92 = arith.constant 0 : index
    %67 = vector.load %arg5[%c0_91, %c0_92] : memref<56x256xf32, #tpu.memory_space<vmem>>, vector<56x256xf32>
    %68 = arith.addf %67, %66 : vector<56x256xf32>
    %c0_93 = arith.constant 0 : index
    %c0_94 = arith.constant 0 : index
    %69 = vector.load %arg5[%c0_93, %c0_94] : memref<56x256xf32, #tpu.memory_space<vmem>>, vector<56x256xf32>
    tpu.vector_store %arg5[%c0_93, %c0_94], %68 {strides = array<i32>} : memref<56x256xf32, #tpu.memory_space<vmem>>, vector<56x256xf32>,
    %c0_95 = arith.constant 0 : index
    %c0_96 = arith.constant 0 : index
    %70 = vector.load %arg3[%c0_95, %c0_96] : memref<2x256xf32, #tpu.memory_space<vmem>>, vector<1x256xf32>
    %c1_97 = arith.constant 1 : index
    %c0_98 = arith.constant 0 : index
    %71 = vector.load %arg3[%c1_97, %c0_98] : memref<2x256xf32, #tpu.memory_space<vmem>>, vector<1x256xf32>
    %c0_99 = arith.constant 0 : index
    %c0_100 = arith.constant 0 : index
    %72 = vector.load %arg5[%c0_99, %c0_100] : memref<56x256xf32, #tpu.memory_space<vmem>>, vector<56x256xf32>
    %73 = vector.broadcast %70 : vector<1x256xf32> to vector<56x256xf32>
    %74 = arith.mulf %72, %73 : vector<56x256xf32>
    %75 = vector.broadcast %71 : vector<1x256xf32> to vector<56x256xf32>
    %76 = arith.addf %74, %75 : vector<56x256xf32>
    %cst_101 = arith.constant 0.000000e+00 : f32
    %77 = vector.broadcast %cst_101 : f32 to vector<56x256xf32>
    %78 = arith.maximumf %76, %77 : vector<56x256xf32>
    %79 = arith.truncf %78 : vector<56x256xf32> to vector<56x256xbf16>
    %c0_102 = arith.constant 0 : index
    %c0_103 = arith.constant 0 : index
    %c0_104 = arith.constant 0 : index
    %80 = vector.load %arg4[%c0_102, %c0_103, %c0_104] : memref<1x56x256xbf16, #tpu.memory_space<vmem>>, vector<1x56x256xbf16>
    %81 = vector.shape_cast %80 : vector<1x56x256xbf16> to vector<56x256xbf16>
    %82 = vector.shape_cast %79 : vector<56x256xbf16> to vector<1x56x256xbf16>
    tpu.vector_store %arg4[%c0_102, %c0_103, %c0_104], %82 {strides = array<i32>} : memref<1x56x256xbf16, #tpu.memory_space<vmem>>, vector<1x56x256xbf16>,
    return
  }
  func.func @transform_0(%arg0: i32) -> (i32, i32, i32, i32) {
    %c0_i32 = arith.constant 0 : i32
    %c0_i32_0 = arith.constant 0 : i32
    %c0_i32_1 = arith.constant 0 : i32
    %c0_i32_2 = arith.constant 0 : i32
    return %arg0, %c0_i32, %c0_i32_0, %c0_i32_1 : i32, i32, i32, i32
  }
  func.func @transform_1(%arg0: i32) -> (i32, i32, i32) {
    %c0_i32 = arith.constant 0 : i32
    %c0_i32_0 = arith.constant 0 : i32
    %c0_i32_1 = arith.constant 0 : i32
    %c0_i32_2 = arith.constant 0 : i32
    return %c0_i32, %c0_i32_0, %c0_i32_1 : i32, i32, i32
  }
  func.func @transform_2(%arg0: i32) -> (i32, i32) {
    %c0_i32 = arith.constant 0 : i32
    %c0_i32_0 = arith.constant 0 : i32
    %c0_i32_1 = arith.constant 0 : i32
    return %c0_i32, %c0_i32_0 : i32, i32
  }
  func.func @transform_3(%arg0: i32) -> (i32, i32, i32) {
    %c0_i32 = arith.constant 0 : i32
    %c0_i32_0 = arith.constant 0 : i32
    %c0_i32_1 = arith.constant 0 : i32
    return %arg0, %c0_i32, %c0_i32_0 : i32, i32, i32
  }
}

module attributes {stable_mosaic.version = 11 : i64} {
  func.func @_conv3x3s2_kernel(%arg0: i32, %arg1: memref<1x4x48x256xbf16, #tpu.memory_space<vmem>>, %arg2: memref<9x256x256xbf16, #tpu.memory_space<vmem>>, %arg3: memref<2x256xf32, #tpu.memory_space<vmem>>, %arg4: memref<1x32x256xbf16, #tpu.memory_space<vmem>>, %arg5: memref<32x256xf32, #tpu.memory_space<vmem>>) attributes {dimension_semantics = [#tpu.dimension_semantics<parallel>], iteration_bounds = array<i64: 2>, scalar_prefetch = 0 : i64, scratch_operands = 1 : i64, tpu.core_type = #tpu.core_type<tc>, window_params = [{transform_indices = @transform_0, window_bounds = array<i64: 1, 4, 48, 256>}, {pipeline_mode = #tpu.pipeline_mode<synchronous>, transform_indices = @transform_1, window_bounds = array<i64: 9, 256, 256>}, {pipeline_mode = #tpu.pipeline_mode<synchronous>, transform_indices = @transform_2, window_bounds = array<i64: 2, 256>}, {transform_indices = @transform_3, window_bounds = array<i64: 1, 32, 256>}]} {
    %c0 = arith.constant 0 : index
    %c0_0 = arith.constant 0 : index
    %c0_1 = arith.constant 0 : index
    %c0_2 = arith.constant 0 : index
    %0 = vector.load %arg1[%c0, %c0_0, %c0_1, %c0_2] : memref<1x4x48x256xbf16, #tpu.memory_space<vmem>>, vector<1x1x32x256xbf16>
    %1 = vector.shape_cast %0 : vector<1x1x32x256xbf16> to vector<32x256xbf16>
    %c0_3 = arith.constant 0 : index
    %c0_4 = arith.constant 0 : index
    %c0_5 = arith.constant 0 : index
    %2 = vector.load %arg2[%c0_3, %c0_4, %c0_5] : memref<9x256x256xbf16, #tpu.memory_space<vmem>>, vector<1x256x256xbf16>
    %3 = vector.shape_cast %2 : vector<1x256x256xbf16> to vector<256x256xbf16>
    %cst = arith.constant dense<0.000000e+00> : vector<32x256xf32>
    %4 = tpu.matmul %1, %3, %cst {dimension_numbers = #tpu.dot_dimension_numbers<[1], [0], [0], [1], [0, 0, 1, 1], [], []>} : vector<32x256xbf16>, vector<256x256xbf16>, vector<32x256xf32> -> vector<32x256xf32>
    %c0_6 = arith.constant 0 : index
    %c0_7 = arith.constant 0 : index
    %5 = vector.load %arg5[%c0_6, %c0_7] : memref<32x256xf32, #tpu.memory_space<vmem>>, vector<32x256xf32>
    tpu.vector_store %arg5[%c0_6, %c0_7], %4 {strides = array<i32>} : memref<32x256xf32, #tpu.memory_space<vmem>>, vector<32x256xf32>,
    %c0_8 = arith.constant 0 : index
    %c1 = arith.constant 1 : index
    %c0_9 = arith.constant 0 : index
    %c0_10 = arith.constant 0 : index
    %6 = vector.load %arg1[%c0_8, %c1, %c0_9, %c0_10] : memref<1x4x48x256xbf16, #tpu.memory_space<vmem>>, vector<1x1x32x256xbf16>
    %7 = vector.shape_cast %6 : vector<1x1x32x256xbf16> to vector<32x256xbf16>
    %c1_11 = arith.constant 1 : index
    %c0_12 = arith.constant 0 : index
    %c0_13 = arith.constant 0 : index
    %8 = vector.load %arg2[%c1_11, %c0_12, %c0_13] : memref<9x256x256xbf16, #tpu.memory_space<vmem>>, vector<1x256x256xbf16>
    %9 = vector.shape_cast %8 : vector<1x256x256xbf16> to vector<256x256xbf16>
    %cst_14 = arith.constant dense<0.000000e+00> : vector<32x256xf32>
    %10 = tpu.matmul %7, %9, %cst_14 {dimension_numbers = #tpu.dot_dimension_numbers<[1], [0], [0], [1], [0, 0, 1, 1], [], []>} : vector<32x256xbf16>, vector<256x256xbf16>, vector<32x256xf32> -> vector<32x256xf32>
    %c0_15 = arith.constant 0 : index
    %c0_16 = arith.constant 0 : index
    %11 = vector.load %arg5[%c0_15, %c0_16] : memref<32x256xf32, #tpu.memory_space<vmem>>, vector<32x256xf32>
    %12 = arith.addf %11, %10 : vector<32x256xf32>
    %c0_17 = arith.constant 0 : index
    %c0_18 = arith.constant 0 : index
    %13 = vector.load %arg5[%c0_17, %c0_18] : memref<32x256xf32, #tpu.memory_space<vmem>>, vector<32x256xf32>
    tpu.vector_store %arg5[%c0_17, %c0_18], %12 {strides = array<i32>} : memref<32x256xf32, #tpu.memory_space<vmem>>, vector<32x256xf32>,
    %c0_19 = arith.constant 0 : index
    %c0_20 = arith.constant 0 : index
    %c1_21 = arith.constant 1 : index
    %c0_22 = arith.constant 0 : index
    %14 = vector.load %arg1[%c0_19, %c0_20, %c1_21, %c0_22] : memref<1x4x48x256xbf16, #tpu.memory_space<vmem>>, vector<1x1x32x256xbf16>
    %15 = vector.shape_cast %14 : vector<1x1x32x256xbf16> to vector<32x256xbf16>
    %c2 = arith.constant 2 : index
    %c0_23 = arith.constant 0 : index
    %c0_24 = arith.constant 0 : index
    %16 = vector.load %arg2[%c2, %c0_23, %c0_24] : memref<9x256x256xbf16, #tpu.memory_space<vmem>>, vector<1x256x256xbf16>
    %17 = vector.shape_cast %16 : vector<1x256x256xbf16> to vector<256x256xbf16>
    %cst_25 = arith.constant dense<0.000000e+00> : vector<32x256xf32>
    %18 = tpu.matmul %15, %17, %cst_25 {dimension_numbers = #tpu.dot_dimension_numbers<[1], [0], [0], [1], [0, 0, 1, 1], [], []>} : vector<32x256xbf16>, vector<256x256xbf16>, vector<32x256xf32> -> vector<32x256xf32>
    %c0_26 = arith.constant 0 : index
    %c0_27 = arith.constant 0 : index
    %19 = vector.load %arg5[%c0_26, %c0_27] : memref<32x256xf32, #tpu.memory_space<vmem>>, vector<32x256xf32>
    %20 = arith.addf %19, %18 : vector<32x256xf32>
    %c0_28 = arith.constant 0 : index
    %c0_29 = arith.constant 0 : index
    %21 = vector.load %arg5[%c0_28, %c0_29] : memref<32x256xf32, #tpu.memory_space<vmem>>, vector<32x256xf32>
    tpu.vector_store %arg5[%c0_28, %c0_29], %20 {strides = array<i32>} : memref<32x256xf32, #tpu.memory_space<vmem>>, vector<32x256xf32>,
    %c0_30 = arith.constant 0 : index
    %c2_31 = arith.constant 2 : index
    %c0_32 = arith.constant 0 : index
    %c0_33 = arith.constant 0 : index
    %22 = vector.load %arg1[%c0_30, %c2_31, %c0_32, %c0_33] : memref<1x4x48x256xbf16, #tpu.memory_space<vmem>>, vector<1x1x32x256xbf16>
    %23 = vector.shape_cast %22 : vector<1x1x32x256xbf16> to vector<32x256xbf16>
    %c3 = arith.constant 3 : index
    %c0_34 = arith.constant 0 : index
    %c0_35 = arith.constant 0 : index
    %24 = vector.load %arg2[%c3, %c0_34, %c0_35] : memref<9x256x256xbf16, #tpu.memory_space<vmem>>, vector<1x256x256xbf16>
    %25 = vector.shape_cast %24 : vector<1x256x256xbf16> to vector<256x256xbf16>
    %cst_36 = arith.constant dense<0.000000e+00> : vector<32x256xf32>
    %26 = tpu.matmul %23, %25, %cst_36 {dimension_numbers = #tpu.dot_dimension_numbers<[1], [0], [0], [1], [0, 0, 1, 1], [], []>} : vector<32x256xbf16>, vector<256x256xbf16>, vector<32x256xf32> -> vector<32x256xf32>
    %c0_37 = arith.constant 0 : index
    %c0_38 = arith.constant 0 : index
    %27 = vector.load %arg5[%c0_37, %c0_38] : memref<32x256xf32, #tpu.memory_space<vmem>>, vector<32x256xf32>
    %28 = arith.addf %27, %26 : vector<32x256xf32>
    %c0_39 = arith.constant 0 : index
    %c0_40 = arith.constant 0 : index
    %29 = vector.load %arg5[%c0_39, %c0_40] : memref<32x256xf32, #tpu.memory_space<vmem>>, vector<32x256xf32>
    tpu.vector_store %arg5[%c0_39, %c0_40], %28 {strides = array<i32>} : memref<32x256xf32, #tpu.memory_space<vmem>>, vector<32x256xf32>,
    %c0_41 = arith.constant 0 : index
    %c3_42 = arith.constant 3 : index
    %c0_43 = arith.constant 0 : index
    %c0_44 = arith.constant 0 : index
    %30 = vector.load %arg1[%c0_41, %c3_42, %c0_43, %c0_44] : memref<1x4x48x256xbf16, #tpu.memory_space<vmem>>, vector<1x1x32x256xbf16>
    %31 = vector.shape_cast %30 : vector<1x1x32x256xbf16> to vector<32x256xbf16>
    %c4 = arith.constant 4 : index
    %c0_45 = arith.constant 0 : index
    %c0_46 = arith.constant 0 : index
    %32 = vector.load %arg2[%c4, %c0_45, %c0_46] : memref<9x256x256xbf16, #tpu.memory_space<vmem>>, vector<1x256x256xbf16>
    %33 = vector.shape_cast %32 : vector<1x256x256xbf16> to vector<256x256xbf16>
    %cst_47 = arith.constant dense<0.000000e+00> : vector<32x256xf32>
    %34 = tpu.matmul %31, %33, %cst_47 {dimension_numbers = #tpu.dot_dimension_numbers<[1], [0], [0], [1], [0, 0, 1, 1], [], []>} : vector<32x256xbf16>, vector<256x256xbf16>, vector<32x256xf32> -> vector<32x256xf32>
    %c0_48 = arith.constant 0 : index
    %c0_49 = arith.constant 0 : index
    %35 = vector.load %arg5[%c0_48, %c0_49] : memref<32x256xf32, #tpu.memory_space<vmem>>, vector<32x256xf32>
    %36 = arith.addf %35, %34 : vector<32x256xf32>
    %c0_50 = arith.constant 0 : index
    %c0_51 = arith.constant 0 : index
    %37 = vector.load %arg5[%c0_50, %c0_51] : memref<32x256xf32, #tpu.memory_space<vmem>>, vector<32x256xf32>
    tpu.vector_store %arg5[%c0_50, %c0_51], %36 {strides = array<i32>} : memref<32x256xf32, #tpu.memory_space<vmem>>, vector<32x256xf32>,
    %c0_52 = arith.constant 0 : index
    %c2_53 = arith.constant 2 : index
    %c1_54 = arith.constant 1 : index
    %c0_55 = arith.constant 0 : index
    %38 = vector.load %arg1[%c0_52, %c2_53, %c1_54, %c0_55] : memref<1x4x48x256xbf16, #tpu.memory_space<vmem>>, vector<1x1x32x256xbf16>
    %39 = vector.shape_cast %38 : vector<1x1x32x256xbf16> to vector<32x256xbf16>
    %c5 = arith.constant 5 : index
    %c0_56 = arith.constant 0 : index
    %c0_57 = arith.constant 0 : index
    %40 = vector.load %arg2[%c5, %c0_56, %c0_57] : memref<9x256x256xbf16, #tpu.memory_space<vmem>>, vector<1x256x256xbf16>
    %41 = vector.shape_cast %40 : vector<1x256x256xbf16> to vector<256x256xbf16>
    %cst_58 = arith.constant dense<0.000000e+00> : vector<32x256xf32>
    %42 = tpu.matmul %39, %41, %cst_58 {dimension_numbers = #tpu.dot_dimension_numbers<[1], [0], [0], [1], [0, 0, 1, 1], [], []>} : vector<32x256xbf16>, vector<256x256xbf16>, vector<32x256xf32> -> vector<32x256xf32>
    %c0_59 = arith.constant 0 : index
    %c0_60 = arith.constant 0 : index
    %43 = vector.load %arg5[%c0_59, %c0_60] : memref<32x256xf32, #tpu.memory_space<vmem>>, vector<32x256xf32>
    %44 = arith.addf %43, %42 : vector<32x256xf32>
    %c0_61 = arith.constant 0 : index
    %c0_62 = arith.constant 0 : index
    %45 = vector.load %arg5[%c0_61, %c0_62] : memref<32x256xf32, #tpu.memory_space<vmem>>, vector<32x256xf32>
    tpu.vector_store %arg5[%c0_61, %c0_62], %44 {strides = array<i32>} : memref<32x256xf32, #tpu.memory_space<vmem>>, vector<32x256xf32>,
    %c0_63 = arith.constant 0 : index
    %c0_64 = arith.constant 0 : index
    %c8 = arith.constant 8 : index
    %c0_65 = arith.constant 0 : index
    %46 = vector.load %arg1[%c0_63, %c0_64, %c8, %c0_65] : memref<1x4x48x256xbf16, #tpu.memory_space<vmem>>, vector<1x1x32x256xbf16>
    %47 = vector.shape_cast %46 : vector<1x1x32x256xbf16> to vector<32x256xbf16>
    %c6 = arith.constant 6 : index
    %c0_66 = arith.constant 0 : index
    %c0_67 = arith.constant 0 : index
    %48 = vector.load %arg2[%c6, %c0_66, %c0_67] : memref<9x256x256xbf16, #tpu.memory_space<vmem>>, vector<1x256x256xbf16>
    %49 = vector.shape_cast %48 : vector<1x256x256xbf16> to vector<256x256xbf16>
    %cst_68 = arith.constant dense<0.000000e+00> : vector<32x256xf32>
    %50 = tpu.matmul %47, %49, %cst_68 {dimension_numbers = #tpu.dot_dimension_numbers<[1], [0], [0], [1], [0, 0, 1, 1], [], []>} : vector<32x256xbf16>, vector<256x256xbf16>, vector<32x256xf32> -> vector<32x256xf32>
    %c0_69 = arith.constant 0 : index
    %c0_70 = arith.constant 0 : index
    %51 = vector.load %arg5[%c0_69, %c0_70] : memref<32x256xf32, #tpu.memory_space<vmem>>, vector<32x256xf32>
    %52 = arith.addf %51, %50 : vector<32x256xf32>
    %c0_71 = arith.constant 0 : index
    %c0_72 = arith.constant 0 : index
    %53 = vector.load %arg5[%c0_71, %c0_72] : memref<32x256xf32, #tpu.memory_space<vmem>>, vector<32x256xf32>
    tpu.vector_store %arg5[%c0_71, %c0_72], %52 {strides = array<i32>} : memref<32x256xf32, #tpu.memory_space<vmem>>, vector<32x256xf32>,
    %c0_73 = arith.constant 0 : index
    %c1_74 = arith.constant 1 : index
    %c8_75 = arith.constant 8 : index
    %c0_76 = arith.constant 0 : index
    %54 = vector.load %arg1[%c0_73, %c1_74, %c8_75, %c0_76] : memref<1x4x48x256xbf16, #tpu.memory_space<vmem>>, vector<1x1x32x256xbf16>
    %55 = vector.shape_cast %54 : vector<1x1x32x256xbf16> to vector<32x256xbf16>
    %c7 = arith.constant 7 : index
    %c0_77 = arith.constant 0 : index
    %c0_78 = arith.constant 0 : index
    %56 = vector.load %arg2[%c7, %c0_77, %c0_78] : memref<9x256x256xbf16, #tpu.memory_space<vmem>>, vector<1x256x256xbf16>
    %57 = vector.shape_cast %56 : vector<1x256x256xbf16> to vector<256x256xbf16>
    %cst_79 = arith.constant dense<0.000000e+00> : vector<32x256xf32>
    %58 = tpu.matmul %55, %57, %cst_79 {dimension_numbers = #tpu.dot_dimension_numbers<[1], [0], [0], [1], [0, 0, 1, 1], [], []>} : vector<32x256xbf16>, vector<256x256xbf16>, vector<32x256xf32> -> vector<32x256xf32>
    %c0_80 = arith.constant 0 : index
    %c0_81 = arith.constant 0 : index
    %59 = vector.load %arg5[%c0_80, %c0_81] : memref<32x256xf32, #tpu.memory_space<vmem>>, vector<32x256xf32>
    %60 = arith.addf %59, %58 : vector<32x256xf32>
    %c0_82 = arith.constant 0 : index
    %c0_83 = arith.constant 0 : index
    %61 = vector.load %arg5[%c0_82, %c0_83] : memref<32x256xf32, #tpu.memory_space<vmem>>, vector<32x256xf32>
    tpu.vector_store %arg5[%c0_82, %c0_83], %60 {strides = array<i32>} : memref<32x256xf32, #tpu.memory_space<vmem>>, vector<32x256xf32>,
    %c0_84 = arith.constant 0 : index
    %c0_85 = arith.constant 0 : index
    %c9 = arith.constant 9 : index
    %c0_86 = arith.constant 0 : index
    %62 = vector.load %arg1[%c0_84, %c0_85, %c9, %c0_86] : memref<1x4x48x256xbf16, #tpu.memory_space<vmem>>, vector<1x1x32x256xbf16>
    %63 = vector.shape_cast %62 : vector<1x1x32x256xbf16> to vector<32x256xbf16>
    %c8_87 = arith.constant 8 : index
    %c0_88 = arith.constant 0 : index
    %c0_89 = arith.constant 0 : index
    %64 = vector.load %arg2[%c8_87, %c0_88, %c0_89] : memref<9x256x256xbf16, #tpu.memory_space<vmem>>, vector<1x256x256xbf16>
    %65 = vector.shape_cast %64 : vector<1x256x256xbf16> to vector<256x256xbf16>
    %cst_90 = arith.constant dense<0.000000e+00> : vector<32x256xf32>
    %66 = tpu.matmul %63, %65, %cst_90 {dimension_numbers = #tpu.dot_dimension_numbers<[1], [0], [0], [1], [0, 0, 1, 1], [], []>} : vector<32x256xbf16>, vector<256x256xbf16>, vector<32x256xf32> -> vector<32x256xf32>
    %c0_91 = arith.constant 0 : index
    %c0_92 = arith.constant 0 : index
    %67 = vector.load %arg5[%c0_91, %c0_92] : memref<32x256xf32, #tpu.memory_space<vmem>>, vector<32x256xf32>
    %68 = arith.addf %67, %66 : vector<32x256xf32>
    %c0_93 = arith.constant 0 : index
    %c0_94 = arith.constant 0 : index
    %69 = vector.load %arg5[%c0_93, %c0_94] : memref<32x256xf32, #tpu.memory_space<vmem>>, vector<32x256xf32>
    tpu.vector_store %arg5[%c0_93, %c0_94], %68 {strides = array<i32>} : memref<32x256xf32, #tpu.memory_space<vmem>>, vector<32x256xf32>,
    %c0_95 = arith.constant 0 : index
    %c0_96 = arith.constant 0 : index
    %70 = vector.load %arg3[%c0_95, %c0_96] : memref<2x256xf32, #tpu.memory_space<vmem>>, vector<1x256xf32>
    %c1_97 = arith.constant 1 : index
    %c0_98 = arith.constant 0 : index
    %71 = vector.load %arg3[%c1_97, %c0_98] : memref<2x256xf32, #tpu.memory_space<vmem>>, vector<1x256xf32>
    %c0_99 = arith.constant 0 : index
    %c0_100 = arith.constant 0 : index
    %72 = vector.load %arg5[%c0_99, %c0_100] : memref<32x256xf32, #tpu.memory_space<vmem>>, vector<32x256xf32>
    %73 = vector.broadcast %70 : vector<1x256xf32> to vector<32x256xf32>
    %74 = arith.mulf %72, %73 : vector<32x256xf32>
    %75 = vector.broadcast %71 : vector<1x256xf32> to vector<32x256xf32>
    %76 = arith.addf %74, %75 : vector<32x256xf32>
    %cst_101 = arith.constant 0.000000e+00 : f32
    %77 = vector.broadcast %cst_101 : f32 to vector<32x256xf32>
    %78 = arith.maximumf %76, %77 : vector<32x256xf32>
    %79 = arith.truncf %78 : vector<32x256xf32> to vector<32x256xbf16>
    %c0_102 = arith.constant 0 : index
    %c0_103 = arith.constant 0 : index
    %c0_104 = arith.constant 0 : index
    %80 = vector.load %arg4[%c0_102, %c0_103, %c0_104] : memref<1x32x256xbf16, #tpu.memory_space<vmem>>, vector<1x32x256xbf16>
    %81 = vector.shape_cast %80 : vector<1x32x256xbf16> to vector<32x256xbf16>
    %82 = vector.shape_cast %79 : vector<32x256xbf16> to vector<1x32x256xbf16>
    tpu.vector_store %arg4[%c0_102, %c0_103, %c0_104], %82 {strides = array<i32>} : memref<1x32x256xbf16, #tpu.memory_space<vmem>>, vector<1x32x256xbf16>,
    return
  }
  func.func @transform_0(%arg0: i32) -> (i32, i32, i32, i32) {
    %c0_i32 = arith.constant 0 : i32
    %c0_i32_0 = arith.constant 0 : i32
    %c0_i32_1 = arith.constant 0 : i32
    %c0_i32_2 = arith.constant 0 : i32
    return %arg0, %c0_i32, %c0_i32_0, %c0_i32_1 : i32, i32, i32, i32
  }
  func.func @transform_1(%arg0: i32) -> (i32, i32, i32) {
    %c0_i32 = arith.constant 0 : i32
    %c0_i32_0 = arith.constant 0 : i32
    %c0_i32_1 = arith.constant 0 : i32
    %c0_i32_2 = arith.constant 0 : i32
    return %c0_i32, %c0_i32_0, %c0_i32_1 : i32, i32, i32
  }
  func.func @transform_2(%arg0: i32) -> (i32, i32) {
    %c0_i32 = arith.constant 0 : i32
    %c0_i32_0 = arith.constant 0 : i32
    %c0_i32_1 = arith.constant 0 : i32
    return %c0_i32, %c0_i32_0 : i32, i32
  }
  func.func @transform_3(%arg0: i32) -> (i32, i32, i32) {
    %c0_i32 = arith.constant 0 : i32
    %c0_i32_0 = arith.constant 0 : i32
    %c0_i32_1 = arith.constant 0 : i32
    return %arg0, %c0_i32, %c0_i32_0 : i32, i32, i32
  }
}

module attributes {stable_mosaic.version = 11 : i64} {
  func.func @_tail_kernel(%arg0: memref<2x4096xbf16, #tpu.memory_space<vmem>>, %arg1: memref<4096x128xbf16, #tpu.memory_space<vmem>>, %arg2: memref<1x128xf32, #tpu.memory_space<vmem>>, %arg3: memref<128x256xbf16, #tpu.memory_space<vmem>>, %arg4: memref<2x256xf32, #tpu.memory_space<vmem>>, %arg5: memref<256x256xbf16, #tpu.memory_space<vmem>>, %arg6: memref<2x256xf32, #tpu.memory_space<vmem>>, %arg7: memref<256x128xbf16, #tpu.memory_space<vmem>>, %arg8: memref<1x128xf32, #tpu.memory_space<vmem>>, %arg9: memref<2x128xf32, #tpu.memory_space<vmem>>, %arg10: memref<2x128xf32, #tpu.memory_space<vmem>>) attributes {dimension_semantics = [], scalar_prefetch = 0 : i64, scratch_operands = 0 : i64, tpu.core_type = #tpu.core_type<tc>} {
    %c0 = arith.constant 0 : index
    %c0_0 = arith.constant 0 : index
    %0 = vector.load %arg0[%c0, %c0_0] : memref<2x4096xbf16, #tpu.memory_space<vmem>>, vector<2x4096xbf16>
    %c0_1 = arith.constant 0 : index
    %c0_2 = arith.constant 0 : index
    %1 = vector.load %arg1[%c0_1, %c0_2] : memref<4096x128xbf16, #tpu.memory_space<vmem>>, vector<4096x128xbf16>
    %cst = arith.constant dense<0.000000e+00> : vector<2x128xf32>
    %2 = tpu.matmul %0, %1, %cst {dimension_numbers = #tpu.dot_dimension_numbers<[1], [0], [0], [1], [0, 0, 1, 1], [], []>} : vector<2x4096xbf16>, vector<4096x128xbf16>, vector<2x128xf32> -> vector<2x128xf32>
    %c0_3 = arith.constant 0 : index
    %c0_4 = arith.constant 0 : index
    %3 = vector.load %arg2[%c0_3, %c0_4] : memref<1x128xf32, #tpu.memory_space<vmem>>, vector<1x128xf32>
    %4 = vector.broadcast %3 : vector<1x128xf32> to vector<2x128xf32>
    %5 = arith.addf %2, %4 : vector<2x128xf32>
    %cst_5 = arith.constant 0.000000e+00 : f32
    %6 = vector.broadcast %cst_5 : f32 to vector<2x128xf32>
    %7 = arith.maximumf %5, %6 : vector<2x128xf32>
    %c0_6 = arith.constant 0 : index
    %c0_7 = arith.constant 0 : index
    %8 = vector.load %arg9[%c0_6, %c0_7] : memref<2x128xf32, #tpu.memory_space<vmem>>, vector<2x128xf32>
    tpu.vector_store %arg9[%c0_6, %c0_7], %7 {strides = array<i32>} : memref<2x128xf32, #tpu.memory_space<vmem>>, vector<2x128xf32>,
    %9 = arith.truncf %7 : vector<2x128xf32> to vector<2x128xbf16>
    %c0_8 = arith.constant 0 : index
    %c0_9 = arith.constant 0 : index
    %10 = vector.load %arg3[%c0_8, %c0_9] : memref<128x256xbf16, #tpu.memory_space<vmem>>, vector<128x256xbf16>
    %cst_10 = arith.constant dense<0.000000e+00> : vector<2x256xf32>
    %11 = tpu.matmul %9, %10, %cst_10 {dimension_numbers = #tpu.dot_dimension_numbers<[1], [0], [0], [1], [0, 0, 1, 1], [], []>} : vector<2x128xbf16>, vector<128x256xbf16>, vector<2x256xf32> -> vector<2x256xf32>
    %c0_11 = arith.constant 0 : index
    %c0_12 = arith.constant 0 : index
    %12 = vector.load %arg4[%c0_11, %c0_12] : memref<2x256xf32, #tpu.memory_space<vmem>>, vector<1x256xf32>
    %13 = vector.broadcast %12 : vector<1x256xf32> to vector<2x256xf32>
    %14 = arith.mulf %11, %13 : vector<2x256xf32>
    %c1 = arith.constant 1 : index
    %c0_13 = arith.constant 0 : index
    %15 = vector.load %arg4[%c1, %c0_13] : memref<2x256xf32, #tpu.memory_space<vmem>>, vector<1x256xf32>
    %16 = vector.broadcast %15 : vector<1x256xf32> to vector<2x256xf32>
    %17 = arith.addf %14, %16 : vector<2x256xf32>
    %cst_14 = arith.constant 0.000000e+00 : f32
    %18 = vector.broadcast %cst_14 : f32 to vector<2x256xf32>
    %19 = arith.maximumf %17, %18 : vector<2x256xf32>
    %20 = arith.truncf %19 : vector<2x256xf32> to vector<2x256xbf16>
    %c0_15 = arith.constant 0 : index
    %c0_16 = arith.constant 0 : index
    %21 = vector.load %arg5[%c0_15, %c0_16] : memref<256x256xbf16, #tpu.memory_space<vmem>>, vector<256x256xbf16>
    %cst_17 = arith.constant dense<0.000000e+00> : vector<2x256xf32>
    %22 = tpu.matmul %20, %21, %cst_17 {dimension_numbers = #tpu.dot_dimension_numbers<[1], [0], [0], [1], [0, 0, 1, 1], [], []>} : vector<2x256xbf16>, vector<256x256xbf16>, vector<2x256xf32> -> vector<2x256xf32>
    %c0_18 = arith.constant 0 : index
    %c0_19 = arith.constant 0 : index
    %23 = vector.load %arg6[%c0_18, %c0_19] : memref<2x256xf32, #tpu.memory_space<vmem>>, vector<1x256xf32>
    %24 = vector.broadcast %23 : vector<1x256xf32> to vector<2x256xf32>
    %25 = arith.mulf %22, %24 : vector<2x256xf32>
    %c1_20 = arith.constant 1 : index
    %c0_21 = arith.constant 0 : index
    %26 = vector.load %arg6[%c1_20, %c0_21] : memref<2x256xf32, #tpu.memory_space<vmem>>, vector<1x256xf32>
    %27 = vector.broadcast %26 : vector<1x256xf32> to vector<2x256xf32>
    %28 = arith.addf %25, %27 : vector<2x256xf32>
    %cst_22 = arith.constant 0.000000e+00 : f32
    %29 = vector.broadcast %cst_22 : f32 to vector<2x256xf32>
    %30 = arith.maximumf %28, %29 : vector<2x256xf32>
    %31 = arith.truncf %30 : vector<2x256xf32> to vector<2x256xbf16>
    %c0_23 = arith.constant 0 : index
    %c0_24 = arith.constant 0 : index
    %32 = vector.load %arg7[%c0_23, %c0_24] : memref<256x128xbf16, #tpu.memory_space<vmem>>, vector<256x128xbf16>
    %cst_25 = arith.constant dense<0.000000e+00> : vector<2x128xf32>
    %33 = tpu.matmul %31, %32, %cst_25 {dimension_numbers = #tpu.dot_dimension_numbers<[1], [0], [0], [1], [0, 0, 1, 1], [], []>} : vector<2x256xbf16>, vector<256x128xbf16>, vector<2x128xf32> -> vector<2x128xf32>
    %c0_26 = arith.constant 0 : index
    %c0_27 = arith.constant 0 : index
    %34 = vector.load %arg8[%c0_26, %c0_27] : memref<1x128xf32, #tpu.memory_space<vmem>>, vector<1x128xf32>
    %35 = vector.broadcast %34 : vector<1x128xf32> to vector<2x128xf32>
    %36 = arith.addf %33, %35 : vector<2x128xf32>
    %c0_28 = arith.constant 0 : index
    %c0_29 = arith.constant 0 : index
    %37 = vector.load %arg10[%c0_28, %c0_29] : memref<2x128xf32, #tpu.memory_space<vmem>>, vector<2x128xf32>
    tpu.vector_store %arg10[%c0_28, %c0_29], %36 {strides = array<i32>} : memref<2x128xf32, #tpu.memory_space<vmem>>, vector<2x128xf32>,
    return
  }
}

</mosaic_0001>

<bundles_post_ra>
// kernel: encoder_stn_no_alpha.5
= control target key start
LH: loop header
LB: loop body
LE: loop exit
PB: predicated region body
PF: predicated region fallthrough
CT: control target
= control target key end

     0   :  { %s5065_s12 = smov 0   ;;  %s6276_s0 = inlined_call_operand.vmem [shape: bf16[2,4,72,256], index: 0, kind: input, shape index: {}]   ;;  %s6277_s1 = inlined_call_operand.vmem [shape: bf16[9,256,256], index: 1, kind: input, shape index: {}]   ;;  %s6278_s2 = inlined_call_operand.vmem [shape: f32[2,256], index: 2, kind: input, shape index: {}]   ;;  %s6279_s3 = inlined_call_operand.vmem [shape: bf16[2,56,256], index: 3, kind: output, shape index: {}]  }
   0x1 LB: > { %s3681_s13 = sadd.s32 4294967295, %s5043_s12   ;;  %p3685_p0 = scmp.ge.s32.totalorder %s5043_s12, 1  ;;  %s5043_s12 = sphi %s5065_s12, %s13_s12  }
   0x2   : > { %p137_p1 = scmp.lt.s32.totalorder %s5043_s12, 3 }
   0x4   : > { %p138_p2 = pnand %p3685_p0, %p137_p1 }
   0x5   : > { %v4523_v0 = vld [vmem:[%s6277_s1 + $0x4] ss:$8 sps:$4 sm:$0xff] (!%p138_p2)   ;;  %v4527_v2 = vld [vmem:[%s6277_s1] ss:$8 sps:$4 sm:$0xff] (!%p138_p2)   ;;  %v4529_v4 = vld [vmem:[%s6277_s1 + $0x14] ss:$8 sps:$4 sm:$0xff] (!%p138_p2)  }
   0x6   : > { %141 = sbr.rel (%p138_p2) target bundleno = 561 (0x231), region = 32  ;;  %v4525_v1 = vld [vmem:[%s6277_s1 + $0x404] ss:$8 sps:$4 sm:$0xff] (!%p138_p2)   ;;  %407 = vmatprep.subr.bf16.mxu1 (!%p138_p2), %v4523_v0  ;;  %v4528_v3 = vld [vmem:[%s6277_s1 + $0x400] ss:$8 sps:$4 sm:$0xff] (!%p138_p2)   ;;  %p161_p3 = scmp.lt.s32.totalorder (!%p138_p2), %s3681_s13, 1 }
   0x7   : > { %1849 = vmatprep.subr.bf16.mxu0 (!%p138_p2), %v4525_v1  ;;  %408 = vmatpush1.bf16.msra.mxu1 (!%p138_p2), %v4527_v2  ;;  %v4531_v5 = vld [vmem:[%s6277_s1 + $0x414] ss:$8 sps:$4 sm:$0xff] (!%p138_p2)   ;;  %v4533_v6 = vld [vmem:[%s6277_s1 + $0x10] ss:$8 sps:$4 sm:$0xff] (!%p138_p2)   ;;  %v4535_v8 = vld [vmem:[%s6277_s1 + $0x24] ss:$8 sps:$4 sm:$0xff] (!%p138_p2)  }
   0x8   : > { %1850 = vmatpush1.bf16.msra.mxu0 (!%p138_p2), %v4528_v3  ;;  %409 = vmatprep.subr.bf16.mxu1 (!%p138_p2), %v4529_v4  ;;  %v4534_v7 = vld [vmem:[%s6277_s1 + $0x410] ss:$8 sps:$4 sm:$0xff] (!%p138_p2)   ;;  %v4537_v9 = vld [vmem:[%s6277_s1 + $0x424] ss:$8 sps:$4 sm:$0xff] (!%p138_p2)   ;;  %v4539_v10 = vld [vmem:[%s6277_s1 + $0x20] ss:$8 sps:$4 sm:$0xff] (!%p138_p2)  }
   0x9   : > { %1851 = vmatprep.subr.bf16.mxu0 (!%p138_p2), %v4531_v5  ;;  %v4540_v11 = vld [vmem:[%s6277_s1 + $0x420] ss:$8 sps:$4 sm:$0xff] (!%p138_p2)   ;;  %v4541_v12 = vld [vmem:[%s6277_s1 + $0x34] ss:$8 sps:$4 sm:$0xff] (!%p138_p2)   ;;  %v4545_v14 = vld [vmem:[%s6277_s1 + $0x30] ss:$8 sps:$4 sm:$0xff] (!%p138_p2)  }
   0xa   : > { %v4543_v13 = vld [vmem:[%s6277_s1 + $0x434] ss:$8 sps:$4 sm:$0xff] (!%p138_p2)   ;;  %v4546_v15 = vld [vmem:[%s6277_s1 + $0x430] ss:$8 sps:$4 sm:$0xff] (!%p138_p2)   ;;  %v4547_v16 = vld [vmem:[%s6277_s1 + $0x44] ss:$8 sps:$4 sm:$0xff] (!%p138_p2)  }
   0xb   : > { %410 = vmatpush1.bf16.msra.mxu1 (!%p138_p2), %v4533_v6  ;;  %v4549_v17 = vld [vmem:[%s6277_s1 + $0x444] ss:$8 sps:$4 sm:$0xff] (!%p138_p2)   ;;  %v4551_v18 = vld [vmem:[%s6277_s1 + $0x40] ss:$8 sps:$4 sm:$0xff] (!%p138_p2)   ;;  %v4553_v20 = vld [vmem:[%s6277_s1 + $0x54] ss:$8 sps:$4 sm:$0xff] (!%p138_p2)  }
   0xc   : > { %1852 = vmatpush1.bf16.msra.mxu0 (!%p138_p2), %v4534_v7  ;;  %411 = vmatprep.subr.bf16.mxu1 (!%p138_p2), %v4535_v8  ;;  %v4552_v19 = vld [vmem:[%s6277_s1 + $0x440] ss:$8 sps:$4 sm:$0xff] (!%p138_p2)   ;;  %v4555_v21 = vld [vmem:[%s6277_s1 + $0x454] ss:$8 sps:$4 sm:$0xff] (!%p138_p2)   ;;  %v4557_v22 = vld [vmem:[%s6277_s1 + $0x50] ss:$8 sps:$4 sm:$0xff] (!%p138_p2)  }
   0xd   : > { %1853 = vmatprep.subr.bf16.mxu0 %v4537_v9  ;;  %v4558_v23 = vld [vmem:[%s6277_s1 + $0x450] ss:$8 sps:$4 sm:$0xff]   ;;  %v4559_v24 = vld [vmem:[%s6277_s1 + $0x64] ss:$8 sps:$4 sm:$0xff]   ;;  %v4563_v26 = vld [vmem:[%s6277_s1 + $0x60] ss:$8 sps:$4 sm:$0xff]  }
   0xe   : > { %v4561_v25 = vld [vmem:[%s6277_s1 + $0x464] ss:$8 sps:$4 sm:$0xff]   ;;  %v4564_v27 = vld [vmem:[%s6277_s1 + $0x460] ss:$8 sps:$4 sm:$0xff]   ;;  %v4565_v28 = vld [vmem:[%s6277_s1 + $0x74] ss:$8 sps:$4 sm:$0xff]  }
   0xf   : > { %412 = vmatpush1.bf16.msra.mxu1 %v4539_v10  ;;  %v4567_v29 = vld [vmem:[%s6277_s1 + $0x474] ss:$8 sps:$4 sm:$0xff]   ;;  %v4569_v30 = vld [vmem:[%s6277_s1 + $0x70] ss:$8 sps:$4 sm:$0xff]   ;;  %v4571_v32 = vld [vmem:[%s6277_s1 + $0x84] ss:$8 sps:$4 sm:$0xff]  }
  0x10   : > { %1854 = vmatpush1.bf16.msra.mxu0 %v4540_v11  ;;  %413 = vmatprep.subr.bf16.mxu1 %v4541_v12  ;;  %v4570_v31 = vld [vmem:[%s6277_s1 + $0x470] ss:$8 sps:$4 sm:$0xff]   ;;  %v4573_v33 = vld [vmem:[%s6277_s1 + $0x484] ss:$8 sps:$4 sm:$0xff]   ;;  %v4575_v34 = vld [vmem:[%s6277_s1 + $0x80] ss:$8 sps:$4 sm:$0xff]  }
  0x11   : > { %1855 = vmatprep.subr.bf16.mxu0 %v4543_v13  ;;  %v4576_v35 = vld [vmem:[%s6277_s1 + $0x480] ss:$8 sps:$4 sm:$0xff]   ;;  %v4577_v36 = vld [vmem:[%s6277_s1 + $0x94] ss:$8 sps:$4 sm:$0xff]   ;;  %s6281_s13 = smov (!%p161_p3, %s3681_s13), 1 }
  0x12   : > { %v4579_v37 = vld [vmem:[%s6277_s1 + $0x494] ss:$8 sps:$4 sm:$0xff]   ;;  %v4581_v38 = vld [vmem:[%s6277_s1 + $0x90] ss:$8 sps:$4 sm:$0xff]   ;;  %v4583_v40 = vld [vmem:[%s6277_s1 + $0xa4] ss:$8 sps:$4 sm:$0xff]  }
  0x13   : > { %414 = vmatpush1.bf16.msra.mxu1 %v4545_v14  ;;  %v4582_v39 = vld [vmem:[%s6277_s1 + $0x490] ss:$8 sps:$4 sm:$0xff]   ;;  %s4513_s21 = smul.u32 288, %s6281_s13  ;;  %v4585_v41 = vld [vmem:[%s6277_s1 + $0x4a4] ss:$8 sps:$4 sm:$0xff]  }
  0x14   : > { %1856 = vmatpush1.bf16.msra.mxu0 %v4546_v15  ;;  %415 = vmatprep.subr.bf16.mxu1 %v4547_v16  ;;  %v4587_v42 = vld [vmem:[%s6277_s1 + $0xa0] ss:$8 sps:$4 sm:$0xff]   ;;  %v4589_v44 = vld [vmem:[%s6277_s1 + $0xb4] ss:$8 sps:$4 sm:$0xff]   ;;  %v4593_v46 = vld [vmem:[%s6277_s1 + $0xb0] ss:$8 sps:$4 sm:$0xff]  }
  0x15   : > { %1857 = vmatprep.subr.bf16.mxu0 %v4549_v17  ;;  %v4588_v43 = vld [vmem:[%s6277_s1 + $0x4a0] ss:$8 sps:$4 sm:$0xff]   ;;  %s5218_s5 = scalar_lea.vmem %s6276_s0, %s4513_s21  ;;  %v4591_v45 = vld [vmem:[%s6277_s1 + $0x4b4] ss:$8 sps:$4 sm:$0xff]   ;;  %v4594_v47 = vld [vmem:[%s6277_s1 + $0x4b0] ss:$8 sps:$4 sm:$0xff]  }
  0x16   : > { %v4621_v48 = vld [vmem:[%s5218_s5 + $0x4] ss:$8 sps:$4 sm:$0xff]   ;;  %v4599_v52 = vld [vmem:[%s6277_s1 + $0xc0] ss:$8 sps:$4 sm:$0xff]   ;;  %v4601_v54 = vld [vmem:[%s6277_s1 + $0xd4] ss:$8 sps:$4 sm:$0xff]  }
  0x17   : > { %416 = vmatpush1.bf16.msra.mxu1 %v4551_v18  ;;  %v4595_v49 = vld [vmem:[%s6277_s1 + $0xc4] ss:$8 sps:$4 sm:$0xff]   ;;  %439 = vmatprep.mubr.bf16.mxu1 %v4621_v48  ;;  %v4600_v53 = vld [vmem:[%s6277_s1 + $0x4c0] ss:$8 sps:$4 sm:$0xff]   ;;  %v4603_v55 = vld [vmem:[%s6277_s1 + $0x4d4] ss:$8 sps:$4 sm:$0xff]  }
  0x18   : > { %1858 = vmatpush1.bf16.msra.mxu0 %v4552_v19  ;;  %417 = vmatprep.subr.bf16.mxu1 %v4553_v20  ;;  %v4597_v50 = vld [vmem:[%s6277_s1 + $0x4c4] ss:$8 sps:$4 sm:$0xff]   ;;  %v4605_v56 = vld [vmem:[%s6277_s1 + $0xd0] ss:$8 sps:$4 sm:$0xff]   ;;  %v4611_v60 = vld [vmem:[%s6277_s1 + $0xe0] ss:$8 sps:$4 sm:$0xff]  }
  0x19   : > { %1859 = vmatprep.subr.bf16.mxu0 %v4555_v21  ;;  %v4627_v51 = vld [vmem:[%s5218_s5 + $0xdc] ss:$8 sps:$4 sm:$0xff]   ;;  %v4606_v57 = vld [vmem:[%s6277_s1 + $0x4d0] ss:$8 sps:$4 sm:$0xff]   ;;  %v4612_v61 = vld [vmem:[%s6277_s1 + $0x4e0] ss:$8 sps:$4 sm:$0xff]  }
  0x1a   : > { %1881 = vmatprep.mubr.bf16.mxu0 %v4627_v51  ;;  %v4607_v58 = vld [vmem:[%s6277_s1 + $0xe4] ss:$8 sps:$4 sm:$0xff]   ;;  %v4613_v62 = vld [vmem:[%s6277_s1 + $0xf4] ss:$8 sps:$4 sm:$0xff]   ;;  %v4617_v0 = vld [vmem:[%s6277_s1 + $0xf0] ss:$8 sps:$4 sm:$0xff]  }
  0x1b   : > { %418 = vmatpush1.bf16.msra.mxu1 %v4557_v22  ;;  %v4609_v59 = vld [vmem:[%s6277_s1 + $0x4e4] ss:$8 sps:$4 sm:$0xff]   ;;  %v4615_v63 = vld [vmem:[%s6277_s1 + $0x4f4] ss:$8 sps:$4 sm:$0xff]   ;;  %v4618_v1 = vld [vmem:[%s6277_s1 + $0x4f0] ss:$8 sps:$4 sm:$0xff]  }
  0x1c   : > { %1860 = vmatpush1.bf16.msra.mxu0 %v4558_v23  ;;  %419 = vmatprep.subr.bf16.mxu1 %v4559_v24  ;;  %v4624_v2 = vld [vmem:[%s6277_s1 + $0x104] ss:$8 sps:$4 sm:$0xff]   ;;  %v4619_v4 = vld [vmem:[%s5218_s5] ss:$8 sps:$4 sm:$0xff]   ;;  %v4633_v8 = vld [vmem:[%s6277_s1 + $0x114] ss:$8 sps:$4 sm:$0xff]  }
  0x1d   : > { %1861 = vmatprep.subr.bf16.mxu0 %v4561_v25  ;;  %v4630_v3 = vld [vmem:[%s6277_s1 + $0x504] ss:$8 sps:$4 sm:$0xff]   ;;  %v4622_v5 = vld [vmem:[%s6277_s1 + $0x100] ss:$8 sps:$4 sm:$0xff]   ;;  %v4636_v9 = vld [vmem:[%s6277_s1 + $0x514] ss:$8 sps:$4 sm:$0xff]  }
  0x1e   : > { %v4625_v6 = vld [vmem:[%s5218_s5 + $0xd8] ss:$8 sps:$4 sm:$0xff]   ;;  %v4639_v12 = vld [vmem:[%s6277_s1 + $0x124] ss:$8 sps:$4 sm:$0xff]   ;;  %v5318_v16 = vld [vmem:[%s5218_s5 + $0x10] sm:$0xff]  ;;  %s4514_s17 = smul.u32 56, %s6281_s13 }
  0x1f   : > { %420 = vmatpush1.bf16.msra.mxu1 %v4563_v26  ;;  %v4628_v7 = vld [vmem:[%s6277_s1 + $0x500] ss:$8 sps:$4 sm:$0xff]   ;;  %v4631_v10 = vld [vmem:[%s6277_s1 + $0x110] ss:$8 sps:$4 sm:$0xff]   ;;  %v4642_v13 = vld [vmem:[%s6277_s1 + $0x524] ss:$8 sps:$4 sm:$0xff]  }
  0x20   : > { %1862 = vmatpush1.bf16.msra.mxu0 %v4564_v27  ;;  %421 = vmatprep.subr.bf16.mxu1 %v4565_v28  ;;  %v4634_v11 = vld [vmem:[%s6277_s1 + $0x510] ss:$8 sps:$4 sm:$0xff]   ;;  %v4637_v14 = vld [vmem:[%s6277_s1 + $0x120] ss:$8 sps:$4 sm:$0xff]   ;;  %v4645_v18 = vld [vmem:[%s6277_s1 + $0x134] ss:$8 sps:$4 sm:$0xff]   ;;  %s6247_s19 = scalar_lea.vmem %s6279_s3, %s4514_s17 }
  0x21   : > { %1863 = vmatprep.subr.bf16.mxu0 %v4567_v29  ;;  %v4640_v15 = vld [vmem:[%s6277_s1 + $0x520] ss:$8 sps:$4 sm:$0xff]   ;;  %v174_v17 = vld [vmem:[%s5218_s5 + $0x18] sm:$0xff]  ;;  %v4689_v21 = vld [vmem:[%s5218_s5 + $0xec] ss:$8 sps:$4 sm:$0xff]  }
  0x22   : > { %v4648_v19 = vld [vmem:[%s6277_s1 + $0x534] ss:$8 sps:$4 sm:$0xff]   ;;  %v5328_v20 = vcombine.high %v5318_v16, %v174_v17  ;;  %v5332_v22 = vcombine.low %v5318_v16, %v174_v17  ;;  %v4643_v23 = vld [vmem:[%s6277_s1 + $0x130] ss:$8 sps:$4 sm:$0xff]   ;;  %v4651_v26 = vld [vmem:[%s6277_s1 + $0x144] ss:$8 sps:$4 sm:$0xff]  }
  0x23   : > { %422 = vmatpush1.bf16.msra.mxu1 %v4569_v30  ;;  %v4646_v24 = vld [vmem:[%s6277_s1 + $0x530] ss:$8 sps:$4 sm:$0xff]   ;;  %v4654_v27 = vld [vmem:[%s6277_s1 + $0x544] ss:$8 sps:$4 sm:$0xff]   ;;  %v4649_v28 = vld [vmem:[%s6277_s1 + $0x140] ss:$8 sps:$4 sm:$0xff]  }
  0x24   : > { %1864 = vmatpush1.bf16.msra.mxu0 %v4570_v31  ;;  %423 = vmatprep.subr.bf16.mxu1 %v4571_v32  ;;  %v4695_v25 = vld [vmem:[%s5218_s5 + $0xe8] ss:$8 sps:$4 sm:$0xff]   ;;  %v175_v30 = vld [vmem:[%s5218_s5 + $0x20] sm:$0xff]  ;;  %v4657_v32 = vld [vmem:[%s6277_s1 + $0x154] ss:$8 sps:$4 sm:$0xff]  }
  0x25   : > { %1865 = vmatprep.subr.bf16.mxu0 %v4573_v33  ;;  %v4652_v29 = vld [vmem:[%s6277_s1 + $0x540] ss:$8 sps:$4 sm:$0xff]   ;;  %v4672_v48 = vld [vmem:[%s6277_s1 + $0x574] ss:$8 sps:$4 sm:$0xff]   ;;  %v4667_v51 = vld [vmem:[%s6277_s1 + $0x170] ss:$8 sps:$4 sm:$0xff]  }
  0x26   : > { %v176_v31 = vld [vmem:[%s5218_s5 + $0x28] sm:$0xff]  ;;  %vm916_vm0 = vsmask.f32 7424 }
  0x27   : > { %424 = vmatpush1.bf16.msra.mxu1 %v4575_v34  ;;  %v5360_v33 = vcombine.high %v175_v30, %v176_v31  ;;  %v4660_v34 = vld [vmem:[%s6277_s1 + $0x554] ss:$8 sps:$4 sm:$0xff]  }
  0x28   : > { %1866 = vmatpush1.bf16.msra.mxu0 %v4576_v35  ;;  %425 = vmatprep.subr.bf16.mxu1 %v4577_v36  ;;  %v4706_v35 = vld [vmem:[%s5218_s5 + $0xfc] ss:$8 sps:$4 sm:$0xff]   ;;  %v5367_v36 = vcombine.low %v175_v30, %v176_v31 }
  0x29   : > { %1867 = vmatprep.subr.bf16.mxu0 %v4579_v37  ;;  %v4655_v37 = vld [vmem:[%s6277_s1 + $0x150] ss:$8 sps:$4 sm:$0xff]   ;;  %v4705_v31 = vld [vmem:[%s6277_s1 + $0x1c4] ss:$8 sps:$4 sm:$0xff]  }
  0x2b   : > { %426 = vmatpush1.bf16.msra.mxu1 %v4581_v38  ;;  %v4658_v38 = vld [vmem:[%s6277_s1 + $0x550] ss:$8 sps:$4 sm:$0xff]  }
  0x2c   : > { %1868 = vmatpush1.bf16.msra.mxu0 %v4582_v39  ;;  %427 = vmatprep.subr.bf16.mxu1 %v4583_v40  ;;  %v4712_v39 = vld [vmem:[%s5218_s5 + $0xf8] ss:$8 sps:$4 sm:$0xff]   ;;  %v4663_v40 = vld [vmem:[%s6277_s1 + $0x164] ss:$8 sps:$4 sm:$0xff]  }
  0x2d   : > { %1869 = vmatprep.subr.bf16.mxu0 %v4585_v41  ;;  %v4666_v41 = vld [vmem:[%s6277_s1 + $0x564] ss:$8 sps:$4 sm:$0xff]  }
  0x2f   : > { %428 = vmatpush1.bf16.msra.mxu1 %v4587_v42  ;;  %v5384_v42 = vld [vmem:[%s5218_s5 + $0x30] sm:$0xff] }
  0x30   : > { %1870 = vmatpush1.bf16.msra.mxu0 %v4588_v43  ;;  %429 = vmatprep.subr.bf16.mxu1 %v4589_v44  ;;  %v4661_v43 = vld [vmem:[%s6277_s1 + $0x160] ss:$8 sps:$4 sm:$0xff]   ;;  %v3695_v44 = vcombine.high %v5384_v42, %v5384_v42 }
  0x31   : > { %1871 = vmatprep.subr.bf16.mxu0 %v4591_v45  ;;  %v4664_v45 = vld [vmem:[%s6277_s1 + $0x560] ss:$8 sps:$4 sm:$0xff]  }
  0x33   : > { %430 = vmatpush1.bf16.msra.mxu1 %v4593_v46  ;;  %v3964_v46 = vld [vmem:[%s5218_s5 + $0x108] sm:$0xff] }
  0x34   : > { %1872 = vmatpush1.bf16.msra.mxu0 %v4594_v47  ;;  %431 = vmatprep.subr.bf16.mxu1 %v4595_v49  ;;  %v4669_v47 = vld [vmem:[%s6277_s1 + $0x174] ss:$8 sps:$4 sm:$0xff]   ;;  %v4004_v49 = vcombine.high %v3964_v46, %v3964_v46 }
  0x35   : > { %1873 = vmatprep.subr.bf16.mxu0 %v4597_v50  ;;  %v3694_v50 = vcombine.low %v5384_v42, %v5384_v42 }
  0x37   : > { %432 = vmatpush1.bf16.msra.mxu1 %v4599_v52  ;;  %v4003_v52 = vcombine.low %v3964_v46, %v3964_v46  ;;  %v4726_v46 = vld [vmem:[%s6277_s1 + $0x5e4] ss:$8 sps:$4 sm:$0xff]  }
  0x38   : > { %1874 = vmatpush1.bf16.msra.mxu0 %v4600_v53  ;;  %433 = vmatprep.subr.bf16.mxu1 %v4601_v54  ;;  %v4670_v53 = vld [vmem:[%s6277_s1 + $0x570] ss:$8 sps:$4 sm:$0xff]   ;;  %v4675_v54 = vld [vmem:[%s6277_s1 + $0x184] ss:$8 sps:$4 sm:$0xff]  }
  0x39   : > { %1875 = vmatprep.subr.bf16.mxu0 %v4603_v55  ;;  %v4678_v55 = vld [vmem:[%s6277_s1 + $0x584] ss:$8 sps:$4 sm:$0xff]  }
  0x3b   : > { %434 = vmatpush1.bf16.msra.mxu1 %v4605_v56  ;;  %v4737_v56 = vld [vmem:[%s5218_s5 + $0x4c] ss:$8 sps:$4 sm:$0xff]  }
  0x3c   : > { %1876 = vmatpush1.bf16.msra.mxu0 %v4606_v57  ;;  %435 = vmatprep.subr.bf16.mxu1 %v4607_v58  ;;  %v4673_v57 = vld [vmem:[%s6277_s1 + $0x180] ss:$8 sps:$4 sm:$0xff]  }
  0x3d   : > { %1877 = vmatprep.subr.bf16.mxu0 %v4609_v59  ;;  %v4676_v58 = vld [vmem:[%s6277_s1 + $0x580] ss:$8 sps:$4 sm:$0xff]   ;;  %v4681_v59 = vld [vmem:[%s6277_s1 + $0x194] ss:$8 sps:$4 sm:$0xff]  }
  0x3f   : > { %436 = vmatpush1.bf16.msra.mxu1 %v4611_v60  ;;  %v4684_v60 = vld [vmem:[%s6277_s1 + $0x594] ss:$8 sps:$4 sm:$0xff]  }
  0x40   : > { %1878 = vmatpush1.bf16.msra.mxu0 %v4612_v61  ;;  %437 = vmatprep.subr.bf16.mxu1 %v4613_v62  ;;  %v4743_v61 = vld [vmem:[%s5218_s5 + $0x94] ss:$8 sps:$4 sm:$0xff]   ;;  %v5430_v62 = vld [vmem:[%s5218_s5 + $0xa4] ss:$8 sps:$4 sm:$0xff]  }
  0x41   : > { %1879 = vmatprep.subr.bf16.mxu0 %v4615_v63  ;;  %v4679_v63 = vld [vmem:[%s6277_s1 + $0x190] ss:$8 sps:$4 sm:$0xff]  }
  0x43   : > { %438 = vmatpush1.bf16.msra.mxu1 %v4617_v0  ;;  %v4682_v0 = vld [vmem:[%s6277_s1 + $0x590] ss:$8 sps:$4 sm:$0xff]  }
  0x44   : > { %1880 = vmatpush1.bf16.msra.mxu0 %v4618_v1  ;;  %730 = vmatprep.subr.bf16.mxu1 %v4624_v2  ;;  %v2048_v1 = vshrl.u32 %v4743_v61, 16  ;;  %v2050_v2 = vshll.u32 %v4743_v61, 16  ;;  %v5549_v61 = vld [vmem:[%s5218_s5 + $0x58] sm:$0xff] }
  0x45   : > { %2265 = vmatprep.subr.bf16.mxu0 %v4630_v3  ;;  %v2055_v3 = vshll.u32 %v5430_v62, 16 }
  0x46   : > { %440 = vmatmul.mubr.bf16.vlgmr.msra.gmra.mrb[0].mxu1 %v4619_v4  ;;  %v937_v4 = vshll.u32 %v5328_v20, 16 }
  0x47   : > { %1882 = vmatmul.mubr.bf16.vlgmr.msra.gmra.mrb[0].mxu0 %v4625_v6  ;;  %731 = vmatpush1.bf16.msra.mxu1 %v4622_v5  ;;  %v4688_v5 = vld [vmem:[%s6277_s1 + $0x1a4] ss:$8 sps:$4 sm:$0xff]   ;;  %v925_v6 = vshll.u32 %v5332_v22, 16 }
  0x48   : > { %2266 = vmatpush1.bf16.msra.mxu0 %v4628_v7  ;;  %732 = vmatprep.subr.bf16.mxu1 %v4633_v8  ;;  %v4693_v7 = vld [vmem:[%s6277_s1 + $0x5a4] ss:$8 sps:$4 sm:$0xff]   ;;  %v2052_v8 = vrot.slane %v2050_v2, 1 }
  0x49   : > { %2267 = vmatprep.subr.bf16.mxu0 %v4636_v9  ;;  %449 = vmatprep.mubr.bf16.mxu1 %v5328_v20  ;;  %v5447_v9 = vrot.slane %v2055_v3, 1  ;;  %v5459_v17 = vrot.slane %v925_v6, 1  ;;  %v5559_v2 = vld [vmem:[%s5218_s5 + $0x60] sm:$0xff]  ;;  %v4808_v3 = vld [vmem:[%s5218_s5 + $0xb4] ss:$8 sps:$4 sm:$0xff]  }
  0x4a   : > { %1891 = vmatprep.mubr.bf16.mxu0 %v4689_v21  ;;  %v4698_v21 = vld [vmem:[%s6277_s1 + $0x1b4] ss:$8 sps:$4 sm:$0xff]  }
  0x4b   : > { %733 = vmatpush1.bf16.msra.mxu1 %v4631_v10  ;;  %v4686_v10 = vld [vmem:[%s6277_s1 + $0x1a0] ss:$8 sps:$4 sm:$0xff]  }
  0x4c   : > { %2268 = vmatpush1.bf16.msra.mxu0 %v4634_v11  ;;  %734 = vmatprep.subr.bf16.mxu1 %v4639_v12  ;;  %v4691_v11 = vld [vmem:[%s6277_s1 + $0x5a0] ss:$8 sps:$4 sm:$0xff]   ;;  %v2053_v12 = vor.u32 %v2052_v8, %v2048_v1 }
  0x4d   : > { %2269 = vmatprep.subr.bf16.mxu0 %v4642_v13  ;;  %v5455_v13 = vrot.slane %v937_v4, 1  ;;  %v4747_v1 = vld [vmem:[%s6277_s1 + $0x600] ss:$8 sps:$4 sm:$0xff]  }
  0x4e   : > { %450 = vmatmul.mubr.bf16.gmra.mrb[4].mxu1 %v5332_v22 }
  0x4f   : > { %735 = vmatpush1.bf16.msra.mxu1 %v4637_v14  ;;  %1892 = vmatmul.mubr.bf16.gmra.mrb[4].mxu0 %v4695_v25  ;;  %v949_v14 = vshrl.u32 %v5328_v20, 16  ;;  %v4701_v20 = vld [vmem:[%s6277_s1 + $0x5b4] ss:$8 sps:$4 sm:$0xff]  }
  0x50   : > { %2270 = vmatpush1.bf16.msra.mxu0 %v4640_v15  ;;  %736 = vmatprep.subr.bf16.mxu1 %v4645_v18  ;;  %v953_v15 = vshll.u32 %v5360_v33, 16  ;;  %v941_v18 = vshrl.u32 %v5332_v22, 16 }
  0x51   : > { %2271 = vmatprep.subr.bf16.mxu0 %v4648_v19  ;;  %459 = vmatprep.mubr.bf16.mxu1 %v5360_v33  ;;  %v945_v19 = vshll.u32 %v5367_v36, 16 }
  0x52   : > { %1901 = vmatprep.mubr.bf16.mxu0 %v4706_v35  ;;  %v5472_v25 = vrot.slane %v953_v15, 1  ;;  %v943_v22 = vor.u32 %v941_v18, %v5459_v17  ;;  %v4708_v35 = vld [vmem:[%s6277_s1 + $0x5c0] ss:$8 sps:$4 sm:$0xff]  }
  0x53   : > { %737 = vmatpush1.bf16.msra.mxu1 %v4643_v23  ;;  %v2058_v23 = vsel %vm916_vm0, %v2053_v12, %v5447_v9 }
  0x54   : > { %2272 = vmatpush1.bf16.msra.mxu0 %v4646_v24  ;;  %738 = vmatprep.subr.bf16.mxu1 %v4651_v26  ;;  %v951_v24 = vor.u32 %v949_v14, %v5455_v13  ;;  %v5475_v26 = vrot.slane %v945_v19, 1  ;;  %v4750_v14 = vld [vmem:[%s6277_s1 + $0x210] ss:$8 sps:$4 sm:$0xff]  }
  0x55   : > { %2273 = vmatprep.subr.bf16.mxu0 %v4654_v27  ;;  %v4696_v27 = vld [vmem:[%s6277_s1 + $0x1b0] ss:$8 sps:$4 sm:$0xff]  }
  0x56   : > { %460 = vmatmul.mubr.bf16.gmra.mrb[8].mxu1 %v5367_v36  ;;  %v5489_v30 = vsel %vm916_vm0, %v943_v22, %v5475_v26  ;;  %v2083_v22 = vshrl.u32 %v4808_v3, 16 }
  0x57   : > { %739 = vmatpush1.bf16.msra.mxu1 %v4649_v28  ;;  %1902 = vmatmul.mubr.bf16.gmra.mrb[8].mxu0 %v4712_v39  ;;  %v5482_v28 = vsel %vm916_vm0, %v951_v24, %v5472_v25  ;;  %v4718_v39 = vld [vmem:[%s6277_s1 + $0x5d4] ss:$8 sps:$4 sm:$0xff]   ;;  %v4043_v24 = vld [vmem:[%s5218_s5 + $0xc0] sm:$0xff] }
  0x58   : > { %2274 = vmatpush1.bf16.msra.mxu0 %v4652_v29  ;;  %740 = vmatprep.subr.bf16.mxu1 %v4657_v32  ;;  %v4699_v29 = vld [vmem:[%s6277_s1 + $0x5b0] ss:$8 sps:$4 sm:$0xff]   ;;  %v4710_v32 = vld [vmem:[%s6277_s1 + $0x5c4] ss:$8 sps:$4 sm:$0xff]  }
  0x59   : > { %2275 = vmatprep.subr.bf16.mxu0 %v4660_v34  ;;  %469 = vmatprep.mubr.bf16.mxu1 %v3695_v44  ;;  %v4703_v34 = vld [vmem:[%s6277_s1 + $0x1c0] ss:$8 sps:$4 sm:$0xff]  }
  0x5a   : > { %1911 = vmatprep.mubr.bf16.mxu0 %v4004_v49 }
  0x5b   : > { %741 = vmatpush1.bf16.msra.mxu1 %v4655_v37  ;;  %v4741_v37 = vld [vmem:[%s5218_s5 + $0x90] ss:$8 sps:$4 sm:$0xff]  }
  0x5c   : > { %2276 = vmatpush1.bf16.msra.mxu0 %v4658_v38  ;;  %742 = vmatprep.subr.bf16.mxu1 %v4663_v40  ;;  %v4715_v38 = vld [vmem:[%s6277_s1 + $0x1d4] ss:$8 sps:$4 sm:$0xff]   ;;  %v4713_v40 = vld [vmem:[%s6277_s1 + $0x1d0] ss:$8 sps:$4 sm:$0xff]   ;;  %v2038_v44 = vshll.u32 %v4741_v37, 16  ;;  %v2036_v49 = vshrl.u32 %v4741_v37, 16 }
  0x5d   : > { %2277 = vmatprep.subr.bf16.mxu0 %v4666_v41  ;;  %v4716_v41 = vld [vmem:[%s6277_s1 + $0x5d0] ss:$8 sps:$4 sm:$0xff]  }
  0x5e   : > { %470 = vmatmul.mubr.bf16.gmra.mrb[12].mxu1 %v3694_v50  ;;  %v2040_v50 = vrot.slane %v2038_v44, 1  ;;  %v4767_v44 = vld [vmem:[%s6277_s1 + $0x634] ss:$8 sps:$4 sm:$0xff]  }
  0x5f   : > { %743 = vmatpush1.bf16.msra.mxu1 %v4661_v43  ;;  %1912 = vmatmul.mubr.bf16.gmra.mrb[12].mxu0 %v4003_v52  ;;  %v4744_v43 = vld [vmem:[%s5218_s5 + $0xa0] ss:$8 sps:$4 sm:$0xff]   ;;  %v4731_v52 = vld [vmem:[%s6277_s1 + $0x1f4] ss:$8 sps:$4 sm:$0xff]  }
  0x60   : > { %2278 = vmatpush1.bf16.msra.mxu0 %v4664_v45  ;;  %744 = vmatprep.subr.bf16.mxu1 %v4669_v47  ;;  %v4722_v45 = vld [vmem:[%s6277_s1 + $0x1e4] ss:$8 sps:$4 sm:$0xff]   ;;  %v4720_v47 = vld [vmem:[%s6277_s1 + $0x1e0] ss:$8 sps:$4 sm:$0xff]   ;;  %v2059_v6 = vshrl.u32 %v4744_v43, 16 }
  0x61   : > { %2279 = vmatprep.subr.bf16.mxu0 %v4672_v48  ;;  %762 = vmatprep.mubr.bf16.mxu1 %v4737_v56  ;;  %v4724_v48 = vld [vmem:[%s6277_s1 + $0x5e0] ss:$8 sps:$4 sm:$0xff]   ;;  %v4740_v56 = vld [vmem:[%s6277_s1 + $0x204] ss:$8 sps:$4 sm:$0xff]  }
  0x62   : > { %2297 = vmatprep.mubr.bf16.mxu0 %v2058_v23 }
  0x63   : > { %745 = vmatpush1.bf16.msra.mxu1 %v4667_v51  ;;  %v2043_v51 = vshll.u32 %v4744_v43, 16 }
  0x64   : > { %2280 = vmatpush1.bf16.msra.mxu0 %v4670_v53  ;;  %746 = vmatprep.subr.bf16.mxu1 %v4675_v54  ;;  %v4734_v53 = vld [vmem:[%s6277_s1 + $0x5f4] ss:$8 sps:$4 sm:$0xff]   ;;  %v4729_v54 = vld [vmem:[%s6277_s1 + $0x1f0] ss:$8 sps:$4 sm:$0xff]  }
  0x65   : > { %2281 = vmatprep.subr.bf16.mxu0 %v4678_v55  ;;  %v4732_v55 = vld [vmem:[%s6277_s1 + $0x5f0] ss:$8 sps:$4 sm:$0xff]  }
  0x67   : > { %747 = vmatpush1.bf16.msra.mxu1 %v4673_v57  ;;  %v4749_v57 = vld [vmem:[%s6277_s1 + $0x604] ss:$8 sps:$4 sm:$0xff]  }
  0x68   : > { %2282 = vmatpush1.bf16.msra.mxu0 %v4676_v58  ;;  %748 = vmatprep.subr.bf16.mxu1 %v4681_v59  ;;  %v2041_v58 = vor.u32 %v2040_v50, %v2036_v49  ;;  %v2045_v59 = vrot.slane %v2043_v51, 1  ;;  %v4762_v50 = vld [vmem:[%s6277_s1 + $0x230] ss:$8 sps:$4 sm:$0xff]  }
  0x69   : > { %2283 = vmatprep.subr.bf16.mxu0 %v4684_v60  ;;  %v4735_v60 = vld [vmem:[%s5218_s5 + $0x48] ss:$8 sps:$4 sm:$0xff]  }
  0x6a   : > { %v2046_v4 = vsel %vm916_vm0, %v2041_v58, %v2045_v59  ;;  %v2061_v18 = vor.u32 %v2059_v6, %v2045_v59  ;;  %v4768_v58 = vld [vmem:[%s6277_s1 + $0x240] ss:$8 sps:$4 sm:$0xff]   ;;  %v4779_v6 = vld [vmem:[%s6277_s1 + $0x654] ss:$8 sps:$4 sm:$0xff]  }
  0x6b   : > { %749 = vmatpush1.bf16.msra.mxu1 %v4679_v63  ;;  %v2067_v63 = vshrl.u32 %v5430_v62, 16  ;;  %v4814_v62 = vld [vmem:[%s5218_s5 + $0xb0] ss:$8 sps:$4 sm:$0xff]  }
  0x6c   : > { %2284 = vmatpush1.bf16.msra.mxu0 %v4682_v0  ;;  %750 = vmatprep.subr.bf16.mxu1 %v4688_v5  ;;  %v4738_v0 = vld [vmem:[%s6277_s1 + $0x200] ss:$8 sps:$4 sm:$0xff]   ;;  %v4752_v5 = vld [vmem:[%s6277_s1 + $0x214] ss:$8 sps:$4 sm:$0xff]   ;;  %v2063_v12 = vshll.u32 %v4814_v62, 16 }
  0x6d   : > { %2285 = vmatprep.subr.bf16.mxu0 %v4693_v7  ;;  %v4755_v7 = vld [vmem:[%s6277_s1 + $0x614] ss:$8 sps:$4 sm:$0xff]   ;;  %v2069_v8 = vor.u32 %v2067_v63, %v5447_v9  ;;  %v4753_v9 = vld [vmem:[%s6277_s1 + $0x610] ss:$8 sps:$4 sm:$0xff]  }
  0x6e   : > { %v2065_v19 = vrot.slane %v2063_v12, 1 }
  0x6f   : > { %751 = vmatpush1.bf16.msra.mxu1 %v4686_v10  ;;  %v2071_v10 = vshll.u32 %v4808_v3, 16  ;;  %v5644_v3 = vld [vmem:[%s5218_s5] sm:$0xff] }
  0x70   : > { %2286 = vmatpush1.bf16.msra.mxu0 %v4691_v11  ;;  %752 = vmatprep.subr.bf16.mxu1 %v4698_v21  ;;  %v3770_v11 = vcombine.high %v5549_v61, %v5559_v2  ;;  %v4758_v21 = vld [vmem:[%s6277_s1 + $0x224] ss:$8 sps:$4 sm:$0xff]  }
  0x71   : > { %2287 = vmatprep.subr.bf16.mxu0 %v4701_v20  ;;  %v2073_v15 = vrot.slane %v2071_v10, 1  ;;  %v4761_v20 = vld [vmem:[%s6277_s1 + $0x624] ss:$8 sps:$4 sm:$0xff]  }
  0x73   : > { %753 = vmatpush1.bf16.msra.mxu1 %v4696_v27  ;;  %v2074_v23 = vsel %vm916_vm0, %v2069_v8, %v2073_v15  ;;  %v4756_v27 = vld [vmem:[%s6277_s1 + $0x220] ss:$8 sps:$4 sm:$0xff]   ;;  %v4774_v8 = vld [vmem:[%s6277_s1 + $0x250] ss:$8 sps:$4 sm:$0xff]  }
  0x74   : > { %2288 = vmatpush1.bf16.msra.mxu0 %v4699_v29  ;;  %754 = vmatprep.subr.bf16.mxu1 %v4705_v31  ;;  %v4044_v29 = vld [vmem:[%s5218_s5 + $0xc8] sm:$0x11]  ;;  %v3769_v31 = vcombine.low %v5549_v61, %v5559_v2 }
  0x75   : > { %2289 = vmatprep.subr.bf16.mxu0 %v4710_v32  ;;  %v5594_v32 = vld [vmem:[%s5218_s5 + $0x68] sm:$0xff]  ;;  %v5599_v37 = vcombine.low %v4043_v24, %v4044_v29 }
  0x76   : > { %v4231_v43 = vcombine.high %v5559_v2, %v5594_v32 }
  0x77   : > { %755 = vmatpush1.bf16.msra.mxu1 %v4703_v34  ;;  %v5597_v34 = vld [vmem:[%s5218_s5 + $0x70] sm:$0xff] }
  0x78   : > { %2290 = vmatpush1.bf16.msra.mxu0 %v4708_v35  ;;  %756 = vmatprep.subr.bf16.mxu1 %v4715_v38  ;;  %v4084_v35 = vcombine.high %v4043_v24, %v4044_v29  ;;  %v4759_v38 = vld [vmem:[%s6277_s1 + $0x620] ss:$8 sps:$4 sm:$0xff]   ;;  %v3772_v49 = vcombine.high %v5594_v32, %v5597_v34  ;;  %v3771_v63 = vcombine.low %v5594_v32, %v5597_v34 }
  0x79   : > { %2291 = vmatprep.subr.bf16.mxu0 %v4718_v39  ;;  %v4764_v39 = vld [vmem:[%s6277_s1 + $0x234] ss:$8 sps:$4 sm:$0xff]   ;;  %v4783_v24 = vld [vmem:[%s6277_s1 + $0x660] ss:$8 sps:$4 sm:$0xff]  }
  0x7a   : > { %v2094_v59 = vshrl.u32 %v4084_v35, 16 }
  0x7b   : > { %757 = vmatpush1.bf16.msra.mxu1 %v4713_v40  ;;  %v2066_v40 = vsel %vm916_vm0, %v2061_v18, %v2065_v19 }
  0x7c   : > { %2292 = vmatpush1.bf16.msra.mxu0 %v4716_v41  ;;  %758 = vmatprep.subr.bf16.mxu1 %v4722_v45  ;;  %v2075_v41 = vshrl.u32 %v4814_v62, 16  ;;  %v2085_v45 = vor.u32 %v2083_v22, %v2073_v15  ;;  %v4776_v62 = vld [vmem:[%s6277_s1 + $0x254] ss:$8 sps:$4 sm:$0xff]   ;;  %v2091_v15 = vshrl.u32 %v5599_v37, 16 }
  0x7d   : > { %2293 = vmatprep.subr.bf16.mxu0 %v4726_v46  ;;  %v2087_v46 = vshll.u32 %v4084_v35, 16  ;;  %v4791_v35 = vld [vmem:[%s6277_s1 + $0x674] ss:$8 sps:$4 sm:$0xff]  }
  0x7f   : > { %759 = vmatpush1.bf16.msra.mxu1 %v4720_v47  ;;  %v2079_v47 = vshll.u32 %v5599_v37, 16  ;;  %v2089_v51 = vrot.slane %v2087_v46, 1  ;;  %v4803_v46 = vld [vmem:[%s6277_s1 + $0x694] ss:$8 sps:$4 sm:$0xff]  }
  0x80   : > { %2294 = vmatpush1.bf16.msra.mxu0 %v4724_v48  ;;  %760 = vmatprep.subr.bf16.mxu1 %v4731_v52  ;;  %v4230_v48 = vcombine.low %v5559_v2, %v5594_v32  ;;  %v4765_v52 = vld [vmem:[%s6277_s1 + $0x630] ss:$8 sps:$4 sm:$0xff]   ;;  %v4195_v2 = vld [vmem:[%s5218_s5 + $0x80] sm:$0xff] }
  0x81   : > { %2295 = vmatprep.subr.bf16.mxu0 %v4734_v53  ;;  %v4770_v53 = vld [vmem:[%s6277_s1 + $0x244] ss:$8 sps:$4 sm:$0xff]  }
  0x83   : > { %761 = vmatpush1.bf16.msra.mxu1 %v4729_v54  ;;  %v2077_v54 = vor.u32 %v2075_v41, %v2065_v19  ;;  %v4782_v19 = vld [vmem:[%s6277_s1 + $0x264] ss:$8 sps:$4 sm:$0xff]  }
  0x84   : > { %2296 = vmatpush1.bf16.msra.mxu0 %v4732_v55  ;;  %1147 = vmatprep.subr.bf16.mxu1 %v4740_v56  ;;  %v2081_v55 = vrot.slane %v2079_v47, 1  ;;  %v4773_v56 = vld [vmem:[%s6277_s1 + $0x644] ss:$8 sps:$4 sm:$0xff]   ;;  %v4798_v47 = vld [vmem:[%s6277_s1 + $0x290] ss:$8 sps:$4 sm:$0xff]  }
  0x85   : > { %2615 = vmatprep.subr.bf16.mxu0 %v4749_v57  ;;  %v2090_v57 = vsel %vm916_vm0, %v2085_v45, %v2089_v51  ;;  %v4794_v41 = vld [vmem:[%s6277_s1 + $0x284] ss:$8 sps:$4 sm:$0xff]   ;;  %v4800_v45 = vld [vmem:[%s6277_s1 + $0x294] ss:$8 sps:$4 sm:$0xff]  }
  0x86   : > { %763 = vmatmul.mubr.bf16.vlgmr.msra.gmra.mrb[0].mxu1 %v4735_v60  ;;  %v4771_v60 = vld [vmem:[%s6277_s1 + $0x640] ss:$8 sps:$4 sm:$0xff]  }
  0x87   : > { %2298 = vmatmul.mubr.bf16.vlgmr.msra.gmra.mrb[0].mxu0 %v2046_v4  ;;  %1148 = vmatpush1.bf16.msra.mxu1 %v4738_v0  ;;  %v5640_v0 = vld [vmem:[%s5218_s5 + $0x78] sm:$0xff]  ;;  %v5647_v4 = vld [vmem:[%s5218_s5 + $0x8] sm:$0xff] }
  0x88   : > { %2616 = vmatpush1.bf16.msra.mxu0 %v4747_v1  ;;  %1149 = vmatprep.subr.bf16.mxu1 %v4752_v5  ;;  %v2082_v1 = vsel %vm916_vm0, %v2077_v54, %v2081_v55  ;;  %v4233_v5 = vcombine.high %v5597_v34, %v5640_v0  ;;  %v3774_v10 = vcombine.high %v5640_v0, %v5640_v0  ;;  %v4817_v54 = vld [vmem:[%s6277_s1 + $0x2b4] ss:$8 sps:$4 sm:$0xff]  }
  0x89   : > { %2617 = vmatprep.subr.bf16.mxu0 %v4755_v7  ;;  %772 = vmatprep.mubr.bf16.mxu1 %v3770_v11  ;;  %v3840_v7 = vcombine.high %v5644_v3, %v5647_v4  ;;  %v2096_v11 = vor.u32 %v2094_v59, %v2089_v51  ;;  %v4232_v12 = vcombine.low %v5597_v34, %v5640_v0  ;;  %v4812_v51 = vld [vmem:[%s6277_s1 + $0x6a4] ss:$8 sps:$4 sm:$0xff]  }
  0x8a   : > { %2307 = vmatprep.mubr.bf16.mxu0 %v2074_v23  ;;  %v4780_v23 = vld [vmem:[%s6277_s1 + $0x260] ss:$8 sps:$4 sm:$0xff]   ;;  %v3773_v22 = vcombine.low %v5640_v0, %v5640_v0  ;;  %v4150_v37 = vcombine.high %v5647_v4, %v5318_v16  ;;  %v4797_v16 = vld [vmem:[%s6277_s1 + $0x684] ss:$8 sps:$4 sm:$0xff]  }
  0x8b   : > { %1150 = vmatpush1.bf16.msra.mxu1 %v4750_v14  ;;  %v4777_v14 = vld [vmem:[%s6277_s1 + $0x650] ss:$8 sps:$4 sm:$0xff]   ;;  %v932_v18 = vshll.u32 %v3840_v7, 16  ;;  %v4828_v59 = vld [vmem:[%s6277_s1 + $0x6c4] ss:$8 sps:$4 sm:$0xff]  }
  0x8c   : > { %2618 = vmatpush1.bf16.msra.mxu0 %v4753_v9  ;;  %1151 = vmatprep.subr.bf16.mxu1 %v4758_v21  ;;  %v930_v9 = vshrl.u32 %v3840_v7, 16  ;;  %v4785_v21 = vld [vmem:[%s6277_s1 + $0x664] ss:$8 sps:$4 sm:$0xff]   ;;  %v4831_v7 = vld [vmem:[%s6277_s1 + $0x2d0] ss:$8 sps:$4 sm:$0xff]  }
  0x8d   : > { %2619 = vmatprep.subr.bf16.mxu0 %v4761_v20  ;;  %v934_v20 = vrot.slane %v932_v18, 1  ;;  %v4994_v0 = vld [vmem:[%s6277_s1 + $0x860] ss:$8 sps:$4 sm:$0xff]  }
  0x8e   : > { %773 = vmatmul.mubr.bf16.gmra.mrb[4].mxu1 %v3769_v31  ;;  %v4788_v31 = vld [vmem:[%s6277_s1 + $0x274] ss:$8 sps:$4 sm:$0xff]  }
  0x8f   : > { %2308 = vmatmul.mubr.bf16.gmra.mrb[4].mxu0 %v2066_v40  ;;  %1152 = vmatpush1.bf16.msra.mxu1 %v4756_v27  ;;  %v2093_v27 = vor.u32 %v2091_v15, %v2081_v55  ;;  %v935_v29 = vor.u32 %v934_v20, %v930_v9  ;;  %v4820_v55 = vld [vmem:[%s6277_s1 + $0x6b4] ss:$8 sps:$4 sm:$0xff]   ;;  %v4841_v15 = vld [vmem:[%s6277_s1 + $0x6e0] ss:$8 sps:$4 sm:$0xff]   ;;  %v4845_v20 = vld [vmem:[%s6277_s1 + $0x2f0] ss:$8 sps:$4 sm:$0xff]  }
  0x90   : > { %2620 = vmatpush1.bf16.msra.mxu0 %v4759_v38  ;;  %1153 = vmatprep.subr.bf16.mxu1 %v4764_v39  ;;  %v4786_v38 = vld [vmem:[%s6277_s1 + $0x270] ss:$8 sps:$4 sm:$0xff]   ;;  %v4847_v9 = vld [vmem:[%s6277_s1 + $0x2f4] ss:$8 sps:$4 sm:$0xff]  }
  0x91   : > { %2621 = vmatprep.subr.bf16.mxu0 %v4767_v44  ;;  %782 = vmatprep.mubr.bf16.mxu1 %v3772_v49  ;;  %v4789_v39 = vld [vmem:[%s6277_s1 + $0x670] ss:$8 sps:$4 sm:$0xff]   ;;  %v940_v40 = vsel %vm916_vm0, %v935_v29, %v5455_v13  ;;  %v4792_v44 = vld [vmem:[%s6277_s1 + $0x280] ss:$8 sps:$4 sm:$0xff]   ;;  %v4860_v29 = vld [vmem:[%s6277_s1 + $0x704] ss:$8 sps:$4 sm:$0xff]  }
  0x92   : > { %2317 = vmatprep.mubr.bf16.mxu0 %v2090_v57  ;;  %v4795_v13 = vld [vmem:[%s6277_s1 + $0x680] ss:$8 sps:$4 sm:$0xff]   ;;  %v4801_v49 = vld [vmem:[%s6277_s1 + $0x690] ss:$8 sps:$4 sm:$0xff]  }
  0x93   : > { %1154 = vmatpush1.bf16.msra.mxu1 %v4762_v50  ;;  %v4807_v50 = vld [vmem:[%s6277_s1 + $0x2a4] ss:$8 sps:$4 sm:$0xff]   ;;  %v4818_v57 = vld [vmem:[%s6277_s1 + $0x6b0] ss:$8 sps:$4 sm:$0xff]  }
  0x94   : > { %2622 = vmatpush1.bf16.msra.mxu0 %v4765_v52  ;;  %1155 = vmatprep.subr.bf16.mxu1 %v4770_v53  ;;  %v4805_v52 = vld [vmem:[%s6277_s1 + $0x2a0] ss:$8 sps:$4 sm:$0xff]  }
  0x95   : > { %2623 = vmatprep.subr.bf16.mxu0 %v4773_v56  ;;  %v4810_v53 = vld [vmem:[%s6277_s1 + $0x6a0] ss:$8 sps:$4 sm:$0xff]   ;;  %v4815_v56 = vld [vmem:[%s6277_s1 + $0x2b0] ss:$8 sps:$4 sm:$0xff]  }
  0x96   : > { %783 = vmatmul.mubr.bf16.gmra.mrb[8].mxu1 %v3771_v63  ;;  %v4826_v63 = vld [vmem:[%s6277_s1 + $0x6c0] ss:$8 sps:$4 sm:$0xff]  }
  0x97   : > { %2318 = vmatmul.mubr.bf16.gmra.mrb[8].mxu0 %v2082_v1  ;;  %1156 = vmatpush1.bf16.msra.mxu1 %v4768_v58  ;;  %v4824_v58 = vld [vmem:[%s6277_s1 + $0x2c4] ss:$8 sps:$4 sm:$0xff]   ;;  %v3839_v1 = vcombine.low %v5644_v3, %v5647_v4  ;;  %v4834_v3 = vld [vmem:[%s6277_s1 + $0x6d0] ss:$8 sps:$4 sm:$0xff]  }
  0x98   : > { %2624 = vmatpush1.bf16.msra.mxu0 %v4771_v60  ;;  %1157 = vmatprep.subr.bf16.mxu1 %v4776_v62  ;;  %v4822_v60 = vld [vmem:[%s6277_s1 + $0x2c0] ss:$8 sps:$4 sm:$0xff]   ;;  %v4833_v62 = vld [vmem:[%s6277_s1 + $0x2d4] ss:$8 sps:$4 sm:$0xff]  }
  0x99   : > { %2625 = vmatprep.subr.bf16.mxu0 %v4779_v6  ;;  %792 = vmatprep.mubr.bf16.mxu1 %v3774_v10  ;;  %v4836_v6 = vld [vmem:[%s6277_s1 + $0x6d4] ss:$8 sps:$4 sm:$0xff]   ;;  %v920_v10 = vshll.u32 %v3839_v1, 16  ;;  %v918_v18 = vshrl.u32 %v3839_v1, 16 }
  0x9a   : > { %2327 = vmatprep.mubr.bf16.mxu0 %v2096_v11  ;;  %v4843_v11 = vld [vmem:[%s6277_s1 + $0x6e4] ss:$8 sps:$4 sm:$0xff]  }
  0x9b   : > { %1158 = vmatpush1.bf16.msra.mxu1 %v4774_v8  ;;  %v4840_v8 = vld [vmem:[%s6277_s1 + $0x2e4] ss:$8 sps:$4 sm:$0xff]  }
  0x9c   : > { %2626 = vmatpush1.bf16.msra.mxu0 %v4777_v14  ;;  %1159 = vmatprep.subr.bf16.mxu1 %v4782_v19  ;;  %v4838_v14 = vld [vmem:[%s6277_s1 + $0x2e0] ss:$8 sps:$4 sm:$0xff]   ;;  %v922_v19 = vrot.slane %v920_v10, 1 }
  0x9d   : > { %2627 = vmatprep.subr.bf16.mxu0 %v4785_v21  ;;  %v4850_v21 = vld [vmem:[%s6277_s1 + $0x6f4] ss:$8 sps:$4 sm:$0xff]  }
  0x9e   : > { %793 = vmatmul.mubr.bf16.gmra.mrb[12].mxu1 %v3773_v22  ;;  %v923_v22 = vor.u32 %v922_v19, %v918_v18 }
  0x9f   : > { %2328 = vmatmul.mubr.bf16.gmra.mrb[12].mxu0 %v2093_v27  ;;  %1160 = vmatpush1.bf16.msra.mxu1 %v4780_v23  ;;  %v4848_v23 = vld [vmem:[%s6277_s1 + $0x6f0] ss:$8 sps:$4 sm:$0xff]  }
  0xa0   : > { %2628 = vmatpush1.bf16.msra.mxu0 %v4783_v24  ;;  %1161 = vmatprep.subr.bf16.mxu1 %v4788_v31  ;;  %v4855_v24 = vld [vmem:[%s6277_s1 + $0x304] ss:$8 sps:$4 sm:$0xff]   ;;  %v850_v27 = vld [vmem:[%s5218_s5 + $0x38] sm:$0x11]  ;;  %v4853_v31 = vld [vmem:[%s6277_s1 + $0x300] ss:$8 sps:$4 sm:$0xff]  }
  0xa1   : > { %2629 = vmatprep.subr.bf16.mxu0 %v4791_v35  ;;  %1179 = vmatprep.mubr.bf16.mxu1 %v940_v40  ;;  %v5030_v35 = vld [vmem:[%s5218_s5 + $0x10] sm:$0xff]  ;;  %v4858_v40 = vld [vmem:[%s6277_s1 + $0x700] ss:$8 sps:$4 sm:$0xff]  }
  0xa2   : > { %2647 = vmatprep.mubr.bf16.mxu0 %v4150_v37  ;;  %v4149_v37 = vcombine.low %v5647_v4, %v5030_v35 }
  0xa3   : > { %1162 = vmatpush1.bf16.msra.mxu1 %v4786_v38  ;;  %v5811_v38 = vld [vmem:[%s5218_s5 + $0x18] sm:$0xff] }
  0xa4   : > { %2630 = vmatpush1.bf16.msra.mxu0 %v4789_v39  ;;  %1163 = vmatprep.subr.bf16.mxu1 %v4794_v41  ;;  %v5814_v39 = vcombine.high %v5384_v42, %v850_v27  ;;  %v928_v41 = vsel %vm916_vm0, %v923_v22, %v5459_v17  ;;  %v965_v17 = vshrl.u32 %v5360_v33, 16  ;;  %v4872_v33 = vld [vmem:[%s6277_s1 + $0x724] ss:$8 sps:$4 sm:$0xff]  }
  0xa5   : > { %2631 = vmatprep.subr.bf16.mxu0 %v4797_v16  ;;  %v4863_v16 = vld [vmem:[%s6277_s1 + $0x314] ss:$8 sps:$4 sm:$0xff]   ;;  %v4896_v22 = vld [vmem:[%s6277_s1 + $0x764] ss:$8 sps:$4 sm:$0xff]  }
  0xa7   : > { %1164 = vmatpush1.bf16.msra.mxu1 %v4792_v44  ;;  %v4866_v44 = vld [vmem:[%s6277_s1 + $0x714] ss:$8 sps:$4 sm:$0xff]  }
  0xa8   : > { %2632 = vmatpush1.bf16.msra.mxu0 %v4795_v13  ;;  %1165 = vmatprep.subr.bf16.mxu1 %v4800_v45  ;;  %v5031_v13 = vld [vmem:[%s5218_s5 + $0x20] sm:$0xff] }
  0xa9   : > { %2633 = vmatprep.subr.bf16.mxu0 %v4803_v46  ;;  %v4152_v45 = vcombine.high %v5811_v38, %v5031_v13  ;;  %v4861_v46 = vld [vmem:[%s6277_s1 + $0x310] ss:$8 sps:$4 sm:$0xff]  }
  0xab   : > { %1166 = vmatpush1.bf16.msra.mxu1 %v4798_v47  ;;  %v969_v47 = vshll.u32 %v5814_v39, 16 }
  0xac   : > { %2634 = vmatpush1.bf16.msra.mxu0 %v4801_v49  ;;  %1167 = vmatprep.subr.bf16.mxu1 %v4807_v50  ;;  %v4864_v49 = vld [vmem:[%s6277_s1 + $0x710] ss:$8 sps:$4 sm:$0xff]   ;;  %v5838_v50 = vcombine.low %v5384_v42, %v850_v27  ;;  %v4151_v42 = vcombine.low %v5811_v38, %v5031_v13 }
  0xad   : > { %2635 = vmatprep.subr.bf16.mxu0 %v4812_v51  ;;  %v4869_v51 = vld [vmem:[%s6277_s1 + $0x324] ss:$8 sps:$4 sm:$0xff]  }
  0xaf   : > { %1168 = vmatpush1.bf16.msra.mxu1 %v4805_v52  ;;  %v4867_v52 = vld [vmem:[%s6277_s1 + $0x320] ss:$8 sps:$4 sm:$0xff]  }
  0xb0   : > { %2636 = vmatpush1.bf16.msra.mxu0 %v4810_v53  ;;  %1169 = vmatprep.subr.bf16.mxu1 %v4817_v54  ;;  %v967_v53 = vor.u32 %v965_v17, %v5472_v25  ;;  %v971_v54 = vrot.slane %v969_v47, 1  ;;  %v4878_v25 = vld [vmem:[%s6277_s1 + $0x734] ss:$8 sps:$4 sm:$0xff]  }
  0xb1   : > { %2637 = vmatprep.subr.bf16.mxu0 %v4820_v55  ;;  %v4870_v55 = vld [vmem:[%s6277_s1 + $0x720] ss:$8 sps:$4 sm:$0xff]   ;;  %v4902_v17 = vld [vmem:[%s6277_s1 + $0x774] ss:$8 sps:$4 sm:$0xff]  }
  0xb3   : > { %1170 = vmatpush1.bf16.msra.mxu1 %v4815_v56  ;;  %v957_v56 = vshrl.u32 %v5367_v36, 16  ;;  %v972_v36 = vsel %vm916_vm0, %v967_v53, %v971_v54  ;;  %v4897_v53 = vld [vmem:[%s6277_s1 + $0x370] ss:$8 sps:$4 sm:$0xff]  }
  0xb4   : > { %2638 = vmatpush1.bf16.msra.mxu0 %v4818_v57  ;;  %1171 = vmatprep.subr.bf16.mxu1 %v4824_v58  ;;  %v4875_v57 = vld [vmem:[%s6277_s1 + $0x334] ss:$8 sps:$4 sm:$0xff]  }
  0xb5   : > { %2639 = vmatprep.subr.bf16.mxu0 %v4828_v59  ;;  %v5864_v58 = vld [vmem:[%s5218_s5 + $0x2c] ss:$8 sps:$4 sm:$0xff]   ;;  %v4873_v59 = vld [vmem:[%s6277_s1 + $0x330] ss:$8 sps:$4 sm:$0xff]  }
  0xb6   : > { %v3187_v18 = vshll.u32 %v5864_v58, 16 }
  0xb7   : > { %1172 = vmatpush1.bf16.msra.mxu1 %v4822_v60  ;;  %v4876_v60 = vld [vmem:[%s6277_s1 + $0x730] ss:$8 sps:$4 sm:$0xff]  }
  0xb8   : > { %2640 = vmatpush1.bf16.msra.mxu0 %v4826_v63  ;;  %1173 = vmatprep.subr.bf16.mxu1 %v4833_v62  ;;  %v959_v63 = vor.u32 %v957_v56, %v5475_v26  ;;  %v4884_v62 = vld [vmem:[%s6277_s1 + $0x744] ss:$8 sps:$4 sm:$0xff]   ;;  %v4879_v26 = vld [vmem:[%s6277_s1 + $0x340] ss:$8 sps:$4 sm:$0xff]   ;;  %v3189_v27 = vrot.slane %v3187_v18, 1 }
  0xb9   : > { %2641 = vmatprep.subr.bf16.mxu0 %v4836_v6  ;;  %v4936_v6 = vld [vmem:[%s5218_s5 + $0x28] ss:$8 sps:$4 sm:$0xff]   ;;  %v4922_v18 = vld [vmem:[%s6277_s1 + $0x7a4] ss:$8 sps:$4 sm:$0xff]  }
  0xba   : > { %v3179_v19 = vshll.u32 %v4936_v6, 16  ;;  %v3191_v35 = vshrl.u32 %v4936_v6, 16 }
  0xbb   : > { %1174 = vmatpush1.bf16.msra.mxu1 %v4831_v7  ;;  %v976_v7 = vshrl.u32 %v5814_v39, 16 }
  0xbc   : > { %2642 = vmatpush1.bf16.msra.mxu0 %v4834_v3  ;;  %1175 = vmatprep.subr.bf16.mxu1 %v4840_v8  ;;  %v2384_v3 = vld [vmem:[%s5218_s5 + $0x38] sm:$0xff]  ;;  %v4882_v8 = vld [vmem:[%s6277_s1 + $0x740] ss:$8 sps:$4 sm:$0xff]  }
  0xbd   : > { %2643 = vmatprep.subr.bf16.mxu0 %v4843_v11  ;;  %v4887_v11 = vld [vmem:[%s6277_s1 + $0x354] ss:$8 sps:$4 sm:$0xff]   ;;  %v4155_v39 = vcombine.low %v2384_v3, %v2384_v3 }
  0xbf   : > { %1176 = vmatpush1.bf16.msra.mxu1 %v4838_v14  ;;  %v4890_v14 = vld [vmem:[%s6277_s1 + $0x754] ss:$8 sps:$4 sm:$0xff]  }
  0xc0   : > { %2644 = vmatpush1.bf16.msra.mxu0 %v4841_v15  ;;  %1177 = vmatprep.subr.bf16.mxu1 %v4847_v9  ;;  %v978_v15 = vor.u32 %v976_v7, %v971_v54  ;;  %v4156_v9 = vcombine.high %v2384_v3, %v2384_v3  ;;  %v4906_v7 = vld [vmem:[%s6277_s1 + $0x780] ss:$8 sps:$4 sm:$0xff]  }
  0xc1   : > { %2645 = vmatprep.subr.bf16.mxu0 %v4850_v21  ;;  %v973_v21 = vshrl.u32 %v5838_v50, 16 }
  0xc3   : > { %1178 = vmatpush1.bf16.msra.mxu1 %v4845_v20  ;;  %v4885_v20 = vld [vmem:[%s6277_s1 + $0x350] ss:$8 sps:$4 sm:$0xff]  }
  0xc4   : > { %2646 = vmatpush1.bf16.msra.mxu0 %v4848_v23  ;;  %1498 = vmatprep.subr.bf16.mxu1 %v4855_v24  ;;  %v4888_v23 = vld [vmem:[%s6277_s1 + $0x750] ss:$8 sps:$4 sm:$0xff]   ;;  %v4893_v24 = vld [vmem:[%s6277_s1 + $0x364] ss:$8 sps:$4 sm:$0xff]  }
  0xc5   : > { %2965 = vmatprep.subr.bf16.mxu0 %v4860_v29  ;;  %v3199_v29 = vshrl.u32 %v5864_v58, 16 }
  0xc6   : > { %1180 = vmatmul.mubr.bf16.vlgmr.msra.gmra.mrb[0].mxu1 %v928_v41  ;;  %v3081_v41 = vld [vmem:[%s5218_s5 + $0x20] sm:$0xff] }
  0xc7   : > { %2648 = vmatmul.mubr.bf16.vlgmr.msra.gmra.mrb[0].mxu0 %v4149_v37  ;;  %1499 = vmatpush1.bf16.msra.mxu1 %v4853_v31  ;;  %v3181_v31 = vrot.slane %v3179_v19, 1  ;;  %v4302_v13 = vcombine.low %v5811_v38, %v3081_v41  ;;  %v4303_v47 = vcombine.high %v5811_v38, %v3081_v41  ;;  %v4916_v19 = vld [vmem:[%s6277_s1 + $0x3a0] ss:$8 sps:$4 sm:$0xff]   ;;  %v4940_v41 = vld [vmem:[%s6277_s1 + $0x3d0] ss:$8 sps:$4 sm:$0xff]  }
  0xc8   : > { %2966 = vmatpush1.bf16.msra.mxu0 %v4858_v40  ;;  %1500 = vmatprep.subr.bf16.mxu1 %v4863_v16  ;;  %v5914_v40 = vld [vmem:[%s5218_s5 + $0x50] sm:$0xff]  ;;  %v4891_v16 = vld [vmem:[%s6277_s1 + $0x360] ss:$8 sps:$4 sm:$0xff]  }
  0xc9   : > { %2967 = vmatprep.subr.bf16.mxu0 %v4866_v44  ;;  %1189 = vmatprep.mubr.bf16.mxu1 %v5482_v28  ;;  %v961_v28 = vshll.u32 %v5838_v50, 16  ;;  %v4894_v44 = vld [vmem:[%s6277_s1 + $0x760] ss:$8 sps:$4 sm:$0xff]   ;;  %v3171_v54 = vshll.u32 %v4303_v47, 16  ;;  %v3159_v38 = vshll.u32 %v4302_v13, 16 }
  0xca   : > { %2657 = vmatprep.mubr.bf16.mxu0 %v4152_v45  ;;  %v3085_v45 = vld [vmem:[%s5218_s5 + $0x40] sm:$0x11] }
  0xcb   : > { %1501 = vmatpush1.bf16.msra.mxu1 %v4861_v46  ;;  %v963_v1 = vrot.slane %v961_v28, 1  ;;  %v4899_v46 = vld [vmem:[%s6277_s1 + $0x374] ss:$8 sps:$4 sm:$0xff]   ;;  %v5934_v50 = vcombine.high %v2384_v3, %v3085_v45  ;;  %v4905_v28 = vld [vmem:[%s6277_s1 + $0x384] ss:$8 sps:$4 sm:$0xff]  }
  0xcc   : > { %2968 = vmatpush1.bf16.msra.mxu0 %v4864_v49  ;;  %1502 = vmatprep.subr.bf16.mxu1 %v4869_v51  ;;  %v5932_v49 = vcombine.low %v2384_v3, %v3085_v45  ;;  %v4962_v51 = vld [vmem:[%s5218_s5 + $0x94] ss:$8 sps:$4 sm:$0xff]   ;;  %v4947_v45 = vld [vmem:[%s6277_s1 + $0x3e0] ss:$8 sps:$4 sm:$0xff]  }
  0xcd   : > { %2969 = vmatprep.subr.bf16.mxu0 %v4872_v33  ;;  %v964_v10 = vsel %vm916_vm0, %v959_v63, %v963_v1  ;;  %v975_v37 = vor.u32 %v973_v21, %v963_v1  ;;  %v4229_v33 = vcombine.high %v5914_v40, %v5549_v61  ;;  %v4900_v61 = vld [vmem:[%s6277_s1 + $0x770] ss:$8 sps:$4 sm:$0xff]   ;;  %v3175_v63 = vshrl.u32 %v4302_v13, 16  ;;  %v4920_v21 = vld [vmem:[%s6277_s1 + $0x7a0] ss:$8 sps:$4 sm:$0xff]  }
  0xce   : > { %1190 = vmatmul.mubr.bf16.gmra.mrb[4].mxu1 %v5489_v30  ;;  %v4881_v30 = vld [vmem:[%s6277_s1 + $0x344] ss:$8 sps:$4 sm:$0xff]   ;;  %v3195_v56 = vshll.u32 %v5932_v49, 16 }
  0xcf   : > { %2658 = vmatmul.mubr.bf16.gmra.mrb[4].mxu0 %v4151_v42  ;;  %1503 = vmatpush1.bf16.msra.mxu1 %v4867_v52  ;;  %v3201_v52 = vor.u32 %v3199_v29, %v3189_v27  ;;  %v3193_v42 = vor.u32 %v3191_v35, %v3181_v31  ;;  %v4939_v29 = vld [vmem:[%s6277_s1 + $0x7c4] ss:$8 sps:$4 sm:$0xff]   ;;  %v4937_v35 = vld [vmem:[%s6277_s1 + $0x7c0] ss:$8 sps:$4 sm:$0xff]  }
  0xd0   : > { %2970 = vmatpush1.bf16.msra.mxu0 %v4870_v55  ;;  %1504 = vmatprep.subr.bf16.mxu1 %v4875_v57  ;;  %v3203_v55 = vshll.u32 %v5934_v50, 16  ;;  %v3183_v57 = vshrl.u32 %v4303_v47, 16  ;;  %v4953_v13 = vld [vmem:[%s6277_s1 + $0x7e4] ss:$8 sps:$4 sm:$0xff]   ;;  %v4959_v47 = vld [vmem:[%s6277_s1 + $0x7f4] ss:$8 sps:$4 sm:$0xff]  }
  0xd1   : > { %2971 = vmatprep.subr.bf16.mxu0 %v4878_v25  ;;  %1199 = vmatprep.mubr.bf16.mxu1 %v972_v36  ;;  %v4908_v25 = vld [vmem:[%s6277_s1 + $0x784] ss:$8 sps:$4 sm:$0xff]  }
  0xd2   : > { %2667 = vmatprep.mubr.bf16.mxu0 %v5864_v58  ;;  %v5953_v58 = vrot.slane %v3171_v54, 1  ;;  %v5955_v36 = vrot.slane %v3203_v55, 1  ;;  %v4965_v55 = vld [vmem:[%s6277_s1 + $0x800] ss:$8 sps:$4 sm:$0xff]  }
  0xd3   : > { %1505 = vmatpush1.bf16.msra.mxu1 %v4873_v59  ;;  %v5957_v59 = vrot.slane %v3195_v56, 1  ;;  %v4971_v56 = vld [vmem:[%s5218_s5 + $0xa4] ss:$8 sps:$4 sm:$0xff]  }
  0xd4   : > { %2972 = vmatpush1.bf16.msra.mxu0 %v4876_v60  ;;  %1506 = vmatprep.subr.bf16.mxu1 %v4881_v30  ;;  %v5959_v60 = vrot.slane %v3159_v38, 1  ;;  %v5963_v1 = vsel %vm916_vm0, %v3201_v52, %v5955_v36  ;;  %v4967_v52 = vld [vmem:[%s6277_s1 + $0x804] ss:$8 sps:$4 sm:$0xff]   ;;  %v4970_v38 = vld [vmem:[%s6277_s1 + $0x814] ss:$8 sps:$4 sm:$0xff]  }
  0xd5   : > { %2973 = vmatprep.subr.bf16.mxu0 %v4884_v62  ;;  %v5967_v30 = vsel %vm916_vm0, %v3193_v42, %v5957_v59  ;;  %v3185_v62 = vor.u32 %v3183_v57, %v5953_v58  ;;  %v4960_v42 = vld [vmem:[%s5218_s5 + $0x90] ss:$8 sps:$4 sm:$0xff]   ;;  %v4976_v57 = vld [vmem:[%s6277_s1 + $0x820] ss:$8 sps:$4 sm:$0xff]  }
  0xd6   : > { %1200 = vmatmul.mubr.bf16.gmra.mrb[8].mxu1 %v964_v10  ;;  %v3177_v3 = vor.u32 %v3175_v63, %v5959_v60  ;;  %v4981_v63 = vld [vmem:[%s6277_s1 + $0x834] ss:$8 sps:$4 sm:$0xff]  }
  0xd7   : > { %2668 = vmatmul.mubr.bf16.gmra.mrb[8].mxu0 %v4936_v6  ;;  %1507 = vmatpush1.bf16.msra.mxu1 %v4879_v26  ;;  %v4903_v6 = vld [vmem:[%s6277_s1 + $0x380] ss:$8 sps:$4 sm:$0xff]   ;;  %v4911_v26 = vld [vmem:[%s6277_s1 + $0x394] ss:$8 sps:$4 sm:$0xff]   ;;  %v5984_v10 = vsel %vm916_vm0, %v3185_v62, %v3189_v27  ;;  %v4935_v27 = vld [vmem:[%s6277_s1 + $0x3c4] ss:$8 sps:$4 sm:$0xff]  }
  0xd8   : > { %2974 = vmatpush1.bf16.msra.mxu0 %v4882_v8  ;;  %1508 = vmatprep.subr.bf16.mxu1 %v4887_v11  ;;  %v4914_v8 = vld [vmem:[%s6277_s1 + $0x794] ss:$8 sps:$4 sm:$0xff]   ;;  %v5987_v11 = vsel %vm916_vm0, %v3177_v3, %v3181_v31  ;;  %v4933_v31 = vld [vmem:[%s6277_s1 + $0x3c0] ss:$8 sps:$4 sm:$0xff]   ;;  %v4979_v62 = vld [vmem:[%s6277_s1 + $0x830] ss:$8 sps:$4 sm:$0xff]  }
  0xd9   : > { %2975 = vmatprep.subr.bf16.mxu0 %v4890_v14  ;;  %1209 = vmatprep.mubr.bf16.mxu1 %v978_v15  ;;  %v4909_v14 = vld [vmem:[%s6277_s1 + $0x390] ss:$8 sps:$4 sm:$0xff]   ;;  %v5034_v3 = vld [vmem:[%s5218_s5 + $0xc0] sm:$0xff] }
  0xda   : > { %2677 = vmatprep.mubr.bf16.mxu0 %v4156_v9  ;;  %v4912_v15 = vld [vmem:[%s6277_s1 + $0x790] ss:$8 sps:$4 sm:$0xff]   ;;  %v4918_v9 = vld [vmem:[%s6277_s1 + $0x3a4] ss:$8 sps:$4 sm:$0xff]  }
  0xdb   : > { %1509 = vmatpush1.bf16.msra.mxu1 %v4885_v20  ;;  %v4925_v20 = vld [vmem:[%s6277_s1 + $0x3b4] ss:$8 sps:$4 sm:$0xff]  }
  0xdc   : > { %2976 = vmatpush1.bf16.msra.mxu0 %v4888_v23  ;;  %1510 = vmatprep.subr.bf16.mxu1 %v4893_v24  ;;  %v4928_v23 = vld [vmem:[%s6277_s1 + $0x7b4] ss:$8 sps:$4 sm:$0xff]   ;;  %v4923_v24 = vld [vmem:[%s6277_s1 + $0x3b0] ss:$8 sps:$4 sm:$0xff]  }
  0xdd   : > { %2977 = vmatprep.subr.bf16.mxu0 %v4896_v22  ;;  %v4926_v22 = vld [vmem:[%s6277_s1 + $0x7b0] ss:$8 sps:$4 sm:$0xff]  }
  0xde   : > { %1210 = vmatmul.mubr.bf16.gmra.mrb[12].mxu1 %v975_v37  ;;  %v4942_v37 = vld [vmem:[%s6277_s1 + $0x3d4] ss:$8 sps:$4 sm:$0xff]  }
  0xdf   : > { %2678 = vmatmul.mubr.bf16.gmra.mrb[12].mxu0 %v4155_v39  ;;  %1511 = vmatpush1.bf16.msra.mxu1 %v4891_v16  ;;  %v4945_v39 = vld [vmem:[%s6277_s1 + $0x7d4] ss:$8 sps:$4 sm:$0xff]   ;;  %v4943_v16 = vld [vmem:[%s6277_s1 + $0x7d0] ss:$8 sps:$4 sm:$0xff]  }
  0xe0   : > { %2978 = vmatpush1.bf16.msra.mxu0 %v4894_v44  ;;  %1512 = vmatprep.subr.bf16.mxu1 %v4899_v46  ;;  %v4949_v44 = vld [vmem:[%s6277_s1 + $0x3e4] ss:$8 sps:$4 sm:$0xff]   ;;  %v4951_v46 = vld [vmem:[%s6277_s1 + $0x7e0] ss:$8 sps:$4 sm:$0xff]  }
  0xe1   : > { %2979 = vmatprep.subr.bf16.mxu0 %v4902_v17  ;;  %1530 = vmatprep.mubr.bf16.mxu1 %v4962_v51  ;;  %v4956_v17 = vld [vmem:[%s6277_s1 + $0x3f4] ss:$8 sps:$4 sm:$0xff]   ;;  %v4954_v51 = vld [vmem:[%s6277_s1 + $0x3f0] ss:$8 sps:$4 sm:$0xff]  }
  0xe2   : > { %2997 = vmatprep.mubr.bf16.mxu0 %v4229_v33  ;;  %v4957_v33 = vld [vmem:[%s6277_s1 + $0x7f0] ss:$8 sps:$4 sm:$0xff]  }
  0xe3   : > { %1513 = vmatpush1.bf16.msra.mxu1 %v4897_v53  ;;  %v5032_v53 = vld [vmem:[%s5218_s5 + $0x58] sm:$0xff] }
  0xe4   : > { %2980 = vmatpush1.bf16.msra.mxu0 %v4900_v61  ;;  %1514 = vmatprep.subr.bf16.mxu1 %v4905_v28  ;;  %v4228_v54 = vcombine.low %v5914_v40, %v5032_v53  ;;  %v4968_v40 = vld [vmem:[%s6277_s1 + $0x810] ss:$8 sps:$4 sm:$0xff]   ;;  %v4978_v61 = vld [vmem:[%s6277_s1 + $0x824] ss:$8 sps:$4 sm:$0xff]   ;;  %v4974_v28 = vld [vmem:[%s5218_s5 + $0xa0] ss:$8 sps:$4 sm:$0xff]  }
  0xe5   : > { %2981 = vmatprep.subr.bf16.mxu0 %v4908_v25  ;;  %v6094_v25 = vld [vmem:[%s5218_s5 + $0x10] sm:$0xff]  ;;  %v3210_v53 = vshrl.u32 %v5934_v50, 16 }
  0xe7   : > { %1515 = vmatpush1.bf16.msra.mxu1 %v4903_v6  ;;  %v4986_v6 = vld [vmem:[%s6277_s1 + $0x844] ss:$8 sps:$4 sm:$0xff]  }
  0xe8   : > { %2982 = vmatpush1.bf16.msra.mxu0 %v4906_v7  ;;  %1516 = vmatprep.subr.bf16.mxu1 %v4911_v26  ;;  %v5033_v7 = vld [vmem:[%s5218_s5 + $0xb4] ss:$8 sps:$4 sm:$0xff]   ;;  %v3925_v26 = vcombine.high %v5034_v3, %v5034_v3 }
  0xe9   : > { %2983 = vmatprep.subr.bf16.mxu0 %v4914_v8  ;;  %v4235_v8 = vcombine.high %v4195_v2, %v4195_v2 }
  0xeb   : > { %1517 = vmatpush1.bf16.msra.mxu1 %v4909_v14  ;;  %v5035_v14 = vld [vmem:[%s5218_s5 + $0xb0] ss:$8 sps:$4 sm:$0xff]  }
  0xec   : > { %2984 = vmatpush1.bf16.msra.mxu0 %v4912_v15  ;;  %1518 = vmatprep.subr.bf16.mxu1 %v4918_v9  ;;  %v4987_v9 = vld [vmem:[%s6277_s1 + $0x850] ss:$8 sps:$4 sm:$0xff]  }
  0xed   : > { %2985 = vmatprep.subr.bf16.mxu0 %v4922_v18  ;;  %v4996_v18 = vld [vmem:[%s6277_s1 + $0x864] ss:$8 sps:$4 sm:$0xff]  }
  0xef   : > { %1519 = vmatpush1.bf16.msra.mxu1 %v4916_v19  ;;  %v3924_v19 = vcombine.low %v5034_v3, %v5034_v3 }
  0xf0   : > { %2986 = vmatpush1.bf16.msra.mxu0 %v4920_v21  ;;  %1520 = vmatprep.subr.bf16.mxu1 %v4925_v20  ;;  %v4234_v21 = vcombine.low %v4195_v2, %v4195_v2 }
  0xf1   : > { %2987 = vmatprep.subr.bf16.mxu0 %v4928_v23  ;;  %v4997_v23 = vld [vmem:[%s6277_s1 + $0x870] ss:$8 sps:$4 sm:$0xff]  }
  0xf3   : > { %1521 = vmatpush1.bf16.msra.mxu1 %v4923_v24  ;;  %v5002_v24 = vld [vmem:[%s6277_s1 + $0x884] ss:$8 sps:$4 sm:$0xff]  }
  0xf4   : > { %2988 = vmatpush1.bf16.msra.mxu0 %v4926_v22  ;;  %1522 = vmatprep.subr.bf16.mxu1 %v4935_v27  ;;  %v5005_v22 = vld [vmem:[%s6277_s1 + $0x894] ss:$8 sps:$4 sm:$0xff]   ;;  %v5003_v27 = vld [vmem:[%s6277_s1 + $0x890] ss:$8 sps:$4 sm:$0xff]  }
  0xf5   : > { %2989 = vmatprep.subr.bf16.mxu0 %v4939_v29  ;;  %v5006_v29 = vld [vmem:[%s6277_s1 + $0x8a0] ss:$8 sps:$4 sm:$0xff]  }
  0xf7   : > { %1523 = vmatpush1.bf16.msra.mxu1 %v4933_v31  ;;  %v5011_v31 = vld [vmem:[%s6277_s1 + $0x8b4] ss:$8 sps:$4 sm:$0xff]  }
  0xf8   : > { %2990 = vmatpush1.bf16.msra.mxu0 %v4937_v35  ;;  %1524 = vmatprep.subr.bf16.mxu1 %v4942_v37  ;;  %v5009_v35 = vld [vmem:[%s6277_s1 + $0x8b0] ss:$8 sps:$4 sm:$0xff]   ;;  %v5014_v37 = vld [vmem:[%s6277_s1 + $0x8c4] ss:$8 sps:$4 sm:$0xff]  }
  0xf9   : > { %2991 = vmatprep.subr.bf16.mxu0 %v4945_v39  ;;  %v5012_v39 = vld [vmem:[%s6277_s1 + $0x8c0] ss:$8 sps:$4 sm:$0xff]  }
  0xfb   : > { %1525 = vmatpush1.bf16.msra.mxu1 %v4940_v41  ;;  %v5036_v41 = vld [vmem:[%s5218_s5 + $0x8] sm:$0xff] }
  0xfc   : > { %2992 = vmatpush1.bf16.msra.mxu0 %v4943_v16  ;;  %1526 = vmatprep.subr.bf16.mxu1 %v4949_v44  ;;  %v4300_v16 = vcombine.low %v5036_v41, %v6094_v25  ;;  %v5017_v44 = vld [vmem:[%s6277_s1 + $0x8d4] ss:$8 sps:$4 sm:$0xff]  }
  0xfd   : > { %2993 = vmatprep.subr.bf16.mxu0 %v4953_v13  ;;  %v5015_v13 = vld [vmem:[%s6277_s1 + $0x8d0] ss:$8 sps:$4 sm:$0xff]  }
  0xff   : > { %1527 = vmatpush1.bf16.msra.mxu1 %v4947_v45  ;;  %v3154_v45 = vshll.u32 %v4300_v16, 16 }
 0x100   : > { %2994 = vmatpush1.bf16.msra.mxu0 %v4951_v46  ;;  %1528 = vmatprep.subr.bf16.mxu1 %v4956_v17  ;;  %v5020_v46 = vld [vmem:[%s6277_s1 + $0x8e4] ss:$8 sps:$4 sm:$0xff]   ;;  %v5018_v17 = vld [vmem:[%s6277_s1 + $0x8e0] ss:$8 sps:$4 sm:$0xff]  }
 0x101   : > { %2995 = vmatprep.subr.bf16.mxu0 %v4959_v47  ;;  %v3152_v47 = vshrl.u32 %v4300_v16, 16 }
 0x103   : > { %1529 = vmatpush1.bf16.msra.mxu1 %v4954_v51  ;;  %v3156_v51 = vrot.slane %v3154_v45, 1 }
 0x104   : > { %2996 = vmatpush1.bf16.msra.mxu0 %v4957_v33  ;;  %4357 = vmatprep.subr.bf16.mxu1 %v4967_v52  ;;  %v5023_v33 = vld [vmem:[%s6277_s1 + $0x8f4] ss:$8 sps:$4 sm:$0xff]  }
 0x105   : > { %3381 = vmatprep.subr.bf16.mxu0 %v4967_v52  ;;  %v5021_v52 = vld [vmem:[%s6277_s1 + $0x8f0] ss:$8 sps:$4 sm:$0xff]  }
 0x106   : > { %1531 = vmatmul.mubr.bf16.vlgmr.msra.gmra.mrb[0].mxu1 %v4960_v42  ;;  %v3157_v42 = vor.u32 %v3156_v51, %v3152_v47 }
 0x107   : > { %2998 = vmatmul.mubr.bf16.vlgmr.msra.gmra.mrb[0].mxu0 %v4228_v54  ;;  %4373 = vmatpush1.bf16.msra.mxu1 %v4965_v55 }
 0x108   : > { %3382 = vmatpush1.bf16.msra.mxu0 %v4965_v55  ;;  %4358 = vmatprep.subr.bf16.mxu1 %v4970_v38  ;;  %v3162_v54 = vsel %vm916_vm0, %v3157_v42, %v5959_v60  ;;  %v3212_v55 = vor.u32 %v3210_v53, %v5955_v36 }
 0x109   : > { %3383 = vmatprep.subr.bf16.mxu0 %v4970_v38  ;;  %1540 = vmatprep.mubr.bf16.mxu1 %v4971_v56  ;;  %v3207_v38 = vshrl.u32 %v5932_v49, 16 }
 0x10a   : > { %3007 = vmatprep.mubr.bf16.mxu0 %v4231_v43  ;;  %v4301_v43 = vcombine.high %v5647_v4, %v6094_v25  ;;  %v4989_v4 = vld [vmem:[%s6277_s1 + $0x854] ss:$8 sps:$4 sm:$0xff]  }
 0x10b   : > { %4374 = vmatpush1.bf16.msra.mxu1 %v4968_v40  ;;  %v3209_v56 = vor.u32 %v3207_v38, %v5957_v59 }
 0x10c   : > { %3384 = vmatpush1.bf16.msra.mxu0 %v4968_v40  ;;  %4359 = vmatprep.subr.bf16.mxu1 %v4978_v61  ;;  %v3166_v32 = vshll.u32 %v4301_v43, 16 }
 0x10d   : > { %3385 = vmatprep.subr.bf16.mxu0 %v4978_v61 }
 0x10e   : > { %1541 = vmatmul.mubr.bf16.gmra.mrb[4].mxu1 %v4974_v28  ;;  %v3168_v15 = vrot.slane %v3166_v32, 1 }
 0x10f   : > { %3008 = vmatmul.mubr.bf16.gmra.mrb[4].mxu0 %v4230_v48  ;;  %4375 = vmatpush1.bf16.msra.mxu1 %v4976_v57  ;;  %v4984_v48 = vld [vmem:[%s6277_s1 + $0x840] ss:$8 sps:$4 sm:$0xff]  }
 0x110   : > { %3386 = vmatpush1.bf16.msra.mxu0 %v4976_v57  ;;  %4360 = vmatprep.subr.bf16.mxu1 %v4981_v63 }
 0x111   : > { %3387 = vmatprep.subr.bf16.mxu0 %v4981_v63  ;;  %1550 = vmatprep.mubr.bf16.mxu1 %v5033_v7 }
 0x112   : > { %3017 = vmatprep.mubr.bf16.mxu0 %v4233_v5  ;;  %v3164_v5 = vshrl.u32 %v4301_v43, 16 }
 0x113   : > { %4376 = vmatpush1.bf16.msra.mxu1 %v4979_v62 }
 0x114   : > { %3388 = vmatpush1.bf16.msra.mxu0 %v4979_v62  ;;  %4361 = vmatprep.subr.bf16.mxu1 %v4986_v6  ;;  %v3169_v34 = vor.u32 %v3168_v15, %v3164_v5 }
 0x115   : > { %3389 = vmatprep.subr.bf16.mxu0 %v4986_v6 }
 0x116   : > { %1551 = vmatmul.mubr.bf16.gmra.mrb[8].mxu1 %v5035_v14  ;;  %v3174_v20 = vsel %vm916_vm0, %v3169_v34, %v5953_v58  ;;  %v5000_v58 = vld [vmem:[%s6277_s1 + $0x880] ss:$8 sps:$4 sm:$0xff]  }
 0x117   : > { %3018 = vmatmul.mubr.bf16.gmra.mrb[8].mxu0 %v4232_v12  ;;  %4377 = vmatpush1.bf16.msra.mxu1 %v4984_v48  ;;  %v4999_v12 = vld [vmem:[%s6277_s1 + $0x874] ss:$8 sps:$4 sm:$0xff]  }
 0x118   : > { %3390 = vmatpush1.bf16.msra.mxu0 %v4984_v48  ;;  %4362 = vmatprep.subr.bf16.mxu1 %v4989_v4 }
 0x119   : > { %3391 = vmatprep.subr.bf16.mxu0 %v4989_v4  ;;  %1560 = vmatprep.mubr.bf16.mxu1 %v3925_v26 }
 0x11a   : > { %3027 = vmatprep.mubr.bf16.mxu0 %v4235_v8 }
 0x11b   : > { %4378 = vmatpush1.bf16.msra.mxu1 %v4987_v9 }
 0x11c   : > { %3392 = vmatpush1.bf16.msra.mxu0 %v4987_v9  ;;  %4363 = vmatprep.subr.bf16.mxu1 %v4996_v18 }
 0x11d   : > { %3393 = vmatprep.subr.bf16.mxu0 %v4996_v18 }
 0x11e   : > { %1561 = vmatmul.mubr.bf16.gmra.mrb[12].mxu1 %v3924_v19  ;;  %v3512_v19 = vlaneseq }
 0x11f   : > { %3028 = vmatmul.mubr.bf16.gmra.mrb[12].mxu0 %v4234_v21  ;;  %4379 = vmatpush1.bf16.msra.mxu1 %v4994_v0 }
 0x120   : > { %3394 = vmatpush1.bf16.msra.mxu0 %v4994_v0  ;;  %4364 = vmatprep.subr.bf16.mxu1 %v4999_v12  ;;  %v3513_v21 = vshrl.u32 %v3512_v19, 7  ;;  %v3494_v0 = vld [vmem:[%s6278_s2] ss:$2 sm:$0x3] }
 0x121   : > { %3395 = vmatprep.subr.bf16.mxu0 %v4999_v12  ;;  %3413 = vmatprep.mubr.bf16.mxu0 %v3174_v20  ;;  %v4340_v20 = vld [vmem:[%s6278_s2 + $0x1] ss:$2 sm:$0x3] }
 0x122   : > { %3433 = vmatprep.mubr.bf16.mxu1 %v5963_v1  ;;  %v5008_v1 = vld [vmem:[%s6277_s1 + $0x8a4] ss:$8 sps:$4 sm:$0xff]   ;;  %v3514_v34 = vsub.s32 0, %v3513_v21  ;;  %v3518_v12 = vsub.s32 1, %v3513_v21 }
 0x123   : > { %4380 = vmatpush1.bf16.msra.mxu1 %v4997_v23 }
 0x124   : > { %3396 = vmatpush1.bf16.msra.mxu0 %v4997_v23  ;;  %4365 = vmatprep.subr.bf16.mxu1 %v5002_v24  ;;  %v6219_v23 = vrot.slane %v3494_v0, %v3514_v34 }
 0x125   : > { %3397 = vmatprep.subr.bf16.mxu0 %v5002_v24 }
 0x127   : > { %4381 = vmatpush1.bf16.msra.mxu1 %v5000_v58 }
 0x128   : > { %3398 = vmatpush1.bf16.msra.mxu0 %v5000_v58  ;;  %4366 = vmatprep.subr.bf16.mxu1 %v5005_v22 }
 0x129   : > { %3399 = vmatprep.subr.bf16.mxu0 %v5005_v22  ;;  %v6221_v22 = vrot.slane %v3494_v0, %v3518_v12 }
 0x12b   : > { %4382 = vmatpush1.bf16.msra.mxu1 %v5003_v27 }
 0x12c   : > { %3400 = vmatpush1.bf16.msra.mxu0 %v5003_v27  ;;  %4367 = vmatprep.subr.bf16.mxu1 %v5008_v1 }
 0x12d   : > { %3401 = vmatprep.subr.bf16.mxu0 %v5008_v1  ;;  %v6223_v1 = vrot.slane %v4340_v20, %v3514_v34 }
 0x12f   : > { %4383 = vmatpush1.bf16.msra.mxu1 %v5006_v29 }
 0x130   : > { %3402 = vmatpush1.bf16.msra.mxu0 %v5006_v29  ;;  %4368 = vmatprep.subr.bf16.mxu1 %v5011_v31 }
 0x131   : > { %3403 = vmatprep.subr.bf16.mxu0 %v5011_v31 }
 0x133   : > { %4384 = vmatpush1.bf16.msra.mxu1 %v5009_v35 }
 0x134   : > { %3404 = vmatpush1.bf16.msra.mxu0 %v5009_v35  ;;  %4369 = vmatprep.subr.bf16.mxu1 %v5014_v37 }
 0x135   : > { %3405 = vmatprep.subr.bf16.mxu0 %v5014_v37 }
 0x137   : > { %4385 = vmatpush1.bf16.msra.mxu1 %v5012_v39 }
 0x138   : > { %3406 = vmatpush1.bf16.msra.mxu0 %v5012_v39  ;;  %4370 = vmatprep.subr.bf16.mxu1 %v5017_v44  ;;  %v6225_v39 = vrot.slane %v4340_v20, %v3518_v12 }
 0x139   : > { %3407 = vmatprep.subr.bf16.mxu0 %v5017_v44 }
 0x13b   : > { %4386 = vmatpush1.bf16.msra.mxu1 %v5015_v13 }
 0x13c   : > { %3408 = vmatpush1.bf16.msra.mxu0 %v5015_v13  ;;  %4371 = vmatprep.subr.bf16.mxu1 %v5020_v46 }
 0x13d   : > { %3409 = vmatprep.subr.bf16.mxu0 %v5020_v46 }
 0x13f   : > { %4387 = vmatpush1.bf16.msra.mxu1 %v5018_v17 }
 0x140   : > { %3410 = vmatpush1.bf16.msra.mxu0 %v5018_v17  ;;  %4372 = vmatprep.subr.bf16.mxu1 %v5023_v33 }
 0x141   : > { %3411 = vmatprep.subr.bf16.mxu0 %v5023_v33 }
 0x143   : > { %4388 = vmatpush1.bf16.msra.mxu1 %v5021_v52 }
 0x144   : > { %3412 = vmatpush1.bf16.msra.mxu0 %v5021_v52 }
 0x146   : > { %3434 = vmatmul.mubr.bf16.vlgmr.msra.gmra.mrb[16].mxu1 %v5967_v30 }
 0x147   : > { %3414 = vmatmul.mubr.bf16.vlgmr.msra.gmra.mrb[0].mxu0 %v3162_v54  ;;  %3443 = vmatprep.mubr.bf16.mxu1 %v3212_v55 }
 0x148   : > { %3423 = vmatprep.mubr.bf16.mxu0 %v5984_v10 }
 0x14e   : > { %3444 = vmatmul.mubr.bf16.gmra.mrb[20].mxu1 %v3209_v56 }
 0x14f   : > { %3424 = vmatmul.mubr.bf16.gmra.mrb[4].mxu0 %v5987_v11 }
 0x1d9   : > { %v1532_v50 = vpop.f32.mrb[0].mxu1 }
 0x1da   : > { %v1534_v40 = vpop.f32.mrb[1].mxu1 }
 0x1db   : > { %v1536_v61 = vpop.f32.mrb[2].mxu1 }
 0x1dc   : > { %v1538_v28 = vpop.f32.mrb[3].mxu1 }
 0x1e1   : > { %v6203_v60 = vpop.f32.mrb[4].mxu1 }
 0x1e2   : > { %v6205_v36 = vpop.f32.mrb[5].mxu1 }
 0x1e3   : > { %v6207_v57 = vpop.f32.mrb[6].mxu1 }
 0x1e4   : > { %v6209_v30 = vpop.f32.mrb[7].mxu1 }
 0x1e9   : > { %v1552_v49 = vpop.f32.mrb[8].mxu1 }
 0x1ea   : > { %v3019_v10 = vpop.f32.mrb[8].mxu0  ;;  %v1554_v63 = vpop.f32.mrb[9].mxu1 }
 0x1eb   : > { %v4397_v25 = vadd.f32 %v3019_v10, %v1552_v49  ;;  %v3021_v59 = vpop.f32.mrb[9].mxu0  ;;  %v1556_v11 = vpop.f32.mrb[10].mxu1 }
 0x1ec   : > { %v4399_v43 = vadd.f32 %v3021_v59, %v1554_v63  ;;  %v3023_v62 = vpop.f32.mrb[10].mxu0  ;;  %v1558_v7 = vpop.f32.mrb[11].mxu1 }
 0x1ed   : > { %v4401_v6 = vadd.f32 %v3023_v62, %v1556_v11  ;;  %v3025_v2 = vpop.f32.mrb[11].mxu0 }
 0x1ee   : > { %v4403_v32 = vadd.f32 %v3025_v2, %v1558_v7 }
 0x1f1   : > { %v1562_v48 = vpop.f32.mrb[12].mxu1 }
 0x1f2   : > { %v3029_v4 = vpop.f32.mrb[12].mxu0  ;;  %v1564_v26 = vpop.f32.mrb[13].mxu1 }
 0x1f3   : > { %v4405_v3 = vadd.f32 %v3029_v4, %v1562_v48  ;;  %v3031_v8 = vpop.f32.mrb[13].mxu0  ;;  %v1566_v5 = vpop.f32.mrb[14].mxu1 }
 0x1f4   : > { %v6211_v14 = vadd.f32 %v3031_v8, %v1564_v26  ;;  %v3033_v15 = vpop.f32.mrb[14].mxu0  ;;  %v1567_v9 = vpop.f32.mrb[15].mxu1 }
 0x1f5   : > { %v3034_v18 = vpop.f32.mrb[15].mxu0 }
 0x219   : > { %v3435_v58 = vpop.f32.mrb[16].mxu1 }
 0x21a   : > { %v3415_v24 = vpop.f32.mrb[0].mxu0  ;;  %v4398_v29 = vadd.f32 %v4397_v25, %v3435_v58  ;;  %v3437_v35 = vpop.f32.mrb[17].mxu1 }
 0x21b   : > { %v4389_v27 = vadd.f32 %v3415_v24, %v1532_v50  ;;  %v3417_v31 = vpop.f32.mrb[1].mxu0  ;;  %v4400_v41 = vadd.f32 %v4399_v43, %v3437_v35  ;;  %v3439_v44 = vpop.f32.mrb[18].mxu1 }
 0x21c   : > { %v4390_v37 = vadd.f32 %v3417_v31, %v1534_v40  ;;  %v3419_v16 = vpop.f32.mrb[2].mxu0  ;;  %v3530_v45 = vmul.f32 %v4398_v29, %v6219_v23  ;;  %v4402_v17 = vadd.f32 %v4401_v6, %v3439_v44  ;;  %v3441_v51 = vpop.f32.mrb[19].mxu1 }
 0x21d   : > { %v3522_v13 = vmul.f32 %v4389_v27, %v6219_v23  ;;  %v4391_v46 = vadd.f32 %v3419_v16, %v1536_v61  ;;  %v3421_v47 = vpop.f32.mrb[3].mxu0  ;;  %v3531_v52 = vmul.f32 %v4400_v41, %v6221_v22  ;;  %v4404_v53 = vadd.f32 %v4403_v32, %v3441_v51 }
 0x21e   : > { %v3523_v33 = vmul.f32 %v4390_v37, %v6221_v22  ;;  %v4392_v42 = vadd.f32 %v3421_v47, %v1538_v28  ;;  %v3555_v55 = vadd.f32 %v6223_v1, %v3530_v45  ;;  %v3532_v56 = vmul.f32 %v4402_v17, %v6219_v23 }
 0x21f   : > { %v3547_v54 = vadd.f32 %v6223_v1, %v3522_v13  ;;  %v3524_v38 = vmul.f32 %v4391_v46, %v6219_v23  ;;  %v3556_v40 = vadd.f32 %v6225_v39, %v3531_v52  ;;  %v3533_v49 = vmul.f32 %v4404_v53, %v6221_v22 }
 0x220   : > { %v3548_v50 = vadd.f32 %v6225_v39, %v3523_v33  ;;  %v3525_v61 = vmul.f32 %v4392_v42, %v6221_v22  ;;  %v3569_v28 = vmax.f32 %v3555_v55, 0.0  ;;  %v3557_v63 = vadd.f32 %v6223_v1, %v3532_v56 }
 0x221   : > { %v3561_v10 = vmax.f32 %v3547_v54, 0.0  ;;  %v3549_v25 = vadd.f32 %v6223_v1, %v3524_v38  ;;  %v3570_v43 = vmax.f32 %v3556_v40, 0.0  ;;  %v3558_v62 = vadd.f32 %v6225_v39, %v3533_v49  ;;  %v3445_v7 = vpop.f32.mrb[20].mxu1 }
 0x222   : > { %v3562_v59 = vmax.f32 %v3548_v50, 0.0  ;;  %v3550_v11 = vadd.f32 %v6225_v39, %v3525_v61  ;;  %v3425_v6 = vpop.f32.mrb[4].mxu0  ;;  %v3571_v32 = vmax.f32 %v3557_v63, 0.0  ;;  %v4406_v4 = vadd.f32 %v4405_v3, %v3445_v7  ;;  %v3447_v8 = vpop.f32.mrb[21].mxu1 }
 0x223   : > { %v3563_v2 = vmax.f32 %v3549_v25, 0.0  ;;  %v4393_v48 = vadd.f32 %v3425_v6, %v6203_v60  ;;  %v3427_v26 = vpop.f32.mrb[5].mxu0  ;;  %v4354_v15 = vpack.c.bf16 %v3570_v43, %v3569_v28  ;;  %v3572_v18 = vmax.f32 %v3558_v62, 0.0  ;;  %v3449_v21 = vpop.f32.mrb[22].mxu1 }
 0x224   : > { %v4350_v5 = vpack.c.bf16 %v3562_v59, %v3561_v10  ;;  %v3564_v9 = vmax.f32 %v3550_v11, 0.0  ;;  %v3429_v19 = vpop.f32.mrb[6].mxu0  ;;  %v3534_v0 = vmul.f32 %v4406_v4, %v6219_v23  ;;  %v4394_v12 = vadd.f32 %v3427_v26, %v6205_v36  ;;  %v3450_v20 = vpop.f32.mrb[23].mxu1 }
 0x225   : > { %v3526_v34 = vmul.f32 %v4393_v48, %v6219_v23  ;;  %v4408_v60 = vadd.f32 %v6211_v14, %v3447_v8  ;;  %v3431_v3 = vpop.f32.mrb[7].mxu0  ;;  %3623 = vst [vmem:[%s6247_s19 + $0x20] sm:$0xff] %v4354_v15  ;;  %v4355_v58 = vpack.c.bf16 %v3572_v18, %v3571_v32  ;;  %v4395_v27 = vadd.f32 %v3429_v19, %v6207_v57 }
 0x226   : > { %3619 = vst [vmem:[%s6247_s19] sm:$0xff] %v4350_v5  ;;  %v4351_v24 = vpack.c.bf16 %v3564_v9, %v3563_v2  ;;  %v4396_v29 = vadd.f32 %v3431_v3, %v6209_v30  ;;  %v3559_v35 = vadd.f32 %v6223_v1, %v3534_v0  ;;  %v3527_v37 = vmul.f32 %v4394_v12, %v6221_v22 }
 0x227   : > { %v3551_v31 = vadd.f32 %v6223_v1, %v3526_v34  ;;  %v3535_v36 = vmul.f32 %v4408_v60, %v6221_v22  ;;  %3624 = vst [vmem:[%s6247_s19 + $0x28] sm:$0xff] %v4355_v58  ;;  %v3528_v14 = vmul.f32 %v4395_v27, %v6219_v23 }
 0x228   : > { %3620 = vst [vmem:[%s6247_s19 + $0x8] sm:$0xff] %v4351_v24  ;;  %v3529_v41 = vmul.f32 %v4396_v29, %v6221_v22  ;;  %v3573_v16 = vmax.f32 %v3559_v35, 0.0  ;;  %v3552_v30 = vadd.f32 %v6225_v39, %v3527_v37 }
 0x229   : > { %v3565_v57 = vmax.f32 %v3551_v31, 0.0  ;;  %v3560_v44 = vadd.f32 %v6225_v39, %v3535_v36  ;;  %v3553_v13 = vadd.f32 %v6223_v1, %v3528_v14 }
 0x22a   : > { %v3554_v45 = vadd.f32 %v6225_v39, %v3529_v41  ;;  %v3566_v46 = vmax.f32 %v3552_v30, 0.0 }
 0x22b   : > { %v3574_v17 = vmax.f32 %v3560_v44, 0.0  ;;  %v3567_v47 = vmax.f32 %v3553_v13, 0.0 }
 0x22c   : > { %v3568_v51 = vmax.f32 %v3554_v45, 0.0  ;;  %v4352_v33 = vpack.c.bf16 %v3566_v46, %v3565_v57 }
 0x22d   : > { %v4356_v23 = vpack.c.bf16 %v3574_v17, %v3573_v16 }
 0x22e   : > { %v4353_v52 = vpack.c.bf16 %v3568_v51, %v3567_v47  ;;  %3621 = vst [vmem:[%s6247_s19 + $0x10] sm:$0xff] %v4352_v33 }
 0x22f   : > { %3625 = vst [vmem:[%s6247_s19 + $0x30] sm:$0xff] %v4356_v23 }
 0x230   : > { %3622 = vst [vmem:[%s6247_s19 + $0x18] sm:$0xff] %v4353_v52 }
 0x231 PF: > { %s13_s12 = sadd.s32 1, %s5043_s12  }
 0x232   : > { %p10_p4 = scmp.ge.s32.totalorder %s13_s12, 4  }
 0x234   :  { %12 = sbr.rel (!%p10_p4) target bundleno = 1 (0x1), region = 74 }

// kernel: encoder_stn_no_alpha.4
= control target key start
LH: loop header
LB: loop body
LE: loop exit
PB: predicated region body
PF: predicated region fallthrough
CT: control target
= control target key end

     0   :  { %s6506_s12 = smov 0   ;;  %s7255_s0 = inlined_call_operand.vmem [shape: bf16[2,4,256,8], index: 0, kind: input, shape index: {}]   ;;  %s7256_s1 = inlined_call_operand.vmem [shape: bf16[9,8,256], index: 1, kind: input, shape index: {}]   ;;  %s7257_s2 = inlined_call_operand.vmem [shape: f32[2,256], index: 2, kind: input, shape index: {}]   ;;  %s7258_s3 = inlined_call_operand.vmem [shape: bf16[2,224,256], index: 3, kind: output, shape index: {}]  }
   0x1 LB: > { %s5371_s13 = sadd.s32 4294967295, %s6483_s12   ;;  %p5375_p0 = scmp.ge.s32.totalorder %s6483_s12, 1  ;;  %s6483_s12 = sphi %s6506_s12, %s13_s12  }
   0x2   : > { %p137_p1 = scmp.lt.s32.totalorder %s6483_s12, 3 }
   0x4   : > { %p138_p2 = pnand %p5375_p0, %p137_p1 }
   0x5   : > { %v200_v0 = vld [vmem:[%s7256_s1] sm:$0xff] (!%p138_p2)  ;;  %vm319_vm0 = vcmask (!%p138_p2), 1043456   ;;  %v5438_v2 = vld [vmem:[%s7256_s1 + $0x8] sm:$0xff] (!%p138_p2)  ;;  %p161_p3 = scmp.lt.s32.totalorder (!%p138_p2), %s5371_s13, 1  ;;  %v6485_v7 = vmov (!%p138_p2), 0   ;;  %v6544_v15 = vld [vmem:[%s7256_s1 + $0x30] sm:$0xff] (!%p138_p2) }
   0x6   : > { %141 = sbr.rel (%p138_p2) target bundleno = 740 (0x2e4), region = 32  ;;  %v5591_v1 = vld [vmem:[%s7256_s1 + $0x20] sm:$0xff] (!%p138_p2)  ;;  %v5394_v3 = vcombine.high (!%p138_p2), %v200_v0, %v200_v0  ;;  %v5393_v5 = vcombine.low (!%p138_p2), %v200_v0, %v200_v0  ;;  %358 = vmatprep.mubr.bf16.mxu1 (!%p138_p2), %v6485_v7  ;;  %v5652_v8 = vld [vmem:[%s7256_s1 + $0x28] sm:$0xff] (!%p138_p2)  ;;  %v5454_v9 = vcombine.high (!%p138_p2), %v5438_v2, %v5438_v2  ;;  %2346 = vmatprep.mubr.bf16.mxu0 (!%p138_p2), %v6485_v7  ;;  %vm276_vm1 = vcmask (!%p138_p2), 64512   ;;  %v6556_v16 = vld [vmem:[%s7256_s1 + $0x10] sm:$0xff] (!%p138_p2) }
   0x7   : > { %v6523_v4 = vcombine.high (!%p138_p2), %v5591_v1, %v5591_v1  ;;  %v5606_v6 = vcombine.low (!%p138_p2), %v5591_v1, %v5591_v1  ;;  %v5669_v10 = vcombine.high (!%p138_p2), %v5652_v8, %v5652_v8  ;;  %v5453_v11 = vcombine.low (!%p138_p2), %v5438_v2, %v5438_v2  ;;  %v6615_v47 = vld [vmem:[%s7256_s1 + $0x38] sm:$0xff] (!%p138_p2) }
   0x8   : > { %5395 = vmatprep.subr.msk.bf16.mxu1 (!%p138_p2), %vm319_vm0, %v5394_v3  ;;  %v321_v12 = vsel (!%p138_p2), %vm319_vm0, %v5393_v5, 0  ;;  %v5668_v14 = vcombine.low (!%p138_p2), %v5652_v8, %v5652_v8  ;;  %v5701_v21 = vcombine.high (!%p138_p2), %v6544_v15, %v6544_v15  ;;  %v5487_v22 = vcombine.high (!%p138_p2), %v6556_v16, %v6556_v16 }
   0x9   : > { %5608 = vmatprep.subr.msk.bf16.mxu0 (!%p138_p2), %vm319_vm0, %v6523_v4  ;;  %v6537_v13 = vsel (!%p138_p2), %vm319_vm0, %v5606_v6, 0  ;;  %327 = vmatpush1.bf16.msra.mxu1 (!%p138_p2), %v321_v12  ;;  %v704_v18 = vsel (!%p138_p2), %vm319_vm0, %v5453_v11, 0  ;;  %vm1154_vm2 = vsmask.f32 (!%p138_p2), 7424  ;;  %v5700_v48 = vcombine.low (!%p138_p2), %v6544_v15, %v6544_v15 }
   0xa   : > { %2315 = vmatpush1.bf16.msra.mxu0 (!%p138_p2), %v6537_v13  ;;  %5455 = vmatprep.subr.msk.bf16.mxu1 (!%p138_p2), %vm319_vm0, %v5454_v9  ;;  %v2923_v20 = vsel (!%p138_p2), %vm319_vm0, %v5668_v14, 0  ;;  %v5761_v53 = vcombine.high (!%p138_p2), %v6615_v47, %v6615_v47 }
   0xb   : > { %5670 = vmatprep.subr.msk.bf16.mxu0 (!%p138_p2), %vm319_vm0, %v5669_v10  ;;  %v3417_v51 = vsel (!%p138_p2), %vm319_vm0, %v5700_v48, 0 }
   0xd   : > { %s7260_s13 = smov (!%p161_p3, %s5371_s13), 1 }
   0xe   : > { %s5841_s22 = sshll.u32 %s7260_s13, 9  ;;  %s6320_s15 = smul.u32 224, %s7260_s13 }
   0xf   : > { %s6551_s27 = scalar_lea.vmem %s7255_s0, %s5841_s22 }
  0x10   : > { %v6336_v17 = vld [vmem:[%s6551_s27] sm:$0xff]   ;;  %v6340_v23 = vld [vmem:[%s6551_s27 + $0x8] sm:$0xff]   ;;  %v6342_v25 = vld [vmem:[%s6551_s27 + $0x10] sm:$0xff]   ;;  %s7097_s18 = scalar_lea.vmem %s7258_s3, %s6320_s15 }
  0x11   : > { %v6338_v19 = vld [vmem:[%s6551_s27 + $0x180] sm:$0xff]   ;;  %5396 = vmatmul.mubr.msk.bf16.vlgmr.msra.gmra.mrb[0].mxu1 %vm276_vm1, %v6336_v17  ;;  %v6341_v24 = vld [vmem:[%s6551_s27 + $0x188] sm:$0xff]   ;;  %v6343_v26 = vld [vmem:[%s6551_s27 + $0x190] sm:$0xff]  }
  0x12   : > { %710 = vmatpush1.bf16.msra.mxu1 %v704_v18  ;;  %5609 = vmatmul.mubr.msk.bf16.vlgmr.msra.gmra.mrb[0].mxu0 %vm276_vm1, %v6338_v19  ;;  %v6344_v27 = vld [vmem:[%s6551_s27 + $0x18] sm:$0xff]   ;;  %v6346_v29 = vld [vmem:[%s6551_s27 + $0x20] sm:$0xff]   ;;  %v6348_v31 = vld [vmem:[%s6551_s27 + $0x28] sm:$0xff]  }
  0x13   : > { %2929 = vmatpush1.bf16.msra.mxu0 %v2923_v20  ;;  %368 = vmatprep.mubr.bf16.mxu1 %v6485_v7  ;;  %v6345_v28 = vld [vmem:[%s6551_s27 + $0x198] sm:$0xff]   ;;  %v6347_v30 = vld [vmem:[%s6551_s27 + $0x1a0] sm:$0xff]   ;;  %v6349_v32 = vld [vmem:[%s6551_s27 + $0x1a8] sm:$0xff]  }
  0x14   : > { %2356 = vmatprep.mubr.bf16.mxu0 %v6485_v7  ;;  %5702 = vmatprep.subr.msk.bf16.mxu0 %vm319_vm0, %v5701_v21  ;;  %v6354_v33 = vld [vmem:[%s6551_s27 + $0x100] sm:$0xff]   ;;  %v6355_v34 = vld [vmem:[%s6551_s27 + $0x108] sm:$0xff]   ;;  %v6350_v36 = vld [vmem:[%s6551_s27 + $0x30] sm:$0xff]  }
  0x15   : > { %5488 = vmatprep.subr.msk.bf16.mxu1 %vm319_vm0, %v5487_v22  ;;  %v2762_v35 = vshll.u32 %v6354_v33, 16  ;;  %v2767_v37 = vshll.u32 %v6355_v34, 16  ;;  %v6351_v38 = vld [vmem:[%s6551_s27 + $0x1b0] sm:$0xff]   ;;  %v2760_v39 = vshrl.u32 %v6354_v33, 16  ;;  %v2771_v43 = vshrl.u32 %v6355_v34, 16  ;;  %v6353_v44 = vld [vmem:[%s6551_s27 + $0x38] sm:$0xff]  }
  0x16   : > { %v6358_v41 = vld [vmem:[%s6551_s27 + $0x110] sm:$0xff]   ;;  %v6360_v49 = vld [vmem:[%s6551_s27 + $0x118] sm:$0xff]   ;;  %v6357_v54 = vld [vmem:[%s6551_s27 + $0x40] sm:$0xff]  }
  0x17   : > { %v2764_v40 = vrot.slane %v2762_v35, 1  ;;  %v2769_v42 = vrot.slane %v2767_v37, 1  ;;  %v2775_v46 = vshll.u32 %v6358_v41, 16  ;;  %v2779_v52 = vshrl.u32 %v6358_v41, 16  ;;  %v6362_v58 = vld [vmem:[%s6551_s27 + $0x120] sm:$0xff]   ;;  %v6359_v61 = vld [vmem:[%s6551_s27 + $0x48] sm:$0xff]  }
  0x18   : > { %v2783_v57 = vshll.u32 %v6360_v49, 16  ;;  %v2787_v60 = vshrl.u32 %v6360_v49, 16  ;;  %v2791_v0 = vshll.u32 %v6362_v58, 16  ;;  %v6364_v1 = vld [vmem:[%s6551_s27 + $0x128] sm:$0xff]   ;;  %v2795_v3 = vshrl.u32 %v6362_v58, 16  ;;  %v6361_v5 = vld [vmem:[%s6551_s27 + $0x50] sm:$0xff]  }
  0x19   : > { %5397 = vmatmul.mubr.msk.bf16.gmra.mrb[4].mxu1 %vm276_vm1, %v6340_v23  ;;  %v2765_v45 = vor.u32 %v2764_v40, %v2760_v39  ;;  %v2773_v55 = vor.u32 %v2771_v43, %v2769_v42  ;;  %v2777_v56 = vrot.slane %v2775_v46, 1  ;;  %v2799_v9 = vshll.u32 %v6364_v1, 16  ;;  %v6366_v10 = vld [vmem:[%s6551_s27 + $0x130] sm:$0xff]   ;;  %v6363_v14 = vld [vmem:[%s6551_s27 + $0x58] sm:$0xff]   ;;  %v6365_v23 = vld [vmem:[%s6551_s27 + $0x60] sm:$0xff]  }
  0x1a   : > { %5610 = vmatmul.mubr.msk.bf16.gmra.mrb[4].mxu0 %vm276_vm1, %v6341_v24  ;;  %378 = vmatprep.mubr.bf16.mxu1 %v6485_v7  ;;  %v2785_v63 = vrot.slane %v2783_v57, 1  ;;  %v2793_v8 = vrot.slane %v2791_v0, 1  ;;  %v2803_v12 = vshrl.u32 %v6364_v1, 16  ;;  %v2807_v18 = vshll.u32 %v6366_v10, 16  ;;  %v6368_v22 = vld [vmem:[%s6551_s27 + $0x138] sm:$0xff]   ;;  %v6370_v34 = vld [vmem:[%s6551_s27 + $0x80] sm:$0xff]  }
  0x1b   : > { %2366 = vmatprep.mubr.bf16.mxu0 %v6485_v7  ;;  %v2770_v50 = vsel %vm1154_vm2, %v2765_v45, %v2769_v42  ;;  %v2778_v59 = vsel %vm1154_vm2, %v2773_v55, %v2777_v56  ;;  %v2781_v62 = vor.u32 %v2779_v52, %v2777_v56  ;;  %v2801_v17 = vrot.slane %v2799_v9, 1  ;;  %v6677_v39 = vld [vmem:[%s7256_s1 + $0x18] sm:$0xff]  ;;  %v6376_v46 = vld [vmem:[%s6551_s27 + $0x150] sm:$0xff]   ;;  %v6373_v48 = vld [vmem:[%s6551_s27 + $0x88] sm:$0xff]  }
  0x1c   : > { %v2789_v6 = vor.u32 %v2787_v60, %v2785_v63  ;;  %v2797_v15 = vor.u32 %v2795_v3, %v2793_v8  ;;  %v2809_v21 = vrot.slane %v2807_v18, 1  ;;  %v5486_v35 = vcombine.low %v6556_v16, %v6556_v16  ;;  %v6375_v55 = vld [vmem:[%s6551_s27 + $0x90] sm:$0xff]  }
  0x1d   : > { %v2786_v2 = vsel %vm1154_vm2, %v2781_v62, %v2785_v63  ;;  %v2805_v20 = vor.u32 %v2803_v12, %v2801_v17  ;;  %v2843_v57 = vshrl.u32 %v6376_v46, 16  ;;  %v6377_v62 = vld [vmem:[%s6551_s27 + $0x98] sm:$0xff]  }
  0x1e   : > { %v2794_v11 = vsel %vm1154_vm2, %v2789_v6, %v2793_v8  ;;  %v2802_v19 = vsel %vm1154_vm2, %v2797_v15, %v2801_v17  ;;  %v1319_v40 = vsel %vm319_vm0, %v5486_v35, 0  ;;  %v6379_v6 = vld [vmem:[%s6551_s27 + $0xa0] sm:$0xff]   ;;  %v6381_v15 = vld [vmem:[%s6551_s27 + $0xa8] sm:$0xff]   ;;  %v6395_v35 = vld [vmem:[%s6551_s27 + $0xd8] sm:$0xff]  }
  0x1f   : > { %v2810_v24 = vsel %vm1154_vm2, %v2805_v20, %v2809_v21 }
  0x21   : > { %5398 = vmatmul.mubr.msk.bf16.gmra.mrb[8].mxu1 %vm276_vm1, %v6342_v25  ;;  %v2811_v25 = vshrl.u32 %v6366_v10, 16 }
  0x22   : > { %5611 = vmatmul.mubr.msk.bf16.gmra.mrb[8].mxu0 %vm276_vm1, %v6343_v26  ;;  %388 = vmatprep.mubr.bf16.mxu1 %v6485_v7  ;;  %v2815_v26 = vshll.u32 %v6368_v22, 16 }
  0x23   : > { %2376 = vmatprep.mubr.bf16.mxu0 %v6485_v7 }
  0x29   : > { %5399 = vmatmul.mubr.msk.bf16.gmra.mrb[12].mxu1 %vm276_vm1, %v6344_v27  ;;  %v2813_v27 = vor.u32 %v2811_v25, %v2809_v21  ;;  %v6386_v25 = vld [vmem:[%s6551_s27 + $0xb8] sm:$0xff]  }
  0x2a   : > { %5612 = vmatmul.mubr.msk.bf16.gmra.mrb[12].mxu0 %vm276_vm1, %v6345_v28  ;;  %398 = vmatprep.mubr.bf16.mxu1 %v6485_v7  ;;  %v2817_v28 = vrot.slane %v2815_v26, 1  ;;  %v6735_v26 = vld [vmem:[%s7256_s1 + $0x40] sm:$0xff] }
  0x2b   : > { %2386 = vmatprep.mubr.bf16.mxu0 %v6485_v7 }
  0x31   : > { %5400 = vmatmul.mubr.msk.bf16.gmra.mrb[16].mxu1 %vm276_vm1, %v6346_v29  ;;  %v6372_v29 = vld [vmem:[%s6551_s27 + $0x140] sm:$0xff]  }
  0x32   : > { %5613 = vmatmul.mubr.msk.bf16.gmra.mrb[16].mxu0 %vm276_vm1, %v6347_v30  ;;  %408 = vmatprep.mubr.bf16.mxu1 %v6485_v7  ;;  %v6367_v30 = vld [vmem:[%s6551_s27 + $0x68] sm:$0xff]   ;;  %v2823_v33 = vshll.u32 %v6372_v29, 16  ;;  %v2827_v42 = vshrl.u32 %v6372_v29, 16  ;;  %v5794_v29 = vcombine.high %v6735_v26, %v6735_v26 }
  0x33   : > { %2396 = vmatprep.mubr.bf16.mxu0 %v6485_v7 }
  0x34   : > { %v2825_v37 = vrot.slane %v2823_v33, 1  ;;  %v6393_v33 = vld [vmem:[%s6551_s27 + $0xd0] sm:$0xff]  }
  0x36   : > { %v2829_v16 = vor.u32 %v2827_v42, %v2825_v37 }
  0x39   : > { %5401 = vmatmul.mubr.msk.bf16.gmra.mrb[20].mxu1 %vm276_vm1, %v6348_v31  ;;  %v2818_v31 = vsel %vm1154_vm2, %v2813_v27, %v2817_v28  ;;  %v6387_v27 = vld [vmem:[%s6551_s27 + $0x8] sm:$0xff]  }
  0x3a   : > { %5614 = vmatmul.mubr.msk.bf16.gmra.mrb[20].mxu0 %vm276_vm1, %v6349_v32  ;;  %418 = vmatprep.mubr.bf16.mxu1 %v6485_v7  ;;  %v2819_v32 = vshrl.u32 %v6368_v22, 16  ;;  %v6383_v22 = vld [vmem:[%s6551_s27 + $0xb0] sm:$0xff]  }
  0x3b   : > { %2406 = vmatprep.mubr.bf16.mxu0 %v6485_v7 }
  0x41   : > { %5402 = vmatmul.mubr.msk.bf16.gmra.mrb[24].mxu1 %vm276_vm1, %v6350_v36  ;;  %v2821_v36 = vor.u32 %v2819_v32, %v2817_v28  ;;  %v6392_v32 = vld [vmem:[%s6551_s27 + $0x18] sm:$0xff]  }
  0x42   : > { %5615 = vmatmul.mubr.msk.bf16.gmra.mrb[24].mxu0 %vm276_vm1, %v6351_v38  ;;  %428 = vmatprep.mubr.bf16.mxu1 %v6485_v7  ;;  %v6374_v38 = vld [vmem:[%s6551_s27 + $0x148] sm:$0xff]  }
  0x43   : > { %2960 = vmatprep.mubr.bf16.mxu0 %v6485_v7  ;;  %v2826_v41 = vsel %vm1154_vm2, %v2821_v36, %v2825_v37  ;;  %v2831_v43 = vshll.u32 %v6374_v38, 16  ;;  %v6396_v36 = vld [vmem:[%s6551_s27 + $0x28] sm:$0xff]   ;;  %v6397_v37 = vld [vmem:[%s6551_s27 + $0xe0] sm:$0xff]  }
  0x45   : > { %v2833_v45 = vrot.slane %v2831_v43, 1  ;;  %v6399_v43 = vld [vmem:[%s6551_s27 + $0xe8] sm:$0xff]  }
  0x47   : > { %v2834_v49 = vsel %vm1154_vm2, %v2829_v16, %v2833_v45 }
  0x49   : > { %5403 = vmatmul.mubr.msk.bf16.gmra.mrb[28].mxu1 %vm276_vm1, %v6353_v44  ;;  %v5547_v44 = vcombine.high %v6677_v39, %v6677_v39 }
  0x4a   : > { %5671 = vmatmul.mubr.msk.bf16.vlgmr.msra.gmra.mrb[0].mxu0 %vm276_vm1, %v2770_v50  ;;  %438 = vmatprep.mubr.bf16.mxu1 %v6485_v7  ;;  %v2835_v50 = vshrl.u32 %v6374_v38, 16  ;;  %v6398_v38 = vld [vmem:[%s6551_s27 + $0x30] sm:$0xff]  }
  0x4b   : > { %3423 = vmatpush1.bf16.msra.mxu0 %v3417_v51  ;;  %2970 = vmatprep.mubr.bf16.mxu0 %v6485_v7  ;;  %v2839_v51 = vshll.u32 %v6376_v46, 16 }
  0x4c   : > { %5762 = vmatprep.subr.msk.bf16.mxu0 %vm319_vm0, %v5761_v53  ;;  %v2837_v52 = vor.u32 %v2835_v50, %v2833_v45  ;;  %v6406_v50 = vld [vmem:[%s6551_s27 + $0x10] sm:$0xff]  }
  0x4d   : > { %v2841_v53 = vrot.slane %v2839_v51, 1  ;;  %v5546_v51 = vcombine.low %v6677_v39, %v6677_v39 }
  0x4f   : > { %v2842_v56 = vsel %vm1154_vm2, %v2837_v52, %v2841_v53 }
  0x51   : > { %5404 = vmatmul.mubr.msk.bf16.gmra.mrb[32].mxu1 %vm276_vm1, %v6357_v54  ;;  %v6378_v54 = vld [vmem:[%s6551_s27 + $0x158] sm:$0xff]  }
  0x52   : > { %5672 = vmatmul.mubr.msk.bf16.gmra.mrb[4].mxu0 %vm276_vm1, %v2778_v59  ;;  %448 = vmatprep.mubr.bf16.mxu1 %v6485_v7  ;;  %v2847_v58 = vshll.u32 %v6378_v54, 16  ;;  %v2845_v59 = vor.u32 %v2843_v57, %v2841_v53  ;;  %v2851_v0 = vshrl.u32 %v6378_v54, 16  ;;  %v6405_v53 = vld [vmem:[%s6551_s27 + $0x40] sm:$0xff]  }
  0x53   : > { %2980 = vmatprep.mubr.bf16.mxu0 %v6485_v7 }
  0x54   : > { %v2849_v60 = vrot.slane %v2847_v58, 1 }
  0x56   : > { %v2850_v63 = vsel %vm1154_vm2, %v2845_v59, %v2849_v60  ;;  %v6408_v59 = vld [vmem:[%s6551_s27 + $0x18] sm:$0xff]  }
  0x59   : > { %5405 = vmatmul.mubr.msk.bf16.gmra.mrb[36].mxu1 %vm276_vm1, %v6359_v61  ;;  %v6380_v61 = vld [vmem:[%s6551_s27 + $0x160] sm:$0xff]  }
  0x5a   : > { %5673 = vmatmul.mubr.msk.bf16.gmra.mrb[8].mxu0 %vm276_vm1, %v2786_v2  ;;  %458 = vmatprep.mubr.bf16.mxu1 %v6485_v7  ;;  %v2855_v1 = vshll.u32 %v6380_v61, 16  ;;  %v2853_v2 = vor.u32 %v2851_v0, %v2849_v60  ;;  %v2859_v9 = vshrl.u32 %v6380_v61, 16  ;;  %v6407_v60 = vld [vmem:[%s6551_s27 + $0x48] sm:$0xff]   ;;  %v1175_v61 = vshrl.u32 %v6406_v50, 16 }
  0x5b   : > { %2990 = vmatprep.mubr.bf16.mxu0 %v6485_v7 }
  0x5c   : > { %v2857_v3 = vrot.slane %v2855_v1, 1  ;;  %v6410_v1 = vld [vmem:[%s6551_s27 + $0x20] sm:$0xff]  }
  0x5e   : > { %v2858_v8 = vsel %vm1154_vm2, %v2853_v2, %v2857_v3  ;;  %v6409_v2 = vld [vmem:[%s6551_s27 + $0x50] sm:$0xff]  }
  0x61   : > { %5406 = vmatmul.mubr.msk.bf16.gmra.mrb[40].mxu1 %vm276_vm1, %v6361_v5  ;;  %v6382_v5 = vld [vmem:[%s6551_s27 + $0x168] sm:$0xff]  }
  0x62   : > { %5674 = vmatmul.mubr.msk.bf16.gmra.mrb[12].mxu0 %vm276_vm1, %v2794_v11  ;;  %468 = vmatprep.mubr.bf16.mxu1 %v6485_v7  ;;  %v2863_v10 = vshll.u32 %v6382_v5, 16  ;;  %v2861_v11 = vor.u32 %v2859_v9, %v2857_v3  ;;  %v2867_v18 = vshrl.u32 %v6382_v5, 16  ;;  %v1183_v3 = vshrl.u32 %v6408_v59, 16  ;;  %v6412_v9 = vld [vmem:[%s6551_s27 + $0x28] sm:$0xff]  }
  0x63   : > { %3000 = vmatprep.mubr.bf16.mxu0 %v6485_v7  ;;  %v1187_v5 = vshll.u32 %v6410_v1, 16 }
  0x64   : > { %v2865_v12 = vrot.slane %v2863_v10, 1 }
  0x66   : > { %v2866_v17 = vsel %vm1154_vm2, %v2861_v11, %v2865_v12  ;;  %v2869_v20 = vor.u32 %v2867_v18, %v2865_v12  ;;  %v6411_v11 = vld [vmem:[%s6551_s27 + $0x58] sm:$0xff]   ;;  %v1191_v12 = vshrl.u32 %v6410_v1, 16  ;;  %v6414_v18 = vld [vmem:[%s6551_s27 + $0x30] sm:$0xff]  }
  0x69   : > { %5407 = vmatmul.mubr.msk.bf16.gmra.mrb[44].mxu1 %vm276_vm1, %v6363_v14  ;;  %v6384_v14 = vld [vmem:[%s6551_s27 + $0x170] ss:$0 sps:$4 sm:$0x11]  }
  0x6a   : > { %5675 = vmatmul.mubr.msk.bf16.gmra.mrb[16].mxu0 %vm276_vm1, %v2802_v19  ;;  %478 = vmatprep.mubr.bf16.mxu1 %v6485_v7  ;;  %v2871_v19 = vshll.u32 %v6384_v14, 16  ;;  %v1195_v14 = vshll.u32 %v6412_v9, 16 }
  0x6b   : > { %3010 = vmatprep.mubr.bf16.mxu0 %v6485_v7 }
  0x6c   : > { %v2873_v21 = vrot.slane %v2871_v19, 1 }
  0x71   : > { %5408 = vmatmul.mubr.msk.bf16.gmra.mrb[48].mxu1 %vm276_vm1, %v6365_v23  ;;  %v2874_v23 = vsel %vm1154_vm2, %v2869_v20, %v2873_v21  ;;  %v6413_v20 = vld [vmem:[%s6551_s27 + $0x60] sm:$0xff]   ;;  %v1199_v21 = vshrl.u32 %v6412_v9, 16 }
  0x72   : > { %5676 = vmatmul.mubr.msk.bf16.gmra.mrb[20].mxu0 %vm276_vm1, %v2810_v24  ;;  %488 = vmatprep.mubr.bf16.mxu1 %v6485_v7  ;;  %v5760_v24 = vcombine.low %v6615_v47, %v6615_v47  ;;  %v6389_v47 = vld [vmem:[%s6551_s27 + $0xc0] sm:$0xff]  }
  0x73   : > { %3020 = vmatprep.mubr.bf16.mxu0 %v6485_v7 }
  0x74   : > { %v3911_v28 = vsel %vm319_vm0, %v5760_v24, 0 }
  0x79   : > { %5409 = vmatmul.mubr.msk.bf16.gmra.mrb[52].mxu1 %vm276_vm1, %v6367_v30  ;;  %v6390_v30 = vld [vmem:[%s6551_s27 + $0x10] sm:$0xff]  }
  0x7a   : > { %5677 = vmatmul.mubr.msk.bf16.gmra.mrb[24].mxu0 %vm276_vm1, %v2818_v31  ;;  %741 = vmatprep.mubr.bf16.mxu1 %v6485_v7  ;;  %v6391_v31 = vld [vmem:[%s6551_s27 + $0xc8] sm:$0xff]  }
  0x7b   : > { %3030 = vmatprep.mubr.bf16.mxu0 %v6485_v7 }
  0x81   : > { %5456 = vmatmul.mubr.msk.bf16.vlgmr.msra.gmra.mrb[0].mxu1 %vm276_vm1, %v6370_v34  ;;  %v6394_v34 = vld [vmem:[%s6551_s27 + $0x20] sm:$0xff]  }
  0x82   : > { %1325 = vmatpush1.bf16.msra.mxu1 %v1319_v40  ;;  %5678 = vmatmul.mubr.msk.bf16.gmra.mrb[28].mxu0 %vm276_vm1, %v2826_v41  ;;  %v6402_v40 = vld [vmem:[%s6551_s27] sm:$0xff]   ;;  %v6403_v41 = vld [vmem:[%s6551_s27 + $0x8] sm:$0xff]  }
  0x83   : > { %751 = vmatprep.mubr.bf16.mxu1 %v6485_v7  ;;  %3040 = vmatprep.mubr.bf16.mxu0 %v6485_v7  ;;  %v1158_v42 = vshll.u32 %v6402_v40, 16  ;;  %v1156_v16 = vshrl.u32 %v6402_v40, 16  ;;  %v1163_v46 = vshll.u32 %v6403_v41, 16  ;;  %v1167_v54 = vshrl.u32 %v6403_v41, 16  ;;  %v6422_v40 = vld [vmem:[%s6551_s27 + $0x48] sm:$0xff]  }
  0x84   : > { %5548 = vmatprep.subr.msk.bf16.mxu1 %vm319_vm0, %v5547_v44  ;;  %v6400_v44 = vld [vmem:[%s6551_s27 + $0x38] sm:$0xff]   ;;  %v5793_v41 = vcombine.low %v6735_v26, %v6735_v26 }
  0x85   : > { %v1160_v45 = vrot.slane %v1158_v42, 1 }
  0x89   : > { %5457 = vmatmul.mubr.msk.bf16.gmra.mrb[4].mxu1 %vm276_vm1, %v6373_v48  ;;  %v1161_v48 = vor.u32 %v1160_v45, %v1156_v16  ;;  %v1227_v16 = vshll.u32 %v6422_v40, 16  ;;  %v4525_v45 = vsel %vm319_vm0, %v5793_v41, 0 }
  0x8a   : > { %5679 = vmatmul.mubr.msk.bf16.gmra.mrb[32].mxu0 %vm276_vm1, %v2834_v49  ;;  %761 = vmatprep.mubr.bf16.mxu1 %v6485_v7  ;;  %v1165_v49 = vrot.slane %v1163_v46, 1 }
  0x8b   : > { %3050 = vmatprep.mubr.bf16.mxu0 %v6485_v7 }
  0x8c   : > { %v1166_v52 = vsel %vm1154_vm2, %v1161_v48, %v1165_v49  ;;  %v1169_v57 = vor.u32 %v1167_v54, %v1165_v49  ;;  %v1229_v48 = vrot.slane %v1227_v16, 1  ;;  %v6424_v49 = vld [vmem:[%s6551_s27 + $0x50] sm:$0xff]   ;;  %v6452_v16 = vld [vmem:[%s6551_s27 + $0x18] sm:$0xff]  }
  0x91   : > { %5458 = vmatmul.mubr.msk.bf16.gmra.mrb[8].mxu1 %vm276_vm1, %v6375_v55  ;;  %v1171_v55 = vshll.u32 %v6406_v50, 16  ;;  %v6423_v50 = vld [vmem:[%s6551_s27 + $0x90] sm:$0xff]  }
  0x92   : > { %5680 = vmatmul.mubr.msk.bf16.gmra.mrb[36].mxu0 %vm276_vm1, %v2842_v56  ;;  %771 = vmatprep.mubr.bf16.mxu1 %v6485_v7  ;;  %v1814_v56 = vsel %vm319_vm0, %v5546_v51, 0  ;;  %v1231_v51 = vshrl.u32 %v6422_v40, 16 }
  0x93   : > { %3060 = vmatprep.mubr.bf16.mxu0 %v6485_v7  ;;  %v1173_v58 = vrot.slane %v1171_v55, 1  ;;  %v6426_v55 = vld [vmem:[%s6551_s27 + $0x58] sm:$0xff]  }
  0x95   : > { %v1174_v39 = vsel %vm1154_vm2, %v1169_v57, %v1173_v58  ;;  %v6425_v57 = vld [vmem:[%s6551_s27 + $0x98] sm:$0xff]  }
  0x99   : > { %5459 = vmatmul.mubr.msk.bf16.gmra.mrb[12].mxu1 %vm276_vm1, %v6377_v62  ;;  %v1179_v62 = vshll.u32 %v6408_v59, 16  ;;  %v1243_v59 = vshll.u32 %v6426_v55, 16 }
  0x9a   : > { %5681 = vmatmul.mubr.msk.bf16.gmra.mrb[40].mxu0 %vm276_vm1, %v2850_v63  ;;  %781 = vmatprep.mubr.bf16.mxu1 %v6485_v7  ;;  %v1177_v63 = vor.u32 %v1175_v61, %v1173_v58  ;;  %v1239_v58 = vshrl.u32 %v6424_v49, 16  ;;  %v6428_v61 = vld [vmem:[%s6551_s27 + $0x60] sm:$0xff]  }
  0x9b   : > { %3070 = vmatprep.mubr.bf16.mxu0 %v6485_v7  ;;  %v1181_v0 = vrot.slane %v1179_v62, 1  ;;  %v1251_v1 = vshll.u32 %v6428_v61, 16 }
  0xa1   : > { %5460 = vmatmul.mubr.msk.bf16.gmra.mrb[16].mxu1 %vm276_vm1, %v6379_v6  ;;  %v1185_v6 = vor.u32 %v1183_v3, %v1181_v0  ;;  %v6430_v3 = vld [vmem:[%s6551_s27 + $0x68] sm:$0xff]  }
  0xa2   : > { %5682 = vmatmul.mubr.msk.bf16.gmra.mrb[44].mxu0 %vm276_vm1, %v2858_v8  ;;  %791 = vmatprep.mubr.bf16.mxu1 %v6485_v7  ;;  %v1189_v8 = vrot.slane %v1187_v5, 1  ;;  %v1259_v9 = vshll.u32 %v6430_v3, 16 }
  0xa3   : > { %3080 = vmatprep.mubr.bf16.mxu0 %v6485_v7 }
  0xa4   : > { %v1190_v10 = vsel %vm1154_vm2, %v1185_v6, %v1189_v8  ;;  %v6429_v6 = vld [vmem:[%s6551_s27 + $0xa8] sm:$0xff]  }
  0xa9   : > { %5461 = vmatmul.mubr.msk.bf16.gmra.mrb[20].mxu1 %vm276_vm1, %v6381_v15  ;;  %v1193_v15 = vor.u32 %v1191_v12, %v1189_v8  ;;  %v1255_v8 = vshrl.u32 %v6428_v61, 16  ;;  %v6432_v12 = vld [vmem:[%s6551_s27 + $0x70] ss:$0 sps:$4 sm:$0x11]  }
  0xaa   : > { %5683 = vmatmul.mubr.msk.bf16.gmra.mrb[48].mxu0 %vm276_vm1, %v2866_v17  ;;  %801 = vmatprep.mubr.bf16.mxu1 %v6485_v7  ;;  %v1197_v17 = vrot.slane %v1195_v14, 1 }
  0xab   : > { %3090 = vmatprep.mubr.bf16.mxu0 %v6485_v7 }
  0xac   : > { %v1198_v19 = vsel %vm1154_vm2, %v1193_v15, %v1197_v17  ;;  %v6431_v15 = vld [vmem:[%s6551_s27 + $0xb0] sm:$0xff]  }
  0xb1   : > { %5462 = vmatmul.mubr.msk.bf16.gmra.mrb[24].mxu1 %vm276_vm1, %v6383_v22  ;;  %v1203_v22 = vshll.u32 %v6414_v18, 16 }
  0xb2   : > { %5684 = vmatmul.mubr.msk.bf16.gmra.mrb[52].mxu0 %vm276_vm1, %v2874_v23  ;;  %811 = vmatprep.mubr.bf16.mxu1 %v6485_v7  ;;  %v1201_v23 = vor.u32 %v1199_v21, %v1197_v17  ;;  %v1263_v17 = vshrl.u32 %v6430_v3, 16 }
  0xb3   : > { %3454 = vmatprep.mubr.bf16.mxu0 %v6485_v7  ;;  %v1205_v24 = vrot.slane %v1203_v22, 1  ;;  %v6433_v22 = vld [vmem:[%s6551_s27 + $0xb8] sm:$0xff]  }
  0xb9   : > { %5463 = vmatmul.mubr.msk.bf16.gmra.mrb[28].mxu1 %vm276_vm1, %v6386_v25  ;;  %v6416_v25 = vld [vmem:[%s6551_s27 + $0x38] sm:$0xff]  }
  0xba   : > { %5703 = vmatmul.mubr.msk.bf16.vlgmr.msra.gmra.mrb[0].mxu0 %vm276_vm1, %v6387_v27  ;;  %821 = vmatprep.mubr.bf16.mxu1 %v6485_v7  ;;  %v1206_v27 = vsel %vm1154_vm2, %v1201_v23, %v1205_v24  ;;  %v6434_v23 = vld [vmem:[%s6551_s27 + $0x100] sm:$0xff]  }
  0xbb   : > { %3917 = vmatpush1.bf16.msra.mxu0 %v3911_v28  ;;  %3464 = vmatprep.mubr.bf16.mxu0 %v6485_v7  ;;  %v6415_v28 = vld [vmem:[%s6551_s27 + $0x68] sm:$0xff]  }
  0xbc   : > { %5795 = vmatprep.subr.msk.bf16.mxu0 %vm319_vm0, %v5794_v29  ;;  %v1207_v29 = vshrl.u32 %v6414_v18, 16  ;;  %v1267_v18 = vshll.u32 %v6432_v12, 16 }
  0xc1   : > { %5464 = vmatmul.mubr.msk.bf16.gmra.mrb[32].mxu1 %vm276_vm1, %v6389_v47  ;;  %v1211_v47 = vshll.u32 %v6416_v25, 16 }
  0xc2   : > { %5704 = vmatmul.mubr.msk.bf16.gmra.mrb[4].mxu0 %vm276_vm1, %v6390_v30  ;;  %831 = vmatprep.mubr.bf16.mxu1 %v6485_v7  ;;  %v1209_v30 = vor.u32 %v1207_v29, %v1205_v24  ;;  %v6435_v24 = vld [vmem:[%s6551_s27 + $0xc0] sm:$0xff]   ;;  %v6440_v29 = vld [vmem:[%s6551_s27 + $0x118] sm:$0xff]  }
  0xc3   : > { %3474 = vmatprep.mubr.bf16.mxu0 %v6485_v7 }
  0xc9   : > { %5465 = vmatmul.mubr.msk.bf16.gmra.mrb[36].mxu1 %vm276_vm1, %v6391_v31  ;;  %v1213_v31 = vrot.slane %v1211_v47, 1  ;;  %v6441_v47 = vld [vmem:[%s6551_s27 + $0xd8] sm:$0xff]  }
  0xca   : > { %5705 = vmatmul.mubr.msk.bf16.gmra.mrb[8].mxu0 %vm276_vm1, %v6392_v32  ;;  %841 = vmatprep.mubr.bf16.mxu1 %v6485_v7  ;;  %v6419_v32 = vld [vmem:[%s6551_s27 + $0x40] sm:$0xff]  }
  0xcb   : > { %3484 = vmatprep.mubr.bf16.mxu0 %v6485_v7 }
  0xd1   : > { %5466 = vmatmul.mubr.msk.bf16.gmra.mrb[40].mxu1 %vm276_vm1, %v6393_v33  ;;  %v1214_v33 = vsel %vm1154_vm2, %v1209_v30, %v1213_v31  ;;  %v6442_v30 = vld [vmem:[%s6551_s27 + $0x120] sm:$0xff]  }
  0xd2   : > { %5706 = vmatmul.mubr.msk.bf16.gmra.mrb[12].mxu0 %vm276_vm1, %v6394_v34  ;;  %851 = vmatprep.mubr.bf16.mxu1 %v6485_v7  ;;  %v6417_v34 = vld [vmem:[%s6551_s27 + $0x70] sm:$0xff]  }
  0xd3   : > { %3494 = vmatprep.mubr.bf16.mxu0 %v6485_v7 }
  0xd9   : > { %5467 = vmatmul.mubr.msk.bf16.gmra.mrb[44].mxu1 %vm276_vm1, %v6395_v35  ;;  %v1215_v35 = vshrl.u32 %v6416_v25, 16  ;;  %v6436_v25 = vld [vmem:[%s6551_s27 + $0x108] sm:$0xff]  }
  0xda   : > { %5707 = vmatmul.mubr.msk.bf16.gmra.mrb[16].mxu0 %vm276_vm1, %v6396_v36  ;;  %861 = vmatprep.mubr.bf16.mxu1 %v6485_v7  ;;  %v1219_v36 = vshll.u32 %v6419_v32, 16 }
  0xdb   : > { %3504 = vmatprep.mubr.bf16.mxu0 %v6485_v7 }
  0xe1   : > { %5468 = vmatmul.mubr.msk.bf16.gmra.mrb[48].mxu1 %vm276_vm1, %v6397_v37  ;;  %v1217_v37 = vor.u32 %v1215_v35, %v1213_v31  ;;  %v6443_v31 = vld [vmem:[%s6551_s27 + $0xe0] sm:$0xff]   ;;  %v6450_v35 = vld [vmem:[%s6551_s27 + $0x10] sm:$0xff]  }
  0xe2   : > { %5708 = vmatmul.mubr.msk.bf16.gmra.mrb[20].mxu0 %vm276_vm1, %v6398_v38  ;;  %871 = vmatprep.mubr.bf16.mxu1 %v6485_v7  ;;  %v1221_v38 = vrot.slane %v1219_v36, 1 }
  0xe3   : > { %3514 = vmatprep.mubr.bf16.mxu0 %v6485_v7 }
  0xe4   : > { %v1222_v42 = vsel %vm1154_vm2, %v1217_v37, %v1221_v38  ;;  %v6446_v37 = vld [vmem:[%s6551_s27 + $0x130] sm:$0xff]  }
  0xe9   : > { %5469 = vmatmul.mubr.msk.bf16.gmra.mrb[52].mxu1 %vm276_vm1, %v6399_v43  ;;  %v6420_v43 = vld [vmem:[%s6551_s27 + $0x88] sm:$0xff]  }
  0xea   : > { %5709 = vmatmul.mubr.msk.bf16.gmra.mrb[24].mxu0 %vm276_vm1, %v6400_v44  ;;  %1356 = vmatprep.mubr.bf16.mxu1 %v6485_v7  ;;  %v1223_v44 = vshrl.u32 %v6419_v32, 16  ;;  %v6444_v32 = vld [vmem:[%s6551_s27 + $0x128] sm:$0xff]  }
  0xeb   : > { %3524 = vmatprep.mubr.bf16.mxu0 %v6485_v7 }
  0xec   : > { %v1225_v46 = vor.u32 %v1223_v44, %v1221_v38  ;;  %v6447_v38 = vld [vmem:[%s6551_s27 + $0xf0] sm:$0xff]  }
  0xee   : > { %v1230_v26 = vsel %vm1154_vm2, %v1225_v46, %v1229_v48 }
  0xf1   : > { %5489 = vmatmul.mubr.msk.bf16.vlgmr.msra.gmra.mrb[0].mxu1 %vm276_vm1, %v1166_v52  ;;  %v1235_v52 = vshll.u32 %v6424_v49, 16  ;;  %v4377_v49 = vshll.u32 %v6452_v16, 16 }
  0xf2   : > { %1820 = vmatpush1.bf16.msra.mxu1 %v1814_v56  ;;  %5710 = vmatmul.mubr.msk.bf16.gmra.mrb[28].mxu0 %vm276_vm1, %v6405_v53  ;;  %v1233_v53 = vor.u32 %v1231_v51, %v1229_v48  ;;  %v4373_v48 = vshrl.u32 %v6450_v35, 16  ;;  %v6454_v51 = vld [vmem:[%s6551_s27 + $0x20] sm:$0xff]  }
  0xf3   : > { %1366 = vmatprep.mubr.bf16.mxu1 %v6485_v7  ;;  %3534 = vmatprep.mubr.bf16.mxu0 %v6485_v7  ;;  %v1237_v54 = vrot.slane %v1235_v52, 1  ;;  %v6451_v52 = vld [vmem:[%s6551_s27 + $0x140] sm:$0xff]  }
  0xf4   : > { %5870 = vmatprep.subr.msk.bf16.mxu1 %vm319_vm0, %v6523_v4  ;;  %v1182_v4 = vsel %vm1154_vm2, %v1177_v63, %v1181_v0  ;;  %v6427_v63 = vld [vmem:[%s6551_s27 + $0xa0] sm:$0xff]   ;;  %v1247_v0 = vshrl.u32 %v6426_v55, 16  ;;  %v4385_v55 = vshll.u32 %v6454_v51, 16 }
  0xf5   : > { %v1238_v56 = vsel %vm1154_vm2, %v1233_v53, %v1237_v54 }
  0xf9   : > { %5490 = vmatmul.mubr.msk.bf16.gmra.mrb[4].mxu1 %vm276_vm1, %v1174_v39  ;;  %v1241_v39 = vor.u32 %v1239_v58, %v1237_v54  ;;  %v4381_v54 = vshrl.u32 %v6452_v16, 16  ;;  %v6456_v58 = vld [vmem:[%s6551_s27 + $0x28] sm:$0xff]   ;;  %v6470_v16 = vld [vmem:[%s6551_s27 + $0x60] sm:$0xff]  }
  0xfa   : > { %5711 = vmatmul.mubr.msk.bf16.gmra.mrb[32].mxu0 %vm276_vm1, %v6407_v60  ;;  %1376 = vmatprep.mubr.bf16.mxu1 %v6485_v7  ;;  %v1245_v60 = vrot.slane %v1243_v59, 1  ;;  %v6453_v59 = vld [vmem:[%s6551_s27 + $0x148] sm:$0xff]   ;;  %v4393_v61 = vshll.u32 %v6456_v58, 16 }
  0xfb   : > { %3544 = vmatprep.mubr.bf16.mxu0 %v6485_v7 }
  0xfc   : > { %v1246_v62 = vsel %vm1154_vm2, %v1241_v39, %v1245_v60 }
 0x101   : > { %5491 = vmatmul.mubr.msk.bf16.gmra.mrb[8].mxu1 %vm276_vm1, %v1182_v4  ;;  %v1249_v4 = vor.u32 %v1247_v0, %v1245_v60  ;;  %v4389_v60 = vshrl.u32 %v6454_v51, 16  ;;  %v6458_v0 = vld [vmem:[%s6551_s27 + $0x30] sm:$0xff]   ;;  %v6472_v51 = vld [vmem:[%s6551_s27 + $0x68] sm:$0xff]  }
 0x102   : > { %5712 = vmatmul.mubr.msk.bf16.gmra.mrb[36].mxu0 %vm276_vm1, %v6409_v2  ;;  %1386 = vmatprep.mubr.bf16.mxu1 %v6485_v7  ;;  %v1253_v2 = vrot.slane %v1251_v1, 1  ;;  %v6455_v1 = vld [vmem:[%s6551_s27 + $0x150] sm:$0xff]   ;;  %v4401_v3 = vshll.u32 %v6458_v0, 16 }
 0x103   : > { %3554 = vmatprep.mubr.bf16.mxu0 %v6485_v7 }
 0x104   : > { %v1254_v5 = vsel %vm1154_vm2, %v1249_v4, %v1253_v2 }
 0x109   : > { %5492 = vmatmul.mubr.msk.bf16.gmra.mrb[12].mxu1 %vm276_vm1, %v1190_v10  ;;  %v1257_v10 = vor.u32 %v1255_v8, %v1253_v2  ;;  %v4397_v2 = vshrl.u32 %v6456_v58, 16  ;;  %v6460_v8 = vld [vmem:[%s6551_s27 + $0x38] sm:$0xff]   ;;  %v6474_v58 = vld [vmem:[%s6551_s27 + $0x70] sm:$0xff]  }
 0x10a   : > { %5713 = vmatmul.mubr.msk.bf16.gmra.mrb[40].mxu0 %vm276_vm1, %v6411_v11  ;;  %1396 = vmatprep.mubr.bf16.mxu1 %v6485_v7  ;;  %v1261_v11 = vrot.slane %v1259_v9, 1  ;;  %v6457_v9 = vld [vmem:[%s6551_s27 + $0x158] sm:$0xff]   ;;  %v4409_v12 = vshll.u32 %v6460_v8, 16 }
 0x10b   : > { %3564 = vmatprep.mubr.bf16.mxu0 %v6485_v7 }
 0x10c   : > { %v1262_v14 = vsel %vm1154_vm2, %v1257_v10, %v1261_v11 }
 0x111   : > { %5493 = vmatmul.mubr.msk.bf16.gmra.mrb[16].mxu1 %vm276_vm1, %v1198_v19  ;;  %v1265_v19 = vor.u32 %v1263_v17, %v1261_v11  ;;  %v4405_v11 = vshrl.u32 %v6458_v0, 16  ;;  %v6462_v17 = vld [vmem:[%s6551_s27 + $0x40] sm:$0xff]   ;;  %v6476_v0 = vld [vmem:[%s6551_s27 + $0x78] ss:$0 sps:$4 sm:$0x11]  }
 0x112   : > { %5714 = vmatmul.mubr.msk.bf16.gmra.mrb[44].mxu0 %vm276_vm1, %v6413_v20  ;;  %1406 = vmatprep.mubr.bf16.mxu1 %v6485_v7  ;;  %v1269_v20 = vrot.slane %v1267_v18, 1  ;;  %v6459_v18 = vld [vmem:[%s6551_s27 + $0x160] sm:$0xff]  }
 0x113   : > { %3574 = vmatprep.mubr.bf16.mxu0 %v6485_v7 }
 0x114   : > { %v1270_v21 = vsel %vm1154_vm2, %v1265_v19, %v1269_v20  ;;  %v4413_v20 = vshrl.u32 %v6460_v8, 16  ;;  %v6475_v8 = vld [vmem:[%s6551_s27 + $0x1e8] sm:$0xff]  }
 0x119   : > { %5494 = vmatmul.mubr.msk.bf16.gmra.mrb[20].mxu1 %vm276_vm1, %v1206_v27  ;;  %v6437_v27 = vld [vmem:[%s6551_s27 + $0xc8] sm:$0xff]  }
 0x11a   : > { %5715 = vmatmul.mubr.msk.bf16.gmra.mrb[48].mxu0 %vm276_vm1, %v6415_v28  ;;  %1416 = vmatprep.mubr.bf16.mxu1 %v6485_v7  ;;  %v6439_v28 = vld [vmem:[%s6551_s27 + $0xd0] sm:$0xff]  }
 0x11b   : > { %3584 = vmatprep.mubr.bf16.mxu0 %v6485_v7 }
 0x121   : > { %5495 = vmatmul.mubr.msk.bf16.gmra.mrb[24].mxu1 %vm276_vm1, %v1214_v33  ;;  %v6445_v33 = vld [vmem:[%s6551_s27 + $0xe8] sm:$0xff]  }
 0x122   : > { %5716 = vmatmul.mubr.msk.bf16.gmra.mrb[52].mxu0 %vm276_vm1, %v6417_v34  ;;  %1426 = vmatprep.mubr.bf16.mxu1 %v6485_v7  ;;  %v6449_v34 = vld [vmem:[%s6551_s27 + $0x8] sm:$0xff]  }
 0x123   : > { %3948 = vmatprep.mubr.bf16.mxu0 %v6485_v7  ;;  %v4364_v36 = vshll.u32 %v6449_v34, 16  ;;  %v4362_v40 = vshrl.u32 %v6449_v34, 16 }
 0x125   : > { %v4366_v41 = vrot.slane %v4364_v36, 1 }
 0x129   : > { %5496 = vmatmul.mubr.msk.bf16.gmra.mrb[28].mxu1 %vm276_vm1, %v1222_v42  ;;  %v4369_v42 = vshll.u32 %v6450_v35, 16 }
 0x12a   : > { %5763 = vmatmul.mubr.msk.bf16.vlgmr.msra.gmra.mrb[0].mxu0 %vm276_vm1, %v6420_v43  ;;  %1436 = vmatprep.mubr.bf16.mxu1 %v6485_v7  ;;  %v4367_v43 = vor.u32 %v4366_v41, %v4362_v40 }
 0x12b   : > { %4531 = vmatpush1.bf16.msra.mxu0 %v4525_v45  ;;  %3958 = vmatprep.mubr.bf16.mxu0 %v6485_v7  ;;  %v4371_v44 = vrot.slane %v4369_v42, 1  ;;  %v6448_v45 = vld [vmem:[%s6551_s27 + $0x138] sm:$0xff]  }
 0x12d   : > { %v4372_v46 = vsel %vm1154_vm2, %v4367_v43, %v4371_v44 }
 0x131   : > { %5497 = vmatmul.mubr.msk.bf16.gmra.mrb[32].mxu1 %vm276_vm1, %v1230_v26  ;;  %v4375_v26 = vor.u32 %v4373_v48, %v4371_v44 }
 0x132   : > { %5764 = vmatmul.mubr.msk.bf16.gmra.mrb[4].mxu0 %vm276_vm1, %v6423_v50  ;;  %1446 = vmatprep.mubr.bf16.mxu1 %v6485_v7  ;;  %v4379_v50 = vrot.slane %v4377_v49, 1  ;;  %v4449_v49 = vshll.u32 %v6470_v16, 16 }
 0x133   : > { %3968 = vmatprep.mubr.bf16.mxu0 %v6485_v7 }
 0x134   : > { %v4380_v53 = vsel %vm1154_vm2, %v4375_v26, %v4379_v50 }
 0x139   : > { %5498 = vmatmul.mubr.msk.bf16.gmra.mrb[36].mxu1 %vm276_vm1, %v1238_v56  ;;  %v4383_v56 = vor.u32 %v4381_v54, %v4379_v50  ;;  %v4451_v50 = vrot.slane %v4449_v49, 1  ;;  %v4453_v54 = vshrl.u32 %v6470_v16, 16 }
 0x13a   : > { %5765 = vmatmul.mubr.msk.bf16.gmra.mrb[8].mxu0 %vm276_vm1, %v6425_v57  ;;  %1456 = vmatprep.mubr.bf16.mxu1 %v6485_v7  ;;  %v4387_v57 = vrot.slane %v4385_v55, 1  ;;  %v4457_v55 = vshll.u32 %v6472_v51, 16 }
 0x13b   : > { %3978 = vmatprep.mubr.bf16.mxu0 %v6485_v7 }
 0x13c   : > { %v4388_v39 = vsel %vm1154_vm2, %v4383_v56, %v4387_v57  ;;  %v4455_v56 = vor.u32 %v4453_v54, %v4451_v50 }
 0x141   : > { %5499 = vmatmul.mubr.msk.bf16.gmra.mrb[40].mxu1 %vm276_vm1, %v1246_v62  ;;  %v4391_v62 = vor.u32 %v4389_v60, %v4387_v57  ;;  %v4459_v57 = vrot.slane %v4457_v55, 1  ;;  %v4461_v60 = vshrl.u32 %v6472_v51, 16 }
 0x142   : > { %5766 = vmatmul.mubr.msk.bf16.gmra.mrb[12].mxu0 %vm276_vm1, %v6427_v63  ;;  %1466 = vmatprep.mubr.bf16.mxu1 %v6485_v7  ;;  %v4395_v63 = vrot.slane %v4393_v61, 1  ;;  %v4465_v61 = vshll.u32 %v6474_v58, 16 }
 0x143   : > { %3988 = vmatprep.mubr.bf16.mxu0 %v6485_v7 }
 0x144   : > { %v4396_v4 = vsel %vm1154_vm2, %v4391_v62, %v4395_v63  ;;  %v4463_v62 = vor.u32 %v4461_v60, %v4459_v57 }
 0x149   : > { %5500 = vmatmul.mubr.msk.bf16.gmra.mrb[44].mxu1 %vm276_vm1, %v1254_v5  ;;  %v4399_v5 = vor.u32 %v4397_v2, %v4395_v63  ;;  %v4467_v63 = vrot.slane %v4465_v61, 1  ;;  %v4469_v2 = vshrl.u32 %v6474_v58, 16 }
 0x14a   : > { %5767 = vmatmul.mubr.msk.bf16.gmra.mrb[16].mxu0 %vm276_vm1, %v6429_v6  ;;  %1476 = vmatprep.mubr.bf16.mxu1 %v6485_v7  ;;  %v4403_v6 = vrot.slane %v4401_v3, 1  ;;  %v4473_v3 = vshll.u32 %v6476_v0, 16 }
 0x14b   : > { %3998 = vmatprep.mubr.bf16.mxu0 %v6485_v7 }
 0x14c   : > { %v4404_v10 = vsel %vm1154_vm2, %v4399_v5, %v4403_v6  ;;  %v4471_v5 = vor.u32 %v4469_v2, %v4467_v63 }
 0x151   : > { %5501 = vmatmul.mubr.msk.bf16.gmra.mrb[48].mxu1 %vm276_vm1, %v1262_v14  ;;  %v4407_v14 = vor.u32 %v4405_v11, %v4403_v6  ;;  %v4475_v6 = vrot.slane %v4473_v3, 1 }
 0x152   : > { %5768 = vmatmul.mubr.msk.bf16.gmra.mrb[20].mxu0 %vm276_vm1, %v6431_v15  ;;  %1486 = vmatprep.mubr.bf16.mxu1 %v6485_v7  ;;  %v4411_v15 = vrot.slane %v4409_v12, 1 }
 0x153   : > { %4008 = vmatprep.mubr.bf16.mxu0 %v6485_v7 }
 0x154   : > { %v4412_v19 = vsel %vm1154_vm2, %v4407_v14, %v4411_v15 }
 0x159   : > { %5502 = vmatmul.mubr.msk.bf16.gmra.mrb[52].mxu1 %vm276_vm1, %v1270_v21  ;;  %v4417_v21 = vshll.u32 %v6462_v17, 16 }
 0x15a   : > { %5769 = vmatmul.mubr.msk.bf16.gmra.mrb[24].mxu0 %vm276_vm1, %v6433_v22  ;;  %1851 = vmatprep.mubr.bf16.mxu1 %v6485_v7  ;;  %v4415_v22 = vor.u32 %v4413_v20, %v4411_v15 }
 0x15b   : > { %4018 = vmatprep.mubr.bf16.mxu0 %v6485_v7 }
 0x161   : > { %5549 = vmatmul.mubr.msk.bf16.vlgmr.msra.gmra.mrb[0].mxu1 %vm276_vm1, %v6434_v23  ;;  %v4419_v23 = vrot.slane %v4417_v21, 1 }
 0x162   : > { %5871 = vmatpush1.bf16.msra.mxu1 %v6537_v13  ;;  %5770 = vmatmul.mubr.msk.bf16.gmra.mrb[28].mxu0 %vm276_vm1, %v6435_v24  ;;  %v6438_v13 = vld [vmem:[%s6551_s27 + $0x110] sm:$0xff]   ;;  %v6464_v24 = vld [vmem:[%s6551_s27 + $0x48] sm:$0xff]  }
 0x163   : > { %1861 = vmatprep.mubr.bf16.mxu1 %v6485_v7  ;;  %4028 = vmatprep.mubr.bf16.mxu0 %v6485_v7 }
 0x169   : > { %5550 = vmatmul.mubr.msk.bf16.gmra.mrb[4].mxu1 %vm276_vm1, %v6436_v25  ;;  %v6461_v25 = vld [vmem:[%s6551_s27 + $0x168] sm:$0xff]  }
 0x16a   : > { %5771 = vmatmul.mubr.msk.bf16.gmra.mrb[32].mxu0 %vm276_vm1, %v6437_v27  ;;  %1871 = vmatprep.mubr.bf16.mxu1 %v6485_v7  ;;  %v4420_v27 = vsel %vm1154_vm2, %v4415_v22, %v4419_v23 }
 0x16b   : > { %4038 = vmatprep.mubr.bf16.mxu0 %v6485_v7 }
 0x171   : > { %5551 = vmatmul.mubr.msk.bf16.gmra.mrb[8].mxu1 %vm276_vm1, %v6438_v13  ;;  %v4421_v13 = vshrl.u32 %v6462_v17, 16 }
 0x172   : > { %5772 = vmatmul.mubr.msk.bf16.gmra.mrb[36].mxu0 %vm276_vm1, %v6439_v28  ;;  %1881 = vmatprep.mubr.bf16.mxu1 %v6485_v7  ;;  %v4425_v28 = vshll.u32 %v6464_v24, 16 }
 0x173   : > { %4048 = vmatprep.mubr.bf16.mxu0 %v6485_v7 }
 0x179   : > { %5552 = vmatmul.mubr.msk.bf16.gmra.mrb[12].mxu1 %vm276_vm1, %v6440_v29  ;;  %v4423_v29 = vor.u32 %v4421_v13, %v4419_v23 }
 0x17a   : > { %5773 = vmatmul.mubr.msk.bf16.gmra.mrb[40].mxu0 %vm276_vm1, %v6441_v47  ;;  %1891 = vmatprep.mubr.bf16.mxu1 %v6485_v7  ;;  %v4427_v47 = vrot.slane %v4425_v28, 1 }
 0x17b   : > { %4058 = vmatprep.mubr.bf16.mxu0 %v6485_v7 }
 0x181   : > { %5553 = vmatmul.mubr.msk.bf16.gmra.mrb[16].mxu1 %vm276_vm1, %v6442_v30  ;;  %v6466_v30 = vld [vmem:[%s6551_s27 + $0x50] sm:$0xff]  }
 0x182   : > { %5774 = vmatmul.mubr.msk.bf16.gmra.mrb[44].mxu0 %vm276_vm1, %v6443_v31  ;;  %1901 = vmatprep.mubr.bf16.mxu1 %v6485_v7  ;;  %v6463_v31 = vld [vmem:[%s6551_s27 + $0x1b8] sm:$0xff]   ;;  %v4433_v34 = vshll.u32 %v6466_v30, 16  ;;  %v4437_v41 = vshrl.u32 %v6466_v30, 16 }
 0x183   : > { %4068 = vmatprep.mubr.bf16.mxu0 %v6485_v7 }
 0x184   : > { %v4435_v36 = vrot.slane %v4433_v34, 1  ;;  %v4931_v34 = vlaneseq }
 0x186   : > { %v4439_v43 = vor.u32 %v4437_v41, %v4435_v36 }
 0x189   : > { %5554 = vmatmul.mubr.msk.bf16.gmra.mrb[20].mxu1 %vm276_vm1, %v6444_v32  ;;  %v4428_v32 = vsel %vm1154_vm2, %v4423_v29, %v4427_v47 }
 0x18a   : > { %5775 = vmatmul.mubr.msk.bf16.gmra.mrb[48].mxu0 %vm276_vm1, %v6445_v33  ;;  %1911 = vmatprep.mubr.bf16.mxu1 %v6485_v7  ;;  %v4429_v33 = vshrl.u32 %v6464_v24, 16 }
 0x18b   : > { %4078 = vmatprep.mubr.bf16.mxu0 %v6485_v7 }
 0x18c   : > { %v4431_v35 = vor.u32 %v4429_v33, %v4427_v47 }
 0x18e   : > { %v4436_v40 = vsel %vm1154_vm2, %v4431_v35, %v4435_v36  ;;  %v4932_v36 = vshrl.u32 %v4931_v34, 7 }
 0x190   : > { %v4933_v41 = vsub.s32 0, %v4932_v36 }
 0x191   : > { %5555 = vmatmul.mubr.msk.bf16.gmra.mrb[24].mxu1 %vm276_vm1, %v6446_v37  ;;  %v6468_v37 = vld [vmem:[%s6551_s27 + $0x58] sm:$0xff]  }
 0x192   : > { %5776 = vmatmul.mubr.msk.bf16.gmra.mrb[52].mxu0 %vm276_vm1, %v6447_v38  ;;  %1921 = vmatprep.mubr.bf16.mxu1 %v6485_v7  ;;  %v6465_v38 = vld [vmem:[%s6551_s27 + $0x1c0] sm:$0xff]   ;;  %v4441_v42 = vshll.u32 %v6468_v37, 16  ;;  %v4445_v48 = vshrl.u32 %v6468_v37, 16 }
 0x193   : > { %4562 = vmatprep.mubr.bf16.mxu0 %v6485_v7 }
 0x194   : > { %v4443_v44 = vrot.slane %v4441_v42, 1  ;;  %v4871_v42 = vld [vmem:[%s7257_s2] ss:$2 sm:$0x3] }
 0x195   : > { %v7077_v16 = vrot.slane %v4871_v42, %v4933_v41 }
 0x196   : > { %v4447_v26 = vor.u32 %v4445_v48, %v4443_v44 }
 0x199   : > { %5556 = vmatmul.mubr.msk.bf16.gmra.mrb[28].mxu1 %vm276_vm1, %v6448_v45  ;;  %v6467_v45 = vld [vmem:[%s6551_s27 + $0x1c8] sm:$0xff]  }
 0x19a   : > { %5796 = vmatmul.mubr.msk.bf16.vlgmr.msra.gmra.mrb[0].mxu0 %vm276_vm1, %v4372_v46  ;;  %1931 = vmatprep.mubr.bf16.mxu1 %v6485_v7  ;;  %v4444_v46 = vsel %vm1154_vm2, %v4439_v43, %v4443_v44  ;;  %v4937_v43 = vsub.s32 1, %v4932_v36  ;;  %v5810_v44 = vld [vmem:[%s7257_s2 + $0x1] ss:$2 sm:$0x3] }
 0x19b   : > { %4572 = vmatprep.mubr.bf16.mxu0 %v6485_v7  ;;  %v7081_v49 = vrot.slane %v5810_v44, %v4933_v41 }
 0x19c   : > { %v7083_v51 = vrot.slane %v5810_v44, %v4937_v43 }
 0x1a1   : > { %5557 = vmatmul.mubr.msk.bf16.gmra.mrb[32].mxu1 %vm276_vm1, %v6451_v52  ;;  %v6469_v52 = vld [vmem:[%s6551_s27 + $0x1d0] sm:$0xff]  }
 0x1a2   : > { %5797 = vmatmul.mubr.msk.bf16.gmra.mrb[4].mxu0 %vm276_vm1, %v4380_v53  ;;  %1941 = vmatprep.mubr.bf16.mxu1 %v6485_v7  ;;  %v4452_v53 = vsel %vm1154_vm2, %v4447_v26, %v4451_v50 }
 0x1a3   : > { %4582 = vmatprep.mubr.bf16.mxu0 %v6485_v7 }
 0x1a9   : > { %5558 = vmatmul.mubr.msk.bf16.gmra.mrb[36].mxu1 %vm276_vm1, %v6453_v59  ;;  %v6471_v59 = vld [vmem:[%s6551_s27 + $0x1d8] sm:$0xff]  }
 0x1aa   : > { %5798 = vmatmul.mubr.msk.bf16.gmra.mrb[8].mxu0 %vm276_vm1, %v4388_v39  ;;  %1951 = vmatprep.mubr.bf16.mxu1 %v6485_v7  ;;  %v4460_v39 = vsel %vm1154_vm2, %v4455_v56, %v4459_v57 }
 0x1ab   : > { %4592 = vmatprep.mubr.bf16.mxu0 %v6485_v7 }
 0x1b1   : > { %5559 = vmatmul.mubr.msk.bf16.gmra.mrb[40].mxu1 %vm276_vm1, %v6455_v1  ;;  %v6473_v1 = vld [vmem:[%s6551_s27 + $0x1e0] sm:$0xff]  }
 0x1b2   : > { %5799 = vmatmul.mubr.msk.bf16.gmra.mrb[12].mxu0 %vm276_vm1, %v4396_v4  ;;  %1961 = vmatprep.mubr.bf16.mxu1 %v6485_v7  ;;  %v4468_v4 = vsel %vm1154_vm2, %v4463_v62, %v4467_v63 }
 0x1b3   : > { %4602 = vmatprep.mubr.bf16.mxu0 %v6485_v7 }
 0x1b9   : > { %5560 = vmatmul.mubr.msk.bf16.gmra.mrb[44].mxu1 %vm276_vm1, %v6457_v9  ;;  %v4476_v9 = vsel %vm1154_vm2, %v4471_v5, %v4475_v6 }
 0x1ba   : > { %5800 = vmatmul.mubr.msk.bf16.gmra.mrb[16].mxu0 %vm276_vm1, %v4404_v10  ;;  %1971 = vmatprep.mubr.bf16.mxu1 %v6485_v7 }
 0x1bb   : > { %4612 = vmatprep.mubr.bf16.mxu0 %v6485_v7 }
 0x1c1   : > { %5561 = vmatmul.mubr.msk.bf16.gmra.mrb[48].mxu1 %vm276_vm1, %v6459_v18 }
 0x1c2   : > { %5801 = vmatmul.mubr.msk.bf16.gmra.mrb[20].mxu0 %vm276_vm1, %v4412_v19  ;;  %1981 = vmatprep.mubr.bf16.mxu1 %v6485_v7 }
 0x1c3   : > { %4622 = vmatprep.mubr.bf16.mxu0 %v6485_v7 }
 0x1c9   : > { %5562 = vmatmul.mubr.msk.bf16.gmra.mrb[52].mxu1 %vm276_vm1, %v6461_v25 }
 0x1ca   : > { %5802 = vmatmul.mubr.msk.bf16.gmra.mrb[24].mxu0 %vm276_vm1, %v4420_v27  ;;  %2416 = vmatprep.mubr.bf16.mxu1 %v6485_v7 }
 0x1cb   : > { %4632 = vmatprep.mubr.bf16.mxu0 %v6485_v7 }
 0x1d1   : > { %5616 = vmatmul.mubr.msk.bf16.vlgmr.msra.gmra.mrb[28].mxu1 %vm276_vm1, %v6463_v31 }
 0x1d2   : > { %5803 = vmatmul.mubr.msk.bf16.gmra.mrb[28].mxu0 %vm276_vm1, %v4428_v32  ;;  %2426 = vmatprep.mubr.bf16.mxu1 %v6485_v7 }
 0x1d3   : > { %4642 = vmatprep.mubr.bf16.mxu0 %v6485_v7 }
 0x1d9   : > { %5617 = vmatmul.mubr.msk.bf16.gmra.mrb[32].mxu1 %vm276_vm1, %v6465_v38 }
 0x1da   : > { %5804 = vmatmul.mubr.msk.bf16.gmra.mrb[32].mxu0 %vm276_vm1, %v4436_v40  ;;  %2436 = vmatprep.mubr.bf16.mxu1 %v6485_v7 }
 0x1db   : > { %4652 = vmatprep.mubr.bf16.mxu0 %v6485_v7 }
 0x1e1   : > { %5618 = vmatmul.mubr.msk.bf16.gmra.mrb[36].mxu1 %vm276_vm1, %v6467_v45 }
 0x1e2   : > { %5805 = vmatmul.mubr.msk.bf16.gmra.mrb[36].mxu0 %vm276_vm1, %v4444_v46  ;;  %2446 = vmatprep.mubr.bf16.mxu1 %v6485_v7  ;;  %v7079_v46 = vrot.slane %v4871_v42, %v4937_v43 }
 0x1e3   : > { %4662 = vmatprep.mubr.bf16.mxu0 %v6485_v7 }
 0x1e9   : > { %5619 = vmatmul.mubr.msk.bf16.gmra.mrb[40].mxu1 %vm276_vm1, %v6469_v52 }
 0x1ea   : > { %5806 = vmatmul.mubr.msk.bf16.gmra.mrb[40].mxu0 %vm276_vm1, %v4452_v53  ;;  %2456 = vmatprep.mubr.bf16.mxu1 %v6485_v7 }
 0x1eb   : > { %4672 = vmatprep.mubr.bf16.mxu0 %v6485_v7 }
 0x1f1   : > { %5620 = vmatmul.mubr.msk.bf16.gmra.mrb[44].mxu1 %vm276_vm1, %v6471_v59 }
 0x1f2   : > { %5807 = vmatmul.mubr.msk.bf16.gmra.mrb[44].mxu0 %vm276_vm1, %v4460_v39  ;;  %2466 = vmatprep.mubr.bf16.mxu1 %v6485_v7 }
 0x1f3   : > { %4682 = vmatprep.mubr.bf16.mxu0 %v6485_v7 }
 0x1f9   : > { %5621 = vmatmul.mubr.msk.bf16.gmra.mrb[48].mxu1 %vm276_vm1, %v6473_v1 }
 0x1fa   : > { %5808 = vmatmul.mubr.msk.bf16.gmra.mrb[48].mxu0 %vm276_vm1, %v4468_v4  ;;  %2476 = vmatprep.mubr.bf16.mxu1 %v6485_v7 }
 0x1fb   : > { %4692 = vmatprep.mubr.bf16.mxu0 %v6485_v7 }
 0x201   : > { %5622 = vmatmul.mubr.msk.bf16.gmra.mrb[52].mxu1 %vm276_vm1, %v6475_v8 }
 0x202   : > { %5809 = vmatmul.mubr.msk.bf16.gmra.mrb[52].mxu0 %vm276_vm1, %v4476_v9 }
 0x234   : > { %v1853_v10 = vpop.f32.mrb[0].mxu1 }
 0x235   : > { %v1855_v11 = vpop.f32.mrb[1].mxu1 }
 0x236   : > { %v1857_v12 = vpop.f32.mrb[2].mxu1 }
 0x237   : > { %v1859_v14 = vpop.f32.mrb[3].mxu1 }
 0x23c   : > { %v1863_v15 = vpop.f32.mrb[4].mxu1 }
 0x23d   : > { %v1865_v17 = vpop.f32.mrb[5].mxu1 }
 0x23e   : > { %v1867_v18 = vpop.f32.mrb[6].mxu1 }
 0x23f   : > { %v7029_v19 = vpop.f32.mrb[7].mxu1 }
 0x244   : > { %v7031_v20 = vpop.f32.mrb[8].mxu1 }
 0x245   : > { %v7033_v7 = vpop.f32.mrb[9].mxu1 }
 0x246   : > { %v7035_v21 = vpop.f32.mrb[10].mxu1 }
 0x247   : > { %v7037_v22 = vpop.f32.mrb[11].mxu1 }
 0x24c   : > { %v7039_v23 = vpop.f32.mrb[12].mxu1 }
 0x24d   : > { %v7041_v24 = vpop.f32.mrb[13].mxu1 }
 0x24e   : > { %v7043_v25 = vpop.f32.mrb[14].mxu1 }
 0x24f   : > { %v7045_v27 = vpop.f32.mrb[15].mxu1 }
 0x254   : > { %v7047_v13 = vpop.f32.mrb[16].mxu1 }
 0x255   : > { %v7049_v28 = vpop.f32.mrb[17].mxu1 }
 0x256   : > { %v7051_v29 = vpop.f32.mrb[18].mxu1 }
 0x257   : > { %v7053_v47 = vpop.f32.mrb[19].mxu1 }
 0x25c   : > { %v7055_v30 = vpop.f32.mrb[20].mxu1 }
 0x25d   : > { %v7057_v31 = vpop.f32.mrb[21].mxu1 }
 0x25e   : > { %v7059_v32 = vpop.f32.mrb[22].mxu1 }
 0x25f   : > { %v7061_v33 = vpop.f32.mrb[23].mxu1 }
 0x264   : > { %v7063_v35 = vpop.f32.mrb[24].mxu1 }
 0x265   : > { %v7065_v37 = vpop.f32.mrb[25].mxu1 }
 0x266   : > { %v7067_v38 = vpop.f32.mrb[26].mxu1 }
 0x267   : > { %v7069_v40 = vpop.f32.mrb[27].mxu1 }
 0x26d   : > { %v4564_v45 = vpop.f32.mrb[0].mxu0 }
 0x26e   : > { %v5872_v48 = vadd.f32 %v4564_v45, %v1853_v10  ;;  %v4566_v26 = vpop.f32.mrb[1].mxu0 }
 0x26f   : > { %v5873_v50 = vadd.f32 %v4566_v26, %v1855_v11  ;;  %v4568_v52 = vpop.f32.mrb[2].mxu0 }
 0x270   : > { %v4941_v53 = vmul.f32 %v5872_v48, %v7077_v16  ;;  %v5874_v54 = vadd.f32 %v4568_v52, %v1857_v12  ;;  %v4570_v55 = vpop.f32.mrb[3].mxu0 }
 0x271   : > { %v4942_v56 = vmul.f32 %v5873_v50, %v7079_v46  ;;  %v5875_v57 = vadd.f32 %v4570_v55, %v1859_v14 }
 0x272   : > { %v5008_v58 = vadd.f32 %v7081_v49, %v4941_v53  ;;  %v4943_v59 = vmul.f32 %v5874_v54, %v7077_v16 }
 0x273   : > { %v5009_v39 = vadd.f32 %v7083_v51, %v4942_v56  ;;  %v4944_v60 = vmul.f32 %v5875_v57, %v7079_v46 }
 0x274   : > { %v5064_v61 = vmax.f32 %v5008_v58, 0.0  ;;  %v5010_v62 = vadd.f32 %v7081_v49, %v4943_v59 }
 0x275   : > { %v5065_v63 = vmax.f32 %v5009_v39, 0.0  ;;  %v5011_v0 = vadd.f32 %v7083_v51, %v4944_v60  ;;  %v4574_v1 = vpop.f32.mrb[4].mxu0 }
 0x276   : > { %v5066_v4 = vmax.f32 %v5010_v62, 0.0  ;;  %v5876_v2 = vadd.f32 %v4574_v1, %v1863_v15  ;;  %v4576_v3 = vpop.f32.mrb[5].mxu0 }
 0x277   : > { %v5842_v5 = vpack.c.bf16 %v5065_v63, %v5064_v61  ;;  %v5067_v6 = vmax.f32 %v5011_v0, 0.0  ;;  %v5877_v8 = vadd.f32 %v4576_v3, %v1865_v17  ;;  %v4578_v9 = vpop.f32.mrb[6].mxu0 }
 0x278   : > { %v4945_v10 = vmul.f32 %v5876_v2, %v7077_v16  ;;  %v5878_v11 = vadd.f32 %v4578_v9, %v1867_v18  ;;  %v4580_v12 = vpop.f32.mrb[7].mxu0 }
 0x279   : > { %5288 = vst [vmem:[%s7097_s18] sm:$0xff] %v5842_v5  ;;  %v5843_v14 = vpack.c.bf16 %v5067_v6, %v5066_v4  ;;  %v4946_v34 = vmul.f32 %v5877_v8, %v7079_v46  ;;  %v5879_v36 = vadd.f32 %v4580_v12, %v7029_v19 }
 0x27a   : > { %v5012_v41 = vadd.f32 %v7081_v49, %v4945_v10  ;;  %v4947_v42 = vmul.f32 %v5878_v11, %v7077_v16 }
 0x27b   : > { %5289 = vst [vmem:[%s7097_s18 + $0x8] sm:$0xff] %v5843_v14  ;;  %v5013_v15 = vadd.f32 %v7083_v51, %v4946_v34  ;;  %v4948_v17 = vmul.f32 %v5879_v36, %v7079_v46 }
 0x27c   : > { %v5068_v43 = vmax.f32 %v5012_v41, 0.0  ;;  %v5014_v18 = vadd.f32 %v7081_v49, %v4947_v42 }
 0x27d   : > { %v5069_v44 = vmax.f32 %v5013_v15, 0.0  ;;  %v5015_v45 = vadd.f32 %v7083_v51, %v4948_v17  ;;  %v4584_v48 = vpop.f32.mrb[8].mxu0 }
 0x27e   : > { %v5070_v26 = vmax.f32 %v5014_v18, 0.0  ;;  %v5880_v19 = vadd.f32 %v4584_v48, %v7031_v20  ;;  %v4586_v50 = vpop.f32.mrb[9].mxu0 }
 0x27f   : > { %v5844_v52 = vpack.c.bf16 %v5069_v44, %v5068_v43  ;;  %v5071_v53 = vmax.f32 %v5015_v45, 0.0  ;;  %v5881_v54 = vadd.f32 %v4586_v50, %v7033_v7  ;;  %v4588_v55 = vpop.f32.mrb[10].mxu0 }
 0x280   : > { %v4949_v56 = vmul.f32 %v5880_v19, %v7077_v16  ;;  %v5882_v57 = vadd.f32 %v4588_v55, %v7035_v21  ;;  %v4590_v58 = vpop.f32.mrb[11].mxu0 }
 0x281   : > { %5290 = vst [vmem:[%s7097_s18 + $0x10] sm:$0xff] %v5844_v52  ;;  %v5845_v59 = vpack.c.bf16 %v5071_v53, %v5070_v26  ;;  %v4950_v39 = vmul.f32 %v5881_v54, %v7079_v46  ;;  %v5883_v60 = vadd.f32 %v4590_v58, %v7037_v22 }
 0x282   : > { %v5016_v61 = vadd.f32 %v7081_v49, %v4949_v56  ;;  %v4951_v20 = vmul.f32 %v5882_v57, %v7077_v16 }
 0x283   : > { %5291 = vst [vmem:[%s7097_s18 + $0x18] sm:$0xff] %v5845_v59  ;;  %v5017_v62 = vadd.f32 %v7083_v51, %v4950_v39  ;;  %v4952_v7 = vmul.f32 %v5883_v60, %v7079_v46 }
 0x284   : > { %v5072_v63 = vmax.f32 %v5016_v61, 0.0  ;;  %v5018_v21 = vadd.f32 %v7081_v49, %v4951_v20 }
 0x285   : > { %v5073_v0 = vmax.f32 %v5017_v62, 0.0  ;;  %v5019_v1 = vadd.f32 %v7083_v51, %v4952_v7  ;;  %v4594_v4 = vpop.f32.mrb[12].mxu0 }
 0x286   : > { %v5074_v2 = vmax.f32 %v5018_v21, 0.0  ;;  %v5884_v22 = vadd.f32 %v4594_v4, %v7039_v23  ;;  %v4596_v3 = vpop.f32.mrb[13].mxu0 }
 0x287   : > { %v5846_v5 = vpack.c.bf16 %v5073_v0, %v5072_v63  ;;  %v5075_v6 = vmax.f32 %v5019_v1, 0.0  ;;  %v5885_v8 = vadd.f32 %v4596_v3, %v7041_v24  ;;  %v4598_v9 = vpop.f32.mrb[14].mxu0 }
 0x288   : > { %v4953_v10 = vmul.f32 %v5884_v22, %v7077_v16  ;;  %v5886_v11 = vadd.f32 %v4598_v9, %v7043_v25  ;;  %v4600_v12 = vpop.f32.mrb[15].mxu0 }
 0x289   : > { %5292 = vst [vmem:[%s7097_s18 + $0x20] sm:$0xff] %v5846_v5  ;;  %v5847_v14 = vpack.c.bf16 %v5075_v6, %v5074_v2  ;;  %v4954_v34 = vmul.f32 %v5885_v8, %v7079_v46  ;;  %v5887_v36 = vadd.f32 %v4600_v12, %v7045_v27 }
 0x28a   : > { %v5020_v41 = vadd.f32 %v7081_v49, %v4953_v10  ;;  %v4955_v23 = vmul.f32 %v5886_v11, %v7077_v16 }
 0x28b   : > { %5293 = vst [vmem:[%s7097_s18 + $0x28] sm:$0xff] %v5847_v14  ;;  %v5021_v42 = vadd.f32 %v7083_v51, %v4954_v34  ;;  %v4956_v24 = vmul.f32 %v5887_v36, %v7079_v46 }
 0x28c   : > { %v5076_v15 = vmax.f32 %v5020_v41, 0.0  ;;  %v5022_v25 = vadd.f32 %v7081_v49, %v4955_v23 }
 0x28d   : > { %v5077_v17 = vmax.f32 %v5021_v42, 0.0  ;;  %v5023_v43 = vadd.f32 %v7083_v51, %v4956_v24  ;;  %v4604_v18 = vpop.f32.mrb[16].mxu0 }
 0x28e   : > { %v5078_v44 = vmax.f32 %v5022_v25, 0.0  ;;  %v5888_v27 = vadd.f32 %v4604_v18, %v7047_v13  ;;  %v4606_v45 = vpop.f32.mrb[17].mxu0 }
 0x28f   : > { %v5848_v48 = vpack.c.bf16 %v5077_v17, %v5076_v15  ;;  %v5079_v26 = vmax.f32 %v5023_v43, 0.0  ;;  %v5889_v19 = vadd.f32 %v4606_v45, %v7049_v28  ;;  %v4608_v50 = vpop.f32.mrb[18].mxu0 }
 0x290   : > { %v4957_v52 = vmul.f32 %v5888_v27, %v7077_v16  ;;  %v5890_v53 = vadd.f32 %v4608_v50, %v7051_v29  ;;  %v4610_v54 = vpop.f32.mrb[19].mxu0 }
 0x291   : > { %5294 = vst [vmem:[%s7097_s18 + $0x30] sm:$0xff] %v5848_v48  ;;  %v5849_v55 = vpack.c.bf16 %v5079_v26, %v5078_v44  ;;  %v4958_v56 = vmul.f32 %v5889_v19, %v7079_v46  ;;  %v5891_v57 = vadd.f32 %v4610_v54, %v7053_v47 }
 0x292   : > { %v5024_v58 = vadd.f32 %v7081_v49, %v4957_v52  ;;  %v4959_v13 = vmul.f32 %v5890_v53, %v7077_v16 }
 0x293   : > { %5295 = vst [vmem:[%s7097_s18 + $0x38] sm:$0xff] %v5849_v55  ;;  %v5025_v59 = vadd.f32 %v7083_v51, %v4958_v56  ;;  %v4960_v28 = vmul.f32 %v5891_v57, %v7079_v46 }
 0x294   : > { %v5080_v39 = vmax.f32 %v5024_v58, 0.0  ;;  %v5026_v29 = vadd.f32 %v7081_v49, %v4959_v13 }
 0x295   : > { %v5081_v60 = vmax.f32 %v5025_v59, 0.0  ;;  %v5027_v61 = vadd.f32 %v7083_v51, %v4960_v28  ;;  %v4614_v20 = vpop.f32.mrb[20].mxu0 }
 0x296   : > { %v5082_v62 = vmax.f32 %v5026_v29, 0.0  ;;  %v5892_v47 = vadd.f32 %v4614_v20, %v7055_v30  ;;  %v4616_v7 = vpop.f32.mrb[21].mxu0 }
 0x297   : > { %v5850_v63 = vpack.c.bf16 %v5081_v60, %v5080_v39  ;;  %v5083_v21 = vmax.f32 %v5027_v61, 0.0  ;;  %v5893_v0 = vadd.f32 %v4616_v7, %v7057_v31  ;;  %v4618_v1 = vpop.f32.mrb[22].mxu0 }
 0x298   : > { %v4961_v4 = vmul.f32 %v5892_v47, %v7077_v16  ;;  %v5894_v2 = vadd.f32 %v4618_v1, %v7059_v32  ;;  %v4620_v22 = vpop.f32.mrb[23].mxu0 }
 0x299   : > { %5296 = vst [vmem:[%s7097_s18 + $0x40] sm:$0xff] %v5850_v63  ;;  %v5851_v3 = vpack.c.bf16 %v5083_v21, %v5082_v62  ;;  %v4962_v5 = vmul.f32 %v5893_v0, %v7079_v46  ;;  %v5895_v6 = vadd.f32 %v4620_v22, %v7061_v33 }
 0x29a   : > { %v5028_v8 = vadd.f32 %v7081_v49, %v4961_v4  ;;  %v4963_v30 = vmul.f32 %v5894_v2, %v7077_v16 }
 0x29b   : > { %5297 = vst [vmem:[%s7097_s18 + $0x48] sm:$0xff] %v5851_v3  ;;  %v5029_v9 = vadd.f32 %v7083_v51, %v4962_v5  ;;  %v4964_v31 = vmul.f32 %v5895_v6, %v7079_v46 }
 0x29c   : > { %v5084_v10 = vmax.f32 %v5028_v8, 0.0  ;;  %v5030_v32 = vadd.f32 %v7081_v49, %v4963_v30 }
 0x29d   : > { %v5085_v11 = vmax.f32 %v5029_v9, 0.0  ;;  %v5031_v12 = vadd.f32 %v7083_v51, %v4964_v31  ;;  %v4624_v14 = vpop.f32.mrb[24].mxu0 }
 0x29e   : > { %v5086_v34 = vmax.f32 %v5030_v32, 0.0  ;;  %v5896_v33 = vadd.f32 %v4624_v14, %v7063_v35  ;;  %v4626_v36 = vpop.f32.mrb[25].mxu0 }
 0x29f   : > { %v5852_v41 = vpack.c.bf16 %v5085_v11, %v5084_v10  ;;  %v5087_v23 = vmax.f32 %v5031_v12, 0.0  ;;  %v5897_v42 = vadd.f32 %v4626_v36, %v7065_v37  ;;  %v4628_v24 = vpop.f32.mrb[26].mxu0 }
 0x2a0   : > { %v4965_v15 = vmul.f32 %v5896_v33, %v7077_v16  ;;  %v5898_v25 = vadd.f32 %v4628_v24, %v7067_v38  ;;  %v4630_v17 = vpop.f32.mrb[27].mxu0 }
 0x2a1   : > { %5298 = vst [vmem:[%s7097_s18 + $0x50] sm:$0xff] %v5852_v41  ;;  %v5853_v43 = vpack.c.bf16 %v5087_v23, %v5086_v34  ;;  %v4966_v18 = vmul.f32 %v5897_v42, %v7079_v46  ;;  %v5899_v44 = vadd.f32 %v4630_v17, %v7069_v40 }
 0x2a2   : > { %v5032_v27 = vadd.f32 %v7081_v49, %v4965_v15  ;;  %v4967_v35 = vmul.f32 %v5898_v25, %v7077_v16 }
 0x2a3   : > { %5299 = vst [vmem:[%s7097_s18 + $0x58] sm:$0xff] %v5853_v43  ;;  %v5033_v45 = vadd.f32 %v7083_v51, %v4966_v18  ;;  %v4968_v37 = vmul.f32 %v5899_v44, %v7079_v46 }
 0x2a4   : > { %v5088_v48 = vmax.f32 %v5032_v27, 0.0  ;;  %v5034_v26 = vadd.f32 %v7081_v49, %v4967_v35  ;;  %v2418_v38 = vpop.f32.mrb[28].mxu1 }
 0x2a5   : > { %v5089_v19 = vmax.f32 %v5033_v45, 0.0  ;;  %v5035_v50 = vadd.f32 %v7083_v51, %v4968_v37  ;;  %v4634_v52 = vpop.f32.mrb[28].mxu0  ;;  %v2420_v53 = vpop.f32.mrb[29].mxu1 }
 0x2a6   : > { %v5090_v40 = vmax.f32 %v5034_v26, 0.0  ;;  %v5900_v54 = vadd.f32 %v4634_v52, %v2418_v38  ;;  %v4636_v55 = vpop.f32.mrb[29].mxu0  ;;  %v2422_v56 = vpop.f32.mrb[30].mxu1 }
 0x2a7   : > { %v5854_v57 = vpack.c.bf16 %v5089_v19, %v5088_v48  ;;  %v5091_v58 = vmax.f32 %v5035_v50, 0.0  ;;  %v5901_v13 = vadd.f32 %v4636_v55, %v2420_v53  ;;  %v4638_v59 = vpop.f32.mrb[30].mxu0  ;;  %v2424_v28 = vpop.f32.mrb[31].mxu1 }
 0x2a8   : > { %v4969_v39 = vmul.f32 %v5900_v54, %v7077_v16  ;;  %v5902_v29 = vadd.f32 %v4638_v59, %v2422_v56  ;;  %v4640_v60 = vpop.f32.mrb[31].mxu0 }
 0x2a9   : > { %5300 = vst [vmem:[%s7097_s18 + $0x60] sm:$0xff] %v5854_v57  ;;  %v5855_v61 = vpack.c.bf16 %v5091_v58, %v5090_v40  ;;  %v4970_v20 = vmul.f32 %v5901_v13, %v7079_v46  ;;  %v5903_v62 = vadd.f32 %v4640_v60, %v2424_v28 }
 0x2aa   : > { %v5036_v47 = vadd.f32 %v7081_v49, %v4969_v39  ;;  %v4971_v7 = vmul.f32 %v5902_v29, %v7077_v16 }
 0x2ab   : > { %5301 = vst [vmem:[%s7097_s18 + $0x68] sm:$0xff] %v5855_v61  ;;  %v5037_v63 = vadd.f32 %v7083_v51, %v4970_v20  ;;  %v4972_v21 = vmul.f32 %v5903_v62, %v7079_v46 }
 0x2ac   : > { %v5092_v0 = vmax.f32 %v5036_v47, 0.0  ;;  %v5038_v1 = vadd.f32 %v7081_v49, %v4971_v7  ;;  %v2428_v4 = vpop.f32.mrb[32].mxu1 }
 0x2ad   : > { %v5093_v2 = vmax.f32 %v5037_v63, 0.0  ;;  %v5039_v22 = vadd.f32 %v7083_v51, %v4972_v21  ;;  %v4644_v3 = vpop.f32.mrb[32].mxu0  ;;  %v2430_v5 = vpop.f32.mrb[33].mxu1 }
 0x2ae   : > { %v5094_v6 = vmax.f32 %v5038_v1, 0.0  ;;  %v5904_v8 = vadd.f32 %v4644_v3, %v2428_v4  ;;  %v4646_v30 = vpop.f32.mrb[33].mxu0  ;;  %v2432_v9 = vpop.f32.mrb[34].mxu1 }
 0x2af   : > { %v5856_v31 = vpack.c.bf16 %v5093_v2, %v5092_v0  ;;  %v5095_v10 = vmax.f32 %v5039_v22, 0.0  ;;  %v5905_v32 = vadd.f32 %v4646_v30, %v2430_v5  ;;  %v4648_v11 = vpop.f32.mrb[34].mxu0  ;;  %v2434_v12 = vpop.f32.mrb[35].mxu1 }
 0x2b0   : > { %v4973_v14 = vmul.f32 %v5904_v8, %v7077_v16  ;;  %v5906_v34 = vadd.f32 %v4648_v11, %v2432_v9  ;;  %v4650_v33 = vpop.f32.mrb[35].mxu0 }
 0x2b1   : > { %5302 = vst [vmem:[%s7097_s18 + $0x70] sm:$0xff] %v5856_v31  ;;  %v5857_v36 = vpack.c.bf16 %v5095_v10, %v5094_v6  ;;  %v4974_v41 = vmul.f32 %v5905_v32, %v7079_v46  ;;  %v5907_v23 = vadd.f32 %v4650_v33, %v2434_v12 }
 0x2b2   : > { %v5040_v42 = vadd.f32 %v7081_v49, %v4973_v14  ;;  %v4975_v24 = vmul.f32 %v5906_v34, %v7077_v16 }
 0x2b3   : > { %5303 = vst [vmem:[%s7097_s18 + $0x78] sm:$0xff] %v5857_v36  ;;  %v5041_v15 = vadd.f32 %v7083_v51, %v4974_v41  ;;  %v4976_v25 = vmul.f32 %v5907_v23, %v7079_v46 }
 0x2b4   : > { %v5096_v17 = vmax.f32 %v5040_v42, 0.0  ;;  %v5042_v43 = vadd.f32 %v7081_v49, %v4975_v24  ;;  %v2438_v18 = vpop.f32.mrb[36].mxu1 }
 0x2b5   : > { %v5097_v44 = vmax.f32 %v5041_v15, 0.0  ;;  %v5043_v27 = vadd.f32 %v7083_v51, %v4976_v25  ;;  %v4654_v35 = vpop.f32.mrb[36].mxu0  ;;  %v2440_v45 = vpop.f32.mrb[37].mxu1 }
 0x2b6   : > { %v5098_v37 = vmax.f32 %v5042_v43, 0.0  ;;  %v5908_v48 = vadd.f32 %v4654_v35, %v2438_v18  ;;  %v4656_v26 = vpop.f32.mrb[37].mxu0  ;;  %v2442_v38 = vpop.f32.mrb[38].mxu1 }
 0x2b7   : > { %v5858_v19 = vpack.c.bf16 %v5097_v44, %v5096_v17  ;;  %v5099_v50 = vmax.f32 %v5043_v27, 0.0  ;;  %v5909_v52 = vadd.f32 %v4656_v26, %v2440_v45  ;;  %v4658_v53 = vpop.f32.mrb[38].mxu0  ;;  %v2444_v40 = vpop.f32.mrb[39].mxu1 }
 0x2b8   : > { %v4977_v54 = vmul.f32 %v5908_v48, %v7077_v16  ;;  %v5910_v55 = vadd.f32 %v4658_v53, %v2442_v38  ;;  %v4660_v56 = vpop.f32.mrb[39].mxu0 }
 0x2b9   : > { %5304 = vst [vmem:[%s7097_s18 + $0x80] sm:$0xff] %v5858_v19  ;;  %v5859_v57 = vpack.c.bf16 %v5099_v50, %v5098_v37  ;;  %v4978_v58 = vmul.f32 %v5909_v52, %v7079_v46  ;;  %v5911_v13 = vadd.f32 %v4660_v56, %v2444_v40 }
 0x2ba   : > { %v5044_v59 = vadd.f32 %v7081_v49, %v4977_v54  ;;  %v4979_v28 = vmul.f32 %v5910_v55, %v7077_v16 }
 0x2bb   : > { %5305 = vst [vmem:[%s7097_s18 + $0x88] sm:$0xff] %v5859_v57  ;;  %v5045_v39 = vadd.f32 %v7083_v51, %v4978_v58  ;;  %v4980_v29 = vmul.f32 %v5911_v13, %v7079_v46 }
 0x2bc   : > { %v5100_v60 = vmax.f32 %v5044_v59, 0.0  ;;  %v5046_v61 = vadd.f32 %v7081_v49, %v4979_v28  ;;  %v2448_v20 = vpop.f32.mrb[40].mxu1 }
 0x2bd   : > { %v5101_v62 = vmax.f32 %v5045_v39, 0.0  ;;  %v5047_v47 = vadd.f32 %v7083_v51, %v4980_v29  ;;  %v4664_v7 = vpop.f32.mrb[40].mxu0  ;;  %v2450_v63 = vpop.f32.mrb[41].mxu1 }
 0x2be   : > { %v5102_v21 = vmax.f32 %v5046_v61, 0.0  ;;  %v5912_v0 = vadd.f32 %v4664_v7, %v2448_v20  ;;  %v4666_v1 = vpop.f32.mrb[41].mxu0  ;;  %v2452_v4 = vpop.f32.mrb[42].mxu1 }
 0x2bf   : > { %v5860_v2 = vpack.c.bf16 %v5101_v62, %v5100_v60  ;;  %v5103_v22 = vmax.f32 %v5047_v47, 0.0  ;;  %v5913_v3 = vadd.f32 %v4666_v1, %v2450_v63  ;;  %v4668_v5 = vpop.f32.mrb[42].mxu0  ;;  %v2454_v6 = vpop.f32.mrb[43].mxu1 }
 0x2c0   : > { %v4981_v8 = vmul.f32 %v5912_v0, %v7077_v16  ;;  %v5914_v30 = vadd.f32 %v4668_v5, %v2452_v4  ;;  %v4670_v9 = vpop.f32.mrb[43].mxu0 }
 0x2c1   : > { %5306 = vst [vmem:[%s7097_s18 + $0x90] sm:$0xff] %v5860_v2  ;;  %v5861_v31 = vpack.c.bf16 %v5103_v22, %v5102_v21  ;;  %v4982_v10 = vmul.f32 %v5913_v3, %v7079_v46  ;;  %v5915_v32 = vadd.f32 %v4670_v9, %v2454_v6 }
 0x2c2   : > { %v5048_v11 = vadd.f32 %v7081_v49, %v4981_v8  ;;  %v4983_v12 = vmul.f32 %v5914_v30, %v7077_v16 }
 0x2c3   : > { %5307 = vst [vmem:[%s7097_s18 + $0x98] sm:$0xff] %v5861_v31  ;;  %v5049_v14 = vadd.f32 %v7083_v51, %v4982_v10  ;;  %v4984_v34 = vmul.f32 %v5915_v32, %v7079_v46 }
 0x2c4   : > { %v5104_v33 = vmax.f32 %v5048_v11, 0.0  ;;  %v5050_v36 = vadd.f32 %v7081_v49, %v4983_v12  ;;  %v2458_v41 = vpop.f32.mrb[44].mxu1 }
 0x2c5   : > { %v5105_v23 = vmax.f32 %v5049_v14, 0.0  ;;  %v5051_v42 = vadd.f32 %v7083_v51, %v4984_v34  ;;  %v4674_v24 = vpop.f32.mrb[44].mxu0  ;;  %v2460_v15 = vpop.f32.mrb[45].mxu1 }
 0x2c6   : > { %v5106_v25 = vmax.f32 %v5050_v36, 0.0  ;;  %v5916_v17 = vadd.f32 %v4674_v24, %v2458_v41  ;;  %v4676_v43 = vpop.f32.mrb[45].mxu0  ;;  %v2462_v18 = vpop.f32.mrb[46].mxu1 }
 0x2c7   : > { %v5862_v44 = vpack.c.bf16 %v5105_v23, %v5104_v33  ;;  %v5107_v27 = vmax.f32 %v5051_v42, 0.0  ;;  %v5917_v35 = vadd.f32 %v4676_v43, %v2460_v15  ;;  %v4678_v45 = vpop.f32.mrb[46].mxu0  ;;  %v2464_v37 = vpop.f32.mrb[47].mxu1 }
 0x2c8   : > { %v4985_v48 = vmul.f32 %v5916_v17, %v7077_v16  ;;  %v5918_v26 = vadd.f32 %v4678_v45, %v2462_v18  ;;  %v4680_v38 = vpop.f32.mrb[47].mxu0 }
 0x2c9   : > { %5308 = vst [vmem:[%s7097_s18 + $0xa0] sm:$0xff] %v5862_v44  ;;  %v5863_v19 = vpack.c.bf16 %v5107_v27, %v5106_v25  ;;  %v4986_v50 = vmul.f32 %v5917_v35, %v7079_v46  ;;  %v5919_v52 = vadd.f32 %v4680_v38, %v2464_v37 }
 0x2ca   : > { %v5052_v53 = vadd.f32 %v7081_v49, %v4985_v48  ;;  %v4987_v40 = vmul.f32 %v5918_v26, %v7077_v16 }
 0x2cb   : > { %5309 = vst [vmem:[%s7097_s18 + $0xa8] sm:$0xff] %v5863_v19  ;;  %v5053_v54 = vadd.f32 %v7083_v51, %v4986_v50  ;;  %v4988_v55 = vmul.f32 %v5919_v52, %v7079_v46 }
 0x2cc   : > { %v5108_v56 = vmax.f32 %v5052_v53, 0.0  ;;  %v5054_v57 = vadd.f32 %v7081_v49, %v4987_v40  ;;  %v2468_v58 = vpop.f32.mrb[48].mxu1 }
 0x2cd   : > { %v5109_v13 = vmax.f32 %v5053_v54, 0.0  ;;  %v5055_v59 = vadd.f32 %v7083_v51, %v4988_v55  ;;  %v4684_v28 = vpop.f32.mrb[48].mxu0  ;;  %v2470_v39 = vpop.f32.mrb[49].mxu1 }
 0x2ce   : > { %v5110_v29 = vmax.f32 %v5054_v57, 0.0  ;;  %v5920_v60 = vadd.f32 %v4684_v28, %v2468_v58  ;;  %v4686_v61 = vpop.f32.mrb[49].mxu0  ;;  %v2472_v20 = vpop.f32.mrb[50].mxu1 }
 0x2cf   : > { %v5864_v62 = vpack.c.bf16 %v5109_v13, %v5108_v56  ;;  %v5111_v47 = vmax.f32 %v5055_v59, 0.0  ;;  %v5921_v7 = vadd.f32 %v4686_v61, %v2470_v39  ;;  %v4688_v63 = vpop.f32.mrb[50].mxu0  ;;  %v2474_v21 = vpop.f32.mrb[51].mxu1 }
 0x2d0   : > { %v4989_v0 = vmul.f32 %v5920_v60, %v7077_v16  ;;  %v5922_v1 = vadd.f32 %v4688_v63, %v2472_v20  ;;  %v4690_v4 = vpop.f32.mrb[51].mxu0 }
 0x2d1   : > { %5310 = vst [vmem:[%s7097_s18 + $0xb0] sm:$0xff] %v5864_v62  ;;  %v5865_v2 = vpack.c.bf16 %v5111_v47, %v5110_v29  ;;  %v4990_v22 = vmul.f32 %v5921_v7, %v7079_v46  ;;  %v5923_v3 = vadd.f32 %v4690_v4, %v2474_v21 }
 0x2d2   : > { %v5056_v5 = vadd.f32 %v7081_v49, %v4989_v0  ;;  %v4991_v6 = vmul.f32 %v5922_v1, %v7077_v16 }
 0x2d3   : > { %5311 = vst [vmem:[%s7097_s18 + $0xb8] sm:$0xff] %v5865_v2  ;;  %v5057_v8 = vadd.f32 %v7083_v51, %v4990_v22  ;;  %v4992_v30 = vmul.f32 %v5923_v3, %v7079_v46 }
 0x2d4   : > { %v5112_v9 = vmax.f32 %v5056_v5, 0.0  ;;  %v5058_v31 = vadd.f32 %v7081_v49, %v4991_v6  ;;  %v2478_v10 = vpop.f32.mrb[52].mxu1 }
 0x2d5   : > { %v5113_v32 = vmax.f32 %v5057_v8, 0.0  ;;  %v5059_v11 = vadd.f32 %v7083_v51, %v4992_v30  ;;  %v4694_v12 = vpop.f32.mrb[52].mxu0  ;;  %v2480_v14 = vpop.f32.mrb[53].mxu1 }
 0x2d6   : > { %v5114_v34 = vmax.f32 %v5058_v31, 0.0  ;;  %v5924_v33 = vadd.f32 %v4694_v12, %v2478_v10  ;;  %v4696_v36 = vpop.f32.mrb[53].mxu0  ;;  %v2482_v41 = vpop.f32.mrb[54].mxu1 }
 0x2d7   : > { %v5866_v23 = vpack.c.bf16 %v5113_v32, %v5112_v9  ;;  %v5115_v42 = vmax.f32 %v5059_v11, 0.0  ;;  %v5925_v24 = vadd.f32 %v4696_v36, %v2480_v14  ;;  %v4698_v15 = vpop.f32.mrb[54].mxu0  ;;  %v2484_v25 = vpop.f32.mrb[55].mxu1 }
 0x2d8   : > { %v4993_v17 = vmul.f32 %v5924_v33, %v7077_v16  ;;  %v5926_v43 = vadd.f32 %v4698_v15, %v2482_v41  ;;  %v4700_v18 = vpop.f32.mrb[55].mxu0 }
 0x2d9   : > { %5312 = vst [vmem:[%s7097_s18 + $0xc0] sm:$0xff] %v5866_v23  ;;  %v5867_v44 = vpack.c.bf16 %v5115_v42, %v5114_v34  ;;  %v4994_v27 = vmul.f32 %v5925_v24, %v7079_v46  ;;  %v5927_v35 = vadd.f32 %v4700_v18, %v2484_v25 }
 0x2da   : > { %v5060_v45 = vadd.f32 %v7081_v49, %v4993_v17  ;;  %v4995_v37 = vmul.f32 %v5926_v43, %v7077_v16 }
 0x2db   : > { %5313 = vst [vmem:[%s7097_s18 + $0xc8] sm:$0xff] %v5867_v44  ;;  %v5061_v48 = vadd.f32 %v7083_v51, %v4994_v27  ;;  %v4996_v26 = vmul.f32 %v5927_v35, %v7079_v46 }
 0x2dc   : > { %v5116_v38 = vmax.f32 %v5060_v45, 0.0  ;;  %v5062_v19 = vadd.f32 %v7081_v49, %v4995_v37 }
 0x2dd   : > { %v5117_v50 = vmax.f32 %v5061_v48, 0.0  ;;  %v5063_v52 = vadd.f32 %v7083_v51, %v4996_v26 }
 0x2de   : > { %v5118_v53 = vmax.f32 %v5062_v19, 0.0 }
 0x2df   : > { %v5868_v40 = vpack.c.bf16 %v5117_v50, %v5116_v38  ;;  %v5119_v54 = vmax.f32 %v5063_v52, 0.0 }
 0x2e1   : > { %5314 = vst [vmem:[%s7097_s18 + $0xd0] sm:$0xff] %v5868_v40  ;;  %v5869_v55 = vpack.c.bf16 %v5119_v54, %v5118_v53 }
 0x2e3   : > { %5315 = vst [vmem:[%s7097_s18 + $0xd8] sm:$0xff] %v5869_v55 }
 0x2e4 PF: > { %s13_s12 = sadd.s32 1, %s6483_s12  }
 0x2e5   : > { %p10_p4 = scmp.ge.s32.totalorder %s13_s12, 4  }
 0x2e7   :  { %12 = sbr.rel (!%p10_p4) target bundleno = 1 (0x1), region = 74 }

// kernel: encoder_stn_no_alpha.6
= control target key start
LH: loop header
LB: loop body
LE: loop exit
PB: predicated region body
PF: predicated region fallthrough
CT: control target
= control target key end

     0   :  { %s4314_s12 = smov 0   ;;  %s5367_s0 = inlined_call_operand.vmem [shape: bf16[2,4,48,256], index: 0, kind: input, shape index: {}]   ;;  %s5368_s1 = inlined_call_operand.vmem [shape: bf16[9,256,256], index: 1, kind: input, shape index: {}]   ;;  %s5369_s2 = inlined_call_operand.vmem [shape: f32[2,256], index: 2, kind: input, shape index: {}]   ;;  %s5370_s3 = inlined_call_operand.vmem [shape: bf16[2,32,256], index: 3, kind: output, shape index: {}]  }
   0x1 LB: > { %s3082_s13 = sadd.s32 4294967295, %s4292_s12   ;;  %p3086_p0 = scmp.ge.s32.totalorder %s4292_s12, 1  ;;  %s4292_s12 = sphi %s4314_s12, %s13_s12  }
   0x2   : > { %p137_p1 = scmp.lt.s32.totalorder %s4292_s12, 3 }
   0x4   : > { %p138_p2 = pnand %p3086_p0, %p137_p1 }
   0x5   : > { %v3814_v0 = vld [vmem:[%s5368_s1 + $0x4] ss:$8 sps:$4 sm:$0xff] (!%p138_p2)   ;;  %v3818_v2 = vld [vmem:[%s5368_s1] ss:$8 sps:$4 sm:$0xff] (!%p138_p2)   ;;  %v3820_v4 = vld [vmem:[%s5368_s1 + $0x14] ss:$8 sps:$4 sm:$0xff] (!%p138_p2)  }
   0x6   : > { %141 = sbr.rel (%p138_p2) target bundleno = 553 (0x229), region = 32  ;;  %v3816_v1 = vld [vmem:[%s5368_s1 + $0x404] ss:$8 sps:$4 sm:$0xff] (!%p138_p2)   ;;  %387 = vmatprep.subr.bf16.mxu1 (!%p138_p2), %v3814_v0  ;;  %v3819_v3 = vld [vmem:[%s5368_s1 + $0x400] ss:$8 sps:$4 sm:$0xff] (!%p138_p2)   ;;  %p161_p3 = scmp.lt.s32.totalorder (!%p138_p2), %s3082_s13, 1 }
   0x7   : > { %1597 = vmatprep.subr.bf16.mxu0 (!%p138_p2), %v3816_v1  ;;  %388 = vmatpush1.bf16.msra.mxu1 (!%p138_p2), %v3818_v2  ;;  %v3822_v5 = vld [vmem:[%s5368_s1 + $0x414] ss:$8 sps:$4 sm:$0xff] (!%p138_p2)   ;;  %v3824_v6 = vld [vmem:[%s5368_s1 + $0x10] ss:$8 sps:$4 sm:$0xff] (!%p138_p2)   ;;  %v3826_v8 = vld [vmem:[%s5368_s1 + $0x24] ss:$8 sps:$4 sm:$0xff] (!%p138_p2)  }
   0x8   : > { %1598 = vmatpush1.bf16.msra.mxu0 (!%p138_p2), %v3819_v3  ;;  %389 = vmatprep.subr.bf16.mxu1 (!%p138_p2), %v3820_v4  ;;  %v3825_v7 = vld [vmem:[%s5368_s1 + $0x410] ss:$8 sps:$4 sm:$0xff] (!%p138_p2)   ;;  %v3828_v9 = vld [vmem:[%s5368_s1 + $0x424] ss:$8 sps:$4 sm:$0xff] (!%p138_p2)   ;;  %v3830_v10 = vld [vmem:[%s5368_s1 + $0x20] ss:$8 sps:$4 sm:$0xff] (!%p138_p2)  }
   0x9   : > { %1599 = vmatprep.subr.bf16.mxu0 (!%p138_p2), %v3822_v5  ;;  %v3831_v11 = vld [vmem:[%s5368_s1 + $0x420] ss:$8 sps:$4 sm:$0xff] (!%p138_p2)   ;;  %v3832_v12 = vld [vmem:[%s5368_s1 + $0x34] ss:$8 sps:$4 sm:$0xff] (!%p138_p2)   ;;  %v3836_v14 = vld [vmem:[%s5368_s1 + $0x30] ss:$8 sps:$4 sm:$0xff] (!%p138_p2)  }
   0xa   : > { %v3834_v13 = vld [vmem:[%s5368_s1 + $0x434] ss:$8 sps:$4 sm:$0xff] (!%p138_p2)   ;;  %v3837_v15 = vld [vmem:[%s5368_s1 + $0x430] ss:$8 sps:$4 sm:$0xff] (!%p138_p2)   ;;  %v3838_v16 = vld [vmem:[%s5368_s1 + $0x44] ss:$8 sps:$4 sm:$0xff] (!%p138_p2)  }
   0xb   : > { %390 = vmatpush1.bf16.msra.mxu1 (!%p138_p2), %v3824_v6  ;;  %v3840_v17 = vld [vmem:[%s5368_s1 + $0x444] ss:$8 sps:$4 sm:$0xff] (!%p138_p2)   ;;  %v3842_v18 = vld [vmem:[%s5368_s1 + $0x40] ss:$8 sps:$4 sm:$0xff] (!%p138_p2)   ;;  %v3844_v20 = vld [vmem:[%s5368_s1 + $0x54] ss:$8 sps:$4 sm:$0xff] (!%p138_p2)  }
   0xc   : > { %1600 = vmatpush1.bf16.msra.mxu0 (!%p138_p2), %v3825_v7  ;;  %391 = vmatprep.subr.bf16.mxu1 (!%p138_p2), %v3826_v8  ;;  %v3843_v19 = vld [vmem:[%s5368_s1 + $0x440] ss:$8 sps:$4 sm:$0xff] (!%p138_p2)   ;;  %v3846_v21 = vld [vmem:[%s5368_s1 + $0x454] ss:$8 sps:$4 sm:$0xff] (!%p138_p2)   ;;  %v3848_v22 = vld [vmem:[%s5368_s1 + $0x50] ss:$8 sps:$4 sm:$0xff] (!%p138_p2)  }
   0xd   : > { %1601 = vmatprep.subr.bf16.mxu0 %v3828_v9  ;;  %v3849_v23 = vld [vmem:[%s5368_s1 + $0x450] ss:$8 sps:$4 sm:$0xff]   ;;  %v3850_v24 = vld [vmem:[%s5368_s1 + $0x64] ss:$8 sps:$4 sm:$0xff]   ;;  %v3854_v26 = vld [vmem:[%s5368_s1 + $0x60] ss:$8 sps:$4 sm:$0xff]  }
   0xe   : > { %v3852_v25 = vld [vmem:[%s5368_s1 + $0x464] ss:$8 sps:$4 sm:$0xff]   ;;  %v3855_v27 = vld [vmem:[%s5368_s1 + $0x460] ss:$8 sps:$4 sm:$0xff]   ;;  %v3856_v28 = vld [vmem:[%s5368_s1 + $0x74] ss:$8 sps:$4 sm:$0xff]  }
   0xf   : > { %392 = vmatpush1.bf16.msra.mxu1 %v3830_v10  ;;  %v3858_v29 = vld [vmem:[%s5368_s1 + $0x474] ss:$8 sps:$4 sm:$0xff]   ;;  %v3860_v30 = vld [vmem:[%s5368_s1 + $0x70] ss:$8 sps:$4 sm:$0xff]   ;;  %v3862_v32 = vld [vmem:[%s5368_s1 + $0x84] ss:$8 sps:$4 sm:$0xff]  }
  0x10   : > { %1602 = vmatpush1.bf16.msra.mxu0 %v3831_v11  ;;  %393 = vmatprep.subr.bf16.mxu1 %v3832_v12  ;;  %v3861_v31 = vld [vmem:[%s5368_s1 + $0x470] ss:$8 sps:$4 sm:$0xff]   ;;  %v3864_v33 = vld [vmem:[%s5368_s1 + $0x484] ss:$8 sps:$4 sm:$0xff]   ;;  %v3866_v34 = vld [vmem:[%s5368_s1 + $0x80] ss:$8 sps:$4 sm:$0xff]  }
  0x11   : > { %1603 = vmatprep.subr.bf16.mxu0 %v3834_v13  ;;  %v3867_v35 = vld [vmem:[%s5368_s1 + $0x480] ss:$8 sps:$4 sm:$0xff]   ;;  %s5372_s13 = smov (!%p161_p3, %s3082_s13), 1  ;;  %v3868_v36 = vld [vmem:[%s5368_s1 + $0x94] ss:$8 sps:$4 sm:$0xff]  }
  0x12   : > { %v3870_v37 = vld [vmem:[%s5368_s1 + $0x494] ss:$8 sps:$4 sm:$0xff]   ;;  %v3872_v38 = vld [vmem:[%s5368_s1 + $0x90] ss:$8 sps:$4 sm:$0xff]   ;;  %s3805_s17 = smul.u32 192, %s5372_s13 }
  0x13   : > { %394 = vmatpush1.bf16.msra.mxu1 %v3836_v14  ;;  %v3873_v39 = vld [vmem:[%s5368_s1 + $0x490] ss:$8 sps:$4 sm:$0xff]   ;;  %v3874_v40 = vld [vmem:[%s5368_s1 + $0xa4] ss:$8 sps:$4 sm:$0xff]   ;;  %v3878_v42 = vld [vmem:[%s5368_s1 + $0xa0] ss:$8 sps:$4 sm:$0xff]  }
  0x14   : > { %1604 = vmatpush1.bf16.msra.mxu0 %v3837_v15  ;;  %395 = vmatprep.subr.bf16.mxu1 %v3838_v16  ;;  %v3876_v41 = vld [vmem:[%s5368_s1 + $0x4a4] ss:$8 sps:$4 sm:$0xff]   ;;  %v3879_v43 = vld [vmem:[%s5368_s1 + $0x4a0] ss:$8 sps:$4 sm:$0xff]   ;;  %s4464_s30 = scalar_lea.vmem %s5367_s0, %s3805_s17  ;;  %v3880_v44 = vld [vmem:[%s5368_s1 + $0xb4] ss:$8 sps:$4 sm:$0xff]  }
  0x15   : > { %1605 = vmatprep.subr.bf16.mxu0 %v3840_v17  ;;  %v3882_v45 = vld [vmem:[%s5368_s1 + $0x4b4] ss:$8 sps:$4 sm:$0xff]   ;;  %v3884_v46 = vld [vmem:[%s5368_s1 + $0xb0] ss:$8 sps:$4 sm:$0xff]   ;;  %v171_v47 = vld [vmem:[%s4464_s30] sm:$0xff]  ;;  %s3704_s17 = sshll.u32 %s5372_s13, 5 }
  0x16   : > { %v4477_v48 = vld [vmem:[%s4464_s30 + $0x8] sm:$0xff]  ;;  %v3885_v49 = vld [vmem:[%s5368_s1 + $0x4b0] ss:$8 sps:$4 sm:$0xff]   ;;  %v3917_v53 = vld [vmem:[%s4464_s30 + $0x94] ss:$8 sps:$4 sm:$0xff]   ;;  %s170_s20 = scalar_lea.vmem %s5370_s3, %s3704_s17 }
  0x17   : > { %396 = vmatpush1.bf16.msra.mxu1 %v3842_v18  ;;  %v3886_v50 = vld [vmem:[%s5368_s1 + $0xc4] ss:$8 sps:$4 sm:$0xff]   ;;  %v4486_v51 = vcombine.high %v171_v47, %v4477_v48  ;;  %1629 = vmatprep.mubr.bf16.mxu0 %v3917_v53  ;;  %v3890_v54 = vld [vmem:[%s5368_s1 + $0xc0] ss:$8 sps:$4 sm:$0xff]   ;;  %v3892_v56 = vld [vmem:[%s5368_s1 + $0xd4] ss:$8 sps:$4 sm:$0xff]   ;;  %v4542_v6 = vcombine.low %v171_v47, %v4477_v48 }
  0x18   : > { %1606 = vmatpush1.bf16.msra.mxu0 %v3843_v19  ;;  %397 = vmatprep.subr.bf16.mxu1 %v3844_v20  ;;  %v3888_v52 = vld [vmem:[%s5368_s1 + $0x4c4] ss:$8 sps:$4 sm:$0xff]   ;;  %v3891_v55 = vld [vmem:[%s5368_s1 + $0x4c0] ss:$8 sps:$4 sm:$0xff]   ;;  %v3894_v57 = vld [vmem:[%s5368_s1 + $0x4d4] ss:$8 sps:$4 sm:$0xff]  }
  0x19   : > { %1607 = vmatprep.subr.bf16.mxu0 %v3846_v21  ;;  %419 = vmatprep.mubr.bf16.mxu1 %v4486_v51  ;;  %v3896_v58 = vld [vmem:[%s5368_s1 + $0xd0] ss:$8 sps:$4 sm:$0xff]   ;;  %v3898_v60 = vld [vmem:[%s5368_s1 + $0xe4] ss:$8 sps:$4 sm:$0xff]   ;;  %v3902_v62 = vld [vmem:[%s5368_s1 + $0xe0] ss:$8 sps:$4 sm:$0xff]  }
  0x1a   : > { %v3897_v59 = vld [vmem:[%s5368_s1 + $0x4d0] ss:$8 sps:$4 sm:$0xff]   ;;  %v3900_v61 = vld [vmem:[%s5368_s1 + $0x4e4] ss:$8 sps:$4 sm:$0xff]   ;;  %v3903_v63 = vld [vmem:[%s5368_s1 + $0x4e0] ss:$8 sps:$4 sm:$0xff]  }
  0x1b   : > { %398 = vmatpush1.bf16.msra.mxu1 %v3848_v22  ;;  %v3904_v0 = vld [vmem:[%s5368_s1 + $0xf4] ss:$8 sps:$4 sm:$0xff]   ;;  %v3908_v2 = vld [vmem:[%s5368_s1 + $0xf0] ss:$8 sps:$4 sm:$0xff]   ;;  %v3914_v4 = vld [vmem:[%s5368_s1 + $0x104] ss:$8 sps:$4 sm:$0xff]  }
  0x1c   : > { %1608 = vmatpush1.bf16.msra.mxu0 %v3849_v23  ;;  %399 = vmatprep.subr.bf16.mxu1 %v3850_v24  ;;  %v3906_v1 = vld [vmem:[%s5368_s1 + $0x4f4] ss:$8 sps:$4 sm:$0xff]   ;;  %v3909_v3 = vld [vmem:[%s5368_s1 + $0x4f0] ss:$8 sps:$4 sm:$0xff]   ;;  %v3920_v5 = vld [vmem:[%s5368_s1 + $0x504] ss:$8 sps:$4 sm:$0xff]  }
  0x1d   : > { %1609 = vmatprep.subr.bf16.mxu0 %v3852_v25  ;;  %v3915_v7 = vld [vmem:[%s4464_s30 + $0x90] ss:$8 sps:$4 sm:$0xff]   ;;  %v3912_v8 = vld [vmem:[%s5368_s1 + $0x100] ss:$8 sps:$4 sm:$0xff]   ;;  %v3923_v10 = vld [vmem:[%s5368_s1 + $0x114] ss:$8 sps:$4 sm:$0xff]  }
  0x1e   : > { %v3918_v9 = vld [vmem:[%s5368_s1 + $0x500] ss:$8 sps:$4 sm:$0xff]   ;;  %v3926_v11 = vld [vmem:[%s5368_s1 + $0x514] ss:$8 sps:$4 sm:$0xff]   ;;  %v3921_v12 = vld [vmem:[%s5368_s1 + $0x110] ss:$8 sps:$4 sm:$0xff]  }
  0x1f   : > { %400 = vmatpush1.bf16.msra.mxu1 %v3854_v26  ;;  %v3924_v13 = vld [vmem:[%s5368_s1 + $0x510] ss:$8 sps:$4 sm:$0xff]   ;;  %v3929_v14 = vld [vmem:[%s5368_s1 + $0x124] ss:$8 sps:$4 sm:$0xff]   ;;  %v3927_v16 = vld [vmem:[%s5368_s1 + $0x120] ss:$8 sps:$4 sm:$0xff]  }
  0x20   : > { %1610 = vmatpush1.bf16.msra.mxu0 %v3855_v27  ;;  %401 = vmatprep.subr.bf16.mxu1 %v3856_v28  ;;  %v3932_v15 = vld [vmem:[%s5368_s1 + $0x524] ss:$8 sps:$4 sm:$0xff]   ;;  %v3930_v17 = vld [vmem:[%s5368_s1 + $0x520] ss:$8 sps:$4 sm:$0xff]   ;;  %v3935_v18 = vld [vmem:[%s5368_s1 + $0x134] ss:$8 sps:$4 sm:$0xff]  }
  0x21   : > { %1611 = vmatprep.subr.bf16.mxu0 %v3858_v29  ;;  %v3938_v19 = vld [vmem:[%s5368_s1 + $0x534] ss:$8 sps:$4 sm:$0xff]   ;;  %v3933_v20 = vld [vmem:[%s5368_s1 + $0x130] ss:$8 sps:$4 sm:$0xff]   ;;  %v3941_v22 = vld [vmem:[%s5368_s1 + $0x144] ss:$8 sps:$4 sm:$0xff]  }
  0x22   : > { %v3936_v21 = vld [vmem:[%s5368_s1 + $0x530] ss:$8 sps:$4 sm:$0xff]   ;;  %v3944_v23 = vld [vmem:[%s5368_s1 + $0x544] ss:$8 sps:$4 sm:$0xff]   ;;  %v806_v24 = vshll.u32 %v4542_v6, 16 }
  0x23   : > { %402 = vmatpush1.bf16.msra.mxu1 %v3860_v30  ;;  %v3939_v25 = vld [vmem:[%s5368_s1 + $0x140] ss:$8 sps:$4 sm:$0xff]   ;;  %v3947_v27 = vld [vmem:[%s5368_s1 + $0x154] ss:$8 sps:$4 sm:$0xff]   ;;  %v3945_v29 = vld [vmem:[%s5368_s1 + $0x150] ss:$8 sps:$4 sm:$0xff]  }
  0x24   : > { %1612 = vmatpush1.bf16.msra.mxu0 %v3861_v31  ;;  %403 = vmatprep.subr.bf16.mxu1 %v3862_v32  ;;  %v3942_v26 = vld [vmem:[%s5368_s1 + $0x540] ss:$8 sps:$4 sm:$0xff]   ;;  %v3950_v28 = vld [vmem:[%s5368_s1 + $0x554] ss:$8 sps:$4 sm:$0xff]   ;;  %v804_v32 = vshrl.u32 %v4542_v6, 16 }
  0x25   : > { %1613 = vmatprep.subr.bf16.mxu0 %v3864_v33  ;;  %v4611_v30 = vld [vmem:[%s4464_s30 + $0x10] sm:$0xff]  ;;  %v4614_v31 = vld [vmem:[%s4464_s30 + $0x18] sm:$0xff]  ;;  %v808_v33 = vrot.slane %v806_v24, 1  ;;  %vm802_vm0 = vsmask.f32 7424 }
  0x26   : > { %v3957_v53 = vld [vmem:[%s5368_s1 + $0x170] ss:$8 sps:$4 sm:$0xff]   ;;  %v3998_v24 = vld [vmem:[%s5368_s1 + $0x5d4] ss:$8 sps:$4 sm:$0xff]  }
  0x27   : > { %404 = vmatpush1.bf16.msra.mxu1 %v3866_v34  ;;  %v3948_v34 = vld [vmem:[%s5368_s1 + $0x550] ss:$8 sps:$4 sm:$0xff]  }
  0x28   : > { %1614 = vmatpush1.bf16.msra.mxu0 %v3867_v35  ;;  %405 = vmatprep.subr.bf16.mxu1 %v3868_v36  ;;  %v3953_v35 = vld [vmem:[%s5368_s1 + $0x164] ss:$8 sps:$4 sm:$0xff]   ;;  %v4625_v36 = vcombine.high %v4611_v30, %v4614_v31 }
  0x29   : > { %1615 = vmatprep.subr.bf16.mxu0 %v3870_v37  ;;  %v4629_v37 = vcombine.low %v4611_v30, %v4614_v31 }
  0x2b   : > { %406 = vmatpush1.bf16.msra.mxu1 %v3872_v38  ;;  %v3519_v38 = vcombine.low %v4477_v48, %v4611_v30 }
  0x2c   : > { %1616 = vmatpush1.bf16.msra.mxu0 %v3873_v39  ;;  %407 = vmatprep.subr.bf16.mxu1 %v3874_v40  ;;  %v4003_v39 = vld [vmem:[%s4464_s30 + $0xa4] ss:$8 sps:$4 sm:$0xff]  }
  0x2d   : > { %1617 = vmatprep.subr.bf16.mxu0 %v3876_v41  ;;  %v3956_v40 = vld [vmem:[%s5368_s1 + $0x564] ss:$8 sps:$4 sm:$0xff]   ;;  %v811_v41 = vshll.u32 %v4629_v37, 16 }
  0x2f   : > { %408 = vmatpush1.bf16.msra.mxu1 %v3878_v42  ;;  %v4009_v42 = vld [vmem:[%s4464_s30 + $0xa0] ss:$8 sps:$4 sm:$0xff]   ;;  %v4650_v47 = vrot.slane %v811_v41, 1  ;;  %v4012_v41 = vld [vmem:[%s5368_s1 + $0x1f4] ss:$8 sps:$4 sm:$0xff]  }
  0x30   : > { %1618 = vmatpush1.bf16.msra.mxu0 %v3879_v43  ;;  %409 = vmatprep.subr.bf16.mxu1 %v3880_v44  ;;  %v809_v43 = vor.u32 %v808_v33, %v804_v32  ;;  %v3951_v44 = vld [vmem:[%s5368_s1 + $0x160] ss:$8 sps:$4 sm:$0xff]   ;;  %v4007_v32 = vld [vmem:[%s5368_s1 + $0x5e4] ss:$8 sps:$4 sm:$0xff]  }
  0x31   : > { %1619 = vmatprep.subr.bf16.mxu0 %v3882_v45  ;;  %v3954_v45 = vld [vmem:[%s5368_s1 + $0x560] ss:$8 sps:$4 sm:$0xff]  }
  0x32   : > { %v4000_v33 = vld [vmem:[%s5368_s1 + $0x1e0] ss:$8 sps:$4 sm:$0xff]  }
  0x33   : > { %410 = vmatpush1.bf16.msra.mxu1 %v3884_v46  ;;  %v3959_v46 = vld [vmem:[%s5368_s1 + $0x174] ss:$8 sps:$4 sm:$0xff]  }
  0x34   : > { %1620 = vmatpush1.bf16.msra.mxu0 %v3885_v49  ;;  %411 = vmatprep.subr.bf16.mxu1 %v3886_v50  ;;  %v3962_v49 = vld [vmem:[%s5368_s1 + $0x574] ss:$8 sps:$4 sm:$0xff]  }
  0x35   : > { %1621 = vmatprep.subr.bf16.mxu0 %v3888_v52  ;;  %v4656_v50 = vld [vmem:[%s4464_s30 + $0x30] sm:$0xff]  ;;  %v4659_v52 = vld [vmem:[%s4464_s30 + $0x38] sm:$0xff] }
  0x37   : > { %412 = vmatpush1.bf16.msra.mxu1 %v3890_v54  ;;  %v3163_v54 = vcombine.high %v4656_v50, %v4659_v52 }
  0x38   : > { %1622 = vmatpush1.bf16.msra.mxu0 %v3891_v55  ;;  %413 = vmatprep.subr.bf16.mxu1 %v3892_v56  ;;  %v4668_v55 = vsel %vm802_vm0, %v809_v43, %v4650_v47  ;;  %v3960_v56 = vld [vmem:[%s5368_s1 + $0x570] ss:$8 sps:$4 sm:$0xff]  }
  0x39   : > { %1623 = vmatprep.subr.bf16.mxu0 %v3894_v57  ;;  %v3965_v57 = vld [vmem:[%s5368_s1 + $0x184] ss:$8 sps:$4 sm:$0xff]   ;;  %v4010_v43 = vld [vmem:[%s5368_s1 + $0x1f0] ss:$8 sps:$4 sm:$0xff]  }
  0x3b   : > { %414 = vmatpush1.bf16.msra.mxu1 %v3896_v58  ;;  %v3968_v58 = vld [vmem:[%s5368_s1 + $0x584] ss:$8 sps:$4 sm:$0xff]  }
  0x3c   : > { %1624 = vmatpush1.bf16.msra.mxu0 %v3897_v59  ;;  %415 = vmatprep.subr.bf16.mxu1 %v3898_v60  ;;  %v4680_v59 = vld [vmem:[%s4464_s30 + $0x64] ss:$8 sps:$4 sm:$0xff]   ;;  %v4683_v60 = vld [vmem:[%s4464_s30 + $0x74] ss:$8 sps:$4 sm:$0xff]  }
  0x3d   : > { %1625 = vmatprep.subr.bf16.mxu0 %v3900_v61  ;;  %v3963_v61 = vld [vmem:[%s5368_s1 + $0x180] ss:$8 sps:$4 sm:$0xff]  }
  0x3f   : > { %416 = vmatpush1.bf16.msra.mxu1 %v3902_v62  ;;  %v3966_v62 = vld [vmem:[%s5368_s1 + $0x580] ss:$8 sps:$4 sm:$0xff]  }
  0x40   : > { %1626 = vmatpush1.bf16.msra.mxu0 %v3903_v63  ;;  %417 = vmatprep.subr.bf16.mxu1 %v3904_v0  ;;  %v1746_v63 = vshrl.u32 %v4680_v59, 16  ;;  %v1748_v0 = vshll.u32 %v4680_v59, 16 }
  0x41   : > { %1627 = vmatprep.subr.bf16.mxu0 %v3906_v1  ;;  %v1753_v1 = vshll.u32 %v4683_v60, 16 }
  0x43   : > { %418 = vmatpush1.bf16.msra.mxu1 %v3908_v2  ;;  %v3971_v2 = vld [vmem:[%s5368_s1 + $0x194] ss:$8 sps:$4 sm:$0xff]  }
  0x44   : > { %1628 = vmatpush1.bf16.msra.mxu0 %v3909_v3  ;;  %666 = vmatprep.subr.bf16.mxu1 %v3914_v4  ;;  %v3974_v3 = vld [vmem:[%s5368_s1 + $0x594] ss:$8 sps:$4 sm:$0xff]   ;;  %v1750_v4 = vrot.slane %v1748_v0, 1  ;;  %v4033_v0 = vld [vmem:[%s5368_s1 + $0x610] ss:$8 sps:$4 sm:$0xff]  }
  0x45   : > { %1937 = vmatprep.subr.bf16.mxu0 %v3920_v5  ;;  %v4700_v5 = vrot.slane %v1753_v1, 1  ;;  %v816_v1 = vshrl.u32 %v4486_v51, 16 }
  0x46   : > { %420 = vmatmul.mubr.bf16.vlgmr.msra.gmra.mrb[0].mxu1 %v4542_v6  ;;  %v3969_v6 = vld [vmem:[%s5368_s1 + $0x190] ss:$8 sps:$4 sm:$0xff]  }
  0x47   : > { %1630 = vmatmul.mubr.bf16.vlgmr.msra.gmra.mrb[0].mxu0 %v3915_v7  ;;  %667 = vmatpush1.bf16.msra.mxu1 %v3912_v8  ;;  %v1751_v7 = vor.u32 %v1750_v4, %v1746_v63  ;;  %v3972_v8 = vld [vmem:[%s5368_s1 + $0x590] ss:$8 sps:$4 sm:$0xff]   ;;  %v1765_v4 = vshrl.u32 %v4683_v60, 16 }
  0x48   : > { %1938 = vmatpush1.bf16.msra.mxu0 %v3918_v9  ;;  %668 = vmatprep.subr.bf16.mxu1 %v3923_v10  ;;  %v3977_v9 = vld [vmem:[%s5368_s1 + $0x1a4] ss:$8 sps:$4 sm:$0xff]   ;;  %v4030_v63 = vld [vmem:[%s5368_s1 + $0x210] ss:$8 sps:$4 sm:$0xff]  }
  0x49   : > { %1939 = vmatprep.subr.bf16.mxu0 %v3926_v11  ;;  %429 = vmatprep.mubr.bf16.mxu1 %v4625_v36  ;;  %v3980_v10 = vld [vmem:[%s5368_s1 + $0x5a4] ss:$8 sps:$4 sm:$0xff]   ;;  %v1756_v11 = vsel %vm802_vm0, %v1751_v7, %v4700_v5  ;;  %v823_v7 = vshll.u32 %v4625_v36, 16 }
  0x4a   : > { %1639 = vmatprep.mubr.bf16.mxu0 %v4003_v39 }
  0x4b   : > { %669 = vmatpush1.bf16.msra.mxu1 %v3921_v12  ;;  %v3975_v12 = vld [vmem:[%s5368_s1 + $0x1a0] ss:$8 sps:$4 sm:$0xff]  }
  0x4c   : > { %1940 = vmatpush1.bf16.msra.mxu0 %v3924_v13  ;;  %670 = vmatprep.subr.bf16.mxu1 %v3929_v14  ;;  %v3978_v13 = vld [vmem:[%s5368_s1 + $0x5a0] ss:$8 sps:$4 sm:$0xff]   ;;  %v3983_v14 = vld [vmem:[%s5368_s1 + $0x1b4] ss:$8 sps:$4 sm:$0xff]  }
  0x4d   : > { %1941 = vmatprep.subr.bf16.mxu0 %v3932_v15  ;;  %v3986_v15 = vld [vmem:[%s5368_s1 + $0x5b4] ss:$8 sps:$4 sm:$0xff]  }
  0x4e   : > { %430 = vmatmul.mubr.bf16.gmra.mrb[4].mxu1 %v4629_v37 }
  0x4f   : > { %671 = vmatpush1.bf16.msra.mxu1 %v3927_v16  ;;  %1640 = vmatmul.mubr.bf16.gmra.mrb[4].mxu0 %v4009_v42  ;;  %v3981_v16 = vld [vmem:[%s5368_s1 + $0x1b0] ss:$8 sps:$4 sm:$0xff]   ;;  %v4015_v42 = vld [vmem:[%s5368_s1 + $0x5f4] ss:$8 sps:$4 sm:$0xff]  }
  0x50   : > { %1942 = vmatpush1.bf16.msra.mxu0 %v3930_v17  ;;  %672 = vmatprep.subr.bf16.mxu1 %v3935_v18  ;;  %v3984_v17 = vld [vmem:[%s5368_s1 + $0x5b0] ss:$8 sps:$4 sm:$0xff]   ;;  %v3989_v18 = vld [vmem:[%s5368_s1 + $0x1c4] ss:$8 sps:$4 sm:$0xff]  }
  0x51   : > { %1943 = vmatprep.subr.bf16.mxu0 %v3938_v19  ;;  %698 = vmatprep.mubr.bf16.mxu1 %v3163_v54  ;;  %v3992_v19 = vld [vmem:[%s5368_s1 + $0x5c4] ss:$8 sps:$4 sm:$0xff]   ;;  %v3162_v54 = vcombine.low %v4656_v50, %v4659_v52  ;;  %v4032_v50 = vld [vmem:[%s5368_s1 + $0x214] ss:$8 sps:$4 sm:$0xff]  }
  0x52   : > { %1969 = vmatprep.mubr.bf16.mxu0 %v1756_v11  ;;  %v3416_v11 = vld [vmem:[%s4464_s30 + $0x80] sm:$0x11] }
  0x53   : > { %673 = vmatpush1.bf16.msra.mxu1 %v3933_v20  ;;  %v3987_v20 = vld [vmem:[%s5368_s1 + $0x1c0] ss:$8 sps:$4 sm:$0xff]  }
  0x54   : > { %1944 = vmatpush1.bf16.msra.mxu0 %v3936_v21  ;;  %674 = vmatprep.subr.bf16.mxu1 %v3941_v22  ;;  %v3990_v21 = vld [vmem:[%s5368_s1 + $0x5c0] ss:$8 sps:$4 sm:$0xff]  }
  0x55   : > { %1945 = vmatprep.subr.bf16.mxu0 %v3944_v23  ;;  %v4747_v22 = vld [vmem:[%s4464_s30 + $0x60] ss:$8 sps:$4 sm:$0xff]   ;;  %v3995_v23 = vld [vmem:[%s5368_s1 + $0x1d4] ss:$8 sps:$4 sm:$0xff]  }
  0x57   : > { %675 = vmatpush1.bf16.msra.mxu1 %v3939_v25  ;;  %v3993_v25 = vld [vmem:[%s5368_s1 + $0x1d0] ss:$8 sps:$4 sm:$0xff]  }
  0x58   : > { %1946 = vmatpush1.bf16.msra.mxu0 %v3942_v26  ;;  %676 = vmatprep.subr.bf16.mxu1 %v3947_v27  ;;  %v3996_v26 = vld [vmem:[%s5368_s1 + $0x5d0] ss:$8 sps:$4 sm:$0xff]  }
  0x59   : > { %1947 = vmatprep.subr.bf16.mxu0 %v3950_v28  ;;  %v4762_v27 = vld [vmem:[%s4464_s30 + $0x70] ss:$8 sps:$4 sm:$0xff]   ;;  %v1736_v28 = vshll.u32 %v4747_v22, 16 }
  0x5b   : > { %677 = vmatpush1.bf16.msra.mxu1 %v3945_v29  ;;  %v4002_v29 = vld [vmem:[%s5368_s1 + $0x1e4] ss:$8 sps:$4 sm:$0xff]   ;;  %v1738_v39 = vrot.slane %v1736_v28, 1 }
  0x5c   : > { %1948 = vmatpush1.bf16.msra.mxu0 %v3948_v34  ;;  %678 = vmatprep.subr.bf16.mxu1 %v3953_v35  ;;  %v4005_v34 = vld [vmem:[%s5368_s1 + $0x5e0] ss:$8 sps:$4 sm:$0xff]   ;;  %v1734_v35 = vshrl.u32 %v4747_v22, 16 }
  0x5d   : > { %1949 = vmatprep.subr.bf16.mxu0 %v3956_v40  ;;  %v1741_v40 = vshll.u32 %v4762_v27, 16 }
  0x5f   : > { %679 = vmatpush1.bf16.msra.mxu1 %v3951_v44  ;;  %v4013_v44 = vld [vmem:[%s5368_s1 + $0x5f0] ss:$8 sps:$4 sm:$0xff]  }
  0x60   : > { %1950 = vmatpush1.bf16.msra.mxu0 %v3954_v45  ;;  %680 = vmatprep.subr.bf16.mxu1 %v3959_v46  ;;  %v1739_v45 = vor.u32 %v1738_v39, %v1734_v35  ;;  %v1743_v46 = vrot.slane %v1741_v40, 1  ;;  %v4050_v39 = vld [vmem:[%s5368_s1 + $0x244] ss:$8 sps:$4 sm:$0xff]  }
  0x61   : > { %1951 = vmatprep.subr.bf16.mxu0 %v3962_v49  ;;  %v4020_v49 = vld [vmem:[%s5368_s1 + $0x204] ss:$8 sps:$4 sm:$0xff]  }
  0x62   : > { %v4053_v40 = vld [vmem:[%s5368_s1 + $0x644] ss:$8 sps:$4 sm:$0xff]  }
  0x63   : > { %681 = vmatpush1.bf16.msra.mxu1 %v3957_v53  ;;  %v4029_v53 = vld [vmem:[%s5368_s1 + $0x604] ss:$8 sps:$4 sm:$0xff]  }
  0x64   : > { %1952 = vmatpush1.bf16.msra.mxu0 %v3960_v56  ;;  %682 = vmatprep.subr.bf16.mxu1 %v3965_v57  ;;  %v4018_v56 = vld [vmem:[%s5368_s1 + $0x200] ss:$8 sps:$4 sm:$0xff]   ;;  %v818_v57 = vshll.u32 %v4486_v51, 16  ;;  %v4041_v51 = vld [vmem:[%s5368_s1 + $0x624] ss:$8 sps:$4 sm:$0xff]  }
  0x65   : > { %1953 = vmatprep.subr.bf16.mxu0 %v3968_v58  ;;  %v4027_v58 = vld [vmem:[%s5368_s1 + $0x600] ss:$8 sps:$4 sm:$0xff]  }
  0x67   : > { %683 = vmatpush1.bf16.msra.mxu1 %v3963_v61  ;;  %v1744_v61 = vsel %vm802_vm0, %v1739_v45, %v1743_v46  ;;  %v4059_v45 = vld [vmem:[%s5368_s1 + $0x654] ss:$8 sps:$4 sm:$0xff]  }
  0x68   : > { %1954 = vmatpush1.bf16.msra.mxu0 %v3966_v62  ;;  %684 = vmatprep.subr.bf16.mxu1 %v3971_v2  ;;  %v4035_v62 = vld [vmem:[%s5368_s1 + $0x614] ss:$8 sps:$4 sm:$0xff]   ;;  %v4821_v2 = vld [vmem:[%s4464_s30 + $0x40] sm:$0xff] }
  0x69   : > { %1955 = vmatprep.subr.bf16.mxu0 %v3974_v3  ;;  %v4824_v3 = vld [vmem:[%s4464_s30 + $0x48] sm:$0xff]  ;;  %v3591_v60 = vcombine.low %v4659_v52, %v4821_v2 }
  0x6b   : > { %685 = vmatpush1.bf16.msra.mxu1 %v3969_v6  ;;  %v820_v6 = vrot.slane %v818_v57, 1  ;;  %v4063_v57 = vld [vmem:[%s5368_s1 + $0x660] ss:$8 sps:$4 sm:$0xff]  }
  0x6c   : > { %1956 = vmatpush1.bf16.msra.mxu0 %v3972_v8  ;;  %686 = vmatprep.subr.bf16.mxu1 %v3977_v9  ;;  %v4038_v8 = vld [vmem:[%s5368_s1 + $0x224] ss:$8 sps:$4 sm:$0xff]   ;;  %v3165_v9 = vcombine.high %v4821_v2, %v4824_v3 }
  0x6d   : > { %1957 = vmatprep.subr.bf16.mxu0 %v3980_v10  ;;  %v1757_v10 = vshrl.u32 %v4762_v27, 16 }
  0x6f   : > { %687 = vmatpush1.bf16.msra.mxu1 %v3975_v12  ;;  %v3592_v12 = vcombine.high %v4659_v52, %v4821_v2 }
  0x70   : > { %1958 = vmatpush1.bf16.msra.mxu0 %v3978_v13  ;;  %688 = vmatprep.subr.bf16.mxu1 %v3983_v14  ;;  %v3454_v13 = vcombine.high %v3416_v11, %v3416_v11  ;;  %v3453_v14 = vcombine.low %v3416_v11, %v3416_v11  ;;  %v4084_v11 = vld [vmem:[%s5368_s1 + $0x2a0] ss:$8 sps:$4 sm:$0xff]  }
  0x71   : > { %1959 = vmatprep.subr.bf16.mxu0 %v3986_v15  ;;  %v4036_v15 = vld [vmem:[%s5368_s1 + $0x220] ss:$8 sps:$4 sm:$0xff]  }
  0x73   : > { %689 = vmatpush1.bf16.msra.mxu1 %v3981_v16  ;;  %v4039_v16 = vld [vmem:[%s5368_s1 + $0x620] ss:$8 sps:$4 sm:$0xff]  }
  0x74   : > { %1960 = vmatpush1.bf16.msra.mxu0 %v3984_v17  ;;  %690 = vmatprep.subr.bf16.mxu1 %v3989_v18  ;;  %v3164_v17 = vcombine.low %v4821_v2, %v4824_v3  ;;  %v821_v18 = vor.u32 %v820_v6, %v816_v1  ;;  %v4072_v1 = vld [vmem:[%s5368_s1 + $0x280] ss:$8 sps:$4 sm:$0xff]   ;;  %v4080_v6 = vld [vmem:[%s5368_s1 + $0x294] ss:$8 sps:$4 sm:$0xff]  }
  0x75   : > { %1961 = vmatprep.subr.bf16.mxu0 %v3992_v19  ;;  %v4850_v19 = vrot.slane %v823_v7, 1  ;;  %v4083_v7 = vld [vmem:[%s5368_s1 + $0x694] ss:$8 sps:$4 sm:$0xff]  }
  0x77   : > { %691 = vmatpush1.bf16.msra.mxu1 %v3987_v20  ;;  %v4044_v20 = vld [vmem:[%s5368_s1 + $0x234] ss:$8 sps:$4 sm:$0xff]  }
  0x78   : > { %1962 = vmatpush1.bf16.msra.mxu0 %v3990_v21  ;;  %692 = vmatprep.subr.bf16.mxu1 %v3995_v23  ;;  %v1767_v21 = vor.u32 %v1765_v4, %v4700_v5  ;;  %v1769_v23 = vshll.u32 %v3454_v13, 16  ;;  %v4045_v5 = vld [vmem:[%s5368_s1 + $0x630] ss:$8 sps:$4 sm:$0xff]   ;;  %v4075_v4 = vld [vmem:[%s5368_s1 + $0x680] ss:$8 sps:$4 sm:$0xff]  }
  0x79   : > { %1963 = vmatprep.subr.bf16.mxu0 %v3998_v24  ;;  %v1759_v24 = vor.u32 %v1757_v10, %v1743_v46  ;;  %v4054_v46 = vld [vmem:[%s5368_s1 + $0x250] ss:$8 sps:$4 sm:$0xff]   ;;  %v4089_v10 = vld [vmem:[%s5368_s1 + $0x6a4] ss:$8 sps:$4 sm:$0xff]   ;;  %v4087_v13 = vld [vmem:[%s5368_s1 + $0x6a0] ss:$8 sps:$4 sm:$0xff]  }
  0x7a   : > { %v1771_v28 = vrot.slane %v1769_v23, 1  ;;  %v4099_v23 = vld [vmem:[%s5368_s1 + $0x6c0] ss:$8 sps:$4 sm:$0xff]  }
  0x7b   : > { %693 = vmatpush1.bf16.msra.mxu1 %v3993_v25  ;;  %v1761_v25 = vshll.u32 %v3453_v14, 16  ;;  %v4092_v14 = vld [vmem:[%s5368_s1 + $0x2b4] ss:$8 sps:$4 sm:$0xff]  }
  0x7c   : > { %1964 = vmatpush1.bf16.msra.mxu0 %v3996_v26  ;;  %694 = vmatprep.subr.bf16.mxu1 %v4002_v29  ;;  %v4047_v26 = vld [vmem:[%s5368_s1 + $0x634] ss:$8 sps:$4 sm:$0xff]  }
  0x7d   : > { %1965 = vmatprep.subr.bf16.mxu0 %v4007_v32  ;;  %v1763_v29 = vrot.slane %v1761_v25, 1  ;;  %v4042_v32 = vld [vmem:[%s5368_s1 + $0x230] ss:$8 sps:$4 sm:$0xff]   ;;  %v4107_v25 = vld [vmem:[%s5368_s1 + $0x6d4] ss:$8 sps:$4 sm:$0xff]  }
  0x7f   : > { %695 = vmatpush1.bf16.msra.mxu1 %v4000_v33  ;;  %v826_v33 = vsel %vm802_vm0, %v821_v18, %v4850_v19  ;;  %v1764_v35 = vsel %vm802_vm0, %v1759_v24, %v1763_v29  ;;  %v4098_v18 = vld [vmem:[%s5368_s1 + $0x2c4] ss:$8 sps:$4 sm:$0xff]   ;;  %v4104_v24 = vld [vmem:[%s5368_s1 + $0x2d4] ss:$8 sps:$4 sm:$0xff]  }
  0x80   : > { %1966 = vmatpush1.bf16.msra.mxu0 %v4005_v34  ;;  %696 = vmatprep.subr.bf16.mxu1 %v4012_v41  ;;  %v1772_v34 = vsel %vm802_vm0, %v1767_v21, %v1771_v28  ;;  %v3520_v41 = vcombine.high %v4477_v48, %v4611_v30  ;;  %v4096_v21 = vld [vmem:[%s5368_s1 + $0x2c0] ss:$8 sps:$4 sm:$0xff]   ;;  %v4105_v28 = vld [vmem:[%s5368_s1 + $0x6d0] ss:$8 sps:$4 sm:$0xff]   ;;  %v4143_v30 = vld [vmem:[%s5368_s1 + $0x724] ss:$8 sps:$4 sm:$0xff]  }
  0x81   : > { %1967 = vmatprep.subr.bf16.mxu0 %v4015_v42  ;;  %v4048_v42 = vld [vmem:[%s5368_s1 + $0x240] ss:$8 sps:$4 sm:$0xff]  }
  0x82   : > { %v747_v29 = vld [vmem:[%s4464_s30 + $0x20] sm:$0x11] }
  0x83   : > { %697 = vmatpush1.bf16.msra.mxu1 %v4010_v43  ;;  %v4051_v43 = vld [vmem:[%s5368_s1 + $0x640] ss:$8 sps:$4 sm:$0xff]  }
  0x84   : > { %1968 = vmatpush1.bf16.msra.mxu0 %v4013_v44  ;;  %1007 = vmatprep.subr.bf16.mxu1 %v4020_v49  ;;  %v4056_v44 = vld [vmem:[%s5368_s1 + $0x254] ss:$8 sps:$4 sm:$0xff]   ;;  %v4057_v49 = vld [vmem:[%s5368_s1 + $0x650] ss:$8 sps:$4 sm:$0xff]  }
  0x85   : > { %2231 = vmatprep.subr.bf16.mxu0 %v4029_v53  ;;  %v4062_v53 = vld [vmem:[%s5368_s1 + $0x264] ss:$8 sps:$4 sm:$0xff]  }
  0x86   : > { %699 = vmatmul.mubr.bf16.vlgmr.msra.gmra.mrb[0].mxu1 %v3162_v54  ;;  %v4065_v54 = vld [vmem:[%s5368_s1 + $0x664] ss:$8 sps:$4 sm:$0xff]  }
  0x87   : > { %1970 = vmatmul.mubr.bf16.vlgmr.msra.gmra.mrb[0].mxu0 %v1744_v61  ;;  %1008 = vmatpush1.bf16.msra.mxu1 %v4018_v56  ;;  %v4060_v56 = vld [vmem:[%s5368_s1 + $0x260] ss:$8 sps:$4 sm:$0xff]   ;;  %v4071_v61 = vld [vmem:[%s5368_s1 + $0x674] ss:$8 sps:$4 sm:$0xff]  }
  0x88   : > { %2232 = vmatpush1.bf16.msra.mxu0 %v4027_v58  ;;  %1009 = vmatprep.subr.bf16.mxu1 %v4032_v50  ;;  %v4068_v58 = vld [vmem:[%s5368_s1 + $0x274] ss:$8 sps:$4 sm:$0xff]   ;;  %v4066_v50 = vld [vmem:[%s5368_s1 + $0x270] ss:$8 sps:$4 sm:$0xff]  }
  0x89   : > { %2233 = vmatprep.subr.bf16.mxu0 %v4035_v62  ;;  %708 = vmatprep.mubr.bf16.mxu1 %v3165_v9  ;;  %v4069_v62 = vld [vmem:[%s5368_s1 + $0x670] ss:$8 sps:$4 sm:$0xff]   ;;  %v4086_v9 = vld [vmem:[%s5368_s1 + $0x2a4] ss:$8 sps:$4 sm:$0xff]  }
  0x8a   : > { %1979 = vmatprep.mubr.bf16.mxu0 %v1772_v34  ;;  %v4113_v34 = vld [vmem:[%s5368_s1 + $0x6e0] ss:$8 sps:$4 sm:$0xff]  }
  0x8b   : > { %1010 = vmatpush1.bf16.msra.mxu1 %v4030_v63  ;;  %v4074_v63 = vld [vmem:[%s5368_s1 + $0x284] ss:$8 sps:$4 sm:$0xff]  }
  0x8c   : > { %2234 = vmatpush1.bf16.msra.mxu0 %v4033_v0  ;;  %1011 = vmatprep.subr.bf16.mxu1 %v4038_v8  ;;  %v4077_v0 = vld [vmem:[%s5368_s1 + $0x684] ss:$8 sps:$4 sm:$0xff]   ;;  %v4078_v8 = vld [vmem:[%s5368_s1 + $0x290] ss:$8 sps:$4 sm:$0xff]  }
  0x8d   : > { %2235 = vmatprep.subr.bf16.mxu0 %v4041_v51  ;;  %v4081_v51 = vld [vmem:[%s5368_s1 + $0x690] ss:$8 sps:$4 sm:$0xff]  }
  0x8e   : > { %709 = vmatmul.mubr.bf16.gmra.mrb[4].mxu1 %v3164_v17  ;;  %v4093_v17 = vld [vmem:[%s5368_s1 + $0x6b0] ss:$8 sps:$4 sm:$0xff]  }
  0x8f   : > { %1012 = vmatpush1.bf16.msra.mxu1 %v4036_v15  ;;  %1039 = vmatprep.mubr.bf16.mxu1 %v826_v33  ;;  %v4095_v15 = vld [vmem:[%s5368_s1 + $0x6b4] ss:$8 sps:$4 sm:$0xff]   ;;  %v4115_v33 = vld [vmem:[%s5368_s1 + $0x6e4] ss:$8 sps:$4 sm:$0xff]  }
  0x90   : > { %2236 = vmatpush1.bf16.msra.mxu0 %v4039_v16  ;;  %1013 = vmatprep.subr.bf16.mxu1 %v4044_v20  ;;  %v4090_v16 = vld [vmem:[%s5368_s1 + $0x2b0] ss:$8 sps:$4 sm:$0xff]   ;;  %v4101_v20 = vld [vmem:[%s5368_s1 + $0x6c4] ss:$8 sps:$4 sm:$0xff]  }
  0x91   : > { %2237 = vmatprep.subr.bf16.mxu0 %v4047_v26  ;;  %1980 = vmatmul.mubr.bf16.gmra.mrb[4].mxu0 %v1764_v35  ;;  %v4102_v26 = vld [vmem:[%s5368_s1 + $0x2d0] ss:$8 sps:$4 sm:$0xff]   ;;  %v3235_v35 = vcombine.high %v747_v29, %v747_v29 }
  0x92   : > { %2263 = vmatprep.mubr.bf16.mxu0 %v3520_v41  ;;  %v835_v41 = vshrl.u32 %v4625_v36, 16  ;;  %v4131_v36 = vld [vmem:[%s5368_s1 + $0x704] ss:$8 sps:$4 sm:$0xff]  }
  0x93   : > { %1014 = vmatpush1.bf16.msra.mxu1 %v4042_v32  ;;  %v4111_v32 = vld [vmem:[%s5368_s1 + $0x2e4] ss:$8 sps:$4 sm:$0xff]  }
  0x94   : > { %2238 = vmatpush1.bf16.msra.mxu0 %v4045_v5  ;;  %1015 = vmatprep.subr.bf16.mxu1 %v4050_v39  ;;  %v4109_v5 = vld [vmem:[%s5368_s1 + $0x2e0] ss:$8 sps:$4 sm:$0xff]   ;;  %v4120_v39 = vld [vmem:[%s5368_s1 + $0x2f4] ss:$8 sps:$4 sm:$0xff]  }
  0x95   : > { %2239 = vmatprep.subr.bf16.mxu0 %v4053_v40  ;;  %v4123_v40 = vld [vmem:[%s5368_s1 + $0x6f4] ss:$8 sps:$4 sm:$0xff]  }
  0x97   : > { %1016 = vmatpush1.bf16.msra.mxu1 %v4048_v42  ;;  %v4118_v42 = vld [vmem:[%s5368_s1 + $0x2f0] ss:$8 sps:$4 sm:$0xff]  }
  0x98   : > { %2240 = vmatpush1.bf16.msra.mxu0 %v4051_v43  ;;  %1017 = vmatprep.subr.bf16.mxu1 %v4056_v44  ;;  %v4121_v43 = vld [vmem:[%s5368_s1 + $0x6f0] ss:$8 sps:$4 sm:$0xff]   ;;  %v839_v44 = vshll.u32 %v3235_v35, 16 }
  0x99   : > { %2241 = vmatprep.subr.bf16.mxu0 %v4059_v45  ;;  %v4126_v45 = vld [vmem:[%s5368_s1 + $0x304] ss:$8 sps:$4 sm:$0xff]   ;;  %v4183_v35 = vld [vmem:[%s5368_s1 + $0x790] ss:$8 sps:$4 sm:$0xff]  }
  0x9b   : > { %1018 = vmatpush1.bf16.msra.mxu1 %v4054_v46  ;;  %v3234_v46 = vcombine.low %v747_v29, %v747_v29  ;;  %v4174_v29 = vld [vmem:[%s5368_s1 + $0x380] ss:$8 sps:$4 sm:$0xff]  }
  0x9c   : > { %2242 = vmatpush1.bf16.msra.mxu0 %v4057_v49  ;;  %1019 = vmatprep.subr.bf16.mxu1 %v4062_v53  ;;  %v4124_v49 = vld [vmem:[%s5368_s1 + $0x300] ss:$8 sps:$4 sm:$0xff]  }
  0x9d   : > { %2243 = vmatprep.subr.bf16.mxu0 %v4065_v54  ;;  %v4129_v53 = vld [vmem:[%s5368_s1 + $0x700] ss:$8 sps:$4 sm:$0xff]   ;;  %v837_v54 = vor.u32 %v835_v41, %v4850_v19 }
  0x9e   : > { %v4186_v41 = vld [vmem:[%s5368_s1 + $0x3a0] ss:$8 sps:$4 sm:$0xff]  }
  0x9f   : > { %1020 = vmatpush1.bf16.msra.mxu1 %v4060_v56  ;;  %v841_v56 = vrot.slane %v839_v44, 1  ;;  %v4197_v44 = vld [vmem:[%s5368_s1 + $0x7b4] ss:$8 sps:$4 sm:$0xff]  }
  0xa0   : > { %2244 = vmatpush1.bf16.msra.mxu0 %v4063_v57  ;;  %1021 = vmatprep.subr.bf16.mxu1 %v4068_v58  ;;  %v5031_v57 = vld [vmem:[%s4464_s30 + $0x20] sm:$0xff]  ;;  %v4134_v58 = vld [vmem:[%s5368_s1 + $0x314] ss:$8 sps:$4 sm:$0xff]  }
  0xa1   : > { %2245 = vmatprep.subr.bf16.mxu0 %v4071_v61  ;;  %v827_v61 = vshrl.u32 %v4629_v37, 16  ;;  %v3522_v19 = vcombine.high %v4614_v31, %v5031_v57  ;;  %v4132_v37 = vld [vmem:[%s5368_s1 + $0x310] ss:$8 sps:$4 sm:$0xff]  }
  0xa3   : > { %1022 = vmatpush1.bf16.msra.mxu1 %v4066_v50  ;;  %v831_v50 = vshll.u32 %v3234_v46, 16  ;;  %v4195_v46 = vld [vmem:[%s5368_s1 + $0x7b0] ss:$8 sps:$4 sm:$0xff]  }
  0xa4   : > { %2246 = vmatpush1.bf16.msra.mxu0 %v4069_v62  ;;  %1023 = vmatprep.subr.bf16.mxu1 %v4074_v63  ;;  %v4137_v62 = vld [vmem:[%s5368_s1 + $0x714] ss:$8 sps:$4 sm:$0xff]   ;;  %v4135_v63 = vld [vmem:[%s5368_s1 + $0x710] ss:$8 sps:$4 sm:$0xff]  }
  0xa5   : > { %2247 = vmatprep.subr.bf16.mxu0 %v4077_v0  ;;  %v842_v0 = vsel %vm802_vm0, %v837_v54, %v841_v56  ;;  %v833_v48 = vrot.slane %v831_v50, 1  ;;  %v4201_v54 = vld [vmem:[%s5368_s1 + $0x7c0] ss:$8 sps:$4 sm:$0xff]   ;;  %v4206_v56 = vld [vmem:[%s5368_s1 + $0x3d4] ss:$8 sps:$4 sm:$0xff]  }
  0xa6   : > { %v4207_v50 = vld [vmem:[%s5368_s1 + $0x7d0] ss:$8 sps:$4 sm:$0xff]  }
  0xa7   : > { %1024 = vmatpush1.bf16.msra.mxu1 %v4072_v1  ;;  %v829_v1 = vor.u32 %v827_v61, %v4650_v47  ;;  %v3521_v47 = vcombine.low %v4614_v31, %v5031_v57  ;;  %v4144_v31 = vld [vmem:[%s5368_s1 + $0x330] ss:$8 sps:$4 sm:$0xff]  }
  0xa8   : > { %2248 = vmatpush1.bf16.msra.mxu0 %v4075_v4  ;;  %1025 = vmatprep.subr.bf16.mxu1 %v4080_v6  ;;  %v4141_v4 = vld [vmem:[%s5368_s1 + $0x720] ss:$8 sps:$4 sm:$0xff]   ;;  %v4146_v6 = vld [vmem:[%s5368_s1 + $0x334] ss:$8 sps:$4 sm:$0xff]   ;;  %v4204_v61 = vld [vmem:[%s5368_s1 + $0x3d0] ss:$8 sps:$4 sm:$0xff]  }
  0xa9   : > { %2249 = vmatprep.subr.bf16.mxu0 %v4083_v7  ;;  %v834_v7 = vsel %vm802_vm0, %v829_v1, %v833_v48  ;;  %v4225_v1 = vld [vmem:[%s5368_s1 + $0x7f4] ss:$8 sps:$4 sm:$0xff]  }
  0xaa   : > { %v4280_v48 = vld [vmem:[%s4464_s30 + $0xc] ss:$8 sps:$4 sm:$0xff]  }
  0xab   : > { %1026 = vmatpush1.bf16.msra.mxu1 %v4078_v8  ;;  %v4149_v8 = vld [vmem:[%s5368_s1 + $0x734] ss:$8 sps:$4 sm:$0xff]  }
  0xac   : > { %2250 = vmatpush1.bf16.msra.mxu0 %v4081_v51  ;;  %1027 = vmatprep.subr.bf16.mxu1 %v4086_v9  ;;  %v4147_v51 = vld [vmem:[%s5368_s1 + $0x730] ss:$8 sps:$4 sm:$0xff]   ;;  %v4152_v9 = vld [vmem:[%s5368_s1 + $0x344] ss:$8 sps:$4 sm:$0xff]  }
  0xad   : > { %2251 = vmatprep.subr.bf16.mxu0 %v4089_v10  ;;  %v4155_v10 = vld [vmem:[%s5368_s1 + $0x744] ss:$8 sps:$4 sm:$0xff]  }
  0xaf   : > { %1028 = vmatpush1.bf16.msra.mxu1 %v4084_v11  ;;  %v4150_v11 = vld [vmem:[%s5368_s1 + $0x340] ss:$8 sps:$4 sm:$0xff]  }
  0xb0   : > { %2252 = vmatpush1.bf16.msra.mxu0 %v4087_v13  ;;  %1029 = vmatprep.subr.bf16.mxu1 %v4092_v14  ;;  %v4153_v13 = vld [vmem:[%s5368_s1 + $0x740] ss:$8 sps:$4 sm:$0xff]   ;;  %v4156_v14 = vld [vmem:[%s5368_s1 + $0x350] ss:$8 sps:$4 sm:$0xff]  }
  0xb1   : > { %2253 = vmatprep.subr.bf16.mxu0 %v4095_v15  ;;  %v4159_v15 = vld [vmem:[%s5368_s1 + $0x750] ss:$8 sps:$4 sm:$0xff]  }
  0xb3   : > { %1030 = vmatpush1.bf16.msra.mxu1 %v4090_v16  ;;  %v4164_v16 = vld [vmem:[%s5368_s1 + $0x364] ss:$8 sps:$4 sm:$0xff]  }
  0xb4   : > { %2254 = vmatpush1.bf16.msra.mxu0 %v4093_v17  ;;  %1031 = vmatprep.subr.bf16.mxu1 %v4098_v18  ;;  %v4167_v17 = vld [vmem:[%s5368_s1 + $0x764] ss:$8 sps:$4 sm:$0xff]   ;;  %v4162_v18 = vld [vmem:[%s5368_s1 + $0x360] ss:$8 sps:$4 sm:$0xff]  }
  0xb5   : > { %2255 = vmatprep.subr.bf16.mxu0 %v4101_v20  ;;  %v4165_v20 = vld [vmem:[%s5368_s1 + $0x760] ss:$8 sps:$4 sm:$0xff]  }
  0xb7   : > { %1032 = vmatpush1.bf16.msra.mxu1 %v4096_v21  ;;  %v4170_v21 = vld [vmem:[%s5368_s1 + $0x374] ss:$8 sps:$4 sm:$0xff]  }
  0xb8   : > { %2256 = vmatpush1.bf16.msra.mxu0 %v4099_v23  ;;  %1033 = vmatprep.subr.bf16.mxu1 %v4104_v24  ;;  %v4173_v23 = vld [vmem:[%s5368_s1 + $0x774] ss:$8 sps:$4 sm:$0xff]   ;;  %v4168_v24 = vld [vmem:[%s5368_s1 + $0x370] ss:$8 sps:$4 sm:$0xff]  }
  0xb9   : > { %2257 = vmatprep.subr.bf16.mxu0 %v4107_v25  ;;  %v4171_v25 = vld [vmem:[%s5368_s1 + $0x770] ss:$8 sps:$4 sm:$0xff]  }
  0xbb   : > { %1034 = vmatpush1.bf16.msra.mxu1 %v4102_v26  ;;  %v4176_v26 = vld [vmem:[%s5368_s1 + $0x384] ss:$8 sps:$4 sm:$0xff]  }
  0xbc   : > { %2258 = vmatpush1.bf16.msra.mxu0 %v4105_v28  ;;  %1035 = vmatprep.subr.bf16.mxu1 %v4111_v32  ;;  %v4179_v28 = vld [vmem:[%s5368_s1 + $0x784] ss:$8 sps:$4 sm:$0xff]   ;;  %v4177_v32 = vld [vmem:[%s5368_s1 + $0x780] ss:$8 sps:$4 sm:$0xff]  }
  0xbd   : > { %2259 = vmatprep.subr.bf16.mxu0 %v4115_v33  ;;  %v4182_v33 = vld [vmem:[%s5368_s1 + $0x394] ss:$8 sps:$4 sm:$0xff]  }
  0xbf   : > { %1036 = vmatpush1.bf16.msra.mxu1 %v4109_v5  ;;  %v4185_v5 = vld [vmem:[%s5368_s1 + $0x794] ss:$8 sps:$4 sm:$0xff]  }
  0xc0   : > { %2260 = vmatpush1.bf16.msra.mxu0 %v4113_v34  ;;  %1037 = vmatprep.subr.bf16.mxu1 %v4120_v39  ;;  %v4180_v34 = vld [vmem:[%s5368_s1 + $0x390] ss:$8 sps:$4 sm:$0xff]   ;;  %v4188_v39 = vld [vmem:[%s5368_s1 + $0x3a4] ss:$8 sps:$4 sm:$0xff]  }
  0xc1   : > { %2261 = vmatprep.subr.bf16.mxu0 %v4123_v40  ;;  %v4191_v40 = vld [vmem:[%s5368_s1 + $0x7a4] ss:$8 sps:$4 sm:$0xff]  }
  0xc3   : > { %1038 = vmatpush1.bf16.msra.mxu1 %v4118_v42  ;;  %v4189_v42 = vld [vmem:[%s5368_s1 + $0x7a0] ss:$8 sps:$4 sm:$0xff]  }
  0xc4   : > { %2262 = vmatpush1.bf16.msra.mxu0 %v4121_v43  ;;  %1302 = vmatprep.subr.bf16.mxu1 %v4126_v45  ;;  %v4194_v43 = vld [vmem:[%s5368_s1 + $0x3b4] ss:$8 sps:$4 sm:$0xff]   ;;  %v4192_v45 = vld [vmem:[%s5368_s1 + $0x3b0] ss:$8 sps:$4 sm:$0xff]  }
  0xc5   : > { %2525 = vmatprep.subr.bf16.mxu0 %v4131_v36  ;;  %v4200_v36 = vld [vmem:[%s5368_s1 + $0x3c4] ss:$8 sps:$4 sm:$0xff]  }
  0xc6   : > { %1040 = vmatmul.mubr.bf16.vlgmr.msra.gmra.mrb[0].mxu1 %v4668_v55  ;;  %v4140_v55 = vld [vmem:[%s5368_s1 + $0x324] ss:$8 sps:$4 sm:$0xff]  }
  0xc7   : > { %2264 = vmatmul.mubr.bf16.vlgmr.msra.gmra.mrb[0].mxu0 %v3519_v38  ;;  %1303 = vmatpush1.bf16.msra.mxu1 %v4124_v49  ;;  %v4138_v38 = vld [vmem:[%s5368_s1 + $0x320] ss:$8 sps:$4 sm:$0xff]   ;;  %v4203_v49 = vld [vmem:[%s5368_s1 + $0x7c4] ss:$8 sps:$4 sm:$0xff]  }
  0xc8   : > { %2526 = vmatpush1.bf16.msra.mxu0 %v4129_v53  ;;  %1304 = vmatprep.subr.bf16.mxu1 %v4134_v58  ;;  %v4198_v53 = vld [vmem:[%s5368_s1 + $0x3c0] ss:$8 sps:$4 sm:$0xff]   ;;  %v4209_v58 = vld [vmem:[%s5368_s1 + $0x7d4] ss:$8 sps:$4 sm:$0xff]  }
  0xc9   : > { %2527 = vmatprep.subr.bf16.mxu0 %v4137_v62  ;;  %1049 = vmatprep.mubr.bf16.mxu1 %v842_v0  ;;  %v4215_v62 = vld [vmem:[%s5368_s1 + $0x3e4] ss:$8 sps:$4 sm:$0xff]   ;;  %v5218_v0 = vld [vmem:[%s4464_s30 + $0x18] sm:$0xff] }
  0xca   : > { %2273 = vmatprep.mubr.bf16.mxu0 %v3522_v19  ;;  %v4219_v19 = vld [vmem:[%s5368_s1 + $0x7e4] ss:$8 sps:$4 sm:$0xff]  }
  0xcb   : > { %1305 = vmatpush1.bf16.msra.mxu1 %v4132_v37  ;;  %v4213_v37 = vld [vmem:[%s5368_s1 + $0x3e0] ss:$8 sps:$4 sm:$0xff]  }
  0xcc   : > { %2528 = vmatpush1.bf16.msra.mxu0 %v4135_v63  ;;  %1306 = vmatprep.subr.bf16.mxu1 %v4140_v55  ;;  %v4217_v63 = vld [vmem:[%s5368_s1 + $0x7e0] ss:$8 sps:$4 sm:$0xff]   ;;  %v4222_v55 = vld [vmem:[%s5368_s1 + $0x3f4] ss:$8 sps:$4 sm:$0xff]  }
  0xcd   : > { %2529 = vmatprep.subr.bf16.mxu0 %v4143_v30  ;;  %v3662_v30 = vcombine.high %v5218_v0, %v5031_v57 }
  0xce   : > { %1050 = vmatmul.mubr.bf16.gmra.mrb[4].mxu1 %v834_v7  ;;  %v3558_v7 = vld [vmem:[%s4464_s30 + $0x50] sm:$0xff] }
  0xcf   : > { %2274 = vmatmul.mubr.bf16.gmra.mrb[4].mxu0 %v3521_v47  ;;  %1307 = vmatpush1.bf16.msra.mxu1 %v4138_v38  ;;  %v4220_v38 = vld [vmem:[%s5368_s1 + $0x3f0] ss:$8 sps:$4 sm:$0xff]   ;;  %v5236_v47 = vld [vmem:[%s4464_s30 + $0x28] sm:$0x11]  ;;  %v3593_v52 = vcombine.low %v4824_v3, %v3558_v7 }
  0xd0   : > { %2530 = vmatpush1.bf16.msra.mxu0 %v4141_v4  ;;  %1308 = vmatprep.subr.bf16.mxu1 %v4146_v6  ;;  %v4223_v4 = vld [vmem:[%s5368_s1 + $0x7f0] ss:$8 sps:$4 sm:$0xff]   ;;  %v4230_v6 = vld [vmem:[%s5368_s1 + $0x804] ss:$8 sps:$4 sm:$0xff]  }
  0xd1   : > { %2531 = vmatprep.subr.bf16.mxu0 %v4149_v8  ;;  %1334 = vmatprep.mubr.bf16.mxu1 %v4680_v59  ;;  %v4158_v59 = vld [vmem:[%s5368_s1 + $0x354] ss:$8 sps:$4 sm:$0xff]   ;;  %v2676_v8 = vshll.u32 %v4280_v48, 16 }
  0xd2   : > { %2557 = vmatprep.mubr.bf16.mxu0 %v3592_v12  ;;  %v4161_v12 = vld [vmem:[%s5368_s1 + $0x754] ss:$8 sps:$4 sm:$0xff]  }
  0xd3   : > { %1309 = vmatpush1.bf16.msra.mxu1 %v4144_v31  ;;  %v2681_v31 = vshll.u32 %v3662_v30, 16 }
  0xd4   : > { %2532 = vmatpush1.bf16.msra.mxu0 %v4147_v51  ;;  %1310 = vmatprep.subr.bf16.mxu1 %v4152_v9  ;;  %v3664_v51 = vcombine.high %v5236_v47, %v5236_v47  ;;  %v4228_v9 = vld [vmem:[%s5368_s1 + $0x800] ss:$8 sps:$4 sm:$0xff]  }
  0xd5   : > { %2533 = vmatprep.subr.bf16.mxu0 %v4155_v10  ;;  %v4233_v10 = vld [vmem:[%s5368_s1 + $0x814] ss:$8 sps:$4 sm:$0xff]  }
  0xd7   : > { %1311 = vmatpush1.bf16.msra.mxu1 %v4150_v11  ;;  %v3594_v11 = vcombine.high %v4824_v3, %v3558_v7 }
  0xd8   : > { %2534 = vmatpush1.bf16.msra.mxu0 %v4153_v13  ;;  %1312 = vmatprep.subr.bf16.mxu1 %v4158_v59  ;;  %v2674_v13 = vshrl.u32 %v4280_v48, 16  ;;  %v2678_v59 = vrot.slane %v2676_v8, 1 }
  0xd9   : > { %2535 = vmatprep.subr.bf16.mxu0 %v4161_v12  ;;  %v2683_v12 = vrot.slane %v2681_v31, 1 }
  0xda   : > { %v2679_v2 = vor.u32 %v2678_v59, %v2674_v13 }
  0xdb   : > { %1313 = vmatpush1.bf16.msra.mxu1 %v4156_v14  ;;  %v2693_v14 = vshrl.u32 %v3662_v30, 16 }
  0xdc   : > { %2536 = vmatpush1.bf16.msra.mxu0 %v4159_v15  ;;  %1314 = vmatprep.subr.bf16.mxu1 %v4164_v16  ;;  %v2697_v15 = vshll.u32 %v3664_v51, 16  ;;  %v4231_v16 = vld [vmem:[%s5368_s1 + $0x810] ss:$8 sps:$4 sm:$0xff]   ;;  %v2684_v3 = vsel %vm802_vm0, %v2679_v2, %v2683_v12 }
  0xdd   : > { %2537 = vmatprep.subr.bf16.mxu0 %v4167_v17  ;;  %v4285_v17 = vld [vmem:[%s4464_s30 + $0x74] ss:$8 sps:$4 sm:$0xff]  }
  0xdf   : > { %1315 = vmatpush1.bf16.msra.mxu1 %v4162_v18  ;;  %v2699_v18 = vrot.slane %v2697_v15, 1 }
  0xe0   : > { %2538 = vmatpush1.bf16.msra.mxu0 %v4165_v20  ;;  %1316 = vmatprep.subr.bf16.mxu1 %v4170_v21  ;;  %v4236_v20 = vld [vmem:[%s5368_s1 + $0x820] ss:$8 sps:$4 sm:$0xff]   ;;  %v4241_v21 = vld [vmem:[%s5368_s1 + $0x834] ss:$8 sps:$4 sm:$0xff]  }
  0xe1   : > { %2539 = vmatprep.subr.bf16.mxu0 %v4173_v23 }
  0xe3   : > { %1317 = vmatpush1.bf16.msra.mxu1 %v4168_v24  ;;  %v4239_v24 = vld [vmem:[%s5368_s1 + $0x830] ss:$8 sps:$4 sm:$0xff]  }
  0xe4   : > { %2540 = vmatpush1.bf16.msra.mxu0 %v4171_v25  ;;  %1318 = vmatprep.subr.bf16.mxu1 %v4176_v26  ;;  %v4244_v25 = vld [vmem:[%s5368_s1 + $0x844] ss:$8 sps:$4 sm:$0xff]   ;;  %v4247_v26 = vld [vmem:[%s5368_s1 + $0x854] ss:$8 sps:$4 sm:$0xff]  }
  0xe5   : > { %2541 = vmatprep.subr.bf16.mxu0 %v4179_v28  ;;  %v4245_v28 = vld [vmem:[%s5368_s1 + $0x850] ss:$8 sps:$4 sm:$0xff]  }
  0xe7   : > { %1319 = vmatpush1.bf16.msra.mxu1 %v4174_v29  ;;  %v4250_v29 = vld [vmem:[%s5368_s1 + $0x864] ss:$8 sps:$4 sm:$0xff]  }
  0xe8   : > { %2542 = vmatpush1.bf16.msra.mxu0 %v4177_v32  ;;  %1320 = vmatprep.subr.bf16.mxu1 %v4182_v33  ;;  %v4248_v32 = vld [vmem:[%s5368_s1 + $0x860] ss:$8 sps:$4 sm:$0xff]   ;;  %v4253_v33 = vld [vmem:[%s5368_s1 + $0x874] ss:$8 sps:$4 sm:$0xff]  }
  0xe9   : > { %2543 = vmatprep.subr.bf16.mxu0 %v4185_v5  ;;  %v4251_v5 = vld [vmem:[%s5368_s1 + $0x870] ss:$8 sps:$4 sm:$0xff]  }
  0xeb   : > { %1321 = vmatpush1.bf16.msra.mxu1 %v4180_v34  ;;  %v4256_v34 = vld [vmem:[%s5368_s1 + $0x884] ss:$8 sps:$4 sm:$0xff]  }
  0xec   : > { %2544 = vmatpush1.bf16.msra.mxu0 %v4183_v35  ;;  %1322 = vmatprep.subr.bf16.mxu1 %v4188_v39  ;;  %v4254_v35 = vld [vmem:[%s5368_s1 + $0x880] ss:$8 sps:$4 sm:$0xff]   ;;  %v4259_v39 = vld [vmem:[%s5368_s1 + $0x894] ss:$8 sps:$4 sm:$0xff]  }
  0xed   : > { %2545 = vmatprep.subr.bf16.mxu0 %v4191_v40  ;;  %v4257_v40 = vld [vmem:[%s5368_s1 + $0x890] ss:$8 sps:$4 sm:$0xff]  }
  0xef   : > { %1323 = vmatpush1.bf16.msra.mxu1 %v4186_v41  ;;  %v4262_v41 = vld [vmem:[%s5368_s1 + $0x8a4] ss:$8 sps:$4 sm:$0xff]  }
  0xf0   : > { %2546 = vmatpush1.bf16.msra.mxu0 %v4189_v42  ;;  %1324 = vmatprep.subr.bf16.mxu1 %v4194_v43  ;;  %v4260_v42 = vld [vmem:[%s5368_s1 + $0x8a0] ss:$8 sps:$4 sm:$0xff]   ;;  %v4265_v43 = vld [vmem:[%s5368_s1 + $0x8b4] ss:$8 sps:$4 sm:$0xff]  }
  0xf1   : > { %2547 = vmatprep.subr.bf16.mxu0 %v4197_v44  ;;  %v4263_v44 = vld [vmem:[%s5368_s1 + $0x8b0] ss:$8 sps:$4 sm:$0xff]  }
  0xf3   : > { %1325 = vmatpush1.bf16.msra.mxu1 %v4192_v45  ;;  %v4268_v45 = vld [vmem:[%s5368_s1 + $0x8c4] ss:$8 sps:$4 sm:$0xff]  }
  0xf4   : > { %2548 = vmatpush1.bf16.msra.mxu0 %v4195_v46  ;;  %1326 = vmatprep.subr.bf16.mxu1 %v4200_v36  ;;  %v4266_v46 = vld [vmem:[%s5368_s1 + $0x8c0] ss:$8 sps:$4 sm:$0xff]  }
  0xf5   : > { %2549 = vmatprep.subr.bf16.mxu0 %v4203_v49  ;;  %v4278_v36 = vld [vmem:[%s4464_s30 + $0x8] ss:$8 sps:$4 sm:$0xff]   ;;  %v3661_v49 = vcombine.low %v5218_v0, %v5031_v57  ;;  %v4274_v57 = vld [vmem:[%s5368_s1 + $0x8e4] ss:$8 sps:$4 sm:$0xff]  }
  0xf7   : > { %1327 = vmatpush1.bf16.msra.mxu1 %v4198_v53  ;;  %v4271_v53 = vld [vmem:[%s5368_s1 + $0x8d4] ss:$8 sps:$4 sm:$0xff]   ;;  %v2685_v0 = vshrl.u32 %v3661_v49, 16 }
  0xf8   : > { %2550 = vmatpush1.bf16.msra.mxu0 %v4201_v54  ;;  %1328 = vmatprep.subr.bf16.mxu1 %v4206_v56  ;;  %v4269_v54 = vld [vmem:[%s5368_s1 + $0x8d0] ss:$8 sps:$4 sm:$0xff]   ;;  %v3663_v56 = vcombine.low %v5236_v47, %v5236_v47 }
  0xf9   : > { %2551 = vmatprep.subr.bf16.mxu0 %v4209_v58  ;;  %v2664_v58 = vshll.u32 %v4278_v36, 16 }
  0xfb   : > { %1329 = vmatpush1.bf16.msra.mxu1 %v4204_v61  ;;  %v2669_v61 = vshll.u32 %v3661_v49, 16 }
  0xfc   : > { %2552 = vmatpush1.bf16.msra.mxu0 %v4207_v50  ;;  %1330 = vmatprep.subr.bf16.mxu1 %v4215_v62  ;;  %v2662_v50 = vshrl.u32 %v4278_v36, 16  ;;  %v4272_v62 = vld [vmem:[%s5368_s1 + $0x8e0] ss:$8 sps:$4 sm:$0xff]  }
  0xfd   : > { %2553 = vmatprep.subr.bf16.mxu0 %v4219_v19  ;;  %v2689_v19 = vshll.u32 %v3663_v56, 16 }
  0xff   : > { %1331 = vmatpush1.bf16.msra.mxu1 %v4213_v37  ;;  %v2666_v37 = vrot.slane %v2664_v58, 1 }
 0x100   : > { %2554 = vmatpush1.bf16.msra.mxu0 %v4217_v63  ;;  %1332 = vmatprep.subr.bf16.mxu1 %v4222_v55  ;;  %v2671_v63 = vrot.slane %v2669_v61, 1  ;;  %v4277_v55 = vld [vmem:[%s5368_s1 + $0x8f4] ss:$8 sps:$4 sm:$0xff]  }
 0x101   : > { %2555 = vmatprep.subr.bf16.mxu0 %v4225_v1  ;;  %v4275_v1 = vld [vmem:[%s5368_s1 + $0x8f0] ss:$8 sps:$4 sm:$0xff]   ;;  %v2667_v48 = vor.u32 %v2666_v37, %v2662_v50 }
 0x102   : > { %v2687_v30 = vor.u32 %v2685_v0, %v2671_v63 }
 0x103   : > { %1333 = vmatpush1.bf16.msra.mxu1 %v4220_v38  ;;  %v2691_v38 = vrot.slane %v2689_v19, 1 }
 0x104   : > { %2556 = vmatpush1.bf16.msra.mxu0 %v4223_v4  ;;  %3709 = vmatprep.subr.bf16.mxu1 %v4230_v6  ;;  %v2672_v4 = vsel %vm802_vm0, %v2667_v48, %v2671_v63 }
 0x105   : > { %2865 = vmatprep.subr.bf16.mxu0 %v4230_v6  ;;  %v2692_v47 = vsel %vm802_vm0, %v2687_v30, %v2691_v38 }
 0x106   : > { %1335 = vmatmul.mubr.bf16.vlgmr.msra.gmra.mrb[0].mxu1 %v4747_v22  ;;  %v4238_v22 = vld [vmem:[%s5368_s1 + $0x824] ss:$8 sps:$4 sm:$0xff]  }
 0x107   : > { %2558 = vmatmul.mubr.bf16.vlgmr.msra.gmra.mrb[0].mxu0 %v3591_v60  ;;  %3725 = vmatpush1.bf16.msra.mxu1 %v4228_v9  ;;  %v2695_v60 = vor.u32 %v2693_v14, %v2683_v12 }
 0x108   : > { %2866 = vmatpush1.bf16.msra.mxu0 %v4228_v9  ;;  %3710 = vmatprep.subr.bf16.mxu1 %v4233_v10 }
 0x109   : > { %2867 = vmatprep.subr.bf16.mxu0 %v4233_v10  ;;  %1344 = vmatprep.mubr.bf16.mxu1 %v4285_v17  ;;  %v2700_v23 = vsel %vm802_vm0, %v2695_v60, %v2699_v18  ;;  %v2942_v18 = vld [vmem:[%s5369_s2] ss:$2 sm:$0x3] }
 0x10a   : > { %2567 = vmatprep.mubr.bf16.mxu0 %v3594_v11 }
 0x10b   : > { %3726 = vmatpush1.bf16.msra.mxu1 %v4231_v16 }
 0x10c   : > { %2868 = vmatpush1.bf16.msra.mxu0 %v4231_v16  ;;  %3711 = vmatprep.subr.bf16.mxu1 %v4238_v22 }
 0x10d   : > { %2869 = vmatprep.subr.bf16.mxu0 %v4238_v22 }
 0x10e   : > { %1345 = vmatmul.mubr.bf16.gmra.mrb[4].mxu1 %v4762_v27  ;;  %v4242_v27 = vld [vmem:[%s5368_s1 + $0x840] ss:$8 sps:$4 sm:$0xff]  }
 0x10f   : > { %2568 = vmatmul.mubr.bf16.gmra.mrb[4].mxu0 %v3593_v52  ;;  %3727 = vmatpush1.bf16.msra.mxu1 %v4236_v20  ;;  %v2954_v52 = vlaneseq }
 0x110   : > { %2870 = vmatpush1.bf16.msra.mxu0 %v4236_v20  ;;  %3712 = vmatprep.subr.bf16.mxu1 %v4241_v21 }
 0x111   : > { %2871 = vmatprep.subr.bf16.mxu0 %v4241_v21  ;;  %2897 = vmatprep.mubr.bf16.mxu0 %v2684_v3  ;;  %v2955_v2 = vshrl.u32 %v2954_v52, 7  ;;  %v3697_v21 = vld [vmem:[%s5369_s2 + $0x1] ss:$2 sm:$0x3] }
 0x112   : > { %2907 = vmatprep.mubr.bf16.mxu1 %v2700_v23 }
 0x113   : > { %3728 = vmatpush1.bf16.msra.mxu1 %v4239_v24  ;;  %v2956_v60 = vsub.s32 0, %v2955_v2  ;;  %v2960_v20 = vsub.s32 1, %v2955_v2 }
 0x114   : > { %2872 = vmatpush1.bf16.msra.mxu0 %v4239_v24  ;;  %3713 = vmatprep.subr.bf16.mxu1 %v4244_v25 }
 0x115   : > { %2873 = vmatprep.subr.bf16.mxu0 %v4244_v25  ;;  %v2957_v3 = vrot.slane %v2942_v18, %v2956_v60  ;;  %v2961_v25 = vrot.slane %v2942_v18, %v2960_v20 }
 0x117   : > { %3729 = vmatpush1.bf16.msra.mxu1 %v4242_v27 }
 0x118   : > { %2874 = vmatpush1.bf16.msra.mxu0 %v4242_v27  ;;  %3714 = vmatprep.subr.bf16.mxu1 %v4247_v26 }
 0x119   : > { %2875 = vmatprep.subr.bf16.mxu0 %v4247_v26  ;;  %v2976_v26 = vrot.slane %v3697_v21, %v2956_v60 }
 0x11b   : > { %3730 = vmatpush1.bf16.msra.mxu1 %v4245_v28 }
 0x11c   : > { %2876 = vmatpush1.bf16.msra.mxu0 %v4245_v28  ;;  %3715 = vmatprep.subr.bf16.mxu1 %v4250_v29 }
 0x11d   : > { %2877 = vmatprep.subr.bf16.mxu0 %v4250_v29 }
 0x11f   : > { %3731 = vmatpush1.bf16.msra.mxu1 %v4248_v32 }
 0x120   : > { %2878 = vmatpush1.bf16.msra.mxu0 %v4248_v32  ;;  %3716 = vmatprep.subr.bf16.mxu1 %v4253_v33 }
 0x121   : > { %2879 = vmatprep.subr.bf16.mxu0 %v4253_v33 }
 0x123   : > { %3732 = vmatpush1.bf16.msra.mxu1 %v4251_v5 }
 0x124   : > { %2880 = vmatpush1.bf16.msra.mxu0 %v4251_v5  ;;  %3717 = vmatprep.subr.bf16.mxu1 %v4256_v34  ;;  %v2980_v5 = vrot.slane %v3697_v21, %v2960_v20 }
 0x125   : > { %2881 = vmatprep.subr.bf16.mxu0 %v4256_v34 }
 0x127   : > { %3733 = vmatpush1.bf16.msra.mxu1 %v4254_v35 }
 0x128   : > { %2882 = vmatpush1.bf16.msra.mxu0 %v4254_v35  ;;  %3718 = vmatprep.subr.bf16.mxu1 %v4259_v39 }
 0x129   : > { %2883 = vmatprep.subr.bf16.mxu0 %v4259_v39 }
 0x12b   : > { %3734 = vmatpush1.bf16.msra.mxu1 %v4257_v40 }
 0x12c   : > { %2884 = vmatpush1.bf16.msra.mxu0 %v4257_v40  ;;  %3719 = vmatprep.subr.bf16.mxu1 %v4262_v41 }
 0x12d   : > { %2885 = vmatprep.subr.bf16.mxu0 %v4262_v41 }
 0x12f   : > { %3735 = vmatpush1.bf16.msra.mxu1 %v4260_v42 }
 0x130   : > { %2886 = vmatpush1.bf16.msra.mxu0 %v4260_v42  ;;  %3720 = vmatprep.subr.bf16.mxu1 %v4265_v43 }
 0x131   : > { %2887 = vmatprep.subr.bf16.mxu0 %v4265_v43 }
 0x133   : > { %3736 = vmatpush1.bf16.msra.mxu1 %v4263_v44 }
 0x134   : > { %2888 = vmatpush1.bf16.msra.mxu0 %v4263_v44  ;;  %3721 = vmatprep.subr.bf16.mxu1 %v4268_v45 }
 0x135   : > { %2889 = vmatprep.subr.bf16.mxu0 %v4268_v45 }
 0x137   : > { %3737 = vmatpush1.bf16.msra.mxu1 %v4266_v46 }
 0x138   : > { %2890 = vmatpush1.bf16.msra.mxu0 %v4266_v46  ;;  %3722 = vmatprep.subr.bf16.mxu1 %v4271_v53 }
 0x139   : > { %2891 = vmatprep.subr.bf16.mxu0 %v4271_v53 }
 0x13b   : > { %3738 = vmatpush1.bf16.msra.mxu1 %v4269_v54 }
 0x13c   : > { %2892 = vmatpush1.bf16.msra.mxu0 %v4269_v54  ;;  %3723 = vmatprep.subr.bf16.mxu1 %v4274_v57 }
 0x13d   : > { %2893 = vmatprep.subr.bf16.mxu0 %v4274_v57 }
 0x13f   : > { %3739 = vmatpush1.bf16.msra.mxu1 %v4272_v62 }
 0x140   : > { %2894 = vmatpush1.bf16.msra.mxu0 %v4272_v62  ;;  %3724 = vmatprep.subr.bf16.mxu1 %v4277_v55 }
 0x141   : > { %2895 = vmatprep.subr.bf16.mxu0 %v4277_v55 }
 0x143   : > { %3740 = vmatpush1.bf16.msra.mxu1 %v4275_v1 }
 0x144   : > { %2896 = vmatpush1.bf16.msra.mxu0 %v4275_v1 }
 0x146   : > { %2908 = vmatmul.mubr.bf16.vlgmr.msra.gmra.mrb[8].mxu1 %v2692_v47 }
 0x147   : > { %2898 = vmatmul.mubr.bf16.vlgmr.msra.gmra.mrb[0].mxu0 %v2672_v4 }
 0x1d9   : > { %v1336_v6 = vpop.f32.mrb[0].mxu1 }
 0x1da   : > { %v1338_v7 = vpop.f32.mrb[1].mxu1 }
 0x1db   : > { %v1340_v8 = vpop.f32.mrb[2].mxu1 }
 0x1dc   : > { %v1342_v31 = vpop.f32.mrb[3].mxu1 }
 0x1e1   : > { %v1346_v51 = vpop.f32.mrb[4].mxu1 }
 0x1e2   : > { %v2569_v9 = vpop.f32.mrb[4].mxu0  ;;  %v1348_v11 = vpop.f32.mrb[5].mxu1 }
 0x1e3   : > { %v3745_v10 = vadd.f32 %v2569_v9, %v1346_v51  ;;  %v2571_v13 = vpop.f32.mrb[5].mxu0  ;;  %v1350_v12 = vpop.f32.mrb[6].mxu1 }
 0x1e4   : > { %v3747_v59 = vadd.f32 %v2571_v13, %v1348_v11  ;;  %v2573_v14 = vpop.f32.mrb[6].mxu0  ;;  %v1352_v16 = vpop.f32.mrb[7].mxu1 }
 0x1e5   : > { %v3749_v15 = vadd.f32 %v2573_v14, %v1350_v12  ;;  %v2575_v22 = vpop.f32.mrb[7].mxu0 }
 0x1e6   : > { %v3751_v17 = vadd.f32 %v2575_v22, %v1352_v16 }
 0x219   : > { %v2909_v24 = vpop.f32.mrb[8].mxu1 }
 0x21a   : > { %v2899_v23 = vpop.f32.mrb[0].mxu0  ;;  %v3746_v28 = vadd.f32 %v3745_v10, %v2909_v24  ;;  %v2911_v32 = vpop.f32.mrb[9].mxu1 }
 0x21b   : > { %v3741_v27 = vadd.f32 %v2899_v23, %v1336_v6  ;;  %v2901_v29 = vpop.f32.mrb[1].mxu0  ;;  %v3748_v34 = vadd.f32 %v3747_v59, %v2911_v32  ;;  %v2913_v39 = vpop.f32.mrb[10].mxu1 }
 0x21c   : > { %v3742_v33 = vadd.f32 %v2901_v29, %v1338_v7  ;;  %v2903_v35 = vpop.f32.mrb[2].mxu0  ;;  %v2968_v41 = vmul.f32 %v3746_v28, %v2957_v3  ;;  %v3750_v43 = vadd.f32 %v3749_v15, %v2913_v39  ;;  %v2915_v45 = vpop.f32.mrb[11].mxu1 }
 0x21d   : > { %v2964_v40 = vmul.f32 %v3741_v27, %v2957_v3  ;;  %v3743_v42 = vadd.f32 %v2903_v35, %v1340_v8  ;;  %v2905_v44 = vpop.f32.mrb[3].mxu0  ;;  %v2969_v36 = vmul.f32 %v3748_v34, %v2961_v25  ;;  %v3752_v53 = vadd.f32 %v3751_v17, %v2915_v45 }
 0x21e   : > { %v2965_v46 = vmul.f32 %v3742_v33, %v2961_v25  ;;  %v3744_v49 = vadd.f32 %v2905_v44, %v1342_v31  ;;  %v2987_v56 = vadd.f32 %v2976_v26, %v2968_v41  ;;  %v2970_v61 = vmul.f32 %v3750_v43, %v2957_v3 }
 0x21f   : > { %v2983_v54 = vadd.f32 %v2976_v26, %v2964_v40  ;;  %v2966_v58 = vmul.f32 %v3743_v42, %v2957_v3  ;;  %v2988_v50 = vadd.f32 %v2980_v5, %v2969_v36  ;;  %v2971_v19 = vmul.f32 %v3752_v53, %v2961_v25 }
 0x220   : > { %v2984_v57 = vadd.f32 %v2980_v5, %v2965_v46  ;;  %v2967_v62 = vmul.f32 %v3744_v49, %v2961_v25  ;;  %v2995_v63 = vmax.f32 %v2987_v56, 0.0  ;;  %v2989_v55 = vadd.f32 %v2976_v26, %v2970_v61 }
 0x221   : > { %v2991_v37 = vmax.f32 %v2983_v54, 0.0  ;;  %v2985_v0 = vadd.f32 %v2976_v26, %v2966_v58  ;;  %v2996_v48 = vmax.f32 %v2988_v50, 0.0  ;;  %v2990_v38 = vadd.f32 %v2980_v5, %v2971_v19 }
 0x222   : > { %v2992_v1 = vmax.f32 %v2984_v57, 0.0  ;;  %v2986_v30 = vadd.f32 %v2980_v5, %v2967_v62  ;;  %v2997_v47 = vmax.f32 %v2989_v55, 0.0 }
 0x223   : > { %v2993_v4 = vmax.f32 %v2985_v0, 0.0  ;;  %v3707_v7 = vpack.c.bf16 %v2996_v48, %v2995_v63  ;;  %v2998_v31 = vmax.f32 %v2990_v38, 0.0 }
 0x224   : > { %v3705_v6 = vpack.c.bf16 %v2992_v1, %v2991_v37  ;;  %v2994_v8 = vmax.f32 %v2986_v30, 0.0 }
 0x225   : > { %3025 = vst [vmem:[%s170_s20 + $0x10] sm:$0xff] %v3707_v7  ;;  %v3708_v9 = vpack.c.bf16 %v2998_v31, %v2997_v47 }
 0x226   : > { %3023 = vst [vmem:[%s170_s20] sm:$0xff] %v3705_v6  ;;  %v3706_v51 = vpack.c.bf16 %v2994_v8, %v2993_v4 }
 0x227   : > { %3026 = vst [vmem:[%s170_s20 + $0x18] sm:$0xff] %v3708_v9 }
 0x228   : > { %3024 = vst [vmem:[%s170_s20 + $0x8] sm:$0xff] %v3706_v51 }
 0x229 PF: > { %s13_s12 = sadd.s32 1, %s4292_s12  }
 0x22a   : > { %p10_p4 = scmp.ge.s32.totalorder %s13_s12, 4  }
 0x22c   :  { %12 = sbr.rel (!%p10_p4) target bundleno = 1 (0x1), region = 74 }

// kernel: encoder_stn_no_alpha.7
= control target key start
LH: loop header
LB: loop body
LE: loop exit
PB: predicated region body
PF: predicated region fallthrough
CT: control target
= control target key end

     0   :  { %16 = vsyncpa [#allocation3], 0  ;;  %v568_v28 = vlaneseq  ;;  %v4709_v36 = vmov 1966171168   ;;  %s5833_s0 = inlined_call_operand.vmem [shape: bf16[2,4096], index: 0, kind: input, shape index: {}]   ;;  %s5834_s1 = inlined_call_operand.vmem [shape: bf16[4096,128], index: 1, kind: input, shape index: {}]   ;;  %s5835_s2 = inlined_call_operand.vmem [shape: f32[1,128], index: 2, kind: input, shape index: {}]   ;;  %s5836_s3 = inlined_call_operand.vmem [shape: bf16[128,256], index: 3, kind: input, shape index: {}]   ;;  %s5837_s4 = inlined_call_operand.vmem [shape: f32[2,256], index: 4, kind: input, shape index: {}]   ;;  %s5838_s5 = inlined_call_operand.vmem [shape: bf16[256,256], index: 5, kind: input, shape index: {}]   ;;  %s5839_s6 = inlined_call_operand.vmem [shape: f32[2,256], index: 6, kind: input, shape index: {}]   ;;  %s5840_s7 = inlined_call_operand.vmem [shape: bf16[256,128], index: 7, kind: input, shape index: {}]   ;;  %s5841_s8 = inlined_call_operand.vmem [shape: f32[1,128], index: 8, kind: input, shape index: {}]   ;;  %s5842_s9 = inlined_call_operand.hbm [shape: f32[2,128], index: 9, kind: output, shape index: {0}]   ;;  %s5843_s10 = inlined_call_operand.hbm [shape: f32[2,128], index: 10, kind: output, shape index: {1}]  }
   0x1   :  { %v4313_v0 = vld [vmem:[%s5834_s1 + $0x40] sm:$0xff]   ;;  %v4317_v4 = vld [vmem:[%s5834_s1 + $0x48] sm:$0xff]   ;;  %v4321_v8 = vld [vmem:[%s5834_s1 + $0x50] sm:$0xff]   ;;  %v566_v37 = vunpack.c.l.s4 %v4709_v36 }
   0x2   :  { %v4314_v1 = vld [vmem:[%s5834_s1 + $0xc0] sm:$0xff]   ;;  %3935 = vmatprep.subr.bf16.mxu0 %v4313_v0  ;;  %v4318_v5 = vld [vmem:[%s5834_s1 + $0xc8] sm:$0xff]   ;;  %v4322_v9 = vld [vmem:[%s5834_s1 + $0xd0] sm:$0xff]   ;;  %v4864_v33 = vshrl.u32 %v568_v28, 7 }
   0x3   :  { %v4315_v2 = vld [vmem:[%s5834_s1] sm:$0xff]   ;;  %3957 = vmatprep.subr.bf16.mxu1 %v4314_v1  ;;  %v4319_v6 = vld [vmem:[%s5834_s1 + $0x8] sm:$0xff]   ;;  %v4323_v10 = vld [vmem:[%s5834_s1 + $0x10] sm:$0xff]   ;;  %v567_v40 = vunpack.c.0.s8 %v566_v37 }
   0x4   :  { %v4316_v3 = vld [vmem:[%s5834_s1 + $0x80] sm:$0xff]   ;;  %3936 = vmatpush3.bf16.msra.mxu0 %v4315_v2  ;;  %v4320_v7 = vld [vmem:[%s5834_s1 + $0x88] sm:$0xff]   ;;  %v4324_v11 = vld [vmem:[%s5834_s1 + $0x90] sm:$0xff]  }
   0x5   :  { %3958 = vmatpush3.bf16.msra.mxu1 %v4316_v3  ;;  %3937 = vmatprep.subr.bf16.mxu0 %v4317_v4  ;;  %v4325_v12 = vld [vmem:[%s5834_s1 + $0x58] sm:$0xff]   ;;  %v4329_v16 = vld [vmem:[%s5834_s1 + $0x60] sm:$0xff]   ;;  %v4333_v20 = vld [vmem:[%s5834_s1 + $0x68] sm:$0xff]   ;;  %v4876_v41 = vsub.s32 %v567_v40, %v4864_v33 }
   0x6   :  { %3959 = vmatprep.subr.bf16.mxu1 %v4318_v5  ;;  %v4326_v13 = vld [vmem:[%s5834_s1 + $0xd8] sm:$0xff]   ;;  %v4330_v17 = vld [vmem:[%s5834_s1 + $0xe0] sm:$0xff]   ;;  %v4334_v21 = vld [vmem:[%s5834_s1 + $0xe8] sm:$0xff]  }
   0x7   :  { %v4327_v14 = vld [vmem:[%s5834_s1 + $0x18] sm:$0xff]   ;;  %v4331_v18 = vld [vmem:[%s5834_s1 + $0x20] sm:$0xff]   ;;  %v4335_v22 = vld [vmem:[%s5834_s1 + $0x28] sm:$0xff]  }
   0x8   :  { %3938 = vmatpush3.bf16.msra.mxu0 %v4319_v6  ;;  %v4328_v15 = vld [vmem:[%s5834_s1 + $0x98] sm:$0xff]   ;;  %v4332_v19 = vld [vmem:[%s5834_s1 + $0xa0] sm:$0xff]   ;;  %v4336_v23 = vld [vmem:[%s5834_s1 + $0xa8] sm:$0xff]  }
   0x9   :  { %3960 = vmatpush3.bf16.msra.mxu1 %v4320_v7  ;;  %3939 = vmatprep.subr.bf16.mxu0 %v4321_v8  ;;  %v4337_v24 = vld [vmem:[%s5834_s1 + $0x70] sm:$0xff]   ;;  %v4341_v29 = vld [vmem:[%s5834_s1 + $0x78] sm:$0xff]   ;;  %v37_v34 = vld [vmem:[%s5833_s0] sm:$0xff] }
   0xa   :  { %3961 = vmatprep.subr.bf16.mxu1 %v4322_v9  ;;  %v4338_v25 = vld [vmem:[%s5834_s1 + $0xf0] sm:$0xff]   ;;  %v4342_v30 = vld [vmem:[%s5834_s1 + $0xf8] sm:$0xff]   ;;  %v4346_v35 = vld [vmem:[%s5834_s1 + $0x140] sm:$0xff]   ;;  %v564_v39 = vcombine.high %v37_v34, %v37_v34  ;;  %v571_v42 = vrot.slane %v37_v34, %v4876_v41 }
   0xb   :  { %v4339_v26 = vld [vmem:[%s5834_s1 + $0x30] sm:$0xff]   ;;  %v4343_v31 = vld [vmem:[%s5834_s1 + $0x38] sm:$0xff]   ;;  %v4347_v38 = vld [vmem:[%s5834_s1 + $0x1c0] sm:$0xff]  }
   0xc   :  { %3940 = vmatpush3.bf16.msra.mxu0 %v4323_v10  ;;  %v4340_v27 = vld [vmem:[%s5834_s1 + $0xb0] sm:$0xff]   ;;  %v4344_v32 = vld [vmem:[%s5834_s1 + $0xb8] sm:$0xff]   ;;  %v4880_v43 = vrot.slane %v564_v39, %v4876_v41  ;;  %v579_v44 = vcombine.high %v571_v42, %v571_v42  ;;  %v587_v45 = vrot.slane %v571_v42, %v4876_v41  ;;  %v4348_v47 = vld [vmem:[%s5834_s1 + $0x100] sm:$0xff]  }
   0xd   :  { %3962 = vmatpush3.bf16.msra.mxu1 %v4324_v11  ;;  %3941 = vmatprep.subr.bf16.mxu0 %v4325_v12  ;;  %v4349_v49 = vld [vmem:[%s5834_s1 + $0x180] sm:$0xff]   ;;  %v4350_v52 = vld [vmem:[%s5834_s1 + $0x148] sm:$0xff]   ;;  %v4354_v58 = vld [vmem:[%s5834_s1 + $0x150] sm:$0xff]  }
   0xe   :  { %3963 = vmatprep.subr.bf16.mxu1 %v4326_v13  ;;  %v580_v46 = vcombine.high %v4880_v43, %v4880_v43  ;;  %v601_v48 = vrot.slane %v579_v44, %v4876_v41  ;;  %v609_v51 = vcombine.high %v587_v45, %v587_v45  ;;  %v4351_v54 = vld [vmem:[%s5834_s1 + $0x1c8] sm:$0xff]   ;;  %v4355_v59 = vld [vmem:[%s5834_s1 + $0x1d0] sm:$0xff]   ;;  %v4358_v62 = vld [vmem:[%s5834_s1 + $0x158] sm:$0xff]  }
   0xf   :  { %v4352_v55 = vld [vmem:[%s5834_s1 + $0x108] sm:$0xff]   ;;  %v4356_v60 = vld [vmem:[%s5834_s1 + $0x110] sm:$0xff]   ;;  %v4359_v63 = vld [vmem:[%s5834_s1 + $0x1d8] sm:$0xff]  }
  0x10   :  { %3942 = vmatpush3.bf16.msra.mxu0 %v4327_v14  ;;  %v608_v50 = vrot.slane %v580_v46, %v4876_v41  ;;  %2360 = vmatprep.mubr.bf16.mxu0 %v601_v48  ;;  %v611_v53 = vcombine.high %v601_v48, %v601_v48  ;;  %v4353_v57 = vld [vmem:[%s5834_s1 + $0x188] sm:$0xff]   ;;  %v4357_v61 = vld [vmem:[%s5834_s1 + $0x190] sm:$0xff]   ;;  %v4360_v0 = vld [vmem:[%s5834_s1 + $0x118] sm:$0xff]  }
  0x11   :  { %3964 = vmatpush3.bf16.msra.mxu1 %v4328_v15  ;;  %3943 = vmatprep.subr.bf16.mxu0 %v4329_v16  ;;  %v4361_v1 = vld [vmem:[%s5834_s1 + $0x198] sm:$0xff]   ;;  %v4362_v2 = vld [vmem:[%s5834_s1 + $0x160] sm:$0xff]   ;;  %v4366_v6 = vld [vmem:[%s5834_s1 + $0x168] sm:$0xff]  }
  0x12   :  { %3965 = vmatprep.subr.bf16.mxu1 %v4330_v17  ;;  %v612_v56 = vcombine.high %v608_v50, %v608_v50  ;;  %2400 = vmatprep.mubr.bf16.mxu1 %v611_v53  ;;  %v4363_v3 = vld [vmem:[%s5834_s1 + $0x1e0] sm:$0xff]   ;;  %v4367_v7 = vld [vmem:[%s5834_s1 + $0x1e8] sm:$0xff]   ;;  %v4370_v10 = vld [vmem:[%s5834_s1 + $0x170] sm:$0xff]  }
  0x13   :  { %v4364_v4 = vld [vmem:[%s5834_s1 + $0x120] sm:$0xff]   ;;  %v4368_v8 = vld [vmem:[%s5834_s1 + $0x128] sm:$0xff]   ;;  %v4371_v11 = vld [vmem:[%s5834_s1 + $0x1f0] sm:$0xff]  }
  0x14   :  { %3944 = vmatpush3.bf16.msra.mxu0 %v4331_v18  ;;  %v4365_v5 = vld [vmem:[%s5834_s1 + $0x1a0] sm:$0xff]   ;;  %v4369_v9 = vld [vmem:[%s5834_s1 + $0x1a8] sm:$0xff]   ;;  %v4372_v12 = vld [vmem:[%s5834_s1 + $0x130] sm:$0xff]   ;;  %v594_v18 = vrot.slane %v4880_v43, %v4876_v41 }
  0x15   :  { %3966 = vmatpush3.bf16.msra.mxu1 %v4332_v19  ;;  %3945 = vmatprep.subr.bf16.mxu0 %v4333_v20  ;;  %v4373_v13 = vld [vmem:[%s5834_s1 + $0x1b0] sm:$0xff]   ;;  %v4374_v14 = vld [vmem:[%s5834_s1 + $0x178] sm:$0xff]   ;;  %v4378_v19 = vld [vmem:[%s5834_s1 + $0x240] sm:$0xff]  }
  0x16   :  { %3967 = vmatprep.subr.bf16.mxu1 %v4334_v21  ;;  %v4375_v15 = vld [vmem:[%s5834_s1 + $0x1f8] sm:$0xff]   ;;  %v4379_v20 = vld [vmem:[%s5834_s1 + $0x2c0] sm:$0xff]   ;;  %v4386_v28 = vld [vmem:[%s5834_s1 + $0x250] sm:$0xff]  }
  0x17   :  { %v4376_v16 = vld [vmem:[%s5834_s1 + $0x138] sm:$0xff]   ;;  %v4380_v21 = vld [vmem:[%s5834_s1 + $0x200] sm:$0xff]   ;;  %v4398_v42 = vld [vmem:[%s5834_s1 + $0x268] sm:$0xff]  }
  0x18   :  { %3946 = vmatpush3.bf16.msra.mxu0 %v4335_v22  ;;  %v4377_v17 = vld [vmem:[%s5834_s1 + $0x1b8] sm:$0xff]   ;;  %v4381_v22 = vld [vmem:[%s5834_s1 + $0x280] sm:$0xff]   ;;  %v4399_v43 = vld [vmem:[%s5834_s1 + $0x2e8] sm:$0xff]  }
  0x19   :  { %3968 = vmatpush3.bf16.msra.mxu1 %v4336_v23  ;;  %3947 = vmatprep.subr.bf16.mxu0 %v4337_v24  ;;  %v610_v23 = vcombine.high %v594_v18, %v594_v18  ;;  %v4382_v24 = vld [vmem:[%s5834_s1 + $0x248] sm:$0xff]   ;;  %v4391_v34 = vld [vmem:[%s5834_s1 + $0x2d8] sm:$0xff]   ;;  %v4394_v37 = vld [vmem:[%s5834_s1 + $0x260] sm:$0xff]  }
  0x1a   :  { %3969 = vmatprep.subr.bf16.mxu1 %v4338_v25  ;;  %v4383_v25 = vld [vmem:[%s5834_s1 + $0x2c8] sm:$0xff]   ;;  %v4393_v36 = vld [vmem:[%s5834_s1 + $0x298] sm:$0xff]   ;;  %v4396_v39 = vld [vmem:[%s5834_s1 + $0x220] sm:$0xff]  }
  0x1b   :  { %v4397_v40 = vld [vmem:[%s5834_s1 + $0x2a0] sm:$0xff]   ;;  %v4400_v44 = vld [vmem:[%s5834_s1 + $0x228] sm:$0xff]   ;;  %v4402_v46 = vld [vmem:[%s5834_s1 + $0x270] sm:$0xff]  }
  0x1c   :  { %3948 = vmatpush3.bf16.msra.mxu0 %v4339_v26  ;;  %v4384_v26 = vld [vmem:[%s5834_s1 + $0x208] sm:$0xff]   ;;  %v4403_v48 = vld [vmem:[%s5834_s1 + $0x2f0] sm:$0xff]  }
  0x1d   :  { %3970 = vmatpush3.bf16.msra.mxu1 %v4340_v27  ;;  %3949 = vmatprep.subr.bf16.mxu0 %v4341_v29  ;;  %v4385_v27 = vld [vmem:[%s5834_s1 + $0x288] sm:$0xff]   ;;  %v4387_v29 = vld [vmem:[%s5834_s1 + $0x2d0] sm:$0xff]  }
  0x1e   :  { %3971 = vmatprep.subr.bf16.mxu1 %v4342_v30  ;;  %v4388_v30 = vld [vmem:[%s5834_s1 + $0x210] sm:$0xff]  }
  0x20   :  { %3950 = vmatpush3.bf16.msra.mxu0 %v4343_v31  ;;  %v4389_v31 = vld [vmem:[%s5834_s1 + $0x290] sm:$0xff]  }
  0x21   :  { %3972 = vmatpush3.bf16.msra.mxu1 %v4344_v32  ;;  %3979 = vmatprep.subr.bf16.mxu0 %v4346_v35  ;;  %v4390_v32 = vld [vmem:[%s5834_s1 + $0x258] sm:$0xff]  }
  0x22   :  { %4001 = vmatprep.subr.bf16.mxu1 %v4347_v38  ;;  %v4392_v35 = vld [vmem:[%s5834_s1 + $0x218] sm:$0xff]   ;;  %v4395_v38 = vld [vmem:[%s5834_s1 + $0x2e0] sm:$0xff]  }
  0x23   :  { %2361 = vmatmul.mubr.bf16.vlgmr.msra.gmra.mrb[0].mxu0 %v587_v45  ;;  %v4401_v45 = vld [vmem:[%s5834_s1 + $0x2a8] sm:$0xff]  }
  0x24   :  { %3980 = vmatpush3.bf16.msra.mxu0 %v4348_v47  ;;  %2401 = vmatmul.mubr.bf16.vlgmr.msra.gmra.mrb[0].mxu1 %v609_v51  ;;  %v38_v47 = vld [vmem:[%s5833_s0 + $0x8] sm:$0xff]  ;;  %v4404_v51 = vld [vmem:[%s5834_s1 + $0x230] sm:$0xff]  }
  0x25   :  { %3981 = vmatprep.subr.bf16.mxu0 %v4350_v52  ;;  %4002 = vmatpush3.bf16.msra.mxu1 %v4349_v49  ;;  %v620_v49 = vrot.slane %v38_v47, %v4876_v41  ;;  %v4405_v52 = vld [vmem:[%s5834_s1 + $0x2b0] sm:$0xff]  }
  0x26   :  { %2440 = vmatprep.mubr.bf16.mxu0 %v608_v50  ;;  %4003 = vmatprep.subr.bf16.mxu1 %v4351_v54  ;;  %v613_v50 = vcombine.high %v38_v47, %v38_v47  ;;  %v4452_v47 = vld [vmem:[%s5834_s1 + $0x4d0] sm:$0xff]  }
  0x27   :  { %2480 = vmatprep.mubr.bf16.mxu1 %v612_v56  ;;  %v628_v53 = vcombine.high %v620_v49, %v620_v49  ;;  %v4407_v56 = vld [vmem:[%s5834_s1 + $0x2f8] sm:$0xff]  }
  0x28   :  { %3982 = vmatpush3.bf16.msra.mxu0 %v4352_v55  ;;  %v5068_v54 = vrot.slane %v613_v50, %v4876_v41  ;;  %v4406_v55 = vld [vmem:[%s5834_s1 + $0x278] sm:$0xff]  }
  0x29   :  { %3983 = vmatprep.subr.bf16.mxu0 %v4354_v58  ;;  %4004 = vmatpush3.bf16.msra.mxu1 %v4353_v57  ;;  %v650_v57 = vrot.slane %v628_v53, %v4876_v41  ;;  %v4455_v50 = vld [vmem:[%s5834_s1 + $0x458] sm:$0xff]  }
  0x2a   :  { %4005 = vmatprep.subr.bf16.mxu1 %v4355_v59  ;;  %v629_v58 = vcombine.high %v5068_v54, %v5068_v54  ;;  %v4408_v59 = vld [vmem:[%s5834_s1 + $0x238] sm:$0xff]  }
  0x2b   :  { %v4458_v53 = vld [vmem:[%s5834_s1 + $0x498] sm:$0xff]  }
  0x2c   :  { %3984 = vmatpush3.bf16.msra.mxu0 %v4356_v60  ;;  %v4409_v60 = vld [vmem:[%s5834_s1 + $0x2b8] sm:$0xff]  }
  0x2d   :  { %3985 = vmatprep.subr.bf16.mxu0 %v4358_v62  ;;  %4006 = vmatpush3.bf16.msra.mxu1 %v4357_v61  ;;  %v660_v61 = vcombine.high %v650_v57, %v650_v57  ;;  %v636_v62 = vrot.slane %v620_v49, %v4876_v41  ;;  %v4454_v49 = vld [vmem:[%s5834_s1 + $0x490] sm:$0xff]  }
  0x2e   :  { %4007 = vmatprep.subr.bf16.mxu1 %v4359_v63  ;;  %v4410_v63 = vld [vmem:[%s5834_s1 + $0x340] sm:$0xff]  }
  0x30   :  { %3986 = vmatpush3.bf16.msra.mxu0 %v4360_v0  ;;  %v4411_v0 = vld [vmem:[%s5834_s1 + $0x3c0] sm:$0xff]  }
  0x31   :  { %3987 = vmatprep.subr.bf16.mxu0 %v4362_v2  ;;  %4008 = vmatpush3.bf16.msra.mxu1 %v4361_v1  ;;  %v657_v1 = vrot.slane %v629_v58, %v4876_v41  ;;  %v4412_v2 = vld [vmem:[%s5834_s1 + $0x300] sm:$0xff]   ;;  %v4463_v58 = vld [vmem:[%s5834_s1 + $0x468] sm:$0xff]  }
  0x32   :  { %4009 = vmatprep.subr.bf16.mxu1 %v4363_v3  ;;  %v4413_v3 = vld [vmem:[%s5834_s1 + $0x380] sm:$0xff]  }
  0x34   :  { %3988 = vmatpush3.bf16.msra.mxu0 %v4364_v4  ;;  %v658_v4 = vcombine.high %v636_v62, %v636_v62 }
  0x35   :  { %3989 = vmatprep.subr.bf16.mxu0 %v4366_v6  ;;  %4010 = vmatpush3.bf16.msra.mxu1 %v4365_v5  ;;  %v4414_v5 = vld [vmem:[%s5834_s1 + $0x348] sm:$0xff]  }
  0x36   :  { %4011 = vmatprep.subr.bf16.mxu1 %v4367_v7  ;;  %v4415_v6 = vld [vmem:[%s5834_s1 + $0x3c8] sm:$0xff]   ;;  %v661_v7 = vcombine.high %v657_v1, %v657_v1 }
  0x38   :  { %3990 = vmatpush3.bf16.msra.mxu0 %v4368_v8  ;;  %v4416_v8 = vld [vmem:[%s5834_s1 + $0x308] sm:$0xff]  }
  0x39   :  { %3991 = vmatprep.subr.bf16.mxu0 %v4370_v10  ;;  %4012 = vmatpush3.bf16.msra.mxu1 %v4369_v9  ;;  %v4417_v9 = vld [vmem:[%s5834_s1 + $0x388] sm:$0xff]   ;;  %v4418_v10 = vld [vmem:[%s5834_s1 + $0x350] sm:$0xff]  }
  0x3a   :  { %4013 = vmatprep.subr.bf16.mxu1 %v4371_v11  ;;  %v4419_v11 = vld [vmem:[%s5834_s1 + $0x3d0] sm:$0xff]  }
  0x3c   :  { %3992 = vmatpush3.bf16.msra.mxu0 %v4372_v12  ;;  %v4420_v12 = vld [vmem:[%s5834_s1 + $0x310] sm:$0xff]  }
  0x3d   :  { %3993 = vmatprep.subr.bf16.mxu0 %v4374_v14  ;;  %4014 = vmatpush3.bf16.msra.mxu1 %v4373_v13  ;;  %v4421_v13 = vld [vmem:[%s5834_s1 + $0x390] sm:$0xff]   ;;  %v4422_v14 = vld [vmem:[%s5834_s1 + $0x358] sm:$0xff]  }
  0x3e   :  { %4015 = vmatprep.subr.bf16.mxu1 %v4375_v15  ;;  %v4423_v15 = vld [vmem:[%s5834_s1 + $0x3d8] sm:$0xff]  }
  0x40   :  { %3994 = vmatpush3.bf16.msra.mxu0 %v4376_v16  ;;  %v4424_v16 = vld [vmem:[%s5834_s1 + $0x318] sm:$0xff]  }
  0x41   :  { %4023 = vmatprep.subr.bf16.mxu0 %v4378_v19  ;;  %4016 = vmatpush3.bf16.msra.mxu1 %v4377_v17  ;;  %v4425_v17 = vld [vmem:[%s5834_s1 + $0x398] sm:$0xff]   ;;  %v4427_v19 = vld [vmem:[%s5834_s1 + $0x3e0] sm:$0xff]  }
  0x42   :  { %4045 = vmatprep.subr.bf16.mxu1 %v4379_v20  ;;  %v4428_v20 = vld [vmem:[%s5834_s1 + $0x320] sm:$0xff]  }
  0x43   :  { %2441 = vmatmul.mubr.bf16.vlgmr.msra.gmra.mrb[4].mxu0 %v594_v18  ;;  %v4426_v18 = vld [vmem:[%s5834_s1 + $0x360] sm:$0xff]  }
  0x44   :  { %4024 = vmatpush3.bf16.msra.mxu0 %v4380_v21  ;;  %2481 = vmatmul.mubr.bf16.vlgmr.msra.gmra.mrb[4].mxu1 %v610_v23  ;;  %v4429_v21 = vld [vmem:[%s5834_s1 + $0x3a0] sm:$0xff]   ;;  %v4431_v23 = vld [vmem:[%s5834_s1 + $0x3e8] sm:$0xff]  }
  0x45   :  { %4025 = vmatprep.subr.bf16.mxu0 %v4382_v24  ;;  %4046 = vmatpush3.bf16.msra.mxu1 %v4381_v22  ;;  %v4430_v22 = vld [vmem:[%s5834_s1 + $0x368] sm:$0xff]  }
  0x46   :  { %4047 = vmatprep.subr.bf16.mxu1 %v4383_v25  ;;  %2520 = vmatprep.mubr.bf16.mxu0 %v650_v57  ;;  %v4432_v24 = vld [vmem:[%s5834_s1 + $0x328] sm:$0xff]   ;;  %v4462_v57 = vld [vmem:[%s5834_s1 + $0x4a0] sm:$0xff]  }
  0x47   :  { %2560 = vmatprep.mubr.bf16.mxu1 %v660_v61  ;;  %v4433_v25 = vld [vmem:[%s5834_s1 + $0x3a8] sm:$0xff]  }
  0x48   :  { %4026 = vmatpush3.bf16.msra.mxu0 %v4384_v26  ;;  %v4434_v26 = vld [vmem:[%s5834_s1 + $0x370] sm:$0xff]   ;;  %v4466_v61 = vld [vmem:[%s5834_s1 + $0x4a8] sm:$0xff]  }
  0x49   :  { %4027 = vmatprep.subr.bf16.mxu0 %v4386_v28  ;;  %4048 = vmatpush3.bf16.msra.mxu1 %v4385_v27  ;;  %v4435_v27 = vld [vmem:[%s5834_s1 + $0x3f0] sm:$0xff]  }
  0x4a   :  { %4049 = vmatprep.subr.bf16.mxu1 %v4387_v29  ;;  %v4436_v28 = vld [vmem:[%s5834_s1 + $0x330] sm:$0xff]  }
  0x4b   :  { %v4437_v29 = vld [vmem:[%s5834_s1 + $0x3b0] sm:$0xff]  }
  0x4c   :  { %4028 = vmatpush3.bf16.msra.mxu0 %v4388_v30  ;;  %v4438_v30 = vld [vmem:[%s5834_s1 + $0x378] sm:$0xff]  }
  0x4d   :  { %4029 = vmatprep.subr.bf16.mxu0 %v4390_v32  ;;  %4050 = vmatpush3.bf16.msra.mxu1 %v4389_v31  ;;  %v4439_v31 = vld [vmem:[%s5834_s1 + $0x3f8] sm:$0xff]  }
  0x4e   :  { %4051 = vmatprep.subr.bf16.mxu1 %v4391_v34  ;;  %v4440_v32 = vld [vmem:[%s5834_s1 + $0x338] sm:$0xff]  }
  0x4f   :  { %v4441_v34 = vld [vmem:[%s5834_s1 + $0x3b8] sm:$0xff]  }
  0x50   :  { %4030 = vmatpush3.bf16.msra.mxu0 %v4392_v35  ;;  %v643_v35 = vrot.slane %v5068_v54, %v4876_v41  ;;  %v4459_v54 = vld [vmem:[%s5834_s1 + $0x460] sm:$0xff]  }
  0x51   :  { %4031 = vmatprep.subr.bf16.mxu0 %v4394_v37  ;;  %4052 = vmatpush3.bf16.msra.mxu1 %v4393_v36  ;;  %v4443_v36 = vld [vmem:[%s5834_s1 + $0x440] sm:$0xff]  }
  0x52   :  { %4053 = vmatprep.subr.bf16.mxu1 %v4395_v38  ;;  %v4444_v37 = vld [vmem:[%s5834_s1 + $0x4c0] sm:$0xff]  }
  0x53   :  { %v4445_v38 = vld [vmem:[%s5834_s1 + $0x400] sm:$0xff]  }
  0x54   :  { %4032 = vmatpush3.bf16.msra.mxu0 %v4396_v39  ;;  %v4446_v39 = vld [vmem:[%s5834_s1 + $0x480] sm:$0xff]  }
  0x55   :  { %4033 = vmatprep.subr.bf16.mxu0 %v4398_v42  ;;  %4054 = vmatpush3.bf16.msra.mxu1 %v4397_v40  ;;  %v659_v40 = vcombine.high %v643_v35, %v643_v35  ;;  %v4447_v42 = vld [vmem:[%s5834_s1 + $0x448] sm:$0xff]  }
  0x56   :  { %4055 = vmatprep.subr.bf16.mxu1 %v4399_v43  ;;  %v4448_v43 = vld [vmem:[%s5834_s1 + $0x4c8] sm:$0xff]  }
  0x58   :  { %4034 = vmatpush3.bf16.msra.mxu0 %v4400_v44  ;;  %v4449_v44 = vld [vmem:[%s5834_s1 + $0x408] sm:$0xff]  }
  0x59   :  { %4035 = vmatprep.subr.bf16.mxu0 %v4402_v46  ;;  %4056 = vmatpush3.bf16.msra.mxu1 %v4401_v45  ;;  %v4450_v45 = vld [vmem:[%s5834_s1 + $0x488] sm:$0xff]   ;;  %v4451_v46 = vld [vmem:[%s5834_s1 + $0x450] sm:$0xff]  }
  0x5a   :  { %4057 = vmatprep.subr.bf16.mxu1 %v4403_v48  ;;  %v4453_v48 = vld [vmem:[%s5834_s1 + $0x410] sm:$0xff]  }
  0x5c   :  { %4036 = vmatpush3.bf16.msra.mxu0 %v4404_v51  ;;  %v4456_v51 = vld [vmem:[%s5834_s1 + $0x4d8] sm:$0xff]  }
  0x5d   :  { %4037 = vmatprep.subr.bf16.mxu0 %v4406_v55  ;;  %4058 = vmatpush3.bf16.msra.mxu1 %v4405_v52  ;;  %v4457_v52 = vld [vmem:[%s5834_s1 + $0x418] sm:$0xff]   ;;  %v4460_v55 = vld [vmem:[%s5834_s1 + $0x4e0] sm:$0xff]  }
  0x5e   :  { %4059 = vmatprep.subr.bf16.mxu1 %v4407_v56  ;;  %v4461_v56 = vld [vmem:[%s5834_s1 + $0x420] sm:$0xff]  }
  0x60   :  { %4038 = vmatpush3.bf16.msra.mxu0 %v4408_v59  ;;  %v4464_v59 = vld [vmem:[%s5834_s1 + $0x4e8] sm:$0xff]  }
  0x61   :  { %4067 = vmatprep.subr.bf16.mxu0 %v4410_v63  ;;  %4060 = vmatpush3.bf16.msra.mxu1 %v4409_v60  ;;  %v4465_v60 = vld [vmem:[%s5834_s1 + $0x428] sm:$0xff]   ;;  %v39_v63 = vld [vmem:[%s5833_s0 + $0x10] sm:$0xff] }
  0x62   :  { %4089 = vmatprep.subr.bf16.mxu1 %v4411_v0  ;;  %v4468_v0 = vld [vmem:[%s5834_s1 + $0x4f0] sm:$0xff]  }
  0x63   :  { %2521 = vmatmul.mubr.bf16.vlgmr.msra.gmra.mrb[8].mxu0 %v636_v62  ;;  %v4467_v62 = vld [vmem:[%s5834_s1 + $0x470] sm:$0xff]  }
  0x64   :  { %4068 = vmatpush3.bf16.msra.mxu0 %v4412_v2  ;;  %2600 = vmatprep.mubr.bf16.mxu0 %v657_v1  ;;  %v669_v1 = vrot.slane %v39_v63, %v4876_v41  ;;  %v662_v2 = vcombine.high %v39_v63, %v39_v63  ;;  %v4517_v63 = vld [vmem:[%s5834_s1 + $0x6d0] sm:$0xff]  }
  0x65   :  { %2561 = vmatmul.mubr.bf16.vlgmr.msra.gmra.mrb[8].mxu1 %v658_v4  ;;  %4069 = vmatprep.subr.bf16.mxu0 %v4414_v5  ;;  %v4470_v4 = vld [vmem:[%s5834_s1 + $0x4b0] sm:$0xff]  }
  0x66   :  { %4090 = vmatpush3.bf16.msra.mxu1 %v4413_v3  ;;  %2640 = vmatprep.mubr.bf16.mxu1 %v661_v7  ;;  %v4469_v3 = vld [vmem:[%s5834_s1 + $0x430] sm:$0xff]   ;;  %v677_v5 = vcombine.high %v669_v1, %v669_v1  ;;  %v4471_v7 = vld [vmem:[%s5834_s1 + $0x478] sm:$0xff]  }
  0x67   :  { %4091 = vmatprep.subr.bf16.mxu1 %v4415_v6  ;;  %v5274_v6 = vrot.slane %v662_v2, %v4876_v41  ;;  %v4520_v2 = vld [vmem:[%s5834_s1 + $0x658] sm:$0xff]  }
  0x68   :  { %4070 = vmatpush3.bf16.msra.mxu0 %v4416_v8  ;;  %v4472_v8 = vld [vmem:[%s5834_s1 + $0x4f8] sm:$0xff]  }
  0x69   :  { %4071 = vmatprep.subr.bf16.mxu0 %v4418_v10  ;;  %v678_v10 = vcombine.high %v5274_v6, %v5274_v6 }
  0x6a   :  { %4092 = vmatpush3.bf16.msra.mxu1 %v4417_v9  ;;  %v699_v9 = vrot.slane %v677_v5, %v4876_v41  ;;  %v4523_v5 = vld [vmem:[%s5834_s1 + $0x698] sm:$0xff]  }
  0x6b   :  { %4093 = vmatprep.subr.bf16.mxu1 %v4419_v11  ;;  %v4473_v11 = vld [vmem:[%s5834_s1 + $0x438] sm:$0xff]  }
  0x6c   :  { %4072 = vmatpush3.bf16.msra.mxu0 %v4420_v12  ;;  %v4474_v12 = vld [vmem:[%s5834_s1 + $0x4b8] sm:$0xff]  }
  0x6d   :  { %4073 = vmatprep.subr.bf16.mxu0 %v4422_v14  ;;  %v685_v14 = vrot.slane %v669_v1, %v4876_v41  ;;  %v4519_v1 = vld [vmem:[%s5834_s1 + $0x690] sm:$0xff]  }
  0x6e   :  { %4094 = vmatpush3.bf16.msra.mxu1 %v4421_v13  ;;  %v709_v13 = vcombine.high %v699_v9, %v699_v9 }
  0x6f   :  { %4095 = vmatprep.subr.bf16.mxu1 %v4423_v15  ;;  %v4475_v15 = vld [vmem:[%s5834_s1 + $0x540] sm:$0xff]  }
  0x70   :  { %4074 = vmatpush3.bf16.msra.mxu0 %v4424_v16  ;;  %v4476_v16 = vld [vmem:[%s5834_s1 + $0x5c0] sm:$0xff]  }
  0x71   :  { %4075 = vmatprep.subr.bf16.mxu0 %v4426_v18  ;;  %v4477_v18 = vld [vmem:[%s5834_s1 + $0x500] sm:$0xff]  }
  0x72   :  { %4096 = vmatpush3.bf16.msra.mxu1 %v4425_v17  ;;  %v706_v17 = vrot.slane %v678_v10, %v4876_v41  ;;  %v4528_v10 = vld [vmem:[%s5834_s1 + $0x668] sm:$0xff]  }
  0x73   :  { %4097 = vmatprep.subr.bf16.mxu1 %v4427_v19  ;;  %v4478_v19 = vld [vmem:[%s5834_s1 + $0x580] sm:$0xff]  }
  0x74   :  { %4076 = vmatpush3.bf16.msra.mxu0 %v4428_v20  ;;  %v707_v20 = vcombine.high %v685_v14, %v685_v14 }
  0x75   :  { %4077 = vmatprep.subr.bf16.mxu0 %v4430_v22  ;;  %v4480_v22 = vld [vmem:[%s5834_s1 + $0x5c8] sm:$0xff]  }
  0x76   :  { %4098 = vmatpush3.bf16.msra.mxu1 %v4429_v21  ;;  %v4479_v21 = vld [vmem:[%s5834_s1 + $0x548] sm:$0xff]  }
  0x77   :  { %4099 = vmatprep.subr.bf16.mxu1 %v4431_v23  ;;  %v710_v23 = vcombine.high %v706_v17, %v706_v17 }
  0x78   :  { %4078 = vmatpush3.bf16.msra.mxu0 %v4432_v24  ;;  %v4481_v24 = vld [vmem:[%s5834_s1 + $0x508] sm:$0xff]  }
  0x79   :  { %4079 = vmatprep.subr.bf16.mxu0 %v4434_v26  ;;  %v4483_v26 = vld [vmem:[%s5834_s1 + $0x550] sm:$0xff]  }
  0x7a   :  { %4100 = vmatpush3.bf16.msra.mxu1 %v4433_v25  ;;  %v4482_v25 = vld [vmem:[%s5834_s1 + $0x588] sm:$0xff]  }
  0x7b   :  { %4101 = vmatprep.subr.bf16.mxu1 %v4435_v27  ;;  %v4484_v27 = vld [vmem:[%s5834_s1 + $0x5d0] sm:$0xff]  }
  0x7c   :  { %4080 = vmatpush3.bf16.msra.mxu0 %v4436_v28  ;;  %v4485_v28 = vld [vmem:[%s5834_s1 + $0x510] sm:$0xff]  }
  0x7d   :  { %4081 = vmatprep.subr.bf16.mxu0 %v4438_v30  ;;  %v4487_v30 = vld [vmem:[%s5834_s1 + $0x558] sm:$0xff]  }
  0x7e   :  { %4102 = vmatpush3.bf16.msra.mxu1 %v4437_v29  ;;  %v4486_v29 = vld [vmem:[%s5834_s1 + $0x590] sm:$0xff]  }
  0x7f   :  { %4103 = vmatprep.subr.bf16.mxu1 %v4439_v31  ;;  %v4488_v31 = vld [vmem:[%s5834_s1 + $0x5d8] sm:$0xff]  }
  0x80   :  { %4082 = vmatpush3.bf16.msra.mxu0 %v4440_v32  ;;  %v4489_v32 = vld [vmem:[%s5834_s1 + $0x518] sm:$0xff]  }
  0x81   :  { %4111 = vmatprep.subr.bf16.mxu0 %v4443_v36  ;;  %v4492_v36 = vld [vmem:[%s5834_s1 + $0x5e0] sm:$0xff]  }
  0x82   :  { %4104 = vmatpush3.bf16.msra.mxu1 %v4441_v34  ;;  %v4490_v34 = vld [vmem:[%s5834_s1 + $0x598] sm:$0xff]  }
  0x83   :  { %2601 = vmatmul.mubr.bf16.vlgmr.msra.gmra.mrb[12].mxu0 %v643_v35  ;;  %4133 = vmatprep.subr.bf16.mxu1 %v4444_v37  ;;  %v4491_v35 = vld [vmem:[%s5834_s1 + $0x560] sm:$0xff]  }
  0x84   :  { %4112 = vmatpush3.bf16.msra.mxu0 %v4445_v38  ;;  %2680 = vmatprep.mubr.bf16.mxu0 %v699_v9  ;;  %v4493_v37 = vld [vmem:[%s5834_s1 + $0x520] sm:$0xff]  }
  0x85   :  { %2641 = vmatmul.mubr.bf16.vlgmr.msra.gmra.mrb[12].mxu1 %v659_v40  ;;  %4113 = vmatprep.subr.bf16.mxu0 %v4447_v42  ;;  %v4494_v38 = vld [vmem:[%s5834_s1 + $0x5a0] sm:$0xff]   ;;  %v4496_v40 = vld [vmem:[%s5834_s1 + $0x5e8] sm:$0xff]  }
  0x86   :  { %4134 = vmatpush3.bf16.msra.mxu1 %v4446_v39  ;;  %2720 = vmatprep.mubr.bf16.mxu1 %v709_v13  ;;  %v4495_v39 = vld [vmem:[%s5834_s1 + $0x568] sm:$0xff]   ;;  %v4527_v9 = vld [vmem:[%s5834_s1 + $0x6a0] sm:$0xff]  }
  0x87   :  { %4135 = vmatprep.subr.bf16.mxu1 %v4448_v43  ;;  %v4497_v42 = vld [vmem:[%s5834_s1 + $0x528] sm:$0xff]  }
  0x88   :  { %4114 = vmatpush3.bf16.msra.mxu0 %v4449_v44  ;;  %v4498_v43 = vld [vmem:[%s5834_s1 + $0x5a8] sm:$0xff]   ;;  %v4499_v44 = vld [vmem:[%s5834_s1 + $0x570] sm:$0xff]  }
  0x89   :  { %4115 = vmatprep.subr.bf16.mxu0 %v4451_v46  ;;  %v4501_v46 = vld [vmem:[%s5834_s1 + $0x530] sm:$0xff]   ;;  %v4531_v13 = vld [vmem:[%s5834_s1 + $0x6a8] sm:$0xff]  }
  0x8a   :  { %4136 = vmatpush3.bf16.msra.mxu1 %v4450_v45  ;;  %v4500_v45 = vld [vmem:[%s5834_s1 + $0x5f0] sm:$0xff]  }
  0x8b   :  { %4137 = vmatprep.subr.bf16.mxu1 %v4452_v47  ;;  %v4502_v47 = vld [vmem:[%s5834_s1 + $0x5b0] sm:$0xff]  }
  0x8c   :  { %4116 = vmatpush3.bf16.msra.mxu0 %v4453_v48  ;;  %v4503_v48 = vld [vmem:[%s5834_s1 + $0x578] sm:$0xff]  }
  0x8d   :  { %4117 = vmatprep.subr.bf16.mxu0 %v4455_v50  ;;  %v4505_v50 = vld [vmem:[%s5834_s1 + $0x538] sm:$0xff]  }
  0x8e   :  { %4138 = vmatpush3.bf16.msra.mxu1 %v4454_v49  ;;  %v4504_v49 = vld [vmem:[%s5834_s1 + $0x5f8] sm:$0xff]  }
  0x8f   :  { %4139 = vmatprep.subr.bf16.mxu1 %v4456_v51  ;;  %v4506_v51 = vld [vmem:[%s5834_s1 + $0x5b8] sm:$0xff]  }
  0x90   :  { %4118 = vmatpush3.bf16.msra.mxu0 %v4457_v52  ;;  %v692_v52 = vrot.slane %v5274_v6, %v4876_v41  ;;  %v4524_v6 = vld [vmem:[%s5834_s1 + $0x660] sm:$0xff]  }
  0x91   :  { %4119 = vmatprep.subr.bf16.mxu0 %v4459_v54  ;;  %v4509_v54 = vld [vmem:[%s5834_s1 + $0x6c0] sm:$0xff]  }
  0x92   :  { %4140 = vmatpush3.bf16.msra.mxu1 %v4458_v53  ;;  %v4508_v53 = vld [vmem:[%s5834_s1 + $0x640] sm:$0xff]  }
  0x93   :  { %4141 = vmatprep.subr.bf16.mxu1 %v4460_v55  ;;  %v4510_v55 = vld [vmem:[%s5834_s1 + $0x600] sm:$0xff]  }
  0x94   :  { %4120 = vmatpush3.bf16.msra.mxu0 %v4461_v56  ;;  %v4511_v56 = vld [vmem:[%s5834_s1 + $0x680] sm:$0xff]  }
  0x95   :  { %4121 = vmatprep.subr.bf16.mxu0 %v4463_v58  ;;  %v4512_v58 = vld [vmem:[%s5834_s1 + $0x648] sm:$0xff]  }
  0x96   :  { %4142 = vmatpush3.bf16.msra.mxu1 %v4462_v57  ;;  %v708_v57 = vcombine.high %v692_v52, %v692_v52 }
  0x97   :  { %4143 = vmatprep.subr.bf16.mxu1 %v4464_v59  ;;  %v4513_v59 = vld [vmem:[%s5834_s1 + $0x6c8] sm:$0xff]  }
  0x98   :  { %4122 = vmatpush3.bf16.msra.mxu0 %v4465_v60  ;;  %v4514_v60 = vld [vmem:[%s5834_s1 + $0x608] sm:$0xff]  }
  0x99   :  { %4123 = vmatprep.subr.bf16.mxu0 %v4467_v62  ;;  %v4516_v62 = vld [vmem:[%s5834_s1 + $0x650] sm:$0xff]  }
  0x9a   :  { %4144 = vmatpush3.bf16.msra.mxu1 %v4466_v61  ;;  %v4515_v61 = vld [vmem:[%s5834_s1 + $0x688] sm:$0xff]  }
  0x9b   :  { %4145 = vmatprep.subr.bf16.mxu1 %v4468_v0  ;;  %v4518_v0 = vld [vmem:[%s5834_s1 + $0x610] sm:$0xff]  }
  0x9c   :  { %4124 = vmatpush3.bf16.msra.mxu0 %v4469_v3  ;;  %v4521_v3 = vld [vmem:[%s5834_s1 + $0x6d8] sm:$0xff]  }
  0x9d   :  { %4125 = vmatprep.subr.bf16.mxu0 %v4471_v7  ;;  %v4525_v7 = vld [vmem:[%s5834_s1 + $0x6e0] sm:$0xff]  }
  0x9e   :  { %4146 = vmatpush3.bf16.msra.mxu1 %v4470_v4  ;;  %v4522_v4 = vld [vmem:[%s5834_s1 + $0x618] sm:$0xff]  }
  0x9f   :  { %4147 = vmatprep.subr.bf16.mxu1 %v4472_v8  ;;  %v4526_v8 = vld [vmem:[%s5834_s1 + $0x620] sm:$0xff]  }
  0xa0   :  { %4126 = vmatpush3.bf16.msra.mxu0 %v4473_v11  ;;  %v4529_v11 = vld [vmem:[%s5834_s1 + $0x6e8] sm:$0xff]  }
  0xa1   :  { %4155 = vmatprep.subr.bf16.mxu0 %v4475_v15  ;;  %v40_v15 = vld [vmem:[%s5833_s0 + $0x18] sm:$0xff] }
  0xa2   :  { %4148 = vmatpush3.bf16.msra.mxu1 %v4474_v12  ;;  %v4530_v12 = vld [vmem:[%s5834_s1 + $0x628] sm:$0xff]  }
  0xa3   :  { %2681 = vmatmul.mubr.bf16.vlgmr.msra.gmra.mrb[16].mxu0 %v685_v14  ;;  %4177 = vmatprep.subr.bf16.mxu1 %v4476_v16  ;;  %v4532_v14 = vld [vmem:[%s5834_s1 + $0x670] sm:$0xff]  }
  0xa4   :  { %4156 = vmatpush3.bf16.msra.mxu0 %v4477_v18  ;;  %2760 = vmatprep.mubr.bf16.mxu0 %v706_v17  ;;  %v4533_v16 = vld [vmem:[%s5834_s1 + $0x6f0] sm:$0xff]   ;;  %v718_v17 = vrot.slane %v40_v15, %v4876_v41  ;;  %v711_v18 = vcombine.high %v40_v15, %v40_v15 }
  0xa5   :  { %2721 = vmatmul.mubr.bf16.vlgmr.msra.gmra.mrb[16].mxu1 %v707_v20  ;;  %4157 = vmatprep.subr.bf16.mxu0 %v4479_v21  ;;  %v4536_v20 = vld [vmem:[%s5834_s1 + $0x678] sm:$0xff]  }
  0xa6   :  { %4178 = vmatpush3.bf16.msra.mxu1 %v4478_v19  ;;  %2800 = vmatprep.mubr.bf16.mxu1 %v710_v23  ;;  %v4534_v19 = vld [vmem:[%s5834_s1 + $0x630] sm:$0xff]   ;;  %v726_v21 = vcombine.high %v718_v17, %v718_v17 }
  0xa7   :  { %4179 = vmatprep.subr.bf16.mxu1 %v4480_v22  ;;  %v5480_v22 = vrot.slane %v711_v18, %v4876_v41  ;;  %v4535_v23 = vld [vmem:[%s5834_s1 + $0x6b0] sm:$0xff]  }
  0xa8   :  { %4158 = vmatpush3.bf16.msra.mxu0 %v4481_v24  ;;  %v4537_v24 = vld [vmem:[%s5834_s1 + $0x6f8] sm:$0xff]  }
  0xa9   :  { %4159 = vmatprep.subr.bf16.mxu0 %v4483_v26  ;;  %v727_v26 = vcombine.high %v5480_v22, %v5480_v22 }
  0xaa   :  { %4180 = vmatpush3.bf16.msra.mxu1 %v4482_v25  ;;  %v748_v25 = vrot.slane %v726_v21, %v4876_v41 }
  0xab   :  { %4181 = vmatprep.subr.bf16.mxu1 %v4484_v27  ;;  %v4538_v27 = vld [vmem:[%s5834_s1 + $0x638] sm:$0xff]  }
  0xac   :  { %4160 = vmatpush3.bf16.msra.mxu0 %v4485_v28  ;;  %v758_v28 = vcombine.high %v748_v25, %v748_v25 }
  0xad   :  { %4161 = vmatprep.subr.bf16.mxu0 %v4487_v30  ;;  %v4540_v30 = vld [vmem:[%s5834_s1 + $0x740] sm:$0xff]  }
  0xae   :  { %4182 = vmatpush3.bf16.msra.mxu1 %v4486_v29  ;;  %v734_v29 = vrot.slane %v718_v17, %v4876_v41  ;;  %v741_v17 = vrot.slane %v5480_v22, %v4876_v41 }
  0xaf   :  { %4183 = vmatprep.subr.bf16.mxu1 %v4488_v31  ;;  %v4539_v31 = vld [vmem:[%s5834_s1 + $0x6b8] sm:$0xff]  }
  0xb0   :  { %4162 = vmatpush3.bf16.msra.mxu0 %v4489_v32  ;;  %v755_v32 = vrot.slane %v727_v26, %v4876_v41  ;;  %v757_v18 = vcombine.high %v741_v17, %v741_v17 }
  0xb1   :  { %4163 = vmatprep.subr.bf16.mxu0 %v4491_v35  ;;  %v4542_v35 = vld [vmem:[%s5834_s1 + $0x700] sm:$0xff]  }
  0xb2   :  { %4184 = vmatpush3.bf16.msra.mxu1 %v4490_v34  ;;  %v4541_v34 = vld [vmem:[%s5834_s1 + $0x7c0] sm:$0xff]  }
  0xb3   :  { %4185 = vmatprep.subr.bf16.mxu1 %v4492_v36  ;;  %v756_v36 = vcombine.high %v734_v29, %v734_v29 }
  0xb4   :  { %4164 = vmatpush3.bf16.msra.mxu0 %v4493_v37  ;;  %v4544_v37 = vld [vmem:[%s5834_s1 + $0x748] sm:$0xff]  }
  0xb5   :  { %4165 = vmatprep.subr.bf16.mxu0 %v4495_v39  ;;  %v759_v39 = vcombine.high %v755_v32, %v755_v32 }
  0xb6   :  { %4186 = vmatpush3.bf16.msra.mxu1 %v4494_v38  ;;  %v4543_v38 = vld [vmem:[%s5834_s1 + $0x780] sm:$0xff]  }
  0xb7   :  { %4187 = vmatprep.subr.bf16.mxu1 %v4496_v40  ;;  %v4545_v40 = vld [vmem:[%s5834_s1 + $0x7c8] sm:$0xff]  }
  0xb8   :  { %4166 = vmatpush3.bf16.msra.mxu0 %v4497_v42  ;;  %v4546_v42 = vld [vmem:[%s5834_s1 + $0x708] sm:$0xff]  }
  0xb9   :  { %4167 = vmatprep.subr.bf16.mxu0 %v4499_v44  ;;  %v4547_v44 = vld [vmem:[%s5834_s1 + $0x788] sm:$0xff]  }
  0xba   :  { %4188 = vmatpush3.bf16.msra.mxu1 %v4498_v43  ;;  %v4548_v43 = vld [vmem:[%s5834_s1 + $0x750] sm:$0xff]  }
  0xbb   :  { %4189 = vmatprep.subr.bf16.mxu1 %v4500_v45  ;;  %v4549_v45 = vld [vmem:[%s5834_s1 + $0x7d0] sm:$0xff]  }
  0xbc   :  { %4168 = vmatpush3.bf16.msra.mxu0 %v4501_v46  ;;  %v4550_v46 = vld [vmem:[%s5834_s1 + $0x710] sm:$0xff]  }
  0xbd   :  { %4169 = vmatprep.subr.bf16.mxu0 %v4503_v48  ;;  %v4551_v48 = vld [vmem:[%s5834_s1 + $0x790] sm:$0xff]  }
  0xbe   :  { %4190 = vmatpush3.bf16.msra.mxu1 %v4502_v47  ;;  %v4552_v47 = vld [vmem:[%s5834_s1 + $0x758] sm:$0xff]  }
  0xbf   :  { %4191 = vmatprep.subr.bf16.mxu1 %v4504_v49  ;;  %v4553_v49 = vld [vmem:[%s5834_s1 + $0x7d8] sm:$0xff]  }
  0xc0   :  { %4170 = vmatpush3.bf16.msra.mxu0 %v4505_v50  ;;  %v4554_v50 = vld [vmem:[%s5834_s1 + $0x718] sm:$0xff]  }
  0xc1   :  { %4199 = vmatprep.subr.bf16.mxu0 %v4508_v53  ;;  %v4557_v53 = vld [vmem:[%s5834_s1 + $0x7e0] sm:$0xff]  }
  0xc2   :  { %4192 = vmatpush3.bf16.msra.mxu1 %v4506_v51  ;;  %v4555_v51 = vld [vmem:[%s5834_s1 + $0x798] sm:$0xff]  }
  0xc3   :  { %2761 = vmatmul.mubr.bf16.vlgmr.msra.gmra.mrb[20].mxu0 %v692_v52  ;;  %4221 = vmatprep.subr.bf16.mxu1 %v4509_v54  ;;  %v4556_v52 = vld [vmem:[%s5834_s1 + $0x760] sm:$0xff]  }
  0xc4   :  { %4200 = vmatpush3.bf16.msra.mxu0 %v4510_v55  ;;  %2840 = vmatprep.mubr.bf16.mxu0 %v748_v25  ;;  %v4558_v54 = vld [vmem:[%s5834_s1 + $0x720] sm:$0xff]  }
  0xc5   :  { %2801 = vmatmul.mubr.bf16.vlgmr.msra.gmra.mrb[20].mxu1 %v708_v57  ;;  %4201 = vmatprep.subr.bf16.mxu0 %v4512_v58  ;;  %v4559_v55 = vld [vmem:[%s5834_s1 + $0x7a0] sm:$0xff]   ;;  %v4561_v57 = vld [vmem:[%s5834_s1 + $0x7e8] sm:$0xff]  }
  0xc6   :  { %4222 = vmatpush3.bf16.msra.mxu1 %v4511_v56  ;;  %2880 = vmatprep.mubr.bf16.mxu1 %v758_v28  ;;  %v4560_v56 = vld [vmem:[%s5834_s1 + $0x768] sm:$0xff]  }
  0xc7   :  { %4223 = vmatprep.subr.bf16.mxu1 %v4513_v59  ;;  %v4562_v58 = vld [vmem:[%s5834_s1 + $0x728] sm:$0xff]  }
  0xc8   :  { %4202 = vmatpush3.bf16.msra.mxu0 %v4514_v60  ;;  %v4563_v59 = vld [vmem:[%s5834_s1 + $0x7a8] sm:$0xff]   ;;  %v4564_v60 = vld [vmem:[%s5834_s1 + $0x770] sm:$0xff]  }
  0xc9   :  { %4203 = vmatprep.subr.bf16.mxu0 %v4516_v62  ;;  %v4565_v62 = vld [vmem:[%s5834_s1 + $0x7f0] sm:$0xff]  }
  0xca   :  { %4224 = vmatpush3.bf16.msra.mxu1 %v4515_v61  ;;  %v3611_v61 = vld [vmem:[%s5835_s2] ss:$0 sm:$0xff] }
  0xcb   :  { %4225 = vmatprep.subr.bf16.mxu1 %v4517_v63 }
  0xcc   :  { %4204 = vmatpush3.bf16.msra.mxu0 %v4518_v0  ;;  %v4566_v0 = vld [vmem:[%s5834_s1 + $0x730] sm:$0xff]  }
  0xcd   :  { %4205 = vmatprep.subr.bf16.mxu0 %v4520_v2  ;;  %v4568_v2 = vld [vmem:[%s5834_s1 + $0x778] sm:$0xff]  }
  0xce   :  { %4226 = vmatpush3.bf16.msra.mxu1 %v4519_v1 }
  0xcf   :  { %4227 = vmatprep.subr.bf16.mxu1 %v4521_v3 }
  0xd0   :  { %4206 = vmatpush3.bf16.msra.mxu0 %v4522_v4 }
  0xd1   :  { %4207 = vmatprep.subr.bf16.mxu0 %v4524_v6  ;;  %v4567_v6 = vld [vmem:[%s5834_s1 + $0x7b0] sm:$0xff]  }
  0xd2   :  { %4228 = vmatpush3.bf16.msra.mxu1 %v4523_v5 }
  0xd3   :  { %4229 = vmatprep.subr.bf16.mxu1 %v4525_v7 }
  0xd4   :  { %4208 = vmatpush3.bf16.msra.mxu0 %v4526_v8 }
  0xd5   :  { %4209 = vmatprep.subr.bf16.mxu0 %v4528_v10 }
  0xd6   :  { %4230 = vmatpush3.bf16.msra.mxu1 %v4527_v9  ;;  %v4569_v9 = vld [vmem:[%s5834_s1 + $0x7f8] sm:$0xff]  }
  0xd7   :  { %4231 = vmatprep.subr.bf16.mxu1 %v4529_v11 }
  0xd8   :  { %4210 = vmatpush3.bf16.msra.mxu0 %v4530_v12 }
  0xd9   :  { %4211 = vmatprep.subr.bf16.mxu0 %v4532_v14 }
  0xda   :  { %4232 = vmatpush3.bf16.msra.mxu1 %v4531_v13  ;;  %v4570_v13 = vld [vmem:[%s5834_s1 + $0x738] sm:$0xff]  }
  0xdb   :  { %4233 = vmatprep.subr.bf16.mxu1 %v4533_v16  ;;  %v4571_v16 = vld [vmem:[%s5834_s1 + $0x7b8] sm:$0xff]  }
  0xdc   :  { %4212 = vmatpush3.bf16.msra.mxu0 %v4534_v19 }
  0xdd   :  { %4213 = vmatprep.subr.bf16.mxu0 %v4536_v20 }
  0xde   :  { %4234 = vmatpush3.bf16.msra.mxu1 %v4535_v23 }
  0xdf   :  { %4235 = vmatprep.subr.bf16.mxu1 %v4537_v24 }
  0xe0   :  { %4214 = vmatpush3.bf16.msra.mxu0 %v4538_v27 }
  0xe1   :  { %4243 = vmatprep.subr.bf16.mxu0 %v4540_v30 }
  0xe2   :  { %4236 = vmatpush3.bf16.msra.mxu1 %v4539_v31 }
  0xe3   :  { %2841 = vmatmul.mubr.bf16.vlgmr.msra.gmra.mrb[24].mxu0 %v734_v29  ;;  %4265 = vmatprep.subr.bf16.mxu1 %v4541_v34 }
  0xe4   :  { %4244 = vmatpush3.bf16.msra.mxu0 %v4542_v35  ;;  %2920 = vmatprep.mubr.bf16.mxu0 %v755_v32 }
  0xe5   :  { %2881 = vmatmul.mubr.bf16.vlgmr.msra.gmra.mrb[24].mxu1 %v756_v36  ;;  %4245 = vmatprep.subr.bf16.mxu0 %v4544_v37 }
  0xe6   :  { %4266 = vmatpush3.bf16.msra.mxu1 %v4543_v38  ;;  %2960 = vmatprep.mubr.bf16.mxu1 %v759_v39 }
  0xe7   :  { %4267 = vmatprep.subr.bf16.mxu1 %v4545_v40 }
  0xe8   :  { %4246 = vmatpush3.bf16.msra.mxu0 %v4546_v42 }
  0xe9   :  { %4247 = vmatprep.subr.bf16.mxu0 %v4548_v43 }
  0xea   :  { %4268 = vmatpush3.bf16.msra.mxu1 %v4547_v44 }
  0xeb   :  { %4269 = vmatprep.subr.bf16.mxu1 %v4549_v45 }
  0xec   :  { %4248 = vmatpush3.bf16.msra.mxu0 %v4550_v46 }
  0xed   :  { %4249 = vmatprep.subr.bf16.mxu0 %v4552_v47 }
  0xee   :  { %4270 = vmatpush3.bf16.msra.mxu1 %v4551_v48 }
  0xef   :  { %4271 = vmatprep.subr.bf16.mxu1 %v4553_v49 }
  0xf0   :  { %4250 = vmatpush3.bf16.msra.mxu0 %v4554_v50 }
  0xf1   :  { %4251 = vmatprep.subr.bf16.mxu0 %v4556_v52 }
  0xf2   :  { %4272 = vmatpush3.bf16.msra.mxu1 %v4555_v51 }
  0xf3   :  { %4273 = vmatprep.subr.bf16.mxu1 %v4557_v53 }
  0xf4   :  { %4252 = vmatpush3.bf16.msra.mxu0 %v4558_v54 }
  0xf5   :  { %4253 = vmatprep.subr.bf16.mxu0 %v4560_v56 }
  0xf6   :  { %4274 = vmatpush3.bf16.msra.mxu1 %v4559_v55  ;;  %v3951_v63 = vpop.f32.mrb[0].mxu0 }
  0xf7   :  { %v3952_v1 = vpop.f32.mrb[1].mxu0  ;;  %4275 = vmatprep.subr.bf16.mxu1 %v4561_v57  ;;  %v3973_v3 = vpop.f32.mrb[0].mxu1 }
  0xf8   :  { %v3953_v4 = vadd.f32 %v3952_v1, %v3951_v63  ;;  %v3954_v5 = vpop.f32.mrb[2].mxu0  ;;  %4254 = vmatpush3.bf16.msra.mxu0 %v4562_v58  ;;  %v3974_v7 = vpop.f32.mrb[1].mxu1 }
  0xf9   :  { %v3955_v8 = vpop.f32.mrb[3].mxu0  ;;  %4255 = vmatprep.subr.bf16.mxu0 %v4564_v60  ;;  %v3975_v11 = vadd.f32 %v3974_v7, %v3973_v3  ;;  %v3976_v12 = vpop.f32.mrb[2].mxu1 }
  0xfa   :  { %v2363_v10 = vadd.f32 %v3953_v4, %v3611_v61  ;;  %4276 = vmatpush3.bf16.msra.mxu1 %v4563_v59  ;;  %v3977_v14 = vpop.f32.mrb[3].mxu1 }
  0xfb   :  { %4277 = vmatprep.subr.bf16.mxu1 %v4565_v62 }
  0xfc   :  { %v2403_v15 = vadd.f32 %v3975_v11, %v2363_v10  ;;  %4256 = vmatpush3.bf16.msra.mxu0 %v4566_v0 }
  0xfd   :  { %4257 = vmatprep.subr.bf16.mxu0 %v4568_v2 }
  0xfe   :  { %4278 = vmatpush3.bf16.msra.mxu1 %v4567_v6 }
  0xff   :  { %4279 = vmatprep.subr.bf16.mxu1 %v4569_v9 }
 0x100   :  { %4258 = vmatpush3.bf16.msra.mxu0 %v4570_v13 }
 0x102   :  { %4280 = vmatpush3.bf16.msra.mxu1 %v4571_v16 }
 0x103   :  { %2921 = vmatmul.mubr.bf16.vlgmr.msra.gmra.mrb[28].mxu0 %v741_v17 }
 0x105   :  { %2961 = vmatmul.mubr.bf16.vlgmr.msra.gmra.mrb[28].mxu1 %v757_v18 }
 0x106   :  { %17 = vsyncpa [#allocation5], 0  ;;  %v4573_v44 = vld [vmem:[%s5836_s3] ss:$8 sps:$4 sm:$0xff]   ;;  %v4575_v45 = vld [vmem:[%s5836_s3 + $0x4] ss:$8 sps:$4 sm:$0xff]  }
 0x107   :  { %v4578_v46 = vld [vmem:[%s5836_s3 + $0x14] ss:$8 sps:$4 sm:$0xff]   ;;  %3067 = vmatprep.subr.bf16.mxu0 %v4575_v45  ;;  %v4576_v47 = vld [vmem:[%s5836_s3 + $0x10] ss:$8 sps:$4 sm:$0xff]   ;;  %v4581_v48 = vld [vmem:[%s5836_s3 + $0x24] ss:$8 sps:$4 sm:$0xff]  }
 0x108   :  { %3068 = vmatpush1.bf16.msra.mxu0 %v4573_v44  ;;  %v4579_v49 = vld [vmem:[%s5836_s3 + $0x20] ss:$8 sps:$4 sm:$0xff]   ;;  %v4584_v50 = vld [vmem:[%s5836_s3 + $0x34] ss:$8 sps:$4 sm:$0xff]   ;;  %v4582_v51 = vld [vmem:[%s5836_s3 + $0x30] ss:$8 sps:$4 sm:$0xff]  }
 0x109   :  { %3069 = vmatprep.subr.bf16.mxu0 %v4578_v46  ;;  %v4587_v52 = vld [vmem:[%s5836_s3 + $0x44] ss:$8 sps:$4 sm:$0xff]   ;;  %v4585_v53 = vld [vmem:[%s5836_s3 + $0x40] ss:$8 sps:$4 sm:$0xff]   ;;  %v4590_v55 = vld [vmem:[%s5836_s3 + $0x54] ss:$8 sps:$4 sm:$0xff]  }
 0x10a   :  { %v4588_v57 = vld [vmem:[%s5836_s3 + $0x50] ss:$8 sps:$4 sm:$0xff]   ;;  %v4593_v2 = vld [vmem:[%s5836_s3 + $0x64] ss:$8 sps:$4 sm:$0xff]   ;;  %v4591_v4 = vld [vmem:[%s5836_s3 + $0x60] ss:$8 sps:$4 sm:$0xff]  }
 0x10b   :  { %v4596_v6 = vld [vmem:[%s5836_s3 + $0x74] ss:$8 sps:$4 sm:$0xff]   ;;  %v4594_v7 = vld [vmem:[%s5836_s3 + $0x70] ss:$8 sps:$4 sm:$0xff]   ;;  %v4710_v8 = vmov 0  }
 0x10c   :  { %3070 = vmatpush1.bf16.msra.mxu0 %v4576_v47  ;;  %3099 = vmatprep.mubr.bf16.mxu0 %v4710_v8  ;;  %v4597_v9 = vld [vmem:[%s5838_s5] ss:$8 sps:$4 sm:$0xff]   ;;  %v4599_v10 = vld [vmem:[%s5838_s5 + $0x4] ss:$8 sps:$4 sm:$0xff]   ;;  %v4602_v11 = vld [vmem:[%s5838_s5 + $0x14] ss:$8 sps:$4 sm:$0xff]  }
 0x10d   :  { %3071 = vmatprep.subr.bf16.mxu0 %v4581_v48  ;;  %3333 = vmatprep.subr.bf16.mxu1 %v4599_v10  ;;  %v4600_v12 = vld [vmem:[%s5838_s5 + $0x10] ss:$8 sps:$4 sm:$0xff]   ;;  %v4605_v13 = vld [vmem:[%s5838_s5 + $0x24] ss:$8 sps:$4 sm:$0xff]   ;;  %v4603_v14 = vld [vmem:[%s5838_s5 + $0x20] ss:$8 sps:$4 sm:$0xff]  }
 0x10e   :  { %3334 = vmatpush1.bf16.msra.mxu1 %v4597_v9  ;;  %v4606_v16 = vld [vmem:[%s5838_s5 + $0x30] ss:$8 sps:$4 sm:$0xff]   ;;  %v4611_v17 = vld [vmem:[%s5838_s5 + $0x44] ss:$8 sps:$4 sm:$0xff]   ;;  %v4609_v18 = vld [vmem:[%s5838_s5 + $0x40] ss:$8 sps:$4 sm:$0xff]  }
 0x10f   :  { %3335 = vmatprep.subr.bf16.mxu1 %v4602_v11  ;;  %v4632_v44 = vld [vmem:[%s5838_s5 + $0xb4] ss:$8 sps:$4 sm:$0xff]   ;;  %v4630_v45 = vld [vmem:[%s5838_s5 + $0xb0] ss:$8 sps:$4 sm:$0xff]   ;;  %v4635_v46 = vld [vmem:[%s5838_s5 + $0xc4] ss:$8 sps:$4 sm:$0xff]  }
 0x110   :  { %3072 = vmatpush1.bf16.msra.mxu0 %v4579_v49  ;;  %v4633_v47 = vld [vmem:[%s5838_s5 + $0xc0] ss:$8 sps:$4 sm:$0xff]   ;;  %v4638_v48 = vld [vmem:[%s5838_s5 + $0xd4] ss:$8 sps:$4 sm:$0xff]   ;;  %v4636_v49 = vld [vmem:[%s5838_s5 + $0xd0] ss:$8 sps:$4 sm:$0xff]  }
 0x111   :  { %3073 = vmatprep.subr.bf16.mxu0 %v4584_v50 }
 0x112   :  { %3336 = vmatpush1.bf16.msra.mxu1 %v4600_v12 }
 0x113   :  { %3337 = vmatprep.subr.bf16.mxu1 %v4605_v13 }
 0x114   :  { %3074 = vmatpush1.bf16.msra.mxu0 %v4582_v51 }
 0x115   :  { %3075 = vmatprep.subr.bf16.mxu0 %v4587_v52 }
 0x116   :  { %v3995_v19 = vpop.f32.mrb[4].mxu0  ;;  %3338 = vmatpush1.bf16.msra.mxu1 %v4603_v14 }
 0x117   :  { %v3996_v20 = vpop.f32.mrb[5].mxu0  ;;  %v4017_v21 = vpop.f32.mrb[4].mxu1 }
 0x118   :  { %v3997_v23 = vadd.f32 %v3996_v20, %v3995_v19  ;;  %v3998_v24 = vpop.f32.mrb[6].mxu0  ;;  %v4018_v25 = vpop.f32.mrb[5].mxu1  ;;  %3076 = vmatpush1.bf16.msra.mxu0 %v4585_v53  ;;  %v4614_v19 = vld [vmem:[%s5838_s5 + $0x54] ss:$8 sps:$4 sm:$0xff]   ;;  %v4612_v20 = vld [vmem:[%s5838_s5 + $0x50] ss:$8 sps:$4 sm:$0xff]  }
 0x119   :  { %v3999_v26 = vpop.f32.mrb[7].mxu0  ;;  %v4019_v28 = vadd.f32 %v4018_v25, %v4017_v21  ;;  %v4020_v29 = vpop.f32.mrb[6].mxu1  ;;  %3077 = vmatprep.subr.bf16.mxu0 %v4590_v55 }
 0x11a   :  { %v2443_v27 = vadd.f32 %v3997_v23, %v2403_v15  ;;  %v4021_v30 = vpop.f32.mrb[7].mxu1  ;;  %v4608_v15 = vld [vmem:[%s5838_s5 + $0x34] ss:$8 sps:$4 sm:$0xff]   ;;  %v4617_v23 = vld [vmem:[%s5838_s5 + $0x64] ss:$8 sps:$4 sm:$0xff]  }
 0x11b   :  { %3339 = vmatprep.subr.bf16.mxu1 %v4608_v15  ;;  %v4615_v30 = vld [vmem:[%s5838_s5 + $0x60] ss:$8 sps:$4 sm:$0xff]  }
 0x11c   :  { %v2483_v41 = vadd.f32 %v4019_v28, %v2443_v27  ;;  %3078 = vmatpush1.bf16.msra.mxu0 %v4588_v57  ;;  %3340 = vmatpush1.bf16.msra.mxu1 %v4606_v16 }
 0x11d   :  { %3079 = vmatprep.subr.bf16.mxu0 %v4593_v2  ;;  %3341 = vmatprep.subr.bf16.mxu1 %v4611_v17 }
 0x120   :  { %3080 = vmatpush1.bf16.msra.mxu0 %v4591_v4  ;;  %3342 = vmatpush1.bf16.msra.mxu1 %v4609_v18 }
 0x121   :  { %3081 = vmatprep.subr.bf16.mxu0 %v4596_v6  ;;  %3343 = vmatprep.subr.bf16.mxu1 %v4614_v19 }
 0x124   :  { %3082 = vmatpush1.bf16.msra.mxu0 %v4594_v7  ;;  %3344 = vmatpush1.bf16.msra.mxu1 %v4612_v20 }
 0x125   :  { %3345 = vmatprep.subr.bf16.mxu1 %v4617_v23 }
 0x128   :  { %3346 = vmatpush1.bf16.msra.mxu1 %v4615_v30  ;;  %v4646_v30 = vld [vmem:[%s5840_s7] sm:$0xff]  }
 0x136   :  { %v4039_v22 = vpop.f32.mrb[8].mxu0 }
 0x137   :  { %v4040_v31 = vpop.f32.mrb[9].mxu0 }
 0x138   :  { %v4061_v32 = vpop.f32.mrb[8].mxu1  ;;  %v4041_v34 = vadd.f32 %v4040_v31, %v4039_v22  ;;  %v4042_v35 = vpop.f32.mrb[10].mxu0 }
 0x139   :  { %v4062_v36 = vpop.f32.mrb[9].mxu1  ;;  %v4043_v37 = vpop.f32.mrb[11].mxu0 }
 0x13a   :  { %v2523_v38 = vadd.f32 %v4041_v34, %v2483_v41  ;;  %v4063_v39 = vadd.f32 %v4062_v36, %v4061_v32  ;;  %v4064_v40 = vpop.f32.mrb[10].mxu1  ;;  %v4620_v32 = vld [vmem:[%s5838_s5 + $0x74] ss:$8 sps:$4 sm:$0xff]   ;;  %v4618_v36 = vld [vmem:[%s5838_s5 + $0x70] ss:$8 sps:$4 sm:$0xff]  }
 0x13b   :  { %v4065_v42 = vpop.f32.mrb[11].mxu1  ;;  %3347 = vmatprep.subr.bf16.mxu1 %v4620_v32  ;;  %v4623_v37 = vld [vmem:[%s5838_s5 + $0x84] ss:$8 sps:$4 sm:$0xff]   ;;  %v4624_v40 = vld [vmem:[%s5838_s5 + $0x90] ss:$8 sps:$4 sm:$0xff]  }
 0x13c   :  { %v2563_v43 = vadd.f32 %v4063_v39, %v2523_v38  ;;  %3348 = vmatpush1.bf16.msra.mxu1 %v4618_v36  ;;  %v4621_v38 = vld [vmem:[%s5838_s5 + $0x80] ss:$8 sps:$4 sm:$0xff]   ;;  %v4626_v39 = vld [vmem:[%s5838_s5 + $0x94] ss:$8 sps:$4 sm:$0xff]   ;;  %v4629_v42 = vld [vmem:[%s5838_s5 + $0xa4] ss:$8 sps:$4 sm:$0xff]  }
 0x13d   :  { %3349 = vmatprep.subr.bf16.mxu1 %v4623_v37  ;;  %v4650_v32 = vld [vmem:[%s5840_s7 + $0x10] sm:$0xff]   ;;  %v4653_v36 = vld [vmem:[%s5840_s7 + $0x60] sm:$0xff]  }
 0x13e   :  { %v4654_v37 = vld [vmem:[%s5840_s7 + $0x20] sm:$0xff]  }
 0x140   :  { %3350 = vmatpush1.bf16.msra.mxu1 %v4621_v38  ;;  %v4655_v38 = vld [vmem:[%s5840_s7 + $0x68] sm:$0xff]  }
 0x141   :  { %3351 = vmatprep.subr.bf16.mxu1 %v4626_v39  ;;  %v3112_v39 = vsub.s32 0, %v4864_v33 }
 0x144   :  { %3352 = vmatpush1.bf16.msra.mxu1 %v4624_v40  ;;  %v3108_v40 = vld [vmem:[%s5837_s4] ss:$2 sm:$0x3] }
 0x145   :  { %3353 = vmatprep.subr.bf16.mxu1 %v4629_v42  ;;  %v3116_v42 = vsub.s32 1, %v4864_v33 }
 0x156   :  { %v4083_v54 = vpop.f32.mrb[12].mxu0 }
 0x157   :  { %v4084_v56 = vpop.f32.mrb[13].mxu0 }
 0x158   :  { %v4105_v58 = vpop.f32.mrb[12].mxu1  ;;  %v4085_v59 = vadd.f32 %v4084_v56, %v4083_v54  ;;  %v4086_v60 = vpop.f32.mrb[14].mxu0 }
 0x159   :  { %v4106_v61 = vpop.f32.mrb[13].mxu1  ;;  %v4087_v62 = vpop.f32.mrb[15].mxu0 }
 0x15a   :  { %v2603_v63 = vadd.f32 %v4085_v59, %v2563_v43  ;;  %v4107_v0 = vadd.f32 %v4106_v61, %v4105_v58  ;;  %v4108_v1 = vpop.f32.mrb[14].mxu1  ;;  %v4627_v43 = vld [vmem:[%s5838_s5 + $0xa0] ss:$8 sps:$4 sm:$0xff]  }
 0x15b   :  { %v4109_v3 = vpop.f32.mrb[15].mxu1  ;;  %3354 = vmatpush1.bf16.msra.mxu1 %v4627_v43  ;;  %v3884_v43 = vld [vmem:[%s5837_s4 + $0x1] ss:$2 sm:$0x3] }
 0x15c   :  { %v2643_v5 = vadd.f32 %v4107_v0, %v2603_v63  ;;  %3355 = vmatprep.subr.bf16.mxu1 %v4632_v44  ;;  %v3113_v44 = vrot.slane %v3108_v40, %v3112_v39 }
 0x15f   :  { %3356 = vmatpush1.bf16.msra.mxu1 %v4630_v45  ;;  %v3117_v45 = vrot.slane %v3108_v40, %v3116_v42 }
 0x160   :  { %3357 = vmatprep.subr.bf16.mxu1 %v4635_v46  ;;  %v3128_v46 = vrot.slane %v3884_v43, %v3112_v39 }
 0x163   :  { %3358 = vmatpush1.bf16.msra.mxu1 %v4633_v47 }
 0x164   :  { %3359 = vmatprep.subr.bf16.mxu1 %v4638_v48  ;;  %v3132_v48 = vrot.slane %v3884_v43, %v3116_v42 }
 0x167   :  { %3360 = vmatpush1.bf16.msra.mxu1 %v4636_v49 }
 0x176   :  { %v4127_v21 = vpop.f32.mrb[16].mxu0 }
 0x177   :  { %v4128_v24 = vpop.f32.mrb[17].mxu0 }
 0x178   :  { %v4149_v25 = vpop.f32.mrb[16].mxu1  ;;  %v4129_v26 = vadd.f32 %v4128_v24, %v4127_v21  ;;  %v4130_v27 = vpop.f32.mrb[18].mxu0 }
 0x179   :  { %v4150_v28 = vpop.f32.mrb[17].mxu1  ;;  %v4131_v29 = vpop.f32.mrb[19].mxu0  ;;  %v4644_v27 = vld [vmem:[%s5838_s5 + $0xf4] ss:$8 sps:$4 sm:$0xff]  }
 0x17a   :  { %v2683_v41 = vadd.f32 %v4129_v26, %v2643_v5  ;;  %v4151_v22 = vadd.f32 %v4150_v28, %v4149_v25  ;;  %v4152_v31 = vpop.f32.mrb[18].mxu1  ;;  %v4641_v25 = vld [vmem:[%s5838_s5 + $0xe4] ss:$8 sps:$4 sm:$0xff]   ;;  %v4639_v26 = vld [vmem:[%s5838_s5 + $0xe0] ss:$8 sps:$4 sm:$0xff]  }
 0x17b   :  { %v4153_v34 = vpop.f32.mrb[19].mxu1  ;;  %3361 = vmatprep.subr.bf16.mxu1 %v4641_v25  ;;  %v4642_v28 = vld [vmem:[%s5838_s5 + $0xf0] ss:$8 sps:$4 sm:$0xff]   ;;  %v4645_v29 = vld [vmem:[%s5840_s7 + $0x40] sm:$0xff]  }
 0x17c   :  { %v2723_v35 = vadd.f32 %v4151_v22, %v2683_v41  ;;  %3362 = vmatpush1.bf16.msra.mxu1 %v4639_v26  ;;  %v4647_v41 = vld [vmem:[%s5840_s7 + $0x48] sm:$0xff]   ;;  %4287 = vmatprep.subr.bf16.mxu0 %v4645_v29  ;;  %v4649_v31 = vld [vmem:[%s5840_s7 + $0x50] sm:$0xff]   ;;  %v4651_v34 = vld [vmem:[%s5840_s7 + $0x58] sm:$0xff]  }
 0x17d   :  { %3363 = vmatprep.subr.bf16.mxu1 %v4644_v27  ;;  %v4648_v22 = vld [vmem:[%s5840_s7 + $0x8] sm:$0xff]  }
 0x180   :  { %3364 = vmatpush1.bf16.msra.mxu1 %v4642_v28 }
 0x196   :  { %v4171_v50 = vpop.f32.mrb[20].mxu0 }
 0x197   :  { %v4172_v51 = vpop.f32.mrb[21].mxu0 }
 0x198   :  { %v4193_v52 = vpop.f32.mrb[20].mxu1  ;;  %v4173_v53 = vadd.f32 %v4172_v51, %v4171_v50  ;;  %v4174_v54 = vpop.f32.mrb[22].mxu0 }
 0x199   :  { %v4194_v55 = vpop.f32.mrb[21].mxu1  ;;  %v4175_v56 = vpop.f32.mrb[23].mxu0 }
 0x19a   :  { %v2763_v57 = vadd.f32 %v4173_v53, %v2723_v35  ;;  %v4195_v58 = vadd.f32 %v4194_v55, %v4193_v52  ;;  %v4196_v59 = vpop.f32.mrb[22].mxu1  ;;  %v4652_v35 = vld [vmem:[%s5840_s7 + $0x18] sm:$0xff]  }
 0x19b   :  { %v4197_v60 = vpop.f32.mrb[23].mxu1  ;;  %v4656_v59 = vld [vmem:[%s5840_s7 + $0x28] sm:$0xff]  }
 0x19c   :  { %v2803_v61 = vadd.f32 %v4195_v58, %v2763_v57  ;;  %v4657_v60 = vld [vmem:[%s5840_s7 + $0x70] sm:$0xff]  }
 0x1b6   :  { %v4215_v62 = vpop.f32.mrb[24].mxu0 }
 0x1b7   :  { %v4216_v63 = vpop.f32.mrb[25].mxu0 }
 0x1b8   :  { %v4237_v0 = vpop.f32.mrb[24].mxu1  ;;  %v4217_v1 = vadd.f32 %v4216_v63, %v4215_v62  ;;  %v4218_v2 = vpop.f32.mrb[26].mxu0  ;;  %v4659_v62 = vld [vmem:[%s5840_s7 + $0x78] sm:$0xff]  }
 0x1b9   :  { %v4238_v3 = vpop.f32.mrb[25].mxu1  ;;  %v4219_v4 = vpop.f32.mrb[27].mxu0  ;;  %v4660_v63 = vld [vmem:[%s5840_s7 + $0x38] sm:$0xff]  }
 0x1ba   :  { %v2843_v5 = vadd.f32 %v4217_v1, %v2803_v61  ;;  %v4239_v6 = vadd.f32 %v4238_v3, %v4237_v0  ;;  %v4240_v7 = vpop.f32.mrb[26].mxu1  ;;  %v4658_v61 = vld [vmem:[%s5840_s7 + $0x30] sm:$0xff]   ;;  %v3374_v0 = vld [vmem:[%s5839_s6] ss:$2 sm:$0x3]  ;;  %s4711_s7 = smov [#allocation2]  }
 0x1bb   :  { %v4241_v8 = vpop.f32.mrb[27].mxu1  ;;  %v3917_v1 = vld [vmem:[%s5839_s6 + $0x1] ss:$2 sm:$0x3]  ;;  %v3379_v2 = vrot.slane %v3374_v0, %v3112_v39  ;;  %v3383_v3 = vrot.slane %v3374_v0, %v3116_v42  ;;  %s3589_s6 = sshll.u32 %s4711_s7, 4  ;;  %s3590_s6 = int_to_ptr.vmem [resolvable:$true] %s3589_s6 }
 0x1bc   :  { %v2883_v9 = vadd.f32 %v4239_v6, %v2843_v5  ;;  %v3394_v4 = vrot.slane %v3917_v1, %v3112_v39  ;;  %v3398_v6 = vrot.slane %v3917_v1, %v3116_v42  ;;  %s4661_s22 = scalar_lea.vmem %s3590_s6, 32  ;;  %p4666_p1 = scmp.lt.s32.totalorder %s3590_s6, %s3590_s6 }
 0x1bd   :  { %p4662_p0 = scmp.ne.s32.totalorder %s3590_s6, %s4661_s22  ;;  %p4667_p2 = scmp.lt.s32.totalorder %s4661_s22, %s4661_s22 }
 0x1bf   :  { %p4668_p3 = por %p4667_p2, %p4666_p1 }
 0x1c1   :  { %p4669_p4 = pnand %p4668_p3, %p4662_p0 }
 0x1d6   :  { %v4259_v10 = vpop.f32.mrb[28].mxu0 }
 0x1d7   :  { %v4260_v11 = vpop.f32.mrb[29].mxu0 }
 0x1d8   :  { %v4281_v12 = vpop.f32.mrb[28].mxu1  ;;  %v4261_v13 = vadd.f32 %v4260_v11, %v4259_v10  ;;  %v4262_v14 = vpop.f32.mrb[30].mxu0 }
 0x1d9   :  { %v4282_v15 = vpop.f32.mrb[29].mxu1  ;;  %v4263_v16 = vpop.f32.mrb[31].mxu0 }
 0x1da   :  { %v2923_v17 = vadd.f32 %v4261_v13, %v2883_v9  ;;  %v4283_v18 = vadd.f32 %v4282_v15, %v4281_v12  ;;  %v4284_v19 = vpop.f32.mrb[30].mxu1 }
 0x1db   :  { %v4285_v20 = vpop.f32.mrb[31].mxu1 }
 0x1dc   :  { %v2963_v21 = vadd.f32 %v4283_v18, %v2923_v17 }
 0x1de   :  { %v2968_v23 = vmax.f32 %v2963_v21, 0.0 }
 0x1e0   :  { %v2970_v24 = vpack.c.bf16 %v2968_v23, %v2968_v23  ;;  %2969 = vst [vmem:[#allocation2] sm:$0x3] %v2968_v23 }
 0x1e2   :  { %3100 = vmatmul.mubr.bf16.vlgmr.msra.gmra.mrb[32].mxu0 %v2970_v24 }
 0x1e3   :  { %4288 = vmatpush3.bf16.msra.mxu0 %v4646_v30 }
 0x1e4   :  { %4289 = vmatprep.subr.bf16.mxu0 %v4647_v41 }
 0x1e7   :  { %4290 = vmatpush3.bf16.msra.mxu0 %v4648_v22 }
 0x1e8   :  { %4291 = vmatprep.subr.bf16.mxu0 %v4649_v31 }
 0x1eb   :  { %4292 = vmatpush3.bf16.msra.mxu0 %v4650_v32 }
 0x1ec   :  { %4293 = vmatprep.subr.bf16.mxu0 %v4651_v34 }
 0x1ef   :  { %4294 = vmatpush3.bf16.msra.mxu0 %v4652_v35 }
 0x1f0   :  { %4295 = vmatprep.subr.bf16.mxu0 %v4653_v36 }
 0x1f3   :  { %4296 = vmatpush3.bf16.msra.mxu0 %v4654_v37 }
 0x1f4   :  { %4297 = vmatprep.subr.bf16.mxu0 %v4655_v38 }
 0x1f7   :  { %4298 = vmatpush3.bf16.msra.mxu0 %v4656_v59 }
 0x1f8   :  { %4299 = vmatprep.subr.bf16.mxu0 %v4657_v60 }
 0x1fb   :  { %4300 = vmatpush3.bf16.msra.mxu0 %v4658_v61 }
 0x1fc   :  { %4301 = vmatprep.subr.bf16.mxu0 %v4659_v62 }
 0x1ff   :  { %4302 = vmatpush3.bf16.msra.mxu0 %v4660_v63 }
 0x2b5   :  { %v3101_v47 = vpop.f32.mrb[32].mxu0 }
 0x2b6   :  { %v3120_v49 = vmul.f32 %v3113_v44, %v3101_v47  ;;  %v3103_v50 = vpop.f32.mrb[33].mxu0 }
 0x2b7   :  { %v3121_v51 = vmul.f32 %v3117_v45, %v3103_v50  ;;  %v3105_v52 = vpop.f32.mrb[34].mxu0 }
 0x2b8   :  { %v3135_v53 = vadd.f32 %v3128_v46, %v3120_v49  ;;  %v3106_v54 = vpop.f32.mrb[35].mxu0 }
 0x2b9   :  { %v3136_v55 = vadd.f32 %v3132_v48, %v3121_v51 }
 0x2ba   :  { %v3137_v56 = vmax.f32 %v3135_v53, 0.0 }
 0x2bb   :  { %v3138_v57 = vmax.f32 %v3136_v55, 0.0 }
 0x2bc   :  { %v3139_v33 = vpack.c.bf16 %v3137_v56, %v3137_v56 }
 0x2bd   :  { %v3140_v58 = vpack.c.bf16 %v3138_v57, %v3138_v57 }
 0x2bf   :  { %3365 = vmatprep.mubr.bf16.mxu1 %v3140_v58 }
 0x2c0   :  { %3366 = vmatmul.mubr.bf16.vlgmr.msra.gmra.mrb[32].mxu1 %v3139_v33 }
 0x393   :  { %v3367_v5 = vpop.f32.mrb[32].mxu1 }
 0x394   :  { %v3386_v7 = vmul.f32 %v3379_v2, %v3367_v5  ;;  %v3369_v8 = vpop.f32.mrb[33].mxu1 }
 0x395   :  { %v3387_v9 = vmul.f32 %v3383_v3, %v3369_v8  ;;  %v3371_v10 = vpop.f32.mrb[34].mxu1 }
 0x396   :  { %v3401_v11 = vadd.f32 %v3394_v4, %v3386_v7  ;;  %v3372_v12 = vpop.f32.mrb[35].mxu1 }
 0x397   :  { %v3402_v13 = vadd.f32 %v3398_v6, %v3387_v9 }
 0x398   :  { %v3403_v14 = vmax.f32 %v3401_v11, 0.0 }
 0x399   :  { %v3404_v15 = vmax.f32 %v3402_v13, 0.0 }
 0x39a   :  { %v3405_v17 = vpack.c.bf16 %v3403_v14, %v3403_v14 }
 0x39b   :  { %v3406_v16 = vpack.c.bf16 %v3404_v15, %v3404_v15 }
 0x39d   :  { %3574 = vmatprep.mubr.bf16.mxu0 %v3406_v16 }
 0x39e   :  { %3575 = vmatmul.mubr.bf16.vlgmr.msra.gmra.mrb[36].mxu0 %v3405_v17 }
 0x39f   :  { %4672 = shalt.err (!%p4669_p4)
}
 0x3a0   :  { %s4673_s23 = scalar_lea.hbm %s5842_s9, 32 }
 0x3a1   :  { %p4674_p5 = scmp.ne.s32.totalorder %s5842_s9, %s4673_s23  ;;  %p4677_p6 = scmp.lt.u32.totalorder %s4673_s23, %s5842_s9 }
 0x3a3   :  { %p4679_p7 = pnand %p4677_p6, %p4674_p5 }
 0x3a5   :  { %4682 = shalt.err (!%p4679_p7)
}
 0x3a6   :  { %3592 = dma.vmem_to_hbm [thread:$0]  %s3590_s6, 32, %s5842_s9, [#allocation3]   ;;  %v3918_v20 = vld [vmem:[%s5841_s8] ss:$0 sm:$0xff] }
 0x3a7   :  { %s4712_s11 = smov [#allocation4]  }
 0x3a8   :  { %s3599_s4 = sshll.u32 %s4712_s11, 4  ;;  %s3600_s4 = int_to_ptr.vmem [resolvable:$true] %s3599_s4 }
 0x3a9   :  { %s4683_s12 = scalar_lea.vmem %s3600_s4, 32  ;;  %p4688_p9 = scmp.lt.s32.totalorder %s3600_s4, %s3600_s4 }
 0x3aa   :  { %p4684_p8 = scmp.ne.s32.totalorder %s3600_s4, %s4683_s12  ;;  %p4689_p10 = scmp.lt.s32.totalorder %s4683_s12, %s4683_s12 }
 0x3ac   :  { %p4690_p11 = por %p4689_p10, %p4688_p9 }
 0x3ae   :  { %p4691_p12 = pnand %p4690_p11, %p4684_p8 }
 0x471   :  { %v4303_v18 = vpop.f32.mrb[36].mxu0 }
 0x472   :  { %v4304_v19 = vpop.f32.mrb[37].mxu0 }
 0x473   :  { %v4305_v21 = vadd.f32 %v4304_v19, %v4303_v18  ;;  %v4306_v23 = vpop.f32.mrb[38].mxu0 }
 0x474   :  { %v4307_v24 = vpop.f32.mrb[39].mxu0 }
 0x475   :  { %v3577_v25 = vadd.f32 %v4305_v21, %v3918_v20 }
 0x477   :  { %3582 = vst [vmem:[#allocation4] sm:$0x3] %v3577_v25 }
 0x478   :  { %4694 = shalt.err (!%p4691_p12)
}
 0x479   :  { %s4695_s14 = scalar_lea.hbm %s5843_s10, 32 }
 0x47a   :  { %p4696_p13 = scmp.ne.s32.totalorder %s5843_s10, %s4695_s14  ;;  %p4699_p0 = scmp.lt.u32.totalorder %s4695_s14, %s5843_s10 }
 0x47c   :  { %p4701_p1 = pnand %p4699_p0, %p4696_p13 }
 0x47e   :  { %4704 = shalt.err (!%p4701_p1)
}
 0x47f   :  { %3602 = dma.vmem_to_hbm [thread:$0]  %s3600_s4, 32, %s5843_s10, [#allocation5]  }
 0x480   :  { %4705 = dma.done.wait [#allocation3], 32  }
 0x481   :  { %4706 = vsyncadd [#allocation3], 4294967264 }
 0x482   :  { %4707 = dma.done.wait [#allocation5], 32  }
 0x483   :  { %4708 = vsyncadd [#allocation5], 4294967264 }
 0x484   :  { %3609 = vsyncpa [#allocation3], 1 }
 0x485   :  { %3610 = vsyncpa [#allocation5], 1 }

</bundles_post_ra>
